<compile_context>
chip_gen: v6e
topology: v6e:2x2x1
jax: 0.10.0
libtpu: 0.0.40
codegen_flags: <defaults>
</compile_context>

<pallas_src>
import numpy as np

import jax
import jax.numpy as jnp
from jax import lax
from jax.experimental import pallas as pl
from jax.experimental.pallas import tpu as pltpu


# ----------------------------------------------------------------------------
# Pallas kernels
# ----------------------------------------------------------------------------
def _spatial_offset_kernel(sp_ref, cols_ref, wy_ref, wx_ref, by_ref, bx_ref,
                           basey_ref, basex_ref, py_ref, px_ref):
    """Fused SpatialAttention(2) + 3x3 offset conv (2 -> 18).

    cols_ref: [2, 9, HW] zero-padded 3x3 windows of the *raw* resized flow.
    Attention is elementwise, so scaling the windowed flow == windowing the
    scaled flow.  The conv is two [9,9]@[9,HW] matmuls per output half; the
    base sampling grid is folded in so outputs are directly the deformable
    sample coordinates py/px, each [9, HW] (lane dense).
    """
    c0 = cols_ref[0]                                            # [9, HW]
    c1 = cols_ref[1]                                            # [9, HW]
    a = jnp.maximum(sp_ref[0] * c0 + sp_ref[1] * c1 + sp_ref[2], 0.0)
    attn = jax.nn.sigmoid(sp_ref[3] * a + sp_ref[4])
    s0 = c0 * attn
    s1 = c1 * attn
    py_ref[...] = (jnp.dot(wy_ref[0], s0, preferred_element_type=jnp.float32)
                   + jnp.dot(wy_ref[1], s1, preferred_element_type=jnp.float32)
                   + by_ref[...] + basey_ref[...])
    px_ref[...] = (jnp.dot(wx_ref[0], s0, preferred_element_type=jnp.float32)
                   + jnp.dot(wx_ref[1], s1, preferred_element_type=jnp.float32)
                   + bx_ref[...] + basex_ref[...])


def make_deform_ca_kernel(H, W):
    """Fused deformable conv (C->C, 3x3, zero pad, no bias) + ChannelAttention.

    grid = (bn, 9):   bn  -> "parallel" (megacore shardable)
                      tap -> "arbitrary" accumulation into a VMEM scratch.
    The bilinear gather is expressed as a one-hot interpolation matrix
    M[q, p] (source pixel q -> output pixel p) built with broadcasted_iota
    compares and applied on the MXU:  cols = feat[C,HW] @ M[HW,HW].
    Channel attention (pool + 2-layer MLP + sigmoid + per-channel scale) is
    applied to the accumulator while it is still in VMEM at the last tap.
    """
    HW = H * W

    def kernel(py_ref, px_ref, feat_ref, wk_ref, w1_ref, b1_ref, w2_ref, b2_ref,
               out_ref, acc_ref):
        k = pl.program_id(1)

        @pl.when(k == 0)
        def _():
            acc_ref[...] = jnp.zeros_like(acc_ref)

        feat = feat_ref[0]                                      # [C, HW]
        yk = py_ref[0]                                          # [1, HW]
        xk = px_ref[0]                                          # [1, HW]
        y0 = jnp.floor(yk)
        x0 = jnp.floor(xk)
        wy1 = yk - y0
        wx1 = xk - x0
        wy0 = 1.0 - wy1
        wx0 = 1.0 - wx1

        # q index (source pixel) along rows; output pixel p along lanes.
        q_iota = lax.broadcasted_iota(jnp.int32, (HW, HW), 0)
        m = jnp.zeros((HW, HW), jnp.float32)
        for cy, cx, wgt in ((y0, x0, wy0 * wx0),
                            (y0, x0 + 1.0, wy0 * wx1),
                            (y0 + 1.0, x0, wy1 * wx0),
                            (y0 + 1.0, x0 + 1.0, wy1 * wx1)):
            valid = ((cy >= 0.0) & (cy <= H - 1.0)
                     & (cx >= 0.0) & (cx <= W - 1.0))
            idx = (jnp.clip(cy, 0.0, H - 1.0).astype(jnp.int32) * W
                   + jnp.clip(cx, 0.0, W - 1.0).astype(jnp.int32))   # [1, HW]
            wv = jnp.where(valid, wgt, 0.0)                          # [1, HW]
            m = m + jnp.where(q_iota == idx, wv, 0.0)                # [HW, HW]

        cols = jnp.dot(feat, m, preferred_element_type=jnp.float32)  # [C, HW]
        acc_ref[...] += jnp.dot(wk_ref[0], cols,
                                preferred_element_type=jnp.float32)

        @pl.when(k == pl.num_programs(1) - 1)
        def _():
            acc = acc_ref[...]                                       # [C, HW]
            pool = jnp.mean(acc, axis=1, keepdims=True)              # [C, 1]
            z = jnp.maximum(
                jnp.dot(w1_ref[...], pool,
                        preferred_element_type=jnp.float32) + b1_ref[...],
                0.0)                                                 # [C//2, 1]
            attn = jax.nn.sigmoid(
                jnp.dot(w2_ref[...], z,
                        preferred_element_type=jnp.float32) + b2_ref[...])
            out_ref[0] = acc * attn                                  # lane-dense

    return kernel


def _fb_consistency_kernel(fwd_ref, bwd_ref, wbwd_ref, mask_ref):
    # Forward/backward consistency (unimatch-style, alpha=0.01, beta=0.5).
    # Operands are [2, 1, Hf*Wf] (lane dense); squared-distance compare avoids
    # two of the four sqrts (threshold >= 0.5 > 0 so squaring is monotone).
    f0, f1 = fwd_ref[0], fwd_ref[1]
    b0, b1 = bwd_ref[0], bwd_ref[1]
    wb0, wb1 = wbwd_ref[0], wbwd_ref[1]
    mag = jnp.sqrt(f0 * f0 + f1 * f1) + jnp.sqrt(b0 * b0 + b1 * b1)
    diff2 = (f0 + wb0) * (f0 + wb0) + (f1 + wb1) * (f1 + wb1)
    thr = 0.01 * mag + 0.5
    mask_ref[...] = (diff2 > thr * thr).astype(jnp.float32)


# ----------------------------------------------------------------------------
# JAX glue (static-index resizes, small flow warp, reshapes)
# ----------------------------------------------------------------------------
def _src_idx(out_size, in_size):
    # PyTorch F.interpolate(mode='bilinear', align_corners=False) source coords
    # (computed with numpy -> constant indices, no dynamic gather indices).
    scale = in_size / out_size
    src = (np.arange(out_size, dtype=np.float64) + 0.5) * scale - 0.5
    src = np.maximum(src, 0.0)
    lo = np.minimum(np.floor(src).astype(np.int32), in_size - 1)
    hi = np.minimum(lo + 1, in_size - 1)
    w = np.clip(src - lo, 0.0, 1.0).astype(np.float32)
    return lo, hi, w


def resize_optical_flow_nhwc(flow_nhwc, target_size):
    # flow_nhwc: [1, Hf, Wf, 2] -> [1, H, W, 2]  (bilinear, align_corners=False)
    _, hin, win, _ = flow_nhwc.shape
    hout, wout = target_size
    lo_y, hi_y, wy = _src_idx(hout, hin)
    lo_x, hi_x, wx = _src_idx(wout, win)
    wy = jnp.asarray(wy)
    wx = jnp.asarray(wx)
    x = flow_nhwc[0]
    rows = x[lo_y] * (1.0 - wy)[:, None, None] + x[hi_y] * wy[:, None, None]
    out = (rows[:, lo_x] * (1.0 - wx)[None, :, None]
           + rows[:, hi_x] * wx[None, :, None])
    return out[None]


def nearest_resize_2d(x, size):
    # F.interpolate(mode='nearest') with constant (numpy) index maps.
    h, w = x.shape
    oh, ow = size
    iy = np.clip(np.floor(np.arange(oh) * (h / oh)).astype(np.int32), 0, h - 1)
    ix = np.clip(np.floor(np.arange(ow) * (w / ow)).astype(np.int32), 0, w - 1)
    return x[iy][:, ix]


def bilinear_sample(feat, py, px):
    # feat: [C, H, W]; py/px sample coords; zero outside.  Only used for the
    # small flow-resolution warp in the consistency check.
    c, h, w = feat.shape
    py = py.reshape(-1)
    px = px.reshape(-1)
    y0 = jnp.floor(py)
    x0 = jnp.floor(px)
    feat_flat = feat.reshape(c, h * w)

    def corner(yi, xi):
        valid = (yi >= 0) & (yi <= h - 1) & (xi >= 0) & (xi <= w - 1)
        yc = jnp.clip(yi, 0, h - 1).astype(jnp.int32)
        xc = jnp.clip(xi, 0, w - 1).astype(jnp.int32)
        v = feat_flat[:, yc * w + xc]
        return v * valid.astype(feat.dtype)[None, :]

    wy1 = py - y0
    wy0 = 1.0 - wy1
    wx1 = px - x0
    wx0 = 1.0 - wx1
    out = (corner(y0, x0) * (wy0 * wx0)[None]
           + corner(y0, x0 + 1.0) * (wy0 * wx1)[None]
           + corner(y0 + 1.0, x0) * (wy1 * wx0)[None]
           + corner(y0 + 1.0, x0 + 1.0) * (wy1 * wx1)[None])
    return out  # [C, N]


def flow_warp(feat, flow):
    # feat, flow: [2, H, W]; flow[0]=dx, flow[1]=dy
    # TODO(synk): small XLA gather kept here (flow-resolution only); the big
    # deformable-conv gather is handled on the MXU inside the Pallas kernel.
    _, h, w = feat.shape
    ys, xs = jnp.meshgrid(jnp.arange(h, dtype=jnp.float32),
                          jnp.arange(w, dtype=jnp.float32), indexing="ij")
    v = bilinear_sample(feat, ys + flow[1], xs + flow[0])
    return v.reshape(2, h, w)


# ----------------------------------------------------------------------------
# Parameter init (deterministic, synthetic)
# ----------------------------------------------------------------------------
def init_params(key, C):
    ks = jax.random.split(key, 9)
    # SpatialAttention(2): conv1 (1,2,1,1)+b1, conv2 (1,1,1,1)+b2 -> 5 scalars
    sa_w1 = jax.random.normal(ks[0], (2,), jnp.float32) * 0.5
    sa_w2 = jax.random.normal(ks[1], (1,), jnp.float32) * 0.5
    spatial = jnp.array([sa_w1[0], sa_w1[1], 0.05, sa_w2[0], -0.05], jnp.float32)
    # ChannelAttention(C): fc1 [C//2, C], fc2 [C, C//2]  (column-vector form)
    ca_w1 = jax.random.normal(ks[2], (C // 2, C), jnp.float32) / jnp.sqrt(C)
    ca_b1 = jax.random.normal(ks[3], (C // 2,), jnp.float32) * 0.05
    ca_w2 = jax.random.normal(ks[4], (C, C // 2), jnp.float32) / jnp.sqrt(C // 2)
    ca_b2 = jax.random.normal(ks[5], (C,), jnp.float32) * 0.05
    # FeatureWarping: offset_conv Conv2d(2, 18, 3, pad=1) + bias
    off_w = jax.random.normal(ks[6], (18, 2, 3, 3), jnp.float32) * 0.2
    off_b = jax.random.normal(ks[7], (18,), jnp.float32) * 0.05
    # DeformConv2d(C, C, 3, pad=1, bias=False)
    def_w = jax.random.normal(ks[8], (C, C, 3, 3), jnp.float32) / jnp.sqrt(9.0 * C)

    # Repack for the fused kernels (torchvision offset ordering: 2k=dy, 2k+1=dx).
    wy = jnp.transpose(off_w[0::2].reshape(9, 2, 9), (1, 0, 2))   # [2, 9out, 9in]
    wx = jnp.transpose(off_w[1::2].reshape(9, 2, 9), (1, 0, 2))
    return {
        "spatial": spatial,
        "ca_w1": ca_w1, "ca_b1": ca_b1.reshape(C // 2, 1),
        "ca_w2": ca_w2, "ca_b2": ca_b2.reshape(C, 1),
        "off_wy": wy, "off_wx": wx,
        "off_by": off_b[0::2].reshape(9, 1),
        "off_bx": off_b[1::2].reshape(9, 1),
        # def_wk[k, cout, cin] = def_w[cout, cin, kh, kw],  k = kh*3 + kw
        "def_wk": jnp.transpose(def_w, (2, 3, 0, 1)).reshape(9, C, C),
    }


# ----------------------------------------------------------------------------
# Forward pass (== OpticalFlowAlignmentWithAttention.forward)
# ----------------------------------------------------------------------------
def optical_flow_alignment_forward(params, image_0, flow):
    # image_0: [B, N, C, H, W] or [B*N, C, H, W];  flow: [2, 1, Hf, Wf, 2]
    if image_0.ndim == 5:
        b, n, c, h, w = image_0.shape
        image_0 = image_0.reshape(b * n, c, h, w)
    bn, C, H, W = image_0.shape
    HW = H * W

    # --- resize flow[0] to feature resolution (bilinear, align_corners=False) ---
    flow_resized = resize_optical_flow_nhwc(flow[0], (H, W))         # [1, H, W, 2]
    flow_chw = jnp.transpose(flow_resized[0], (2, 0, 1))             # [2, H, W]

    # --- zero-padded 3x3 windows of the raw flow (layout plumbing only) ---
    flow_pad = jnp.pad(flow_chw, ((0, 0), (1, 1), (1, 1)))
    cols = jnp.stack(
        [flow_pad[:, kh:kh + H, kw:kw + W].reshape(2, HW)
         for kh in range(3) for kw in range(3)], axis=1)             # [2, 9, HW]

    # --- base sampling grid + per-tap kernel shifts (static constants) ---
    pix = np.arange(HW, dtype=np.int64)
    ys = (pix // W).astype(np.float32)
    xs = (pix % W).astype(np.float32)
    dky = np.repeat(np.arange(3, dtype=np.float32) - 1.0, 3)
    dkx = np.tile(np.arange(3, dtype=np.float32) - 1.0, 3)
    base_y = jnp.asarray(ys[None, :] + dky[:, None])                 # [9, HW]
    base_x = jnp.asarray(xs[None, :] + dkx[:, None])                 # [9, HW]

    # --- fused spatial attention + offset conv -> sample coords [9, HW] ---
    vmem = pl.BlockSpec(memory_space=pltpu.MemorySpace.VMEM)
    py, px = pl.pallas_call(
        _spatial_offset_kernel,
        out_shape=(jax.ShapeDtypeStruct((9, HW), jnp.float32),
                   jax.ShapeDtypeStruct((9, HW), jnp.float32)),
        in_specs=[
            pl.BlockSpec(memory_space=pltpu.MemorySpace.SMEM),   # 5 SA scalars
            vmem, vmem, vmem, vmem, vmem, vmem, vmem,
        ],
        out_specs=(vmem, vmem),
    )(params["spatial"], cols, params["off_wy"], params["off_wx"],
      params["off_by"], params["off_bx"], base_y, base_x)

    # --- fused deformable conv + channel attention (bn parallel, 9 taps acc) ---
    # Offsets come from a batch-1 flow (as in the reference) and are shared
    # across bn.  Output is emitted lane-dense as [bn, C, HW].
    feat = image_0.reshape(bn, C, HW).astype(jnp.float32)
    deform_kernel = make_deform_ca_kernel(H, W)
    warped = pl.pallas_call(
        deform_kernel,
        out_shape=jax.ShapeDtypeStruct((bn, C, HW), jnp.float32),
        grid=(bn, 9),
        in_specs=[
            pl.BlockSpec((1, 1, HW), lambda bi, k: (k, 0, 0)),       # py
            pl.BlockSpec((1, 1, HW), lambda bi, k: (k, 0, 0)),       # px
            pl.BlockSpec((1, C, HW), lambda bi, k: (bi, 0, 0)),      # feat
            pl.BlockSpec((1, C, C), lambda bi, k: (k, 0, 0)),        # def weights
            pl.BlockSpec((C // 2, C), lambda bi, k: (0, 0)),         # ca fc1 W
            pl.BlockSpec((C // 2, 1), lambda bi, k: (0, 0)),         # ca fc1 b
            pl.BlockSpec((C, C // 2), lambda bi, k: (0, 0)),         # ca fc2 W
            pl.BlockSpec((C, 1), lambda bi, k: (0, 0)),              # ca fc2 b
        ],
        out_specs=pl.BlockSpec((1, C, HW), lambda bi, k: (bi, 0, 0)),
        scratch_shapes=[pltpu.VMEM((C, HW), jnp.float32)],
        compiler_params=pltpu.CompilerParams(
            dimension_semantics=("parallel", "arbitrary")),
    )(py.reshape(9, 1, HW), px.reshape(9, 1, HW), feat,
      params["def_wk"], params["ca_w1"], params["ca_b1"],
      params["ca_w2"], params["ca_b2"])
    warped_image = warped.reshape(bn, C, H, W)

    # --- forward/backward consistency mask (only mask_f is used/returned) ---
    # TODO(synk): forward_backward_consistency_check source was not provided;
    # standard unimatch-style check (alpha=0.01, beta=0.5) is implemented.
    fwd = jnp.transpose(flow[0][0], (2, 0, 1))                       # [2, Hf, Wf]
    bwd = jnp.transpose(flow[1][0], (2, 0, 1))
    warped_bwd = flow_warp(bwd, fwd)
    Hf, Wf = fwd.shape[1], fwd.shape[2]
    Nf = Hf * Wf
    mask_f = pl.pallas_call(
        _fb_consistency_kernel,
        out_shape=jax.ShapeDtypeStruct((1, Nf), jnp.float32),
    )(fwd.reshape(2, 1, Nf), bwd.reshape(2, 1, Nf), warped_bwd.reshape(2, 1, Nf))
    mask_f = nearest_resize_2d(mask_f.reshape(Hf, Wf), (48, 160))[None]

    return warped_image, mask_f


# ----------------------------------------------------------------------------
if __name__ == "__main__":
    key = jax.random.PRNGKey(0)
    k_img, k_flow, k_par = jax.random.split(key, 3)

    C, H, W = 16, 16, 32           # feature channels / feature-map size (small)
    Hf, Wf = 24, 48                # optical-flow resolution

    image_0 = jax.random.normal(k_img, (1, 1, C, H, W), jnp.float32)
    flow = jax.random.normal(k_flow, (2, 1, Hf, Wf, 2), jnp.float32) * 3.0

    params = init_params(k_par, C)

    fwd_fn = jax.jit(lambda img, fl: optical_flow_alignment_forward(params, img, fl))
    warped_image, mask_f = fwd_fn(image_0, flow)
    jax.block_until_ready((warped_image, mask_f))

    assert warped_image.shape == (1, C, H, W)
    assert mask_f.shape == (1, 48, 160)
    assert bool(jnp.all(jnp.isfinite(warped_image)))
    print("KERNEL_OK")
</pallas_src>

<mosaic_0001>
module attributes {stable_mosaic.version = 11 : i64} {
  func.func @_fb_consistency_kernel(%arg0: memref<2x1x1152xf32, #tpu.memory_space<vmem>>, %arg1: memref<2x1x1152xf32, #tpu.memory_space<vmem>>, %arg2: memref<2x1x1152xf32, #tpu.memory_space<vmem>>, %arg3: memref<1x1152xf32, #tpu.memory_space<vmem>>) attributes {dimension_semantics = [], scalar_prefetch = 0 : i64, scratch_operands = 0 : i64, tpu.core_type = #tpu.core_type<tc>} {
    %c0 = arith.constant 0 : index
    %c0_0 = arith.constant 0 : index
    %c0_1 = arith.constant 0 : index
    %0 = vector.load %arg0[%c0, %c0_0, %c0_1] : memref<2x1x1152xf32, #tpu.memory_space<vmem>>, vector<1x1x1152xf32>
    %1 = vector.shape_cast %0 : vector<1x1x1152xf32> to vector<1x1152xf32>
    %c1 = arith.constant 1 : index
    %c0_2 = arith.constant 0 : index
    %c0_3 = arith.constant 0 : index
    %2 = vector.load %arg0[%c1, %c0_2, %c0_3] : memref<2x1x1152xf32, #tpu.memory_space<vmem>>, vector<1x1x1152xf32>
    %3 = vector.shape_cast %2 : vector<1x1x1152xf32> to vector<1x1152xf32>
    %c0_4 = arith.constant 0 : index
    %c0_5 = arith.constant 0 : index
    %c0_6 = arith.constant 0 : index
    %4 = vector.load %arg1[%c0_4, %c0_5, %c0_6] : memref<2x1x1152xf32, #tpu.memory_space<vmem>>, vector<1x1x1152xf32>
    %5 = vector.shape_cast %4 : vector<1x1x1152xf32> to vector<1x1152xf32>
    %c1_7 = arith.constant 1 : index
    %c0_8 = arith.constant 0 : index
    %c0_9 = arith.constant 0 : index
    %6 = vector.load %arg1[%c1_7, %c0_8, %c0_9] : memref<2x1x1152xf32, #tpu.memory_space<vmem>>, vector<1x1x1152xf32>
    %7 = vector.shape_cast %6 : vector<1x1x1152xf32> to vector<1x1152xf32>
    %c0_10 = arith.constant 0 : index
    %c0_11 = arith.constant 0 : index
    %c0_12 = arith.constant 0 : index
    %8 = vector.load %arg2[%c0_10, %c0_11, %c0_12] : memref<2x1x1152xf32, #tpu.memory_space<vmem>>, vector<1x1x1152xf32>
    %9 = vector.shape_cast %8 : vector<1x1x1152xf32> to vector<1x1152xf32>
    %c1_13 = arith.constant 1 : index
    %c0_14 = arith.constant 0 : index
    %c0_15 = arith.constant 0 : index
    %10 = vector.load %arg2[%c1_13, %c0_14, %c0_15] : memref<2x1x1152xf32, #tpu.memory_space<vmem>>, vector<1x1x1152xf32>
    %11 = vector.shape_cast %10 : vector<1x1x1152xf32> to vector<1x1152xf32>
    %12 = arith.mulf %1, %1 : vector<1x1152xf32>
    %13 = arith.mulf %3, %3 : vector<1x1152xf32>
    %14 = arith.addf %12, %13 : vector<1x1152xf32>
    %15 = math.sqrt %14 : vector<1x1152xf32>
    %16 = arith.mulf %5, %5 : vector<1x1152xf32>
    %17 = arith.mulf %7, %7 : vector<1x1152xf32>
    %18 = arith.addf %16, %17 : vector<1x1152xf32>
    %19 = math.sqrt %18 : vector<1x1152xf32>
    %20 = arith.addf %15, %19 : vector<1x1152xf32>
    %21 = arith.addf %1, %9 : vector<1x1152xf32>
    %22 = arith.addf %1, %9 : vector<1x1152xf32>
    %23 = arith.mulf %21, %22 : vector<1x1152xf32>
    %24 = arith.addf %3, %11 : vector<1x1152xf32>
    %25 = arith.addf %3, %11 : vector<1x1152xf32>
    %26 = arith.mulf %24, %25 : vector<1x1152xf32>
    %27 = arith.addf %23, %26 : vector<1x1152xf32>
    %cst = arith.constant 0.00999999977 : f32
    %28 = vector.broadcast %cst : f32 to vector<1x1152xf32>
    %29 = arith.mulf %28, %20 : vector<1x1152xf32>
    %cst_16 = arith.constant 5.000000e-01 : f32
    %30 = vector.broadcast %cst_16 : f32 to vector<1x1152xf32>
    %31 = arith.addf %29, %30 : vector<1x1152xf32>
    %32 = arith.mulf %31, %31 : vector<1x1152xf32>
    %33 = arith.cmpf ogt, %27, %32 : vector<1x1152xf32>
    %34 = arith.extui %33 : vector<1x1152xi1> to vector<1x1152xi32>
    %35 = arith.sitofp %34 : vector<1x1152xi32> to vector<1x1152xf32>
    %c0_17 = arith.constant 0 : index
    %c0_18 = arith.constant 0 : index
    %36 = vector.load %arg3[%c0_17, %c0_18] : memref<1x1152xf32, #tpu.memory_space<vmem>>, vector<1x1152xf32>
    tpu.vector_store %arg3[%c0_17, %c0_18], %35 {strides = array<i32>} : memref<1x1152xf32, #tpu.memory_space<vmem>>, vector<1x1152xf32>,
    return
  }
}

module attributes {stable_mosaic.version = 11 : i64} {
  func.func @_spatial_offset_kernel(%arg0: memref<5xf32, #tpu.memory_space<smem>>, %arg1: memref<2x9x512xf32, #tpu.memory_space<vmem>>, %arg2: memref<2x9x9xf32, #tpu.memory_space<vmem>>, %arg3: memref<2x9x9xf32, #tpu.memory_space<vmem>>, %arg4: memref<9x1xf32, #tpu.memory_space<vmem>>, %arg5: memref<9x1xf32, #tpu.memory_space<vmem>>, %arg6: memref<9x512xf32, #tpu.memory_space<vmem>>, %arg7: memref<9x512xf32, #tpu.memory_space<vmem>>, %arg8: memref<9x512xf32, #tpu.memory_space<vmem>>, %arg9: memref<9x512xf32, #tpu.memory_space<vmem>>) attributes {dimension_semantics = [], scalar_prefetch = 0 : i64, scratch_operands = 0 : i64, tpu.core_type = #tpu.core_type<tc>} {
    %c0 = arith.constant 0 : index
    %c0_0 = arith.constant 0 : index
    %c0_1 = arith.constant 0 : index
    %0 = vector.load %arg1[%c0, %c0_0, %c0_1] : memref<2x9x512xf32, #tpu.memory_space<vmem>>, vector<1x9x512xf32>
    %1 = vector.shape_cast %0 : vector<1x9x512xf32> to vector<9x512xf32>
    %c1 = arith.constant 1 : index
    %c0_2 = arith.constant 0 : index
    %c0_3 = arith.constant 0 : index
    %2 = vector.load %arg1[%c1, %c0_2, %c0_3] : memref<2x9x512xf32, #tpu.memory_space<vmem>>, vector<1x9x512xf32>
    %3 = vector.shape_cast %2 : vector<1x9x512xf32> to vector<9x512xf32>
    %c0_4 = arith.constant 0 : index
    %4 = memref.load %arg0[%c0_4] : memref<5xf32, #tpu.memory_space<smem>>
    %5 = vector.broadcast %4 : f32 to vector<9x512xf32>
    %6 = arith.mulf %5, %1 : vector<9x512xf32>
    %c1_5 = arith.constant 1 : index
    %7 = memref.load %arg0[%c1_5] : memref<5xf32, #tpu.memory_space<smem>>
    %8 = vector.broadcast %7 : f32 to vector<9x512xf32>
    %9 = arith.mulf %8, %3 : vector<9x512xf32>
    %10 = arith.addf %6, %9 : vector<9x512xf32>
    %c2 = arith.constant 2 : index
    %11 = memref.load %arg0[%c2] : memref<5xf32, #tpu.memory_space<smem>>
    %12 = vector.broadcast %11 : f32 to vector<9x512xf32>
    %13 = arith.addf %10, %12 : vector<9x512xf32>
    %cst = arith.constant 0.000000e+00 : f32
    %14 = vector.broadcast %cst : f32 to vector<9x512xf32>
    %15 = arith.maximumf %13, %14 : vector<9x512xf32>
    %c3 = arith.constant 3 : index
    %16 = memref.load %arg0[%c3] : memref<5xf32, #tpu.memory_space<smem>>
    %17 = vector.broadcast %16 : f32 to vector<9x512xf32>
    %18 = arith.mulf %17, %15 : vector<9x512xf32>
    %c4 = arith.constant 4 : index
    %19 = memref.load %arg0[%c4] : memref<5xf32, #tpu.memory_space<smem>>
    %20 = vector.broadcast %19 : f32 to vector<9x512xf32>
    %21 = arith.addf %18, %20 : vector<9x512xf32>
    %22 = arith.negf %21 : vector<9x512xf32>
    %23 = math.exp %22 : vector<9x512xf32>
    %cst_6 = arith.constant 1.000000e+00 : f32
    %24 = vector.broadcast %cst_6 : f32 to vector<9x512xf32>
    %25 = arith.addf %24, %23 : vector<9x512xf32>
    %26 = arith.divf %24, %25 : vector<9x512xf32>
    %27 = arith.mulf %1, %26 : vector<9x512xf32>
    %28 = arith.mulf %3, %26 : vector<9x512xf32>
    %c0_7 = arith.constant 0 : index
    %c0_8 = arith.constant 0 : index
    %c0_9 = arith.constant 0 : index
    %29 = vector.load %arg2[%c0_7, %c0_8, %c0_9] : memref<2x9x9xf32, #tpu.memory_space<vmem>>, vector<1x9x9xf32>
    %30 = vector.shape_cast %29 : vector<1x9x9xf32> to vector<9x9xf32>
    %cst_10 = arith.constant dense<0.000000e+00> : vector<9x512xf32>
    %31 = tpu.matmul %30, %27, %cst_10 {dimension_numbers = #tpu.dot_dimension_numbers<[1], [0], [0], [1], [0, 0, 1, 1], [], []>} : vector<9x9xf32>, vector<9x512xf32>, vector<9x512xf32> -> vector<9x512xf32>
    %c1_11 = arith.constant 1 : index
    %c0_12 = arith.constant 0 : index
    %c0_13 = arith.constant 0 : index
    %32 = vector.load %arg2[%c1_11, %c0_12, %c0_13] : memref<2x9x9xf32, #tpu.memory_space<vmem>>, vector<1x9x9xf32>
    %33 = vector.shape_cast %32 : vector<1x9x9xf32> to vector<9x9xf32>
    %cst_14 = arith.constant dense<0.000000e+00> : vector<9x512xf32>
    %34 = tpu.matmul %33, %28, %cst_14 {dimension_numbers = #tpu.dot_dimension_numbers<[1], [0], [0], [1], [0, 0, 1, 1], [], []>} : vector<9x9xf32>, vector<9x512xf32>, vector<9x512xf32> -> vector<9x512xf32>
    %35 = arith.addf %31, %34 : vector<9x512xf32>
    %c0_15 = arith.constant 0 : index
    %c0_16 = arith.constant 0 : index
    %36 = vector.load %arg4[%c0_15, %c0_16] : memref<9x1xf32, #tpu.memory_space<vmem>>, vector<9x1xf32>
    %37 = vector.broadcast %36 : vector<9x1xf32> to vector<9x512xf32>
    %38 = arith.addf %35, %37 : vector<9x512xf32>
    %c0_17 = arith.constant 0 : index
    %c0_18 = arith.constant 0 : index
    %39 = vector.load %arg6[%c0_17, %c0_18] : memref<9x512xf32, #tpu.memory_space<vmem>>, vector<9x512xf32>
    %40 = arith.addf %38, %39 : vector<9x512xf32>
    %c0_19 = arith.constant 0 : index
    %c0_20 = arith.constant 0 : index
    %41 = vector.load %arg8[%c0_19, %c0_20] : memref<9x512xf32, #tpu.memory_space<vmem>>, vector<9x512xf32>
    tpu.vector_store %arg8[%c0_19, %c0_20], %40 {strides = array<i32>} : memref<9x512xf32, #tpu.memory_space<vmem>>, vector<9x512xf32>,
    %c0_21 = arith.constant 0 : index
    %c0_22 = arith.constant 0 : index
    %c0_23 = arith.constant 0 : index
    %42 = vector.load %arg3[%c0_21, %c0_22, %c0_23] : memref<2x9x9xf32, #tpu.memory_space<vmem>>, vector<1x9x9xf32>
    %43 = vector.shape_cast %42 : vector<1x9x9xf32> to vector<9x9xf32>
    %cst_24 = arith.constant dense<0.000000e+00> : vector<9x512xf32>
    %44 = tpu.matmul %43, %27, %cst_24 {dimension_numbers = #tpu.dot_dimension_numbers<[1], [0], [0], [1], [0, 0, 1, 1], [], []>} : vector<9x9xf32>, vector<9x512xf32>, vector<9x512xf32> -> vector<9x512xf32>
    %c1_25 = arith.constant 1 : index
    %c0_26 = arith.constant 0 : index
    %c0_27 = arith.constant 0 : index
    %45 = vector.load %arg3[%c1_25, %c0_26, %c0_27] : memref<2x9x9xf32, #tpu.memory_space<vmem>>, vector<1x9x9xf32>
    %46 = vector.shape_cast %45 : vector<1x9x9xf32> to vector<9x9xf32>
    %cst_28 = arith.constant dense<0.000000e+00> : vector<9x512xf32>
    %47 = tpu.matmul %46, %28, %cst_28 {dimension_numbers = #tpu.dot_dimension_numbers<[1], [0], [0], [1], [0, 0, 1, 1], [], []>} : vector<9x9xf32>, vector<9x512xf32>, vector<9x512xf32> -> vector<9x512xf32>
    %48 = arith.addf %44, %47 : vector<9x512xf32>
    %c0_29 = arith.constant 0 : index
    %c0_30 = arith.constant 0 : index
    %49 = vector.load %arg5[%c0_29, %c0_30] : memref<9x1xf32, #tpu.memory_space<vmem>>, vector<9x1xf32>
    %50 = vector.broadcast %49 : vector<9x1xf32> to vector<9x512xf32>
    %51 = arith.addf %48, %50 : vector<9x512xf32>
    %c0_31 = arith.constant 0 : index
    %c0_32 = arith.constant 0 : index
    %52 = vector.load %arg7[%c0_31, %c0_32] : memref<9x512xf32, #tpu.memory_space<vmem>>, vector<9x512xf32>
    %53 = arith.addf %51, %52 : vector<9x512xf32>
    %c0_33 = arith.constant 0 : index
    %c0_34 = arith.constant 0 : index
    %54 = vector.load %arg9[%c0_33, %c0_34] : memref<9x512xf32, #tpu.memory_space<vmem>>, vector<9x512xf32>
    tpu.vector_store %arg9[%c0_33, %c0_34], %53 {strides = array<i32>} : memref<9x512xf32, #tpu.memory_space<vmem>>, vector<9x512xf32>,
    return
  }
}

module attributes {stable_mosaic.version = 11 : i64} {
  func.func @kernel(%arg0: i32, %arg1: i32, %arg2: memref<1x1x512xf32, #tpu.memory_space<vmem>>, %arg3: memref<1x1x512xf32, #tpu.memory_space<vmem>>, %arg4: memref<1x16x512xf32, #tpu.memory_space<vmem>>, %arg5: memref<1x16x16xf32, #tpu.memory_space<vmem>>, %arg6: memref<8x16xf32, #tpu.memory_space<vmem>>, %arg7: memref<8x1xf32, #tpu.memory_space<vmem>>, %arg8: memref<16x8xf32, #tpu.memory_space<vmem>>, %arg9: memref<16x1xf32, #tpu.memory_space<vmem>>, %arg10: memref<1x16x512xf32, #tpu.memory_space<vmem>>, %arg11: memref<16x512xf32, #tpu.memory_space<vmem>>) attributes {dimension_semantics = [#tpu.dimension_semantics<parallel>, #tpu.dimension_semantics<arbitrary>], iteration_bounds = array<i64: 1, 9>, scalar_prefetch = 0 : i64, scratch_operands = 1 : i64, tpu.core_type = #tpu.core_type<tc>, window_params = [{transform_indices = @transform_0, window_bounds = array<i64: 1, 1, 512>}, {transform_indices = @transform_1, window_bounds = array<i64: 1, 1, 512>}, {transform_indices = @transform_2, window_bounds = array<i64: 1, 16, 512>}, {transform_indices = @transform_3, window_bounds = array<i64: 1, 16, 16>}, {pipeline_mode = #tpu.pipeline_mode<synchronous>, transform_indices = @transform_4, window_bounds = array<i64: 8, 16>}, {pipeline_mode = #tpu.pipeline_mode<synchronous>, transform_indices = @transform_5, window_bounds = array<i64: 8, 1>}, {pipeline_mode = #tpu.pipeline_mode<synchronous>, transform_indices = @transform_6, window_bounds = array<i64: 16, 8>}, {pipeline_mode = #tpu.pipeline_mode<synchronous>, transform_indices = @transform_7, window_bounds = array<i64: 16, 1>}, {transform_indices = @transform_8, window_bounds = array<i64: 1, 16, 512>}]} {
    %c0_i32 = arith.constant 0 : i32
    %0 = arith.cmpi eq, %arg1, %c0_i32 : i32
    %1 = arith.extui %0 : i1 to i32
    %c0_i32_0 = arith.constant 0 : i32
    %2 = arith.cmpi ne, %1, %c0_i32_0 : i32
    scf.if %2 {
      %cst_68 = arith.constant 0.000000e+00 : f32
      %173 = vector.broadcast %cst_68 : f32 to vector<16x512xf32>
      %c0_69 = arith.constant 0 : index
      %c0_70 = arith.constant 0 : index
      %174 = vector.load %arg11[%c0_69, %c0_70] : memref<16x512xf32, #tpu.memory_space<vmem>>, vector<16x512xf32>
      tpu.vector_store %arg11[%c0_69, %c0_70], %173 {strides = array<i32>} : memref<16x512xf32, #tpu.memory_space<vmem>>, vector<16x512xf32>,
    } else {
    }
    %c0 = arith.constant 0 : index
    %c0_1 = arith.constant 0 : index
    %c0_2 = arith.constant 0 : index
    %3 = vector.load %arg4[%c0, %c0_1, %c0_2] : memref<1x16x512xf32, #tpu.memory_space<vmem>>, vector<1x16x512xf32>
    %4 = vector.shape_cast %3 : vector<1x16x512xf32> to vector<16x512xf32>
    %c0_3 = arith.constant 0 : index
    %c0_4 = arith.constant 0 : index
    %c0_5 = arith.constant 0 : index
    %5 = vector.load %arg2[%c0_3, %c0_4, %c0_5] : memref<1x1x512xf32, #tpu.memory_space<vmem>>, vector<1x1x512xf32>
    %6 = vector.shape_cast %5 : vector<1x1x512xf32> to vector<1x512xf32>
    %c0_6 = arith.constant 0 : index
    %c0_7 = arith.constant 0 : index
    %c0_8 = arith.constant 0 : index
    %7 = vector.load %arg3[%c0_6, %c0_7, %c0_8] : memref<1x1x512xf32, #tpu.memory_space<vmem>>, vector<1x1x512xf32>
    %8 = vector.shape_cast %7 : vector<1x1x512xf32> to vector<1x512xf32>
    %9 = math.floor %6 : vector<1x512xf32>
    %10 = math.floor %8 : vector<1x512xf32>
    %11 = arith.subf %6, %9 : vector<1x512xf32>
    %12 = arith.subf %8, %10 : vector<1x512xf32>
    %cst = arith.constant 1.000000e+00 : f32
    %13 = vector.broadcast %cst : f32 to vector<1x512xf32>
    %14 = arith.subf %13, %11 : vector<1x512xf32>
    %cst_9 = arith.constant 1.000000e+00 : f32
    %15 = vector.broadcast %cst_9 : f32 to vector<1x512xf32>
    %16 = arith.subf %15, %12 : vector<1x512xf32>
    %17 = tpu.iota {dimensions = array<i32: 0>} : vector<512x512xi32>
    %cst_10 = arith.constant 0.000000e+00 : f32
    %18 = vector.broadcast %cst_10 : f32 to vector<512x512xf32>
    %19 = arith.mulf %14, %16 : vector<1x512xf32>
    %cst_11 = arith.constant 1.000000e+00 : f32
    %20 = vector.broadcast %cst_11 : f32 to vector<1x512xf32>
    %21 = arith.addf %10, %20 : vector<1x512xf32>
    %22 = arith.mulf %14, %12 : vector<1x512xf32>
    %cst_12 = arith.constant 1.000000e+00 : f32
    %23 = vector.broadcast %cst_12 : f32 to vector<1x512xf32>
    %24 = arith.addf %9, %23 : vector<1x512xf32>
    %25 = arith.mulf %11, %16 : vector<1x512xf32>
    %cst_13 = arith.constant 1.000000e+00 : f32
    %26 = vector.broadcast %cst_13 : f32 to vector<1x512xf32>
    %27 = arith.addf %9, %26 : vector<1x512xf32>
    %cst_14 = arith.constant 1.000000e+00 : f32
    %28 = vector.broadcast %cst_14 : f32 to vector<1x512xf32>
    %29 = arith.addf %10, %28 : vector<1x512xf32>
    %30 = arith.mulf %11, %12 : vector<1x512xf32>
    %cst_15 = arith.constant 0.000000e+00 : f32
    %31 = vector.broadcast %cst_15 : f32 to vector<1x512xf32>
    %32 = arith.cmpf oge, %9, %31 : vector<1x512xf32>
    %cst_16 = arith.constant 1.500000e+01 : f32
    %33 = vector.broadcast %cst_16 : f32 to vector<1x512xf32>
    %34 = arith.cmpf ole, %9, %33 : vector<1x512xf32>
    %35 = arith.andi %32, %34 : vector<1x512xi1>
    %cst_17 = arith.constant 0.000000e+00 : f32
    %36 = vector.broadcast %cst_17 : f32 to vector<1x512xf32>
    %37 = arith.cmpf oge, %10, %36 : vector<1x512xf32>
    %38 = arith.andi %35, %37 : vector<1x512xi1>
    %cst_18 = arith.constant 3.100000e+01 : f32
    %39 = vector.broadcast %cst_18 : f32 to vector<1x512xf32>
    %40 = arith.cmpf ole, %10, %39 : vector<1x512xf32>
    %41 = arith.andi %38, %40 : vector<1x512xi1>
    %cst_19 = arith.constant 0.000000e+00 : f32
    %cst_20 = arith.constant 1.500000e+01 : f32
    %42 = vector.broadcast %cst_19 : f32 to vector<1x512xf32>
    %43 = arith.maximumf %42, %9 : vector<1x512xf32>
    %44 = vector.broadcast %cst_20 : f32 to vector<1x512xf32>
    %45 = arith.minimumf %44, %43 : vector<1x512xf32>
    %46 = arith.fptosi %45 : vector<1x512xf32> to vector<1x512xi32>
    %c32_i32 = arith.constant 32 : i32
    %47 = vector.broadcast %c32_i32 : i32 to vector<1x512xi32>
    %48 = arith.muli %46, %47 : vector<1x512xi32>
    %cst_21 = arith.constant 0.000000e+00 : f32
    %cst_22 = arith.constant 3.100000e+01 : f32
    %49 = vector.broadcast %cst_21 : f32 to vector<1x512xf32>
    %50 = arith.maximumf %49, %10 : vector<1x512xf32>
    %51 = vector.broadcast %cst_22 : f32 to vector<1x512xf32>
    %52 = arith.minimumf %51, %50 : vector<1x512xf32>
    %53 = arith.fptosi %52 : vector<1x512xf32> to vector<1x512xi32>
    %54 = arith.addi %48, %53 : vector<1x512xi32>
    %cst_23 = arith.constant 0.000000e+00 : f32
    %55 = vector.broadcast %cst_23 : f32 to vector<1x512xf32>
    %56 = arith.select %41, %19, %55 : vector<1x512xi1>, vector<1x512xf32>
    %57 = vector.broadcast %54 : vector<1x512xi32> to vector<512x512xi32>
    %58 = arith.cmpi eq, %17, %57 : vector<512x512xi32>
    %cst_24 = arith.constant 0.000000e+00 : f32
    %59 = vector.shape_cast %56 : vector<1x512xf32> to vector<1x512xf32>
    %60 = vector.broadcast %59 : vector<1x512xf32> to vector<512x512xf32>
    %61 = vector.broadcast %cst_24 : f32 to vector<512x512xf32>
    %62 = arith.select %58, %60, %61 : vector<512x512xi1>, vector<512x512xf32>
    %63 = arith.addf %18, %62 : vector<512x512xf32>
    %cst_25 = arith.constant 0.000000e+00 : f32
    %64 = vector.broadcast %cst_25 : f32 to vector<1x512xf32>
    %65 = arith.cmpf oge, %9, %64 : vector<1x512xf32>
    %cst_26 = arith.constant 1.500000e+01 : f32
    %66 = vector.broadcast %cst_26 : f32 to vector<1x512xf32>
    %67 = arith.cmpf ole, %9, %66 : vector<1x512xf32>
    %68 = arith.andi %65, %67 : vector<1x512xi1>
    %cst_27 = arith.constant 0.000000e+00 : f32
    %69 = vector.broadcast %cst_27 : f32 to vector<1x512xf32>
    %70 = arith.cmpf oge, %21, %69 : vector<1x512xf32>
    %71 = arith.andi %68, %70 : vector<1x512xi1>
    %cst_28 = arith.constant 3.100000e+01 : f32
    %72 = vector.broadcast %cst_28 : f32 to vector<1x512xf32>
    %73 = arith.cmpf ole, %21, %72 : vector<1x512xf32>
    %74 = arith.andi %71, %73 : vector<1x512xi1>
    %cst_29 = arith.constant 0.000000e+00 : f32
    %cst_30 = arith.constant 1.500000e+01 : f32
    %75 = vector.broadcast %cst_29 : f32 to vector<1x512xf32>
    %76 = arith.maximumf %75, %9 : vector<1x512xf32>
    %77 = vector.broadcast %cst_30 : f32 to vector<1x512xf32>
    %78 = arith.minimumf %77, %76 : vector<1x512xf32>
    %79 = arith.fptosi %78 : vector<1x512xf32> to vector<1x512xi32>
    %c32_i32_31 = arith.constant 32 : i32
    %80 = vector.broadcast %c32_i32_31 : i32 to vector<1x512xi32>
    %81 = arith.muli %79, %80 : vector<1x512xi32>
    %cst_32 = arith.constant 0.000000e+00 : f32
    %cst_33 = arith.constant 3.100000e+01 : f32
    %82 = vector.broadcast %cst_32 : f32 to vector<1x512xf32>
    %83 = arith.maximumf %82, %21 : vector<1x512xf32>
    %84 = vector.broadcast %cst_33 : f32 to vector<1x512xf32>
    %85 = arith.minimumf %84, %83 : vector<1x512xf32>
    %86 = arith.fptosi %85 : vector<1x512xf32> to vector<1x512xi32>
    %87 = arith.addi %81, %86 : vector<1x512xi32>
    %cst_34 = arith.constant 0.000000e+00 : f32
    %88 = vector.broadcast %cst_34 : f32 to vector<1x512xf32>
    %89 = arith.select %74, %22, %88 : vector<1x512xi1>, vector<1x512xf32>
    %90 = vector.broadcast %87 : vector<1x512xi32> to vector<512x512xi32>
    %91 = arith.cmpi eq, %17, %90 : vector<512x512xi32>
    %cst_35 = arith.constant 0.000000e+00 : f32
    %92 = vector.shape_cast %89 : vector<1x512xf32> to vector<1x512xf32>
    %93 = vector.broadcast %92 : vector<1x512xf32> to vector<512x512xf32>
    %94 = vector.broadcast %cst_35 : f32 to vector<512x512xf32>
    %95 = arith.select %91, %93, %94 : vector<512x512xi1>, vector<512x512xf32>
    %96 = arith.addf %63, %95 : vector<512x512xf32>
    %cst_36 = arith.constant 0.000000e+00 : f32
    %97 = vector.broadcast %cst_36 : f32 to vector<1x512xf32>
    %98 = arith.cmpf oge, %24, %97 : vector<1x512xf32>
    %cst_37 = arith.constant 1.500000e+01 : f32
    %99 = vector.broadcast %cst_37 : f32 to vector<1x512xf32>
    %100 = arith.cmpf ole, %24, %99 : vector<1x512xf32>
    %101 = arith.andi %98, %100 : vector<1x512xi1>
    %cst_38 = arith.constant 0.000000e+00 : f32
    %102 = vector.broadcast %cst_38 : f32 to vector<1x512xf32>
    %103 = arith.cmpf oge, %10, %102 : vector<1x512xf32>
    %104 = arith.andi %101, %103 : vector<1x512xi1>
    %cst_39 = arith.constant 3.100000e+01 : f32
    %105 = vector.broadcast %cst_39 : f32 to vector<1x512xf32>
    %106 = arith.cmpf ole, %10, %105 : vector<1x512xf32>
    %107 = arith.andi %104, %106 : vector<1x512xi1>
    %cst_40 = arith.constant 0.000000e+00 : f32
    %cst_41 = arith.constant 1.500000e+01 : f32
    %108 = vector.broadcast %cst_40 : f32 to vector<1x512xf32>
    %109 = arith.maximumf %108, %24 : vector<1x512xf32>
    %110 = vector.broadcast %cst_41 : f32 to vector<1x512xf32>
    %111 = arith.minimumf %110, %109 : vector<1x512xf32>
    %112 = arith.fptosi %111 : vector<1x512xf32> to vector<1x512xi32>
    %c32_i32_42 = arith.constant 32 : i32
    %113 = vector.broadcast %c32_i32_42 : i32 to vector<1x512xi32>
    %114 = arith.muli %112, %113 : vector<1x512xi32>
    %cst_43 = arith.constant 0.000000e+00 : f32
    %cst_44 = arith.constant 3.100000e+01 : f32
    %115 = vector.broadcast %cst_43 : f32 to vector<1x512xf32>
    %116 = arith.maximumf %115, %10 : vector<1x512xf32>
    %117 = vector.broadcast %cst_44 : f32 to vector<1x512xf32>
    %118 = arith.minimumf %117, %116 : vector<1x512xf32>
    %119 = arith.fptosi %118 : vector<1x512xf32> to vector<1x512xi32>
    %120 = arith.addi %114, %119 : vector<1x512xi32>
    %cst_45 = arith.constant 0.000000e+00 : f32
    %121 = vector.broadcast %cst_45 : f32 to vector<1x512xf32>
    %122 = arith.select %107, %25, %121 : vector<1x512xi1>, vector<1x512xf32>
    %123 = vector.broadcast %120 : vector<1x512xi32> to vector<512x512xi32>
    %124 = arith.cmpi eq, %17, %123 : vector<512x512xi32>
    %cst_46 = arith.constant 0.000000e+00 : f32
    %125 = vector.shape_cast %122 : vector<1x512xf32> to vector<1x512xf32>
    %126 = vector.broadcast %125 : vector<1x512xf32> to vector<512x512xf32>
    %127 = vector.broadcast %cst_46 : f32 to vector<512x512xf32>
    %128 = arith.select %124, %126, %127 : vector<512x512xi1>, vector<512x512xf32>
    %129 = arith.addf %96, %128 : vector<512x512xf32>
    %cst_47 = arith.constant 0.000000e+00 : f32
    %130 = vector.broadcast %cst_47 : f32 to vector<1x512xf32>
    %131 = arith.cmpf oge, %27, %130 : vector<1x512xf32>
    %cst_48 = arith.constant 1.500000e+01 : f32
    %132 = vector.broadcast %cst_48 : f32 to vector<1x512xf32>
    %133 = arith.cmpf ole, %27, %132 : vector<1x512xf32>
    %134 = arith.andi %131, %133 : vector<1x512xi1>
    %cst_49 = arith.constant 0.000000e+00 : f32
    %135 = vector.broadcast %cst_49 : f32 to vector<1x512xf32>
    %136 = arith.cmpf oge, %29, %135 : vector<1x512xf32>
    %137 = arith.andi %134, %136 : vector<1x512xi1>
    %cst_50 = arith.constant 3.100000e+01 : f32
    %138 = vector.broadcast %cst_50 : f32 to vector<1x512xf32>
    %139 = arith.cmpf ole, %29, %138 : vector<1x512xf32>
    %140 = arith.andi %137, %139 : vector<1x512xi1>
    %cst_51 = arith.constant 0.000000e+00 : f32
    %cst_52 = arith.constant 1.500000e+01 : f32
    %141 = vector.broadcast %cst_51 : f32 to vector<1x512xf32>
    %142 = arith.maximumf %141, %27 : vector<1x512xf32>
    %143 = vector.broadcast %cst_52 : f32 to vector<1x512xf32>
    %144 = arith.minimumf %143, %142 : vector<1x512xf32>
    %145 = arith.fptosi %144 : vector<1x512xf32> to vector<1x512xi32>
    %c32_i32_53 = arith.constant 32 : i32
    %146 = vector.broadcast %c32_i32_53 : i32 to vector<1x512xi32>
    %147 = arith.muli %145, %146 : vector<1x512xi32>
    %cst_54 = arith.constant 0.000000e+00 : f32
    %cst_55 = arith.constant 3.100000e+01 : f32
    %148 = vector.broadcast %cst_54 : f32 to vector<1x512xf32>
    %149 = arith.maximumf %148, %29 : vector<1x512xf32>
    %150 = vector.broadcast %cst_55 : f32 to vector<1x512xf32>
    %151 = arith.minimumf %150, %149 : vector<1x512xf32>
    %152 = arith.fptosi %151 : vector<1x512xf32> to vector<1x512xi32>
    %153 = arith.addi %147, %152 : vector<1x512xi32>
    %cst_56 = arith.constant 0.000000e+00 : f32
    %154 = vector.broadcast %cst_56 : f32 to vector<1x512xf32>
    %155 = arith.select %140, %30, %154 : vector<1x512xi1>, vector<1x512xf32>
    %156 = vector.broadcast %153 : vector<1x512xi32> to vector<512x512xi32>
    %157 = arith.cmpi eq, %17, %156 : vector<512x512xi32>
    %cst_57 = arith.constant 0.000000e+00 : f32
    %158 = vector.shape_cast %155 : vector<1x512xf32> to vector<1x512xf32>
    %159 = vector.broadcast %158 : vector<1x512xf32> to vector<512x512xf32>
    %160 = vector.broadcast %cst_57 : f32 to vector<512x512xf32>
    %161 = arith.select %157, %159, %160 : vector<512x512xi1>, vector<512x512xf32>
    %162 = arith.addf %129, %161 : vector<512x512xf32>
    %cst_58 = arith.constant dense<0.000000e+00> : vector<16x512xf32>
    %163 = tpu.matmul %4, %162, %cst_58 {dimension_numbers = #tpu.dot_dimension_numbers<[1], [0], [0], [1], [0, 0, 1, 1], [], []>} : vector<16x512xf32>, vector<512x512xf32>, vector<16x512xf32> -> vector<16x512xf32>
    %c0_59 = arith.constant 0 : index
    %c0_60 = arith.constant 0 : index
    %164 = vector.load %arg11[%c0_59, %c0_60] : memref<16x512xf32, #tpu.memory_space<vmem>>, vector<16x512xf32>
    %c0_61 = arith.constant 0 : index
    %c0_62 = arith.constant 0 : index
    %c0_63 = arith.constant 0 : index
    %165 = vector.load %arg5[%c0_61, %c0_62, %c0_63] : memref<1x16x16xf32, #tpu.memory_space<vmem>>, vector<1x16x16xf32>
    %166 = vector.shape_cast %165 : vector<1x16x16xf32> to vector<16x16xf32>
    %cst_64 = arith.constant dense<0.000000e+00> : vector<16x512xf32>
    %167 = tpu.matmul %166, %163, %cst_64 {dimension_numbers = #tpu.dot_dimension_numbers<[1], [0], [0], [1], [0, 0, 1, 1], [], []>} : vector<16x16xf32>, vector<16x512xf32>, vector<16x512xf32> -> vector<16x512xf32>
    %168 = arith.addf %164, %167 : vector<16x512xf32>
    %c0_65 = arith.constant 0 : index
    %c0_66 = arith.constant 0 : index
    %169 = vector.load %arg11[%c0_65, %c0_66] : memref<16x512xf32, #tpu.memory_space<vmem>>, vector<16x512xf32>
    tpu.vector_store %arg11[%c0_65, %c0_66], %168 {strides = array<i32>} : memref<16x512xf32, #tpu.memory_space<vmem>>, vector<16x512xf32>,
    %c8_i32 = arith.constant 8 : i32
    %170 = arith.cmpi eq, %arg1, %c8_i32 : i32
    %171 = arith.extui %170 : i1 to i32
    %c0_i32_67 = arith.constant 0 : i32
    %172 = arith.cmpi ne, %171, %c0_i32_67 : i32
    scf.if %172 {
      %c0_68 = arith.constant 0 : index
      %c0_69 = arith.constant 0 : index
      %173 = vector.load %arg11[%c0_68, %c0_69] : memref<16x512xf32, #tpu.memory_space<vmem>>, vector<16x512xf32>
      %cst_70 = arith.constant dense<0.000000e+00> : vector<16xf32>
      %174 = vector.multi_reduction <add>, %173, %cst_70 [1] : vector<16x512xf32> to vector<16xf32>
      %175 = vector.shape_cast %174 : vector<16xf32> to vector<16x1xf32>
      %cst_71 = arith.constant 5.120000e+02 : f32
      %176 = vector.broadcast %cst_71 : f32 to vector<16x1xf32>
      %177 = arith.divf %175, %176 : vector<16x1xf32>
      %c0_72 = arith.constant 0 : index
      %c0_73 = arith.constant 0 : index
      %178 = vector.load %arg6[%c0_72, %c0_73] : memref<8x16xf32, #tpu.memory_space<vmem>>, vector<8x16xf32>
      %cst_74 = arith.constant dense<0.000000e+00> : vector<8x1xf32>
      %179 = tpu.matmul %178, %177, %cst_74 {dimension_numbers = #tpu.dot_dimension_numbers<[1], [0], [0], [1], [0, 0, 1, 1], [], []>} : vector<8x16xf32>, vector<16x1xf32>, vector<8x1xf32> -> vector<8x1xf32>
      %c0_75 = arith.constant 0 : index
      %c0_76 = arith.constant 0 : index
      %180 = vector.load %arg7[%c0_75, %c0_76] : memref<8x1xf32, #tpu.memory_space<vmem>>, vector<8x1xf32>
      %181 = arith.addf %179, %180 : vector<8x1xf32>
      %cst_77 = arith.constant 0.000000e+00 : f32
      %182 = vector.broadcast %cst_77 : f32 to vector<8x1xf32>
      %183 = arith.maximumf %181, %182 : vector<8x1xf32>
      %c0_78 = arith.constant 0 : index
      %c0_79 = arith.constant 0 : index
      %184 = vector.load %arg8[%c0_78, %c0_79] : memref<16x8xf32, #tpu.memory_space<vmem>>, vector<16x8xf32>
      %cst_80 = arith.constant dense<0.000000e+00> : vector<16x1xf32>
      %185 = tpu.matmul %184, %183, %cst_80 {dimension_numbers = #tpu.dot_dimension_numbers<[1], [0], [0], [1], [0, 0, 1, 1], [], []>} : vector<16x8xf32>, vector<8x1xf32>, vector<16x1xf32> -> vector<16x1xf32>
      %c0_81 = arith.constant 0 : index
      %c0_82 = arith.constant 0 : index
      %186 = vector.load %arg9[%c0_81, %c0_82] : memref<16x1xf32, #tpu.memory_space<vmem>>, vector<16x1xf32>
      %187 = arith.addf %185, %186 : vector<16x1xf32>
      %188 = arith.negf %187 : vector<16x1xf32>
      %189 = math.exp %188 : vector<16x1xf32>
      %cst_83 = arith.constant 1.000000e+00 : f32
      %190 = vector.broadcast %cst_83 : f32 to vector<16x1xf32>
      %191 = arith.addf %190, %189 : vector<16x1xf32>
      %192 = arith.divf %190, %191 : vector<16x1xf32>
      %193 = vector.broadcast %192 : vector<16x1xf32> to vector<16x512xf32>
      %194 = arith.mulf %173, %193 : vector<16x512xf32>
      %c0_84 = arith.constant 0 : index
      %c0_85 = arith.constant 0 : index
      %c0_86 = arith.constant 0 : index
      %195 = vector.load %arg10[%c0_84, %c0_85, %c0_86] : memref<1x16x512xf32, #tpu.memory_space<vmem>>, vector<1x16x512xf32>
      %196 = vector.shape_cast %195 : vector<1x16x512xf32> to vector<16x512xf32>
      %197 = vector.shape_cast %194 : vector<16x512xf32> to vector<1x16x512xf32>
      tpu.vector_store %arg10[%c0_84, %c0_85, %c0_86], %197 {strides = array<i32>} : memref<1x16x512xf32, #tpu.memory_space<vmem>>, vector<1x16x512xf32>,
    } else {
    }
    return
  }
  func.func @transform_0(%arg0: i32, %arg1: i32) -> (i32, i32, i32) {
    %c0_i32 = arith.constant 0 : i32
    %c0_i32_0 = arith.constant 0 : i32
    %c0_i32_1 = arith.constant 0 : i32
    return %arg1, %c0_i32, %c0_i32_0 : i32, i32, i32
  }
  func.func @transform_1(%arg0: i32, %arg1: i32) -> (i32, i32, i32) {
    %c0_i32 = arith.constant 0 : i32
    %c0_i32_0 = arith.constant 0 : i32
    %c0_i32_1 = arith.constant 0 : i32
    return %arg1, %c0_i32, %c0_i32_0 : i32, i32, i32
  }
  func.func @transform_2(%arg0: i32, %arg1: i32) -> (i32, i32, i32) {
    %c0_i32 = arith.constant 0 : i32
    %c0_i32_0 = arith.constant 0 : i32
    %c0_i32_1 = arith.constant 0 : i32
    return %arg0, %c0_i32, %c0_i32_0 : i32, i32, i32
  }
  func.func @transform_3(%arg0: i32, %arg1: i32) -> (i32, i32, i32) {
    %c0_i32 = arith.constant 0 : i32
    %c0_i32_0 = arith.constant 0 : i32
    %c0_i32_1 = arith.constant 0 : i32
    return %arg1, %c0_i32, %c0_i32_0 : i32, i32, i32
  }
  func.func @transform_4(%arg0: i32, %arg1: i32) -> (i32, i32) {
    %c0_i32 = arith.constant 0 : i32
    %c0_i32_0 = arith.constant 0 : i32
    %c0_i32_1 = arith.constant 0 : i32
    return %c0_i32, %c0_i32_0 : i32, i32
  }
  func.func @transform_5(%arg0: i32, %arg1: i32) -> (i32, i32) {
    %c0_i32 = arith.constant 0 : i32
    %c0_i32_0 = arith.constant 0 : i32
    %c0_i32_1 = arith.constant 0 : i32
    return %c0_i32, %c0_i32_0 : i32, i32
  }
  func.func @transform_6(%arg0: i32, %arg1: i32) -> (i32, i32) {
    %c0_i32 = arith.constant 0 : i32
    %c0_i32_0 = arith.constant 0 : i32
    %c0_i32_1 = arith.constant 0 : i32
    return %c0_i32, %c0_i32_0 : i32, i32
  }
  func.func @transform_7(%arg0: i32, %arg1: i32) -> (i32, i32) {
    %c0_i32 = arith.constant 0 : i32
    %c0_i32_0 = arith.constant 0 : i32
    %c0_i32_1 = arith.constant 0 : i32
    return %c0_i32, %c0_i32_0 : i32, i32
  }
  func.func @transform_8(%arg0: i32, %arg1: i32) -> (i32, i32, i32) {
    %c0_i32 = arith.constant 0 : i32
    %c0_i32_0 = arith.constant 0 : i32
    %c0_i32_1 = arith.constant 0 : i32
    return %arg0, %c0_i32, %c0_i32_0 : i32, i32, i32
  }
}

</mosaic_0001>

<bundles_post_ra>
// kernel: _lambda_.5
= control target key start
LH: loop header
LB: loop body
LE: loop exit
PB: predicated region body
PF: predicated region fallthrough
CT: control target
= control target key end

     0   :  { %v94_v59 = vlaneseq  ;;  %v120_v62 = vmov 0.0   ;;  %s184_s0 = inlined_call_operand.vmem [shape: f32[2,1,1152], index: 0, kind: input, shape index: {}]   ;;  %s185_s1 = inlined_call_operand.vmem [shape: f32[2,1,1152], index: 1, kind: input, shape index: {}]   ;;  %s186_s2 = inlined_call_operand.vmem [shape: f32[2,1,1152], index: 2, kind: input, shape index: {}]   ;;  %s187_s3 = inlined_call_operand.vmem [shape: f32[1,1152], index: 3, kind: output, shape index: {}]  }
   0x1   :  { %v14_v0 = vld [vmem:[%s184_s0] sm:$0xff]  ;;  %v103_v1 = vld [vmem:[%s184_s0 + $0x9] sm:$0xff]  ;;  %v15_v8 = vld [vmem:[%s184_s0 + $0x8] sm:$0x1] }
   0x2   :  { %v19_v2 = vld [vmem:[%s185_s1] sm:$0xff]  ;;  %v105_v3 = vld [vmem:[%s185_s1 + $0x9] sm:$0xff]  ;;  %v29_v4 = vmul.f32 %v14_v0, %v14_v0  ;;  %v31_v5 = vmul.f32 %v103_v1, %v103_v1  ;;  %v104_v9 = vld [vmem:[%s184_s0 + $0x11] sm:$0x1]  ;;  %v30_v13 = vmul.f32 %v15_v8, %v15_v8  ;;  %vm96_vm9 = vcmp.lt.s32.totalorder %v94_v59, 128 }
   0x3   :  { %v49_v6 = vmul.f32 %v19_v2, %v19_v2  ;;  %v51_v7 = vmul.f32 %v105_v3, %v105_v3  ;;  %v20_v10 = vld [vmem:[%s185_s1 + $0x8] sm:$0x1]  ;;  %v106_v12 = vld [vmem:[%s185_s1 + $0x11] sm:$0x1]  ;;  %v32_v14 = vmul.f32 %v104_v9, %v104_v9  ;;  %v24_v20 = vld [vmem:[%s186_s2] sm:$0xff] }
   0x4   :  { %v33_v11 = vadd.f32 %v31_v5, %v29_v4  ;;  %v50_v15 = vmul.f32 %v20_v10, %v20_v10  ;;  %v52_v17 = vmul.f32 %v106_v12, %v106_v12  ;;  %v107_v21 = vld [vmem:[%s186_s2 + $0x9] sm:$0xff]  ;;  %v71_v22 = vadd.f32 %v24_v20, %v14_v0  ;;  %v25_v26 = vld [vmem:[%s186_s2 + $0x8] sm:$0x1]  ;;  %v108_v34 = vld [vmem:[%s186_s2 + $0x11] sm:$0x1] }
   0x5   :  { %v53_v16 = vadd.f32 %v51_v7, %v49_v6  ;;  %v34_v18 = vadd.f32 %v32_v14, %v30_v13  ;;  %v75_v23 = vadd.f32 %v107_v21, %v103_v1  ;;  %v72_v35 = vadd.f32 %v25_v26, %v15_v8 }
   0x6   :  { %112 = vrsqrt.f32 %v33_v11  ;;  %v54_v19 = vadd.f32 %v52_v17, %v50_v15  ;;  %vm37_vm0 = vcmp.eq.f32.partialorder %v33_v11, inf  ;;  %v40_v25 = vand.u32 2147483648, %v33_v11 }
   0x7   :  { %114 = vrsqrt.f32 %v53_v16  ;;  %vm39_vm1 = vcmp.eq.f32.partialorder %v33_v11, 0.0  ;;  %vm57_vm2 = vcmp.eq.f32.partialorder %v53_v16, inf  ;;  %v60_v29 = vand.u32 2147483648, %v53_v16 }
   0x8   :  { %116 = vrsqrt.f32 %v34_v18  ;;  %vm59_vm3 = vcmp.eq.f32.partialorder %v53_v16, 0.0  ;;  %v73_v31 = vmul.f32 %v71_v22, %v71_v22  ;;  %v77_v33 = vmul.f32 %v75_v23, %v75_v23 }
   0x9   :  { %118 = vrsqrt.f32 %v54_v19  ;;  %vm44_vm4 = vcmp.eq.f32.partialorder %v34_v18, inf  ;;  %vm46_vm5 = vcmp.eq.f32.partialorder %v34_v18, 0.0  ;;  %v47_v39 = vand.u32 2147483648, %v34_v18 }
   0xa   :  { %vm64_vm6 = vcmp.eq.f32.partialorder %v54_v19, inf  ;;  %v67_v43 = vand.u32 2147483648, %v54_v19  ;;  %vm66_vm7 = vcmp.eq.f32.partialorder %v54_v19, 0.0  ;;  %v76_v46 = vadd.f32 %v108_v34, %v104_v9 }
   0xb   :  { %v79_v51 = vadd.f32 %v77_v33, %v73_v31  ;;  %v74_v55 = vmul.f32 %v72_v35, %v72_v35 }
   0xc   :  { %v78_v56 = vmul.f32 %v76_v46, %v76_v46 }
   0xe   :  { %v80_v60 = vadd.f32 %v78_v56, %v74_v55 }
  0x13   :  { %v113_v24 = vpop.eup %112 }
  0x14   :  { %v115_v27 = vpop.eup %114  ;;  %v36_v28 = vmul.f32 %v113_v24, %v33_v11 }
  0x15   :  { %v56_v30 = vmul.f32 %v115_v27, %v53_v16  ;;  %v117_v36 = vpop.eup %116 }
  0x16   :  { %v38_v32 = vsel %vm37_vm0, %v33_v11, %v36_v28  ;;  %v119_v40 = vpop.eup %118  ;;  %v43_v42 = vmul.f32 %v117_v36, %v34_v18 }
  0x17   :  { %v41_v37 = vsel %vm39_vm1, %v40_v25, %v38_v32  ;;  %v58_v38 = vsel %vm57_vm2, %v53_v16, %v56_v30  ;;  %v63_v45 = vmul.f32 %v119_v40, %v54_v19 }
  0x18   :  { %v61_v41 = vsel %vm59_vm3, %v60_v29, %v58_v38  ;;  %v45_v47 = vsel %vm44_vm4, %v34_v18, %v43_v42 }
  0x19   :  { %v69_v44 = vadd.f32 %v61_v41, %v41_v37  ;;  %v48_v49 = vsel %vm46_vm5, %v47_v39, %v45_v47  ;;  %v65_v50 = vsel %vm64_vm6, %v54_v19, %v63_v45 }
  0x1a   :  { %v68_v52 = vsel %vm66_vm7, %v67_v43, %v65_v50 }
  0x1b   :  { %v81_v48 = vmul.f32 0.01, %v69_v44  ;;  %v70_v54 = vadd.f32 %v68_v52, %v48_v49 }
  0x1d   :  { %v83_v53 = vadd.f32 0.5, %v81_v48  ;;  %v82_v58 = vmul.f32 0.01, %v70_v54 }
  0x1f   :  { %v85_v57 = vmul.f32 %v83_v53, %v83_v53  ;;  %v84_v61 = vadd.f32 0.5, %v82_v58 }
  0x21   :  { %vm87_vm8 = vcmp.gt.f32.partialorder %v79_v51, %v85_v57  ;;  %v86_v0 = vmul.f32 %v84_v61, %v84_v61 }
  0x22   :  { %v109_v63 = vsel %vm87_vm8, 1.0, %v120_v62 }
  0x23   :  { %93 = vst [vmem:[%s187_s3] sm:$0xff] %v109_v63  ;;  %vm88_vm10 = vcmp.gt.f32.partialorder %v80_v60, %v86_v0 }
  0x24   :  { %v110_v1 = vsel %vm88_vm10, 1.0, %v120_v62 }
  0x25   :  { %98 = vst.msk [vmem:[%s187_s3 + $0x8] sm:$0x1] %vm96_vm9, %v110_v1 }

// kernel: _lambda_.3
= control target key start
LH: loop header
LB: loop body
LE: loop exit
PB: predicated region body
PF: predicated region fallthrough
CT: control target
= control target key end

     0   :  { %15 = vsyncpa [#allocation3], 0  ;;  %s1452_s0 = inlined_call_operand.vmem [shape: f32[5], index: 0, kind: input, shape index: {}]   ;;  %s1453_s1 = inlined_call_operand.vmem [shape: f32[2,9,512], index: 1, kind: input, shape index: {}]   ;;  %s1454_s2 = inlined_call_operand.vmem [shape: f32[2,9,9], index: 2, kind: input, shape index: {}]   ;;  %s1455_s3 = inlined_call_operand.vmem [shape: f32[2,9,9], index: 3, kind: input, shape index: {}]   ;;  %s1456_s4 = inlined_call_operand.vmem [shape: f32[9,1], index: 4, kind: input, shape index: {}]   ;;  %s1457_s5 = inlined_call_operand.vmem [shape: f32[9,1], index: 5, kind: input, shape index: {}]   ;;  %s1458_s6 = inlined_call_operand.vmem [shape: f32[9,512], index: 6, kind: input, shape index: {}]   ;;  %s1459_s7 = inlined_call_operand.vmem [shape: f32[9,512], index: 7, kind: input, shape index: {}]   ;;  %s1460_s8 = inlined_call_operand.vmem [shape: f32[9,512], index: 8, kind: output, shape index: {0}]   ;;  %s1461_s9 = inlined_call_operand.vmem [shape: f32[9,512], index: 9, kind: output, shape index: {1}]  }
   0x1   :  { %s22_s11 = sshll.u32 %s1452_s0, 4  ;;  %s23_s11 = int_to_ptr.vmem [resolvable:$true] %s22_s11 }
   0x2   :  { %s1057_s12 = scalar_lea.vmem %s23_s11, 16  ;;  %p1062_p1 = scmp.lt.s32.totalorder %s23_s11, %s23_s11 }
   0x3   :  { %p1058_p0 = scmp.ne.s32.totalorder %s23_s11, %s1057_s12  ;;  %p1063_p2 = scmp.lt.s32.totalorder %s1057_s12, %s1057_s12 }
   0x5   :  { %p1064_p3 = por %p1063_p2, %p1062_p1 }
   0x7   :  { %p1065_p4 = pnand %p1064_p3, %p1058_p0 }
   0x9   :  { %1068 = shalt.err (!%p1065_p4)
}
   0xa   :  { %s1071_s13 = smov [#allocation2]  }
   0xb   :  { %25 = dma.vmem_to_smem %s23_s11, 16, %s1071_s13, [#allocation3]  }
   0xc   :  { %1069 = dma.done.wait [#allocation3], 16  }
   0xd   :  { %1070 = vsyncadd [#allocation3], 4294967280 }
   0xe   :  { %43 = sfence }
   0xf   :  { %s61_s14 = sld [smem:[#allocation2]]  ;;  %v1130_v0 = vld [vmem:[%s1453_s1 + $0x28] sm:$0x1]  ;;  %v1142_v2 = vld [vmem:[%s1453_s1 + $0x38] sm:$0x1]  ;;  %v1072_v10 = vmov 0.0  }
  0x10   :  { %s972_s15 = sld [smem:[#allocation2 + $0x1]]  ;;  %v1135_v1 = vld [vmem:[%s1453_s1 + $0x68] sm:$0x1]  ;;  %v1147_v3 = vld [vmem:[%s1453_s1 + $0x20] sm:$0x1]  ;;  %280 = vmatprep.mubr.f32.mxu0 %v1072_v10  ;;  %357 = vmatprep.mubr.f32.mxu1 %v1072_v10  ;;  %v1073_v15 = vmov 0  }
  0x11   :  { %s973_s16 = sld [smem:[#allocation2 + $0x2]]  ;;  %v1152_v4 = vld [vmem:[%s1453_s1 + $0x78] sm:$0x1]  ;;  %v1157_v5 = vld [vmem:[%s1453_s1 + $0x60] sm:$0x1]  ;;  %v1172_v9 = vld [vmem:[%s1453_s1 + $0x8] sm:$0xff]  ;;  %1023 = vset.pattern.permute.xlu0 %v1073_v15  ;;  %1024 = vset.pattern.permute.xlu1 %v1073_v15 }
  0x12   :  { %s974_s20 = sld [smem:[#allocation2 + $0x3]]  ;;  %v1162_v7 = vld [vmem:[%s1453_s1 + $0x30] sm:$0x1]  ;;  %v1187_v20 = vld [vmem:[%s1453_s1 + $0x48] sm:$0xff]  ;;  %v1192_v21 = vld [vmem:[%s1453_s1 + $0x18] sm:$0xff]  ;;  %vm203_vm0 = vcmask 1040384  }
  0x13   :  { %s1137_s21 = sld [smem:[#allocation2 + $0x4]]  ;;  %v1167_v8 = vld [vmem:[%s1453_s1 + $0x70] sm:$0x1]  ;;  %v1197_v22 = vld [vmem:[%s1453_s1 + $0x58] sm:$0xff]  ;;  %v1207_v27 = vld [vmem:[%s1453_s1] sm:$0xff]  ;;  %vm196_vm1 = vcmask 72704  }
  0x14   :  { %v542_v28 = vld [vmem:[%s1456_s4] sm:$0xff]  ;;  %v1229_v39 = vld [vmem:[%s1453_s1 + $0x10] sm:$0xff]  ;;  %v543_v40 = vld [vmem:[%s1456_s4 + $0x8] sm:$0x1] }
  0x15   :  { %v62_v6 = vstv %s61_s14  ;;  %v1218_v33 = vld [vmem:[%s1453_s1 + $0x40] sm:$0xff]  ;;  %546 = vperm.xlu0 %1023, %v542_v28   ;;  %v912_v45 = vld [vmem:[%s1457_s5 + $0x8] sm:$0x1]  ;;  %v1246_v50 = vld [vmem:[%s1453_s1 + $0x50] sm:$0xff] }
  0x16   :  { %v68_v11 = vmul.f32 %v62_v6, %v1130_v0  ;;  %v72_v12 = vstv %s972_s15  ;;  %v70_v13 = vmul.f32 %v62_v6, %v1142_v2  ;;  %v67_v14 = vmul.f32 %v62_v6, %v1147_v3  ;;  %v911_v34 = vld [vmem:[%s1457_s5] sm:$0xff] }
  0x17   :  { %v78_v16 = vmul.f32 %v1135_v1, %v72_v12  ;;  %v1180_v17 = vstv %s973_s16  ;;  %v80_v18 = vmul.f32 %v1152_v4, %v72_v12  ;;  %v77_v19 = vmul.f32 %v1157_v5, %v72_v12  ;;  %915 = vperm.xlu1 %1024, %v911_v34  }
  0x18   :  { %v1199_v23 = vstv %s974_s20  ;;  %v69_v24 = vmul.f32 %v62_v6, %v1162_v7  ;;  %v79_v25 = vmul.f32 %v1167_v8, %v72_v12  ;;  %v64_v26 = vmul.f32 %v62_v6, %v1172_v9 }
  0x19   :  { %v86_v29 = vadd.f32 %v78_v16, %v68_v11  ;;  %v1213_v30 = vstv %s1137_s21  ;;  %v88_v31 = vadd.f32 %v80_v18, %v70_v13  ;;  %v85_v32 = vadd.f32 %v77_v19, %v67_v14  ;;  %551 = vperm.xlu0 %1023, %v543_v40  }
  0x1a   :  { %v87_v35 = vadd.f32 %v79_v25, %v69_v24  ;;  %v74_v36 = vmul.f32 %v1187_v20, %v72_v12  ;;  %v66_v37 = vmul.f32 %v62_v6, %v1192_v21  ;;  %v76_v38 = vmul.f32 %v1197_v22, %v72_v12 }
  0x1b   :  { %v96_v41 = vadd.f32 %v1180_v17, %v86_v29  ;;  %v98_v42 = vadd.f32 %v1180_v17, %v88_v31  ;;  %v95_v43 = vadd.f32 %v1180_v17, %v85_v32  ;;  %v63_v44 = vmul.f32 %v62_v6, %v1207_v27  ;;  %920 = vperm.xlu1 %1024, %v912_v45  }
  0x1c   :  { %v97_v46 = vadd.f32 %v1180_v17, %v87_v35  ;;  %v82_v47 = vadd.f32 %v74_v36, %v64_v26  ;;  %v84_v48 = vadd.f32 %v76_v38, %v66_v37  ;;  %v73_v49 = vmul.f32 %v1218_v33, %v72_v12 }
  0x1d   :  { %v104_v51 = vmax.f32 %v96_v41, 0.0  ;;  %v106_v52 = vmax.f32 %v98_v42, 0.0  ;;  %v103_v53 = vmax.f32 %v95_v43, 0.0  ;;  %v65_v54 = vmul.f32 %v62_v6, %v1229_v39 }
  0x1e   :  { %v105_v55 = vmax.f32 %v97_v46, 0.0  ;;  %v92_v56 = vadd.f32 %v1180_v17, %v82_v47  ;;  %v94_v57 = vadd.f32 %v1180_v17, %v84_v48  ;;  %v81_v58 = vadd.f32 %v73_v49, %v63_v44 }
  0x1f   :  { %v114_v59 = vmul.f32 %v1199_v23, %v104_v51  ;;  %v116_v60 = vmul.f32 %v1199_v23, %v106_v52  ;;  %v113_v61 = vmul.f32 %v1199_v23, %v103_v53  ;;  %v75_v62 = vmul.f32 %v1246_v50, %v72_v12 }
  0x20   :  { %v115_v63 = vmul.f32 %v1199_v23, %v105_v55  ;;  %v100_v11 = vmax.f32 %v92_v56, 0.0  ;;  %v102_v6 = vmax.f32 %v94_v57, 0.0  ;;  %v91_v13 = vadd.f32 %v1180_v17, %v81_v58 }
  0x21   :  { %v124_v14 = vadd.f32 %v1213_v30, %v114_v59  ;;  %v126_v15 = vadd.f32 %v1213_v30, %v116_v60  ;;  %v123_v16 = vadd.f32 %v1213_v30, %v113_v61  ;;  %v83_v18 = vadd.f32 %v75_v62, %v65_v54 }
  0x22   :  { %v125_v19 = vadd.f32 %v1213_v30, %v115_v63  ;;  %v110_v24 = vmul.f32 %v1199_v23, %v100_v11  ;;  %v112_v25 = vmul.f32 %v1199_v23, %v102_v6  ;;  %v99_v12 = vmax.f32 %v91_v13, 0.0 }
  0x23   :  { %v981_v26 = vmul.f32 -1.442695, %v124_v14  ;;  %v983_v28 = vmul.f32 -1.442695, %v126_v15  ;;  %v980_v29 = vmul.f32 -1.442695, %v123_v16  ;;  %v93_v31 = vadd.f32 %v1180_v17, %v83_v18 }
  0x24   :  { %v982_v32 = vmul.f32 -1.442695, %v125_v19  ;;  %v120_v34 = vadd.f32 %v1213_v30, %v110_v24  ;;  %v122_v35 = vadd.f32 %v1213_v30, %v112_v25  ;;  %v109_v36 = vmul.f32 %v1199_v23, %v99_v12  ;;  %v984_v24 = vld [vmem:[%s1454_s2 + $0x10] sm:$0xff] }
  0x25   :  { %1025 = vpow2.f32 %v981_v26  ;;  %v101_v37 = vmax.f32 %v93_v31, 0.0  ;;  %v587_v26 = vld [vmem:[%s1455_s3 + $0x8] sm:$0x1] }
  0x26   :  { %1027 = vpow2.f32 %v983_v28  ;;  %v977_v38 = vmul.f32 -1.442695, %v120_v34  ;;  %v979_v40 = vmul.f32 -1.442695, %v122_v35  ;;  %v119_v41 = vadd.f32 %v1213_v30, %v109_v36 }
  0x27   :  { %1029 = vpow2.f32 %v980_v29  ;;  %v111_v42 = vmul.f32 %v1199_v23, %v101_v37 }
  0x28   :  { %1031 = vpow2.f32 %v982_v32  ;;  %v976_v43 = vmul.f32 -1.442695, %v119_v41 }
  0x29   :  { %1033 = vpow2.f32 %v977_v38  ;;  %v121_v17 = vadd.f32 %v1213_v30, %v111_v42 }
  0x2a   :  { %1035 = vpow2.f32 %v979_v40 }
  0x2b   :  { %1037 = vpow2.f32 %v976_v43  ;;  %v978_v44 = vmul.f32 -1.442695, %v121_v17 }
  0x2d   :  { %1039 = vpow2.f32 %v978_v44 }
  0x32   :  { %v1026_v45 = vpop.eup %1025 }
  0x33   :  { %v1028_v46 = vpop.eup %1027  ;;  %v156_v47 = vadd.f32 1.0, %v1026_v45 }
  0x34   :  { %v1030_v48 = vpop.eup %1029  ;;  %v158_v49 = vadd.f32 1.0, %v1028_v46  ;;  %v564_v46 = vld [vmem:[%s1458_s6 + $0x10] sm:$0xff] }
  0x35   :  { %v1032_v51 = vpop.eup %1031  ;;  %1041 = vrcp.f32 %v156_v47  ;;  %v155_v52 = vadd.f32 1.0, %v1030_v48  ;;  %v563_v47 = vld [vmem:[%s1458_s6 + $0x8] sm:$0xff] }
  0x36   :  { %v1034_v53 = vpop.eup %1033  ;;  %1043 = vrcp.f32 %v158_v49  ;;  %v157_v23 = vadd.f32 1.0, %v1032_v51 }
  0x37   :  { %v1036_v54 = vpop.eup %1035  ;;  %1045 = vrcp.f32 %v155_v52  ;;  %v152_v55 = vadd.f32 1.0, %v1034_v53 }
  0x38   :  { %v1038_v56 = vpop.eup %1037  ;;  %1047 = vrcp.f32 %v157_v23  ;;  %v154_v30 = vadd.f32 1.0, %v1036_v54 }
  0x39   :  { %1049 = vrcp.f32 %v152_v55  ;;  %v151_v57 = vadd.f32 1.0, %v1038_v56  ;;  %v565_v55 = vld [vmem:[%s1458_s6 + $0x18] sm:$0xff] }
  0x3a   :  { %v1040_v58 = vpop.eup %1039  ;;  %1051 = vrcp.f32 %v154_v30 }
  0x3b   :  { %1053 = vrcp.f32 %v151_v57  ;;  %v153_v59 = vadd.f32 1.0, %v1040_v58 }
  0x3d   :  { %1055 = vrcp.f32 %v153_v59 }
  0x42   :  { %v1042_v60 = vpop.eup %1041 }
  0x43   :  { %v1044_v61 = vpop.eup %1043  ;;  %v188_v62 = vmul.f32 %v1042_v60, %v1135_v1 }
  0x44   :  { %v1046_v63 = vpop.eup %1045  ;;  %v190_v11 = vmul.f32 %v1044_v61, %v1152_v4  ;;  %v180_v4 = vmul.f32 %v1042_v60, %v1130_v0  ;;  %v985_v0 = vld [vmem:[%s1454_s2 + $0x18] sm:$0x1] }
  0x45   :  { %v1048_v6 = vpop.eup %1047  ;;  %986 = vmatprep.subr.msk.mxu0 %vm203_vm0, %v188_v62  ;;  %v187_v13 = vmul.f32 %v1046_v63, %v1157_v5 }
  0x46   :  { %v1050_v14 = vpop.eup %1049  ;;  %990 = vmatprep.subr.msk.mxu1 %vm203_vm0, %v190_v11  ;;  %v189_v15 = vmul.f32 %v1048_v6, %v1167_v8  ;;  %v179_v8 = vmul.f32 %v1046_v63, %v1147_v3  ;;  %v568_v63 = vld [vmem:[%s1458_s6 + $0x30] sm:$0x1] }
  0x47   :  { %v1052_v16 = vpop.eup %1051  ;;  %987 = vmatpush1.msk.msra.mxu0 %vm203_vm0, %v187_v13  ;;  %v184_v18 = vmul.f32 %v1050_v14, %v1187_v20  ;;  %v182_v20 = vmul.f32 %v1044_v61, %v1142_v2  ;;  %v176_v3 = vmul.f32 %v1050_v14, %v1172_v9  ;;  %v191_v9 = vld [vmem:[%s1454_s2] sm:$0xff] }
  0x48   :  { %v1054_v19 = vpop.eup %1053  ;;  %991 = vmatpush1.msk.msra.mxu1 %vm203_vm0, %v189_v15  ;;  %v186_v1 = vmul.f32 %v1052_v16, %v1197_v22  ;;  %v181_v22 = vmul.f32 %v1048_v6, %v1162_v7  ;;  %v178_v2 = vmul.f32 %v1052_v16, %v1192_v21  ;;  %v192_v21 = vld [vmem:[%s1454_s2 + $0x8] sm:$0x1] }
  0x49   :  { %246 = vmatprep.subr.mxu0 %v184_v18  ;;  %v183_v5 = vmul.f32 %v1054_v19, %v1218_v33  ;;  %v175_v7 = vmul.f32 %v1054_v19, %v1207_v27  ;;  %v1002_v27 = vld [vmem:[%s1455_s3 + $0x10] sm:$0xff] }
  0x4a   :  { %v1056_v25 = vpop.eup %1055  ;;  %323 = vmatprep.subr.mxu1 %v186_v1 }
  0x4b   :  { %247 = vmatpush1.msra.mxu0 %v183_v5  ;;  %v185_v12 = vmul.f32 %v1056_v25, %v1246_v50  ;;  %v177_v33 = vmul.f32 %v1056_v25, %v1229_v39  ;;  %v1003_v39 = vld [vmem:[%s1455_s3 + $0x18] sm:$0x1]  ;;  %v586_v50 = vld [vmem:[%s1455_s3] sm:$0xff] }
  0x4c   :  { %988 = vmatmul.mubr.msk.f32.vlgmr.msra.gmra.mxu0 %vm196_vm1, %v984_v24  ;;  %994 = vmatprep.subr.msk.mxu0 %vm203_vm0, %v180_v4 }
  0x4d   :  { %324 = vmatpush1.msra.mxu1 %v185_v12  ;;  %995 = vmatpush1.msk.msra.mxu0 %vm203_vm0, %v179_v8 }
  0x4e   :  { %992 = vmatmul.mubr.msk.f32.vlgmr.msra.gmra.mxu1 %vm196_vm1, %v984_v24  ;;  %998 = vmatprep.subr.msk.mxu1 %vm203_vm0, %v182_v20 }
  0x4f   :  { %999 = vmatpush1.msk.msra.mxu1 %vm203_vm0, %v181_v22  ;;  %286 = vmatprep.mubr.f32.mxu0 %v1072_v10 }
  0x50   :  { %363 = vmatprep.mubr.f32.mxu1 %v1072_v10  ;;  %989 = vmatmul.mubr.msk.f32.gmra.mxu0 %vm196_vm1, %v985_v0 }
  0x51   :  { %418 = vmatprep.subr.mxu0 %v176_v3  ;;  %495 = vmatprep.subr.mxu1 %v178_v2 }
  0x52   :  { %993 = vmatmul.mubr.msk.f32.gmra.mxu1 %vm196_vm1, %v985_v0  ;;  %419 = vmatpush1.msra.mxu0 %v175_v7 }
  0x53   :  { %496 = vmatpush1.msra.mxu1 %v177_v33  ;;  %452 = vmatprep.mubr.f32.mxu0 %v1072_v10 }
  0x54   :  { %529 = vmatprep.mubr.f32.mxu1 %v1072_v10  ;;  %996 = vmatmul.mubr.msk.f32.vlgmr.msra.gmra.mxu0 %vm196_vm1, %v191_v9 }
  0x55   :  { %1004 = vmatprep.subr.msk.mxu0 %vm203_vm0, %v188_v62  ;;  %1008 = vmatprep.subr.msk.mxu1 %vm203_vm0, %v190_v11  ;;  %v566_v62 = vld [vmem:[%s1458_s6 + $0x20] sm:$0x1] }
  0x56   :  { %1000 = vmatmul.mubr.msk.f32.vlgmr.msra.gmra.mxu1 %vm196_vm1, %v191_v9  ;;  %1005 = vmatpush1.msk.msra.mxu0 %vm203_vm0, %v187_v13 }
  0x57   :  { %1009 = vmatpush1.msk.msra.mxu1 %vm203_vm0, %v189_v15  ;;  %458 = vmatprep.mubr.f32.mxu0 %v1072_v10 }
  0x58   :  { %535 = vmatprep.mubr.f32.mxu1 %v1072_v10  ;;  %997 = vmatmul.mubr.msk.f32.gmra.mxu0 %vm196_vm1, %v192_v21 }
  0x59   :  { %627 = vmatprep.subr.mxu0 %v184_v18  ;;  %704 = vmatprep.subr.mxu1 %v186_v1  ;;  %v567_v18 = vld [vmem:[%s1458_s6 + $0x28] sm:$0x1] }
  0x5a   :  { %1001 = vmatmul.mubr.msk.f32.gmra.mxu1 %vm196_vm1, %v192_v21  ;;  %628 = vmatpush1.msra.mxu0 %v183_v5  ;;  %v569_v5 = vld [vmem:[%s1458_s6 + $0x38] sm:$0x1] }
  0x5b   :  { %705 = vmatpush1.msra.mxu1 %v185_v12  ;;  %661 = vmatprep.mubr.f32.mxu0 %v1072_v10 }
  0x5c   :  { %738 = vmatprep.mubr.f32.mxu1 %v1072_v10  ;;  %1006 = vmatmul.mubr.msk.f32.vlgmr.msra.gmra.mxu0 %vm196_vm1, %v1002_v27 }
  0x5d   :  { %1012 = vmatprep.subr.msk.mxu0 %vm203_vm0, %v180_v4  ;;  %1016 = vmatprep.subr.msk.mxu1 %vm203_vm0, %v182_v20 }
  0x5e   :  { %1010 = vmatmul.mubr.msk.f32.vlgmr.msra.gmra.mxu1 %vm196_vm1, %v1002_v27  ;;  %1013 = vmatpush1.msk.msra.mxu0 %vm203_vm0, %v179_v8 }
  0x5f   :  { %1017 = vmatpush1.msk.msra.mxu1 %vm203_vm0, %v181_v22  ;;  %667 = vmatprep.mubr.f32.mxu0 %v1072_v10 }
  0x60   :  { %744 = vmatprep.mubr.f32.mxu1 %v1072_v10  ;;  %1007 = vmatmul.mubr.msk.f32.gmra.mxu0 %vm196_vm1, %v1003_v39 }
  0x61   :  { %787 = vmatprep.subr.mxu0 %v176_v3  ;;  %864 = vmatprep.subr.mxu1 %v178_v2 }
  0x62   :  { %1011 = vmatmul.mubr.msk.f32.gmra.mxu1 %vm196_vm1, %v1003_v39  ;;  %788 = vmatpush1.msra.mxu0 %v175_v7 }
  0x63   :  { %865 = vmatpush1.msra.mxu1 %v177_v33  ;;  %821 = vmatprep.mubr.f32.mxu0 %v1072_v10 }
  0x64   :  { %898 = vmatprep.mubr.f32.mxu1 %v1072_v10  ;;  %1014 = vmatmul.mubr.msk.f32.vlgmr.msra.gmra.mxu0 %vm196_vm1, %v586_v50 }
  0x65   :  { %827 = vmatprep.mubr.f32.mxu0 %v1072_v10 }
  0x66   :  { %1018 = vmatmul.mubr.msk.f32.vlgmr.msra.gmra.mxu1 %vm196_vm1, %v586_v50  ;;  %v931_v50 = vld [vmem:[%s1459_s7] sm:$0xff] }
  0x67   :  { %904 = vmatprep.mubr.f32.mxu1 %v1072_v10  ;;  %v562_v10 = vld [vmem:[%s1458_s6] sm:$0xff] }
  0x68   :  { %1015 = vmatmul.mubr.msk.f32.gmra.mxu0 %vm196_vm1, %v587_v26 }
  0x6a   :  { %1019 = vmatmul.mubr.msk.f32.gmra.mxu1 %vm196_vm1, %v587_v26 }
  0x90   :  { %v547_v37 = vpop.permute.xlu0 %546 }
  0x92   :  { %v916_v27 = vpop.permute.xlu1 %915 }
  0x94   :  { %v552_v54 = vpop.permute.xlu0 %551 }
 0x10c   :  { %v282_v28 = vpop.f32.mrf.mxu0 }
 0x10e   :  { %v359_v29 = vpop.f32.mrf.mxu1  ;;  %v284_v31 = vpop.f32.mrf.mxu0 }
 0x110   :  { %v361_v32 = vpop.f32.mrf.mxu1  ;;  %v288_v34 = vpop.f32.mrf.mxu0 }
 0x112   :  { %v365_v35 = vpop.f32.mrf.mxu1  ;;  %v290_v36 = vpop.f32.mrf.mxu0 }
 0x114   :  { %v367_v38 = vpop.f32.mrf.mxu1  ;;  %v454_v40 = vpop.f32.mrf.mxu0 }
 0x115   :  { %v455_v41 = vadd.f32 %v454_v40, %v282_v28 }
 0x116   :  { %v531_v42 = vpop.f32.mrf.mxu1  ;;  %v456_v43 = vpop.f32.mrf.mxu0 }
 0x117   :  { %v532_v17 = vadd.f32 %v531_v42, %v359_v29  ;;  %v554_v44 = vadd.f32 %v547_v37, %v455_v41  ;;  %v457_v45 = vadd.f32 %v456_v43, %v284_v31  ;;  %v934_v42 = vld [vmem:[%s1459_s7 + $0x18] sm:$0xff] }
 0x118   :  { %v533_v48 = vpop.f32.mrf.mxu1  ;;  %v460_v49 = vpop.f32.mrf.mxu0 }
 0x119   :  { %v556_v51 = vadd.f32 %v547_v37, %v532_v17  ;;  %v570_v52 = vadd.f32 %v562_v10, %v554_v44  ;;  %v555_v53 = vadd.f32 %v547_v37, %v457_v45  ;;  %v534_v23 = vadd.f32 %v533_v48, %v361_v32  ;;  %v933_v32 = vld [vmem:[%s1459_s7 + $0x10] sm:$0xff]  ;;  %v935_v48 = vld [vmem:[%s1459_s7 + $0x20] sm:$0x1] }
 0x11a   :  { %v461_v56 = vadd.f32 %v460_v49, %v288_v34  ;;  %v537_v30 = vpop.f32.mrf.mxu1  ;;  %v462_v57 = vpop.f32.mrf.mxu0  ;;  %v932_v34 = vld [vmem:[%s1459_s7 + $0x8] sm:$0xff] }
 0x11b   :  { %v572_v58 = vadd.f32 %v564_v46, %v556_v51  ;;  %578 = vst [vmem:[%s1460_s8] sm:$0xff] %v570_v52  ;;  %v571_v59 = vadd.f32 %v563_v47, %v555_v53  ;;  %v557_v60 = vadd.f32 %v547_v37, %v534_v23  ;;  %v538_v61 = vadd.f32 %v537_v30, %v365_v35  ;;  %v921_v49 = vpop.permute.xlu1 %920  ;;  %v937_v51 = vld [vmem:[%s1459_s7 + $0x30] sm:$0x1] }
 0x11c   :  { %v558_v11 = vadd.f32 %v552_v54, %v461_v56  ;;  %v463_v6 = vadd.f32 %v462_v57, %v290_v36  ;;  %v539_v13 = vpop.f32.mrf.mxu1  ;;  %v663_v14 = vpop.f32.mrf.mxu0  ;;  %v936_v56 = vld [vmem:[%s1459_s7 + $0x28] sm:$0x1] }
 0x11d   :  { %580 = vst [vmem:[%s1460_s8 + $0x10] sm:$0xff] %v572_v58  ;;  %579 = vst [vmem:[%s1460_s8 + $0x8] sm:$0xff] %v571_v59  ;;  %v573_v15 = vadd.f32 %v565_v55, %v557_v60  ;;  %v560_v16 = vadd.f32 %v552_v54, %v538_v61  ;;  %v540_v19 = vadd.f32 %v539_v13, %v367_v38  ;;  %v938_v59 = vld [vmem:[%s1459_s7 + $0x38] sm:$0x1] }
 0x11e   :  { %v574_v1 = vadd.f32 %v566_v62, %v558_v11  ;;  %v559_v4 = vadd.f32 %v552_v54, %v463_v6  ;;  %v740_v24 = vpop.f32.mrf.mxu1  ;;  %v665_v8 = vpop.f32.mrf.mxu0 }
 0x11f   :  { %581 = vst [vmem:[%s1460_s8 + $0x18] sm:$0xff] %v573_v15  ;;  %v576_v25 = vadd.f32 %v568_v63, %v560_v16  ;;  %v561_v20 = vadd.f32 %v552_v54, %v540_v19 }
 0x120   :  { %582 = vst [vmem:[%s1460_s8 + $0x20] sm:$0x1] %v574_v1  ;;  %v575_v12 = vadd.f32 %v567_v18, %v559_v4  ;;  %v742_v22 = vpop.f32.mrf.mxu1  ;;  %v669_v0 = vpop.f32.mrf.mxu0 }
 0x121   :  { %584 = vst [vmem:[%s1460_s8 + $0x30] sm:$0x1] %v576_v25  ;;  %v577_v3 = vadd.f32 %v569_v5, %v561_v20 }
 0x122   :  { %583 = vst [vmem:[%s1460_s8 + $0x28] sm:$0x1] %v575_v12  ;;  %v746_v2 = vpop.f32.mrf.mxu1  ;;  %v671_v7 = vpop.f32.mrf.mxu0 }
 0x123   :  { %585 = vst [vmem:[%s1460_s8 + $0x38] sm:$0x1] %v577_v3 }
 0x124   :  { %v748_v33 = vpop.f32.mrf.mxu1  ;;  %v823_v9 = vpop.f32.mrf.mxu0 }
 0x125   :  { %v824_v21 = vadd.f32 %v823_v9, %v663_v14 }
 0x126   :  { %v900_v39 = vpop.f32.mrf.mxu1  ;;  %v825_v26 = vpop.f32.mrf.mxu0 }
 0x127   :  { %v901_v28 = vadd.f32 %v900_v39, %v740_v24  ;;  %v923_v29 = vadd.f32 %v916_v27, %v824_v21  ;;  %v826_v31 = vadd.f32 %v825_v26, %v665_v8 }
 0x128   :  { %v902_v35 = vpop.f32.mrf.mxu1  ;;  %v829_v36 = vpop.f32.mrf.mxu0 }
 0x129   :  { %v925_v37 = vadd.f32 %v916_v27, %v901_v28  ;;  %v939_v38 = vadd.f32 %v931_v50, %v923_v29  ;;  %v924_v40 = vadd.f32 %v916_v27, %v826_v31  ;;  %v903_v41 = vadd.f32 %v902_v35, %v742_v22 }
 0x12a   :  { %v830_v10 = vadd.f32 %v829_v36, %v669_v0  ;;  %v906_v43 = vpop.f32.mrf.mxu1  ;;  %v831_v17 = vpop.f32.mrf.mxu0 }
 0x12b   :  { %v941_v44 = vadd.f32 %v933_v32, %v925_v37  ;;  %947 = vst [vmem:[%s1461_s9] sm:$0xff] %v939_v38  ;;  %v940_v45 = vadd.f32 %v932_v34, %v924_v40  ;;  %v926_v46 = vadd.f32 %v916_v27, %v903_v41  ;;  %v907_v47 = vadd.f32 %v906_v43, %v746_v2 }
 0x12c   :  { %v927_v52 = vadd.f32 %v921_v49, %v830_v10  ;;  %v832_v53 = vadd.f32 %v831_v17, %v671_v7  ;;  %v908_v23 = vpop.f32.mrf.mxu1 }
 0x12d   :  { %949 = vst [vmem:[%s1461_s9 + $0x10] sm:$0xff] %v941_v44  ;;  %948 = vst [vmem:[%s1461_s9 + $0x8] sm:$0xff] %v940_v45  ;;  %v942_v54 = vadd.f32 %v934_v42, %v926_v46  ;;  %v929_v55 = vadd.f32 %v921_v49, %v907_v47  ;;  %v909_v30 = vadd.f32 %v908_v23, %v748_v33 }
 0x12e   :  { %v943_v57 = vadd.f32 %v935_v48, %v927_v52  ;;  %v928_v58 = vadd.f32 %v921_v49, %v832_v53 }
 0x12f   :  { %950 = vst [vmem:[%s1461_s9 + $0x18] sm:$0xff] %v942_v54  ;;  %v945_v60 = vadd.f32 %v937_v51, %v929_v55  ;;  %v930_v61 = vadd.f32 %v921_v49, %v909_v30 }
 0x130   :  { %951 = vst [vmem:[%s1461_s9 + $0x20] sm:$0x1] %v943_v57  ;;  %v944_v62 = vadd.f32 %v936_v56, %v928_v58 }
 0x131   :  { %953 = vst [vmem:[%s1461_s9 + $0x30] sm:$0x1] %v945_v60  ;;  %v946_v63 = vadd.f32 %v938_v59, %v930_v61 }
 0x132   :  { %952 = vst [vmem:[%s1461_s9 + $0x28] sm:$0x1] %v944_v62 }
 0x133   :  { %954 = vst [vmem:[%s1461_s9 + $0x38] sm:$0x1] %v946_v63 }
 0x134   :  { %963 = vsyncpa [#allocation3], 1 }

// kernel: _lambda_.4
= control target key start
LH: loop header
LB: loop body
LE: loop exit
PB: predicated region body
PF: predicated region fallthrough
CT: control target
= control target key end

     0   :  { %s4722_s27 = smov 0   ;;  %s4724_s28 = smov 0   ;;  %s8295_s0 = inlined_call_operand.vmem [shape: f32[9,1,512], index: 0, kind: input, shape index: {}]   ;;  %s8296_s1 = inlined_call_operand.vmem [shape: f32[9,1,512], index: 1, kind: input, shape index: {}]   ;;  %s8297_s2 = inlined_call_operand.vmem [shape: f32[1,16,512], index: 2, kind: input, shape index: {}]   ;;  %s8298_s3 = inlined_call_operand.vmem [shape: f32[9,16,16], index: 3, kind: input, shape index: {}]   ;;  %s8299_s4 = inlined_call_operand.vmem [shape: f32[8,16], index: 4, kind: input, shape index: {}]   ;;  %s8300_s5 = inlined_call_operand.vmem [shape: f32[8,1], index: 5, kind: input, shape index: {}]   ;;  %s8301_s6 = inlined_call_operand.vmem [shape: f32[16,8], index: 6, kind: input, shape index: {}]   ;;  %s8302_s7 = inlined_call_operand.vmem [shape: f32[16,1], index: 7, kind: input, shape index: {}]   ;;  %s8303_s8 = inlined_call_operand.vmem [shape: f32[1,16,512], index: 8, kind: output, shape index: {}]  }
   0x1   :  { %s4726_s29 = smov 0  }
   0x2 LB: > { %s27_s30 = sadd.s32 1, %s4666_s28  ;;  %p4555_p0 = scmp.ge.s32.totalorder %s4670_s29, 1  ;;  %s4670_s29 = sphi %s4726_s29, %s18_s29   ;;  %s4666_s28 = sphi %s4724_s28, %s8457_s28   ;;  %s4662_s27 = sphi %s4722_s27, %s8456_s27  }
   0x3   : > { %p28_p1 = scmp.ge.s32.totalorder %s27_s30, 9  ;;  %p302_p2 = scmp.lt.s32.totalorder %s4670_s29, 10 }
   0x5   : > { %s8459_s30 = smov (%p28_p1, %s27_s30), 0  ;;  %p303_p3 = pnand %p4555_p0, %p302_p2 }
   0x7   : > { %306 = sbr.rel (%p303_p3) target bundleno = 1897 (0x769), region = 52 }
   0xc   : > { %p349_p4 = scmp.lt.s32.totalorder %s4662_s27, 8  ;;  %p4560_p5 = scmp.ne.s32.totalorder %s4662_s27, 0 }
   0xe   : > { %s350_s9 = scalar_select %p349_p4, %s4662_s27, 8 }
   0xf   : > { %375 = sbr.rel (%p4560_p5) target bundleno = 25 (0x19), region = 56 }
  0x10   : > { %s4556_s10 = sshll.u32 %s350_s9, 2  ;;  %s4574_s11 = sshll.u32 %s350_s9, 4 }
  0x11   : > { %s352_s14 = scalar_lea.vmem %s8295_s0, %s4556_s10  ;;  %s356_s17 = scalar_lea.vmem %s8296_s1, %s4556_s10 }
  0x12   : > { %s4753_s20 = scalar_lea.vmem %s8298_s3, %s4574_s11 }
  0x14   : > { %v4672_v0 = vmov 0.0  }
  0x15   : > { %376 = vst [vmem:[#allocation2 + $0x30] sm:$0xff] %v4672_v0  ;;  %377 = vst [vmem:[#allocation2] sm:$0xff] %v4672_v0 }
  0x16   : > { %378 = vst [vmem:[#allocation2 + $0x18] sm:$0xff] %v4672_v0  ;;  %379 = vst [vmem:[#allocation2 + $0x10] sm:$0xff] %v4672_v0 }
  0x17   : > { %380 = vst [vmem:[#allocation2 + $0x8] sm:$0xff] %v4672_v0  ;;  %381 = vst [vmem:[#allocation2 + $0x20] sm:$0xff] %v4672_v0 }
  0x18   : > { %382 = vst [vmem:[#allocation2 + $0x28] sm:$0xff] %v4672_v0  ;;  %383 = vst [vmem:[#allocation2 + $0x38] sm:$0xff] %v4672_v0 }
  0x19 PF: > { %v392_v1 = vld [vmem:[%s352_s14] sm:$0xf]  ;;  %v400_v3 = vlaneseq  ;;  %p4565_p6 = scmp.ne.s32.totalorder %s4662_s27, 8 }
  0x1a   : > { %v393_v2 = vld [vmem:[%s356_s17] sm:$0xf]  ;;  %v394_v4 = vfloor.f32 %v392_v1 }
  0x1b   : > { %v395_v5 = vfloor.f32 %v393_v2  ;;  %v4756_v6 = vshrl.u32 %v400_v3, 7 }
  0x1c   : > { %v396_v7 = vsub.f32 %v392_v1, %v394_v4  ;;  %v468_v10 = vadd.f32 1.0, %v394_v4  ;;  %vm471_vm0 = vcmp.ge.f32.partialorder %v394_v4, 0.0  ;;  %vm472_vm1 = vcmp.le.f32.partialorder %v394_v4, 15.0 }
  0x1d   : > { %v397_v8 = vsub.f32 %v393_v2, %v395_v5  ;;  %v466_v9 = vadd.f32 1.0, %v395_v5  ;;  %v4759_v11 = vadd.s32 120, %v4756_v6  ;;  %vm474_vm2 = vcmp.ge.f32.partialorder %v395_v5, 0.0  ;;  %vm473_vm3 = vmand %vm471_vm0, %vm472_vm1 }
  0x1e   : > { %v398_v12 = vsub.f32 1.0, %v396_v7  ;;  %vm476_vm4 = vcmp.le.f32.partialorder %v395_v5, 31.0  ;;  %vm475_vm5 = vmand %vm473_vm3, %vm474_vm2  ;;  %v478_v15 = vmax.f32 %v394_v4, 0.0  ;;  %v482_v16 = vmax.f32 %v395_v5, 0.0 }
  0x1f   : > { %v399_v13 = vsub.f32 1.0, %v397_v8  ;;  %v470_v14 = vmul.f32 %v397_v8, %v396_v7  ;;  %v4763_v17 = vsub.s32 1, %v4756_v6  ;;  %vm1292_vm6 = vcmp.ge.f32.partialorder %v466_v9, 0.0  ;;  %vm477_vm7 = vmand %vm475_vm5, %vm476_vm4 }
  0x20   : > { %v467_v19 = vmul.f32 %v398_v12, %v397_v8  ;;  %vm1294_vm8 = vcmp.le.f32.partialorder %v466_v9, 31.0  ;;  %v479_v21 = vmin.f32 %v478_v15, 15.0  ;;  %v483_v22 = vmin.f32 %v482_v16, 31.0  ;;  %vm1293_vm9 = vmand %vm473_vm3, %vm1292_vm6 }
  0x21   : > { %v465_v18 = vmul.f32 %v399_v13, %v398_v12  ;;  %v469_v20 = vmul.f32 %v399_v13, %v396_v7  ;;  %v1296_v23 = vmax.f32 %v466_v9, 0.0  ;;  %vm2106_vm10 = vcmp.ge.f32.partialorder %v468_v10, 0.0  ;;  %vm1295_vm11 = vmand %vm1293_vm9, %vm1294_vm8 }
  0x22   : > { %vm2107_vm12 = vcmp.le.f32.partialorder %v468_v10, 15.0  ;;  %v2111_v25 = vmax.f32 %v468_v10, 0.0  ;;  %v4771_v26 = vadd.s32 376, %v4756_v6  ;;  %v4593_v27 = vtrunc.f32 %v479_v21 }
  0x23   : > { %v4767_v24 = vsel %vm477_vm7, %v465_v18, 0.0  ;;  %v4595_v28 = vtrunc.f32 %v483_v22  ;;  %v1297_v30 = vmin.f32 %v1296_v23, 31.0  ;;  %vm2108_vm13 = vmand %vm2106_vm10, %vm2107_vm12  ;;  %v4777_v31 = vsel %vm1295_vm11, %v467_v19, 0.0 }
  0x24   : > { %v4775_v29 = vrot.slane %v4767_v24, %v4763_v17  ;;  %vm2109_vm14 = vmand %vm2108_vm13, %vm474_vm2  ;;  %v2112_v32 = vmin.f32 %v2111_v25, 15.0  ;;  %v4781_v33 = vsub.s32 0, %v4756_v6  ;;  %v4784_v34 = vadd.s32 112, %v4756_v6 }
  0x25   : > { %v4594_v35 = vcvt.f32.s32 %v4593_v27  ;;  %v4596_v36 = vcvt.f32.s32 %v4595_v28  ;;  %v4597_v37 = vtrunc.f32 %v1297_v30  ;;  %v4788_v38 = vrot.slane %v4777_v31, %v4763_v17  ;;  %vm2110_vm15 = vmand %vm2109_vm14, %vm476_vm4 }
  0x26   : > { %v4599_v39 = vtrunc.f32 %v2112_v32  ;;  %v4791_v40 = vsel %vm2110_vm15, %v469_v20, 0.0  ;;  %vm2922_vm0 = vmand %vm2108_vm13, %vm1292_vm6  ;;  %v4796_v41 = vrot.slane %v4767_v24, %v4781_v33  ;;  %v4800_v42 = vrot.slane %v4777_v31, %v4781_v33 }
  0x27   : > { %v481_v43 = vmul.u32 32, %v4594_v35  ;;  %v4598_v44 = vcvt.f32.s32 %v4597_v37  ;;  %v4804_v45 = vrot.slane %v4791_v40, %v4763_v17  ;;  %vm2923_vm1 = vmand %vm2922_vm0, %vm1294_vm8  ;;  %v4809_v46 = vrot.slane %v4791_v40, %v4781_v33 }
  0x28   : > { %v4600_v47 = vcvt.f32.s32 %v4599_v39  ;;  %v4811_v48 = vsel %vm2923_vm1, %v470_v14, 0.0  ;;  %v4814_v49 = vadd.s32 368, %v4756_v6  ;;  %v4817_v50 = vadd.s32 104, %v4756_v6 }
  0x29   : > { %v4819_v51 = vadd.s32 %v4596_v36, %v481_v43  ;;  %v4821_v52 = vadd.s32 %v4598_v44, %v481_v43  ;;  %v4825_v53 = vrot.slane %v4811_v48, %v4763_v17  ;;  %v4829_v54 = vrot.slane %v4811_v48, %v4781_v33 }
  0x2a   : > { %v2114_v55 = vmul.u32 32, %v4600_v47  ;;  %v4832_v56 = vadd.s32 360, %v4756_v6  ;;  %v4835_v57 = vadd.s32 96, %v4756_v6  ;;  %v4838_v58 = vadd.s32 352, %v4756_v6 }
  0x2b   : > { %v4842_v59 = vrot.slane %v4819_v51, %v4763_v17  ;;  %v4846_v60 = vrot.slane %v4821_v52, %v4763_v17  ;;  %v4850_v61 = vrot.slane %v4819_v51, %v4781_v33  ;;  %v4854_v62 = vrot.slane %v4821_v52, %v4781_v33 }
  0x2c   : > { %v4856_v63 = vadd.s32 %v4596_v36, %v2114_v55  ;;  %v4858_v0 = vadd.s32 %v4598_v44, %v2114_v55  ;;  %v4861_v1 = vadd.s32 88, %v4756_v6  ;;  %v4864_v2 = vadd.s32 344, %v4756_v6 }
  0x2d   : > { %vm564_vm2 = vcmp.eq.s32.totalorder %v4759_v11, %v4842_v59  ;;  %vm1378_vm3 = vcmp.eq.s32.totalorder %v4759_v11, %v4846_v60  ;;  %vm692_vm4 = vcmp.eq.s32.totalorder %v4771_v26, %v4842_v59  ;;  %vm1506_vm5 = vcmp.eq.s32.totalorder %v4771_v26, %v4846_v60 }
  0x2e   : > { %v841_v3 = vsel %vm564_vm2, %v4775_v29, 0.0  ;;  %v1655_v4 = vsel %vm1378_vm3, %v4788_v38, 0.0  ;;  %v4878_v5 = vrot.slane %v4856_v63, %v4763_v17  ;;  %v4882_v7 = vrot.slane %v4858_v0, %v4763_v17 }
  0x2f   : > { %v1911_v8 = vadd.f32 %v1655_v4, %v841_v3  ;;  %v969_v9 = vsel %vm692_vm4, %v4775_v29, 0.0  ;;  %v1783_v10 = vsel %vm1506_vm5, %v4788_v38, 0.0  ;;  %vm563_vm6 = vcmp.eq.s32.totalorder %v4759_v11, %v4850_v61 }
  0x30   : > { %vm2194_vm7 = vcmp.eq.s32.totalorder %v4759_v11, %v4878_v5  ;;  %vm3003_vm8 = vcmp.eq.s32.totalorder %v4759_v11, %v4882_v7  ;;  %v2039_v12 = vadd.f32 %v1783_v10, %v969_v9  ;;  %vm2322_vm9 = vcmp.eq.s32.totalorder %v4771_v26, %v4878_v5 }
  0x31   : > { %v2471_v13 = vsel %vm2194_vm7, %v4804_v45, 0.0  ;;  %v3280_v14 = vsel %vm3003_vm8, %v4825_v53, 0.0  ;;  %v2599_v15 = vsel %vm2322_vm9, %v4804_v45, 0.0  ;;  %vm3131_vm10 = vcmp.eq.s32.totalorder %v4771_v26, %v4882_v7 }
  0x32   : > { %v2727_v16 = vadd.f32 %v2471_v13, %v1911_v8  ;;  %v2855_v17 = vadd.f32 %v2599_v15, %v2039_v12  ;;  %v3408_v18 = vsel %vm3131_vm10, %v4825_v53, 0.0  ;;  %v840_v19 = vsel %vm563_vm6, %v4796_v41, 0.0 }
  0x33   : > { %vm1377_vm11 = vcmp.eq.s32.totalorder %v4759_v11, %v4854_v62  ;;  %v4905_v20 = vrot.slane %v4856_v63, %v4781_v33  ;;  %v4909_v21 = vrot.slane %v4858_v0, %v4781_v33  ;;  %vm691_vm12 = vcmp.eq.s32.totalorder %v4771_v26, %v4850_v61 }
  0x34   : > { %v3536_v22 = vadd.f32 %v3280_v14, %v2727_v16  ;;  %v3664_v23 = vadd.f32 %v3408_v18, %v2855_v17  ;;  %v1654_v25 = vsel %vm1377_vm11, %v4800_v42, 0.0  ;;  %v968_v27 = vsel %vm691_vm12, %v4796_v41, 0.0 }
  0x35   : > { %v1910_v28 = vadd.f32 %v1654_v25, %v840_v19  ;;  %vm2193_vm13 = vcmp.eq.s32.totalorder %v4759_v11, %v4905_v20  ;;  %vm3002_vm14 = vcmp.eq.s32.totalorder %v4759_v11, %v4909_v21  ;;  %vm1505_vm15 = vcmp.eq.s32.totalorder %v4771_v26, %v4854_v62 }
  0x36   : > { %3731 = vmatprep.subr.mxu0 %v3536_v22  ;;  %3808 = vmatprep.subr.mxu1 %v3664_v23  ;;  %v2470_v30 = vsel %vm2193_vm13, %v4809_v46, 0.0  ;;  %v3279_v32 = vsel %vm3002_vm14, %v4829_v54, 0.0  ;;  %v1782_v33 = vsel %vm1505_vm15, %v4800_v42, 0.0  ;;  %vm2321_vm0 = vcmp.eq.s32.totalorder %v4771_v26, %v4905_v20 }
  0x37   : > { %v2726_v35 = vadd.f32 %v2470_v30, %v1910_v28  ;;  %v2038_v36 = vadd.f32 %v1782_v33, %v968_v27  ;;  %v2598_v37 = vsel %vm2321_vm0, %v4809_v46, 0.0  ;;  %vm3130_vm1 = vcmp.eq.s32.totalorder %v4771_v26, %v4909_v21 }
  0x38   : > { %v3407_v39 = vsel %vm3130_vm1, %v4829_v54, 0.0  ;;  %vm560_vm2 = vcmp.eq.s32.totalorder %v4784_v34, %v4842_v59  ;;  %vm1374_vm3 = vcmp.eq.s32.totalorder %v4784_v34, %v4846_v60  ;;  %vm2190_vm4 = vcmp.eq.s32.totalorder %v4784_v34, %v4878_v5 }
  0x39   : > { %v3535_v43 = vadd.f32 %v3279_v32, %v2726_v35  ;;  %v2854_v44 = vadd.f32 %v2598_v37, %v2038_v36  ;;  %v837_v47 = vsel %vm560_vm2, %v4775_v29, 0.0  ;;  %v1651_v55 = vsel %vm1374_vm3, %v4788_v38, 0.0 }
  0x3a   : > { %v1907_v3 = vadd.f32 %v1651_v55, %v837_v47  ;;  %v2467_v4 = vsel %vm2190_vm4, %v4804_v45, 0.0  ;;  %vm2999_vm5 = vcmp.eq.s32.totalorder %v4784_v34, %v4882_v7  ;;  %vm688_vm6 = vcmp.eq.s32.totalorder %v4814_v49, %v4842_v59 }
  0x3b   : > { %3732 = vmatpush1.msra.mxu0 %v3535_v43  ;;  %v3663_v8 = vadd.f32 %v3407_v39, %v2854_v44  ;;  %v3276_v9 = vsel %vm2999_vm5, %v4825_v53, 0.0  ;;  %v965_v10 = vsel %vm688_vm6, %v4775_v29, 0.0  ;;  %vm1502_vm7 = vcmp.eq.s32.totalorder %v4814_v49, %v4846_v60 }
  0x3c   : > { %v2723_v12 = vadd.f32 %v2467_v4, %v1907_v3  ;;  %v1779_v13 = vsel %vm1502_vm7, %v4788_v38, 0.0  ;;  %vm2318_vm8 = vcmp.eq.s32.totalorder %v4814_v49, %v4878_v5  ;;  %vm3127_vm9 = vcmp.eq.s32.totalorder %v4814_v49, %v4882_v7 }
  0x3d   : > { %3809 = vmatpush1.msra.mxu1 %v3663_v8  ;;  %v2035_v14 = vadd.f32 %v1779_v13, %v965_v10  ;;  %v2595_v15 = vsel %vm2318_vm8, %v4804_v45, 0.0  ;;  %v3404_v16 = vsel %vm3127_vm9, %v4825_v53, 0.0  ;;  %vm559_vm10 = vcmp.eq.s32.totalorder %v4784_v34, %v4850_v61 }
  0x3e   : > { %v3532_v17 = vadd.f32 %v3276_v9, %v2723_v12  ;;  %v836_v18 = vsel %vm559_vm10, %v4796_v41, 0.0  ;;  %vm1373_vm11 = vcmp.eq.s32.totalorder %v4784_v34, %v4854_v62  ;;  %vm2189_vm12 = vcmp.eq.s32.totalorder %v4784_v34, %v4905_v20 }
  0x3f   : > { %v2851_v19 = vadd.f32 %v2595_v15, %v2035_v14  ;;  %v1650_v22 = vsel %vm1373_vm11, %v4800_v42, 0.0  ;;  %v2466_v23 = vsel %vm2189_vm12, %v4809_v46, 0.0  ;;  %vm2998_vm13 = vcmp.eq.s32.totalorder %v4784_v34, %v4909_v21 }
  0x40   : > { %3733 = vmatprep.subr.mxu0 %v3532_v17  ;;  %v1906_v25 = vadd.f32 %v1650_v22, %v836_v18  ;;  %v3275_v27 = vsel %vm2998_vm13, %v4829_v54, 0.0  ;;  %vm687_vm14 = vcmp.eq.s32.totalorder %v4814_v49, %v4850_v61  ;;  %vm1501_vm15 = vcmp.eq.s32.totalorder %v4814_v49, %v4854_v62 }
  0x41   : > { %v3660_v28 = vadd.f32 %v3404_v16, %v2851_v19  ;;  %v964_v30 = vsel %vm687_vm14, %v4796_v41, 0.0  ;;  %v1778_v32 = vsel %vm1501_vm15, %v4800_v42, 0.0  ;;  %vm2317_vm0 = vcmp.eq.s32.totalorder %v4814_v49, %v4905_v20 }
  0x42   : > { %v2722_v33 = vadd.f32 %v2466_v23, %v1906_v25  ;;  %v2034_v35 = vadd.f32 %v1778_v32, %v964_v30  ;;  %v2594_v36 = vsel %vm2317_vm0, %v4809_v46, 0.0  ;;  %vm3126_vm1 = vcmp.eq.s32.totalorder %v4814_v49, %v4909_v21 }
  0x43   : > { %3810 = vmatprep.subr.mxu1 %v3660_v28  ;;  %v3403_v37 = vsel %vm3126_vm1, %v4829_v54, 0.0  ;;  %vm556_vm2 = vcmp.eq.s32.totalorder %v4817_v50, %v4842_v59  ;;  %vm1370_vm3 = vcmp.eq.s32.totalorder %v4817_v50, %v4846_v60  ;;  %vm2186_vm4 = vcmp.eq.s32.totalorder %v4817_v50, %v4878_v5 }
  0x44   : > { %v3531_v39 = vadd.f32 %v3275_v27, %v2722_v33  ;;  %v2850_v43 = vadd.f32 %v2594_v36, %v2034_v35  ;;  %v833_v44 = vsel %vm556_vm2, %v4775_v29, 0.0  ;;  %v1647_v47 = vsel %vm1370_vm3, %v4788_v38, 0.0 }
  0x45   : > { %v1903_v55 = vadd.f32 %v1647_v47, %v833_v44  ;;  %v2463_v3 = vsel %vm2186_vm4, %v4804_v45, 0.0  ;;  %vm2995_vm5 = vcmp.eq.s32.totalorder %v4817_v50, %v4882_v7  ;;  %vm684_vm6 = vcmp.eq.s32.totalorder %v4832_v56, %v4842_v59 }
  0x46   : > { %3734 = vmatpush1.msra.mxu0 %v3531_v39  ;;  %v3659_v4 = vadd.f32 %v3403_v37, %v2850_v43  ;;  %v3272_v8 = vsel %vm2995_vm5, %v4825_v53, 0.0  ;;  %v961_v9 = vsel %vm684_vm6, %v4775_v29, 0.0  ;;  %vm1498_vm7 = vcmp.eq.s32.totalorder %v4832_v56, %v4846_v60 }
  0x47   : > { %v2719_v10 = vadd.f32 %v2463_v3, %v1903_v55  ;;  %v1775_v12 = vsel %vm1498_vm7, %v4788_v38, 0.0  ;;  %vm2314_vm8 = vcmp.eq.s32.totalorder %v4832_v56, %v4878_v5  ;;  %vm3123_vm9 = vcmp.eq.s32.totalorder %v4832_v56, %v4882_v7 }
  0x48   : > { %3811 = vmatpush1.msra.mxu1 %v3659_v4  ;;  %v2031_v13 = vadd.f32 %v1775_v12, %v961_v9  ;;  %v2591_v14 = vsel %vm2314_vm8, %v4804_v45, 0.0  ;;  %v3400_v15 = vsel %vm3123_vm9, %v4825_v53, 0.0  ;;  %vm555_vm10 = vcmp.eq.s32.totalorder %v4817_v50, %v4850_v61 }
  0x49   : > { %v3528_v16 = vadd.f32 %v3272_v8, %v2719_v10  ;;  %v832_v17 = vsel %vm555_vm10, %v4796_v41, 0.0  ;;  %vm1369_vm11 = vcmp.eq.s32.totalorder %v4817_v50, %v4854_v62  ;;  %vm2185_vm12 = vcmp.eq.s32.totalorder %v4817_v50, %v4905_v20 }
  0x4a   : > { %v2847_v18 = vadd.f32 %v2591_v14, %v2031_v13  ;;  %v1646_v19 = vsel %vm1369_vm11, %v4800_v42, 0.0  ;;  %v2462_v22 = vsel %vm2185_vm12, %v4809_v46, 0.0  ;;  %vm2994_vm13 = vcmp.eq.s32.totalorder %v4817_v50, %v4909_v21 }
  0x4b   : > { %3735 = vmatprep.subr.mxu0 %v3528_v16  ;;  %v1902_v23 = vadd.f32 %v1646_v19, %v832_v17  ;;  %v3271_v25 = vsel %vm2994_vm13, %v4829_v54, 0.0  ;;  %vm683_vm14 = vcmp.eq.s32.totalorder %v4832_v56, %v4850_v61  ;;  %vm1497_vm15 = vcmp.eq.s32.totalorder %v4832_v56, %v4854_v62 }
  0x4c   : > { %v3656_v27 = vadd.f32 %v3400_v15, %v2847_v18  ;;  %v960_v28 = vsel %vm683_vm14, %v4796_v41, 0.0  ;;  %v1774_v30 = vsel %vm1497_vm15, %v4800_v42, 0.0  ;;  %vm2313_vm0 = vcmp.eq.s32.totalorder %v4832_v56, %v4905_v20 }
  0x4d   : > { %v2718_v32 = vadd.f32 %v2462_v22, %v1902_v23  ;;  %v2030_v33 = vadd.f32 %v1774_v30, %v960_v28  ;;  %v2590_v35 = vsel %vm2313_vm0, %v4809_v46, 0.0  ;;  %vm3122_vm1 = vcmp.eq.s32.totalorder %v4832_v56, %v4909_v21 }
  0x4e   : > { %3812 = vmatprep.subr.mxu1 %v3656_v27  ;;  %v3399_v36 = vsel %vm3122_vm1, %v4829_v54, 0.0  ;;  %vm552_vm2 = vcmp.eq.s32.totalorder %v4835_v57, %v4842_v59  ;;  %vm1366_vm3 = vcmp.eq.s32.totalorder %v4835_v57, %v4846_v60  ;;  %vm2182_vm4 = vcmp.eq.s32.totalorder %v4835_v57, %v4878_v5 }
  0x4f   : > { %v3527_v37 = vadd.f32 %v3271_v25, %v2718_v32  ;;  %v2846_v39 = vadd.f32 %v2590_v35, %v2030_v33  ;;  %v829_v43 = vsel %vm552_vm2, %v4775_v29, 0.0  ;;  %v1643_v44 = vsel %vm1366_vm3, %v4788_v38, 0.0 }
  0x50   : > { %v1899_v47 = vadd.f32 %v1643_v44, %v829_v43  ;;  %v2459_v55 = vsel %vm2182_vm4, %v4804_v45, 0.0  ;;  %vm2991_vm5 = vcmp.eq.s32.totalorder %v4835_v57, %v4882_v7  ;;  %vm680_vm6 = vcmp.eq.s32.totalorder %v4838_v58, %v4842_v59 }
  0x51   : > { %3736 = vmatpush1.msra.mxu0 %v3527_v37  ;;  %v3655_v3 = vadd.f32 %v3399_v36, %v2846_v39  ;;  %v3268_v4 = vsel %vm2991_vm5, %v4825_v53, 0.0  ;;  %v957_v8 = vsel %vm680_vm6, %v4775_v29, 0.0  ;;  %vm1494_vm7 = vcmp.eq.s32.totalorder %v4838_v58, %v4846_v60 }
  0x52   : > { %v2715_v9 = vadd.f32 %v2459_v55, %v1899_v47  ;;  %v1771_v10 = vsel %vm1494_vm7, %v4788_v38, 0.0  ;;  %vm2310_vm8 = vcmp.eq.s32.totalorder %v4838_v58, %v4878_v5  ;;  %vm3119_vm9 = vcmp.eq.s32.totalorder %v4838_v58, %v4882_v7 }
  0x53   : > { %3813 = vmatpush1.msra.mxu1 %v3655_v3  ;;  %v2027_v12 = vadd.f32 %v1771_v10, %v957_v8  ;;  %v2587_v13 = vsel %vm2310_vm8, %v4804_v45, 0.0  ;;  %v3396_v14 = vsel %vm3119_vm9, %v4825_v53, 0.0  ;;  %vm551_vm10 = vcmp.eq.s32.totalorder %v4835_v57, %v4850_v61 }
  0x54   : > { %v3524_v15 = vadd.f32 %v3268_v4, %v2715_v9  ;;  %v828_v16 = vsel %vm551_vm10, %v4796_v41, 0.0  ;;  %vm1365_vm11 = vcmp.eq.s32.totalorder %v4835_v57, %v4854_v62  ;;  %vm2181_vm12 = vcmp.eq.s32.totalorder %v4835_v57, %v4905_v20 }
  0x55   : > { %v2843_v17 = vadd.f32 %v2587_v13, %v2027_v12  ;;  %v1642_v18 = vsel %vm1365_vm11, %v4800_v42, 0.0  ;;  %v2458_v19 = vsel %vm2181_vm12, %v4809_v46, 0.0  ;;  %vm2990_vm13 = vcmp.eq.s32.totalorder %v4835_v57, %v4909_v21 }
  0x56   : > { %3737 = vmatprep.subr.mxu0 %v3524_v15  ;;  %v1898_v22 = vadd.f32 %v1642_v18, %v828_v16  ;;  %v3267_v23 = vsel %vm2990_vm13, %v4829_v54, 0.0  ;;  %vm679_vm14 = vcmp.eq.s32.totalorder %v4838_v58, %v4850_v61  ;;  %vm1493_vm15 = vcmp.eq.s32.totalorder %v4838_v58, %v4854_v62 }
  0x57   : > { %v3652_v25 = vadd.f32 %v3396_v14, %v2843_v17  ;;  %v956_v27 = vsel %vm679_vm14, %v4796_v41, 0.0  ;;  %v1770_v28 = vsel %vm1493_vm15, %v4800_v42, 0.0  ;;  %vm2309_vm0 = vcmp.eq.s32.totalorder %v4838_v58, %v4905_v20 }
  0x58   : > { %v2714_v30 = vadd.f32 %v2458_v19, %v1898_v22  ;;  %v2026_v32 = vadd.f32 %v1770_v28, %v956_v27  ;;  %v2586_v33 = vsel %vm2309_vm0, %v4809_v46, 0.0  ;;  %vm3118_vm1 = vcmp.eq.s32.totalorder %v4838_v58, %v4909_v21 }
  0x59   : > { %3814 = vmatprep.subr.mxu1 %v3652_v25  ;;  %v3395_v35 = vsel %vm3118_vm1, %v4829_v54, 0.0  ;;  %vm548_vm2 = vcmp.eq.s32.totalorder %v4861_v1, %v4842_v59  ;;  %vm1362_vm3 = vcmp.eq.s32.totalorder %v4861_v1, %v4846_v60  ;;  %vm2178_vm4 = vcmp.eq.s32.totalorder %v4861_v1, %v4878_v5 }
  0x5a   : > { %v3523_v36 = vadd.f32 %v3267_v23, %v2714_v30  ;;  %v2842_v37 = vadd.f32 %v2586_v33, %v2026_v32  ;;  %v825_v39 = vsel %vm548_vm2, %v4775_v29, 0.0  ;;  %v1639_v43 = vsel %vm1362_vm3, %v4788_v38, 0.0 }
  0x5b   : > { %v1895_v44 = vadd.f32 %v1639_v43, %v825_v39  ;;  %v2455_v47 = vsel %vm2178_vm4, %v4804_v45, 0.0  ;;  %vm2987_vm5 = vcmp.eq.s32.totalorder %v4861_v1, %v4882_v7  ;;  %vm676_vm6 = vcmp.eq.s32.totalorder %v4864_v2, %v4842_v59 }
  0x5c   : > { %3738 = vmatpush1.msra.mxu0 %v3523_v36  ;;  %v3651_v55 = vadd.f32 %v3395_v35, %v2842_v37  ;;  %v3264_v3 = vsel %vm2987_vm5, %v4825_v53, 0.0  ;;  %v953_v4 = vsel %vm676_vm6, %v4775_v29, 0.0  ;;  %vm1490_vm7 = vcmp.eq.s32.totalorder %v4864_v2, %v4846_v60 }
  0x5d   : > { %v2711_v8 = vadd.f32 %v2455_v47, %v1895_v44  ;;  %v1767_v9 = vsel %vm1490_vm7, %v4788_v38, 0.0  ;;  %vm2306_vm8 = vcmp.eq.s32.totalorder %v4864_v2, %v4878_v5  ;;  %vm3115_vm9 = vcmp.eq.s32.totalorder %v4864_v2, %v4882_v7 }
  0x5e   : > { %3815 = vmatpush1.msra.mxu1 %v3651_v55  ;;  %v2023_v10 = vadd.f32 %v1767_v9, %v953_v4  ;;  %v2583_v12 = vsel %vm2306_vm8, %v4804_v45, 0.0  ;;  %v3392_v13 = vsel %vm3115_vm9, %v4825_v53, 0.0  ;;  %vm547_vm10 = vcmp.eq.s32.totalorder %v4861_v1, %v4850_v61 }
  0x5f   : > { %v3520_v14 = vadd.f32 %v3264_v3, %v2711_v8  ;;  %v824_v15 = vsel %vm547_vm10, %v4796_v41, 0.0  ;;  %vm1361_vm11 = vcmp.eq.s32.totalorder %v4861_v1, %v4854_v62  ;;  %vm2177_vm12 = vcmp.eq.s32.totalorder %v4861_v1, %v4905_v20 }
  0x60   : > { %v2839_v16 = vadd.f32 %v2583_v12, %v2023_v10  ;;  %v1638_v17 = vsel %vm1361_vm11, %v4800_v42, 0.0  ;;  %v2454_v18 = vsel %vm2177_vm12, %v4809_v46, 0.0  ;;  %vm2986_vm13 = vcmp.eq.s32.totalorder %v4861_v1, %v4909_v21 }
  0x61   : > { %3739 = vmatprep.subr.mxu0 %v3520_v14  ;;  %v1894_v19 = vadd.f32 %v1638_v17, %v824_v15  ;;  %v3263_v22 = vsel %vm2986_vm13, %v4829_v54, 0.0  ;;  %vm675_vm14 = vcmp.eq.s32.totalorder %v4864_v2, %v4850_v61  ;;  %vm1489_vm15 = vcmp.eq.s32.totalorder %v4864_v2, %v4854_v62 }
  0x62   : > { %v3648_v23 = vadd.f32 %v3392_v13, %v2839_v16  ;;  %v952_v25 = vsel %vm675_vm14, %v4796_v41, 0.0  ;;  %v1766_v27 = vsel %vm1489_vm15, %v4800_v42, 0.0  ;;  %vm2305_vm0 = vcmp.eq.s32.totalorder %v4864_v2, %v4905_v20 }
  0x63   : > { %v2710_v28 = vadd.f32 %v2454_v18, %v1894_v19  ;;  %v2022_v30 = vadd.f32 %v1766_v27, %v952_v25  ;;  %v2582_v32 = vsel %vm2305_vm0, %v4809_v46, 0.0  ;;  %vm3114_vm1 = vcmp.eq.s32.totalorder %v4864_v2, %v4909_v21 }
  0x64   : > { %3816 = vmatprep.subr.mxu1 %v3648_v23  ;;  %v3391_v33 = vsel %vm3114_vm1, %v4829_v54, 0.0  ;;  %v5123_v35 = vadd.s32 80, %v4756_v6  ;;  %v5126_v36 = vadd.s32 336, %v4756_v6  ;;  %v5129_v37 = vadd.s32 72, %v4756_v6 }
  0x65   : > { %v3519_v39 = vadd.f32 %v3263_v22, %v2710_v28  ;;  %v2838_v43 = vadd.f32 %v2582_v32, %v2022_v30  ;;  %v5132_v44 = vadd.s32 328, %v4756_v6  ;;  %v5135_v47 = vadd.s32 64, %v4756_v6 }
  0x66   : > { %vm544_vm2 = vcmp.eq.s32.totalorder %v5123_v35, %v4842_v59  ;;  %vm1358_vm3 = vcmp.eq.s32.totalorder %v5123_v35, %v4846_v60  ;;  %vm2174_vm4 = vcmp.eq.s32.totalorder %v5123_v35, %v4878_v5  ;;  %vm2983_vm5 = vcmp.eq.s32.totalorder %v5123_v35, %v4882_v7 }
  0x67   : > { %3740 = vmatpush1.msra.mxu0 %v3519_v39  ;;  %v3647_v55 = vadd.f32 %v3391_v33, %v2838_v43  ;;  %v821_v3 = vsel %vm544_vm2, %v4775_v29, 0.0  ;;  %v1635_v4 = vsel %vm1358_vm3, %v4788_v38, 0.0  ;;  %v2451_v8 = vsel %vm2174_vm4, %v4804_v45, 0.0 }
  0x68   : > { %v1891_v9 = vadd.f32 %v1635_v4, %v821_v3  ;;  %v3260_v10 = vsel %vm2983_vm5, %v4825_v53, 0.0  ;;  %vm672_vm6 = vcmp.eq.s32.totalorder %v5126_v36, %v4842_v59  ;;  %vm1486_vm7 = vcmp.eq.s32.totalorder %v5126_v36, %v4846_v60 }
  0x69   : > { %3817 = vmatpush1.msra.mxu1 %v3647_v55  ;;  %v949_v12 = vsel %vm672_vm6, %v4775_v29, 0.0  ;;  %v1763_v13 = vsel %vm1486_vm7, %v4788_v38, 0.0  ;;  %vm2302_vm8 = vcmp.eq.s32.totalorder %v5126_v36, %v4878_v5  ;;  %vm3111_vm9 = vcmp.eq.s32.totalorder %v5126_v36, %v4882_v7 }
  0x6a   : > { %v2707_v14 = vadd.f32 %v2451_v8, %v1891_v9  ;;  %v2019_v15 = vadd.f32 %v1763_v13, %v949_v12  ;;  %v2579_v16 = vsel %vm2302_vm8, %v4804_v45, 0.0  ;;  %v3388_v17 = vsel %vm3111_vm9, %v4825_v53, 0.0 }
  0x6b   : > { %vm543_vm10 = vcmp.eq.s32.totalorder %v5123_v35, %v4850_v61  ;;  %vm1357_vm11 = vcmp.eq.s32.totalorder %v5123_v35, %v4854_v62  ;;  %vm2173_vm12 = vcmp.eq.s32.totalorder %v5123_v35, %v4905_v20  ;;  %vm2982_vm13 = vcmp.eq.s32.totalorder %v5123_v35, %v4909_v21 }
  0x6c   : > { %v3516_v18 = vadd.f32 %v3260_v10, %v2707_v14  ;;  %v2835_v19 = vadd.f32 %v2579_v16, %v2019_v15  ;;  %v820_v22 = vsel %vm543_vm10, %v4796_v41, 0.0  ;;  %v1634_v23 = vsel %vm1357_vm11, %v4800_v42, 0.0 }
  0x6d   : > { %v1890_v25 = vadd.f32 %v1634_v23, %v820_v22  ;;  %v2450_v27 = vsel %vm2173_vm12, %v4809_v46, 0.0  ;;  %v3259_v28 = vsel %vm2982_vm13, %v4829_v54, 0.0  ;;  %vm671_vm14 = vcmp.eq.s32.totalorder %v5126_v36, %v4850_v61 }
  0x6e   : > { %3741 = vmatprep.subr.mxu0 %v3516_v18  ;;  %v3644_v30 = vadd.f32 %v3388_v17, %v2835_v19  ;;  %v948_v32 = vsel %vm671_vm14, %v4796_v41, 0.0  ;;  %vm1485_vm15 = vcmp.eq.s32.totalorder %v5126_v36, %v4854_v62  ;;  %vm2301_vm0 = vcmp.eq.s32.totalorder %v5126_v36, %v4905_v20 }
  0x6f   : > { %v2706_v33 = vadd.f32 %v2450_v27, %v1890_v25  ;;  %v1762_v39 = vsel %vm1485_vm15, %v4800_v42, 0.0  ;;  %v2578_v43 = vsel %vm2301_vm0, %v4809_v46, 0.0  ;;  %vm3110_vm1 = vcmp.eq.s32.totalorder %v5126_v36, %v4909_v21 }
  0x70   : > { %3818 = vmatprep.subr.mxu1 %v3644_v30  ;;  %v2018_v55 = vadd.f32 %v1762_v39, %v948_v32  ;;  %v3387_v3 = vsel %vm3110_vm1, %v4829_v54, 0.0  ;;  %vm540_vm2 = vcmp.eq.s32.totalorder %v5129_v37, %v4842_v59  ;;  %vm1354_vm3 = vcmp.eq.s32.totalorder %v5129_v37, %v4846_v60 }
  0x71   : > { %v3515_v4 = vadd.f32 %v3259_v28, %v2706_v33  ;;  %v817_v8 = vsel %vm540_vm2, %v4775_v29, 0.0  ;;  %v1631_v9 = vsel %vm1354_vm3, %v4788_v38, 0.0  ;;  %vm2170_vm4 = vcmp.eq.s32.totalorder %v5129_v37, %v4878_v5 }
  0x72   : > { %v2834_v10 = vadd.f32 %v2578_v43, %v2018_v55  ;;  %v1887_v12 = vadd.f32 %v1631_v9, %v817_v8  ;;  %v2447_v13 = vsel %vm2170_vm4, %v4804_v45, 0.0  ;;  %vm2979_vm5 = vcmp.eq.s32.totalorder %v5129_v37, %v4882_v7 }
  0x73   : > { %3742 = vmatpush1.msra.mxu0 %v3515_v4  ;;  %v3256_v14 = vsel %vm2979_vm5, %v4825_v53, 0.0  ;;  %vm668_vm6 = vcmp.eq.s32.totalorder %v5132_v44, %v4842_v59  ;;  %vm1482_vm7 = vcmp.eq.s32.totalorder %v5132_v44, %v4846_v60  ;;  %vm2298_vm8 = vcmp.eq.s32.totalorder %v5132_v44, %v4878_v5 }
  0x74   : > { %v3643_v15 = vadd.f32 %v3387_v3, %v2834_v10  ;;  %v2703_v16 = vadd.f32 %v2447_v13, %v1887_v12  ;;  %v945_v17 = vsel %vm668_vm6, %v4775_v29, 0.0  ;;  %v1759_v18 = vsel %vm1482_vm7, %v4788_v38, 0.0 }
  0x75   : > { %v2015_v19 = vadd.f32 %v1759_v18, %v945_v17  ;;  %v2575_v22 = vsel %vm2298_vm8, %v4804_v45, 0.0  ;;  %vm3107_vm9 = vcmp.eq.s32.totalorder %v5132_v44, %v4882_v7  ;;  %vm539_vm10 = vcmp.eq.s32.totalorder %v5129_v37, %v4850_v61 }
  0x76   : > { %3819 = vmatpush1.msra.mxu1 %v3643_v15  ;;  %v3512_v23 = vadd.f32 %v3256_v14, %v2703_v16  ;;  %v3384_v25 = vsel %vm3107_vm9, %v4825_v53, 0.0  ;;  %v816_v27 = vsel %vm539_vm10, %v4796_v41, 0.0  ;;  %vm1353_vm11 = vcmp.eq.s32.totalorder %v5129_v37, %v4854_v62 }
  0x77   : > { %v2831_v28 = vadd.f32 %v2575_v22, %v2015_v19  ;;  %v1630_v30 = vsel %vm1353_vm11, %v4800_v42, 0.0  ;;  %vm2169_vm12 = vcmp.eq.s32.totalorder %v5129_v37, %v4905_v20  ;;  %vm2978_vm13 = vcmp.eq.s32.totalorder %v5129_v37, %v4909_v21 }
  0x78   : > { %3743 = vmatprep.subr.mxu0 %v3512_v23  ;;  %v1886_v32 = vadd.f32 %v1630_v30, %v816_v27  ;;  %v2446_v33 = vsel %vm2169_vm12, %v4809_v46, 0.0  ;;  %v3255_v39 = vsel %vm2978_vm13, %v4829_v54, 0.0  ;;  %vm667_vm14 = vcmp.eq.s32.totalorder %v5132_v44, %v4850_v61 }
  0x79   : > { %v3640_v43 = vadd.f32 %v3384_v25, %v2831_v28  ;;  %v944_v55 = vsel %vm667_vm14, %v4796_v41, 0.0  ;;  %vm1481_vm15 = vcmp.eq.s32.totalorder %v5132_v44, %v4854_v62  ;;  %vm2297_vm0 = vcmp.eq.s32.totalorder %v5132_v44, %v4905_v20 }
  0x7a   : > { %v2702_v3 = vadd.f32 %v2446_v33, %v1886_v32  ;;  %v1758_v4 = vsel %vm1481_vm15, %v4800_v42, 0.0  ;;  %v2574_v8 = vsel %vm2297_vm0, %v4809_v46, 0.0  ;;  %vm3106_vm1 = vcmp.eq.s32.totalorder %v5132_v44, %v4909_v21 }
  0x7b   : > { %3820 = vmatprep.subr.mxu1 %v3640_v43  ;;  %v2014_v9 = vadd.f32 %v1758_v4, %v944_v55  ;;  %v3383_v10 = vsel %vm3106_vm1, %v4829_v54, 0.0  ;;  %vm536_vm2 = vcmp.eq.s32.totalorder %v5135_v47, %v4842_v59  ;;  %vm1350_vm3 = vcmp.eq.s32.totalorder %v5135_v47, %v4846_v60 }
  0x7c   : > { %v3511_v12 = vadd.f32 %v3255_v39, %v2702_v3  ;;  %v813_v13 = vsel %vm536_vm2, %v4775_v29, 0.0  ;;  %v1627_v14 = vsel %vm1350_vm3, %v4788_v38, 0.0  ;;  %vm2166_vm4 = vcmp.eq.s32.totalorder %v5135_v47, %v4878_v5 }
  0x7d   : > { %v2830_v15 = vadd.f32 %v2574_v8, %v2014_v9  ;;  %v1883_v16 = vadd.f32 %v1627_v14, %v813_v13  ;;  %v2443_v17 = vsel %vm2166_vm4, %v4804_v45, 0.0  ;;  %vm2975_vm5 = vcmp.eq.s32.totalorder %v5135_v47, %v4882_v7 }
  0x7e   : > { %3744 = vmatpush1.msra.mxu0 %v3511_v12  ;;  %v3252_v18 = vsel %vm2975_vm5, %v4825_v53, 0.0  ;;  %v5246_v19 = vadd.s32 320, %v4756_v6  ;;  %vm535_vm6 = vcmp.eq.s32.totalorder %v5135_v47, %v4850_v61  ;;  %vm1349_vm7 = vcmp.eq.s32.totalorder %v5135_v47, %v4854_v62 }
  0x7f   : > { %v3639_v22 = vadd.f32 %v3383_v10, %v2830_v15  ;;  %v2699_v23 = vadd.f32 %v2443_v17, %v1883_v16  ;;  %v812_v25 = vsel %vm535_vm6, %v4796_v41, 0.0  ;;  %v1626_v27 = vsel %vm1349_vm7, %v4800_v42, 0.0 }
  0x80   : > { %vm664_vm8 = vcmp.eq.s32.totalorder %v5246_v19, %v4842_v59  ;;  %vm1478_vm9 = vcmp.eq.s32.totalorder %v5246_v19, %v4846_v60  ;;  %vm2294_vm10 = vcmp.eq.s32.totalorder %v5246_v19, %v4878_v5  ;;  %vm3103_vm11 = vcmp.eq.s32.totalorder %v5246_v19, %v4882_v7 }
  0x81   : > { %3821 = vmatpush1.msra.mxu1 %v3639_v22  ;;  %v3508_v28 = vadd.f32 %v3252_v18, %v2699_v23  ;;  %v941_v30 = vsel %vm664_vm8, %v4775_v29, 0.0  ;;  %v1755_v32 = vsel %vm1478_vm9, %v4788_v38, 0.0  ;;  %v2571_v33 = vsel %vm2294_vm10, %v4804_v45, 0.0 }
  0x82   : > { %v2011_v39 = vadd.f32 %v1755_v32, %v941_v30  ;;  %v3380_v43 = vsel %vm3103_vm11, %v4825_v53, 0.0  ;;  %v1882_v55 = vadd.f32 %v1626_v27, %v812_v25  ;;  %vm2165_vm12 = vcmp.eq.s32.totalorder %v5135_v47, %v4905_v20 }
  0x83   : > { %3745 = vmatprep.subr.mxu0 %v3508_v28  ;;  %v2442_v3 = vsel %vm2165_vm12, %v4809_v46, 0.0  ;;  %vm2974_vm13 = vcmp.eq.s32.totalorder %v5135_v47, %v4909_v21  ;;  %vm663_vm14 = vcmp.eq.s32.totalorder %v5246_v19, %v4850_v61  ;;  %vm1477_vm15 = vcmp.eq.s32.totalorder %v5246_v19, %v4854_v62 }
  0x84   : > { %v2827_v4 = vadd.f32 %v2571_v33, %v2011_v39  ;;  %v2698_v8 = vadd.f32 %v2442_v3, %v1882_v55  ;;  %v3251_v9 = vsel %vm2974_vm13, %v4829_v54, 0.0  ;;  %v940_v10 = vsel %vm663_vm14, %v4796_v41, 0.0 }
  0x85   : > { %v1754_v12 = vsel %vm1477_vm15, %v4800_v42, 0.0  ;;  %vm2293_vm0 = vcmp.eq.s32.totalorder %v5246_v19, %v4905_v20  ;;  %vm3102_vm1 = vcmp.eq.s32.totalorder %v5246_v19, %v4909_v21  ;;  %v5283_v13 = vadd.s32 56, %v4756_v6 }
  0x86   : > { %v3636_v14 = vadd.f32 %v3380_v43, %v2827_v4  ;;  %v3507_v15 = vadd.f32 %v3251_v9, %v2698_v8  ;;  %v2010_v16 = vadd.f32 %v1754_v12, %v940_v10  ;;  %v2570_v17 = vsel %vm2293_vm0, %v4809_v46, 0.0 }
  0x87   : > { %v3379_v18 = vsel %vm3102_vm1, %v4829_v54, 0.0  ;;  %vm532_vm2 = vcmp.eq.s32.totalorder %v5283_v13, %v4842_v59  ;;  %vm1346_vm3 = vcmp.eq.s32.totalorder %v5283_v13, %v4846_v60  ;;  %vm2162_vm4 = vcmp.eq.s32.totalorder %v5283_v13, %v4878_v5 }
  0x88   : > { %3822 = vmatprep.subr.mxu1 %v3636_v14  ;;  %3746 = vmatpush1.msra.mxu0 %v3507_v15  ;;  %v2826_v22 = vadd.f32 %v2570_v17, %v2010_v16  ;;  %v809_v23 = vsel %vm532_vm2, %v4775_v29, 0.0  ;;  %v1623_v25 = vsel %vm1346_vm3, %v4788_v38, 0.0  ;;  %v2439_v27 = vsel %vm2162_vm4, %v4804_v45, 0.0 }
  0x89   : > { %v1879_v28 = vadd.f32 %v1623_v25, %v809_v23  ;;  %vm2971_vm5 = vcmp.eq.s32.totalorder %v5283_v13, %v4882_v7  ;;  %v5299_v30 = vadd.s32 312, %v4756_v6  ;;  %vm531_vm6 = vcmp.eq.s32.totalorder %v5283_v13, %v4850_v61 }
  0x8a   : > { %v3635_v32 = vadd.f32 %v3379_v18, %v2826_v22  ;;  %v3248_v33 = vsel %vm2971_vm5, %v4825_v53, 0.0  ;;  %v808_v39 = vsel %vm531_vm6, %v4796_v41, 0.0  ;;  %vm1345_vm7 = vcmp.eq.s32.totalorder %v5283_v13, %v4854_v62 }
  0x8b   : > { %v2695_v43 = vadd.f32 %v2439_v27, %v1879_v28  ;;  %vm660_vm8 = vcmp.eq.s32.totalorder %v5299_v30, %v4842_v59  ;;  %vm1474_vm9 = vcmp.eq.s32.totalorder %v5299_v30, %v4846_v60  ;;  %vm2290_vm10 = vcmp.eq.s32.totalorder %v5299_v30, %v4878_v5 }
  0x8c   : > { %3823 = vmatpush1.msra.mxu1 %v3635_v32  ;;  %v937_v55 = vsel %vm660_vm8, %v4775_v29, 0.0  ;;  %v1751_v3 = vsel %vm1474_vm9, %v4788_v38, 0.0  ;;  %v2567_v4 = vsel %vm2290_vm10, %v4804_v45, 0.0  ;;  %vm3099_vm11 = vcmp.eq.s32.totalorder %v5299_v30, %v4882_v7 }
  0x8d   : > { %v3504_v8 = vadd.f32 %v3248_v33, %v2695_v43  ;;  %v2007_v9 = vadd.f32 %v1751_v3, %v937_v55  ;;  %v3376_v10 = vsel %vm3099_vm11, %v4825_v53, 0.0  ;;  %v1622_v12 = vsel %vm1345_vm7, %v4800_v42, 0.0 }
  0x8e   : > { %v1878_v14 = vadd.f32 %v1622_v12, %v808_v39  ;;  %vm2161_vm12 = vcmp.eq.s32.totalorder %v5283_v13, %v4905_v20  ;;  %vm2970_vm13 = vcmp.eq.s32.totalorder %v5283_v13, %v4909_v21  ;;  %vm659_vm14 = vcmp.eq.s32.totalorder %v5299_v30, %v4850_v61 }
  0x8f   : > { %3747 = vmatprep.subr.mxu0 %v3504_v8  ;;  %v2823_v15 = vadd.f32 %v2567_v4, %v2007_v9  ;;  %v2438_v16 = vsel %vm2161_vm12, %v4809_v46, 0.0  ;;  %v3247_v17 = vsel %vm2970_vm13, %v4829_v54, 0.0  ;;  %v936_v18 = vsel %vm659_vm14, %v4796_v41, 0.0 }
  0x90   : > { %v2694_v22 = vadd.f32 %v2438_v16, %v1878_v14  ;;  %vm1473_vm15 = vcmp.eq.s32.totalorder %v5299_v30, %v4854_v62  ;;  %vm2289_vm0 = vcmp.eq.s32.totalorder %v5299_v30, %v4905_v20  ;;  %vm3098_vm1 = vcmp.eq.s32.totalorder %v5299_v30, %v4909_v21 }
  0x91   : > { %v3632_v23 = vadd.f32 %v3376_v10, %v2823_v15  ;;  %v1750_v25 = vsel %vm1473_vm15, %v4800_v42, 0.0  ;;  %v2566_v27 = vsel %vm2289_vm0, %v4809_v46, 0.0  ;;  %v3375_v28 = vsel %vm3098_vm1, %v4829_v54, 0.0 }
  0x92   : > { %v3503_v32 = vadd.f32 %v3247_v17, %v2694_v22  ;;  %v2006_v33 = vadd.f32 %v1750_v25, %v936_v18  ;;  %v5339_v39 = vadd.s32 48, %v4756_v6  ;;  %v5342_v43 = vadd.s32 304, %v4756_v6 }
  0x93   : > { %3824 = vmatprep.subr.mxu1 %v3632_v23  ;;  %v5345_v55 = vadd.s32 40, %v4756_v6  ;;  %v5348_v3 = vadd.s32 296, %v4756_v6  ;;  %v5351_v4 = vadd.s32 32, %v4756_v6  ;;  %v5354_v8 = vadd.s32 288, %v4756_v6 }
  0x94   : > { %8380 = vst [vmem:[#allocation3_spill] sm:$0xff] %v5342_v43  ;;  %3748 = vmatpush1.msra.mxu0 %v3503_v32  ;;  %v2822_v9 = vadd.f32 %v2566_v27, %v2006_v33  ;;  %vm528_vm2 = vcmp.eq.s32.totalorder %v5339_v39, %v4842_v59  ;;  %vm1342_vm3 = vcmp.eq.s32.totalorder %v5339_v39, %v4846_v60 }
  0x95   : > { %8381 = vst [vmem:[#allocation4_spill] sm:$0xff] %v5345_v55  ;;  %8382 = vst [vmem:[#allocation5_spill] sm:$0xff] %v5348_v3  ;;  %vm2158_vm4 = vcmp.eq.s32.totalorder %v5339_v39, %v4878_v5  ;;  %v805_v10 = vsel %vm528_vm2, %v4775_v29, 0.0  ;;  %v1619_v12 = vsel %vm1342_vm3, %v4788_v38, 0.0  ;;  %vm2967_vm5 = vcmp.eq.s32.totalorder %v5339_v39, %v4882_v7 }
  0x96   : > { %8383 = vst [vmem:[#allocation6_spill] sm:$0xff] %v5351_v4  ;;  %8384 = vst [vmem:[#allocation7_spill] sm:$0xff] %v5354_v8  ;;  %v2435_v14 = vsel %vm2158_vm4, %v4804_v45, 0.0  ;;  %v3631_v15 = vadd.f32 %v3375_v28, %v2822_v9  ;;  %v1875_v16 = vadd.f32 %v1619_v12, %v805_v10  ;;  %v3244_v17 = vsel %vm2967_vm5, %v4825_v53, 0.0 }
  0x97   : > { %vm656_vm6 = vcmp.eq.s32.totalorder %v5342_v43, %v4842_v59  ;;  %vm1470_vm7 = vcmp.eq.s32.totalorder %v5342_v43, %v4846_v60  ;;  %vm2286_vm8 = vcmp.eq.s32.totalorder %v5342_v43, %v4878_v5  ;;  %vm3095_vm9 = vcmp.eq.s32.totalorder %v5342_v43, %v4882_v7 }
  0x98   : > { %v933_v18 = vsel %vm656_vm6, %v4775_v29, 0.0  ;;  %3825 = vmatpush1.msra.mxu1 %v3631_v15  ;;  %v2691_v22 = vadd.f32 %v2435_v14, %v1875_v16  ;;  %v1747_v23 = vsel %vm1470_vm7, %v4788_v38, 0.0  ;;  %v2563_v25 = vsel %vm2286_vm8, %v4804_v45, 0.0 }
  0x99   : > { %v3372_v27 = vsel %vm3095_vm9, %v4825_v53, 0.0  ;;  %v2003_v28 = vadd.f32 %v1747_v23, %v933_v18  ;;  %vm527_vm10 = vcmp.eq.s32.totalorder %v5339_v39, %v4850_v61  ;;  %vm1341_vm11 = vcmp.eq.s32.totalorder %v5339_v39, %v4854_v62 }
  0x9a   : > { %vm2157_vm12 = vcmp.eq.s32.totalorder %v5339_v39, %v4905_v20  ;;  %v3500_v32 = vadd.f32 %v3244_v17, %v2691_v22  ;;  %v804_v33 = vsel %vm527_vm10, %v4796_v41, 0.0  ;;  %v1618_v9 = vsel %vm1341_vm11, %v4800_v42, 0.0 }
  0x9b   : > { %v2434_v10 = vsel %vm2157_vm12, %v4809_v46, 0.0  ;;  %v2819_v12 = vadd.f32 %v2563_v25, %v2003_v28  ;;  %v1874_v14 = vadd.f32 %v1618_v9, %v804_v33  ;;  %vm2966_vm13 = vcmp.eq.s32.totalorder %v5339_v39, %v4909_v21 }
  0x9c   : > { %vm655_vm14 = vcmp.eq.s32.totalorder %v5342_v43, %v4850_v61  ;;  %3749 = vmatprep.subr.mxu0 %v3500_v32  ;;  %v3243_v15 = vsel %vm2966_vm13, %v4829_v54, 0.0  ;;  %vm1469_vm15 = vcmp.eq.s32.totalorder %v5342_v43, %v4854_v62  ;;  %vm2285_vm0 = vcmp.eq.s32.totalorder %v5342_v43, %v4905_v20 }
  0x9d   : > { %v932_v16 = vsel %vm655_vm14, %v4796_v41, 0.0  ;;  %v3628_v17 = vadd.f32 %v3372_v27, %v2819_v12  ;;  %v2690_v18 = vadd.f32 %v2434_v10, %v1874_v14  ;;  %v1746_v22 = vsel %vm1469_vm15, %v4800_v42, 0.0 }
  0x9e   : > { %v2562_v23 = vsel %vm2285_vm0, %v4809_v46, 0.0  ;;  %v2002_v25 = vadd.f32 %v1746_v22, %v932_v16  ;;  %vm3094_vm1 = vcmp.eq.s32.totalorder %v5342_v43, %v4909_v21  ;;  %vm524_vm2 = vcmp.eq.s32.totalorder %v5345_v55, %v4842_v59 }
  0x9f   : > { %vm1338_vm3 = vcmp.eq.s32.totalorder %v5345_v55, %v4846_v60  ;;  %3826 = vmatprep.subr.mxu1 %v3628_v17  ;;  %v3499_v28 = vadd.f32 %v3243_v15, %v2690_v18  ;;  %v3371_v32 = vsel %vm3094_vm1, %v4829_v54, 0.0  ;;  %v801_v27 = vsel %vm524_vm2, %v4775_v29, 0.0 }
  0xa0   : > { %v1615_v33 = vsel %vm1338_vm3, %v4788_v38, 0.0  ;;  %v2818_v9 = vadd.f32 %v2562_v23, %v2002_v25  ;;  %vm2154_vm4 = vcmp.eq.s32.totalorder %v5345_v55, %v4878_v5  ;;  %vm2963_vm5 = vcmp.eq.s32.totalorder %v5345_v55, %v4882_v7 }
  0xa1   : > { %v1871_v10 = vadd.f32 %v1615_v33, %v801_v27  ;;  %3750 = vmatpush1.msra.mxu0 %v3499_v28  ;;  %v2431_v12 = vsel %vm2154_vm4, %v4804_v45, 0.0  ;;  %v3240_v14 = vsel %vm2963_vm5, %v4825_v53, 0.0  ;;  %vm652_vm6 = vcmp.eq.s32.totalorder %v5348_v3, %v4842_v59 }
  0xa2   : > { %vm1466_vm7 = vcmp.eq.s32.totalorder %v5348_v3, %v4846_v60  ;;  %v3627_v15 = vadd.f32 %v3371_v32, %v2818_v9  ;;  %v929_v17 = vsel %vm652_vm6, %v4775_v29, 0.0  ;;  %vm2282_vm8 = vcmp.eq.s32.totalorder %v5348_v3, %v4878_v5 }
  0xa3   : > { %v2687_v16 = vadd.f32 %v2431_v12, %v1871_v10  ;;  %v1743_v18 = vsel %vm1466_vm7, %v4788_v38, 0.0  ;;  %vm3091_vm9 = vcmp.eq.s32.totalorder %v5348_v3, %v4882_v7  ;;  %vm523_vm10 = vcmp.eq.s32.totalorder %v5345_v55, %v4850_v61 }
  0xa4   : > { %v1999_v22 = vadd.f32 %v1743_v18, %v929_v17  ;;  %3827 = vmatpush1.msra.mxu1 %v3627_v15  ;;  %v2559_v25 = vsel %vm2282_vm8, %v4804_v45, 0.0  ;;  %v3368_v28 = vsel %vm3091_vm9, %v4825_v53, 0.0  ;;  %v800_v32 = vsel %vm523_vm10, %v4796_v41, 0.0 }
  0xa5   : > { %v3496_v23 = vadd.f32 %v3240_v14, %v2687_v16  ;;  %vm1337_vm11 = vcmp.eq.s32.totalorder %v5345_v55, %v4854_v62  ;;  %vm2153_vm12 = vcmp.eq.s32.totalorder %v5345_v55, %v4905_v20  ;;  %vm2962_vm13 = vcmp.eq.s32.totalorder %v5345_v55, %v4909_v21 }
  0xa6   : > { %v2815_v27 = vadd.f32 %v2559_v25, %v1999_v22  ;;  %v1614_v33 = vsel %vm1337_vm11, %v4800_v42, 0.0  ;;  %v2430_v9 = vsel %vm2153_vm12, %v4809_v46, 0.0  ;;  %v3239_v10 = vsel %vm2962_vm13, %v4829_v54, 0.0 }
  0xa7   : > { %3751 = vmatprep.subr.mxu0 %v3496_v23  ;;  %vm651_vm14 = vcmp.eq.s32.totalorder %v5348_v3, %v4850_v61  ;;  %v1870_v14 = vadd.f32 %v1614_v33, %v800_v32  ;;  %vm1465_vm15 = vcmp.eq.s32.totalorder %v5348_v3, %v4854_v62  ;;  %vm2281_vm0 = vcmp.eq.s32.totalorder %v5348_v3, %v4905_v20 }
  0xa8   : > { %v3624_v12 = vadd.f32 %v3368_v28, %v2815_v27  ;;  %v928_v15 = vsel %vm651_vm14, %v4796_v41, 0.0  ;;  %v1742_v16 = vsel %vm1465_vm15, %v4800_v42, 0.0  ;;  %vm3090_vm1 = vcmp.eq.s32.totalorder %v5348_v3, %v4909_v21 }
  0xa9   : > { %vm520_vm2 = vcmp.eq.s32.totalorder %v5351_v4, %v4842_v59  ;;  %v2686_v17 = vadd.f32 %v2430_v9, %v1870_v14  ;;  %v1998_v18 = vadd.f32 %v1742_v16, %v928_v15  ;;  %v2558_v22 = vsel %vm2281_vm0, %v4809_v46, 0.0 }
  0xaa   : > { %3828 = vmatprep.subr.mxu1 %v3624_v12  ;;  %v3367_v23 = vsel %vm3090_vm1, %v4829_v54, 0.0  ;;  %v797_v25 = vsel %vm520_vm2, %v4775_v29, 0.0  ;;  %vm1334_vm3 = vcmp.eq.s32.totalorder %v5351_v4, %v4846_v60  ;;  %vm2150_vm4 = vcmp.eq.s32.totalorder %v5351_v4, %v4878_v5 }
  0xab   : > { %vm2959_vm5 = vcmp.eq.s32.totalorder %v5351_v4, %v4882_v7  ;;  %v3495_v28 = vadd.f32 %v3239_v10, %v2686_v17  ;;  %v2814_v32 = vadd.f32 %v2558_v22, %v1998_v18  ;;  %v1611_v27 = vsel %vm1334_vm3, %v4788_v38, 0.0 }
  0xac   : > { %v2427_v33 = vsel %vm2150_vm4, %v4804_v45, 0.0  ;;  %v1867_v9 = vadd.f32 %v1611_v27, %v797_v25  ;;  %v3236_v12 = vsel %vm2959_vm5, %v4825_v53, 0.0  ;;  %vm648_vm6 = vcmp.eq.s32.totalorder %v5354_v8, %v4842_v59 }
  0xad   : > { %vm1462_vm7 = vcmp.eq.s32.totalorder %v5354_v8, %v4846_v60  ;;  %3752 = vmatpush1.msra.mxu0 %v3495_v28  ;;  %v3623_v14 = vadd.f32 %v3367_v23, %v2814_v32  ;;  %v925_v15 = vsel %vm648_vm6, %v4775_v29, 0.0  ;;  %vm2278_vm8 = vcmp.eq.s32.totalorder %v5354_v8, %v4878_v5 }
  0xae   : > { %v1739_v10 = vsel %vm1462_vm7, %v4788_v38, 0.0  ;;  %v2683_v16 = vadd.f32 %v2427_v33, %v1867_v9  ;;  %v2555_v18 = vsel %vm2278_vm8, %v4804_v45, 0.0  ;;  %vm3087_vm9 = vcmp.eq.s32.totalorder %v5354_v8, %v4882_v7 }
  0xaf   : > { %v1995_v17 = vadd.f32 %v1739_v10, %v925_v15  ;;  %3829 = vmatpush1.msra.mxu1 %v3623_v14  ;;  %v3364_v22 = vsel %vm3087_vm9, %v4825_v53, 0.0  ;;  %vm519_vm10 = vcmp.eq.s32.totalorder %v5351_v4, %v4850_v61  ;;  %vm1333_vm11 = vcmp.eq.s32.totalorder %v5351_v4, %v4854_v62 }
  0xb0   : > { %vm2149_vm12 = vcmp.eq.s32.totalorder %v5351_v4, %v4905_v20  ;;  %v3492_v23 = vadd.f32 %v3236_v12, %v2683_v16  ;;  %v796_v28 = vsel %vm519_vm10, %v4796_v41, 0.0  ;;  %v1610_v32 = vsel %vm1333_vm11, %v4800_v42, 0.0 }
  0xb1   : > { %v2811_v25 = vadd.f32 %v2555_v18, %v1995_v17  ;;  %v1866_v27 = vadd.f32 %v1610_v32, %v796_v28  ;;  %v2426_v33 = vsel %vm2149_vm12, %v4809_v46, 0.0  ;;  %vm2958_vm13 = vcmp.eq.s32.totalorder %v5351_v4, %v4909_v21 }
  0xb2   : > { %vm647_vm14 = vcmp.eq.s32.totalorder %v5354_v8, %v4850_v61  ;;  %3753 = vmatprep.subr.mxu0 %v3492_v23  ;;  %v3235_v14 = vsel %vm2958_vm13, %v4829_v54, 0.0  ;;  %vm1461_vm15 = vcmp.eq.s32.totalorder %v5354_v8, %v4854_v62  ;;  %vm2277_vm0 = vcmp.eq.s32.totalorder %v5354_v8, %v4905_v20 }
  0xb3   : > { %v3620_v9 = vadd.f32 %v3364_v22, %v2811_v25  ;;  %v924_v12 = vsel %vm647_vm14, %v4796_v41, 0.0  ;;  %v2682_v15 = vadd.f32 %v2426_v33, %v1866_v27  ;;  %v1738_v10 = vsel %vm1461_vm15, %v4800_v42, 0.0 }
  0xb4   : > { %vm3086_vm1 = vcmp.eq.s32.totalorder %v5354_v8, %v4909_v21  ;;  %v1994_v16 = vadd.f32 %v1738_v10, %v924_v12  ;;  %v2554_v17 = vsel %vm2277_vm0, %v4809_v46, 0.0  ;;  %v5501_v22 = vadd.s32 24, %v4756_v6 }
  0xb5   : > { %3830 = vmatprep.subr.mxu1 %v3620_v9  ;;  %v3363_v18 = vsel %vm3086_vm1, %v4829_v54, 0.0  ;;  %v3491_v23 = vadd.f32 %v3235_v14, %v2682_v15  ;;  %v5504_v25 = vadd.s32 280, %v4756_v6  ;;  %v5507_v28 = vadd.s32 16, %v4756_v6 }
  0xb6   : > { %8385 = vst [vmem:[#allocation8_spill] sm:$0xff] %v5501_v22  ;;  %v5510_v32 = vadd.s32 272, %v4756_v6  ;;  %v2810_v27 = vadd.f32 %v2554_v17, %v1994_v16  ;;  %vm516_vm2 = vcmp.eq.s32.totalorder %v5501_v22, %v4842_v59  ;;  %vm1330_vm3 = vcmp.eq.s32.totalorder %v5501_v22, %v4846_v60 }
  0xb7   : > { %8386 = vst [vmem:[#allocation9_spill] sm:$0xff] %v5504_v25  ;;  %8387 = vst [vmem:[#allocation10_spill] sm:$0xff] %v5507_v28  ;;  %vm2146_vm4 = vcmp.eq.s32.totalorder %v5501_v22, %v4878_v5  ;;  %3754 = vmatpush1.msra.mxu0 %v3491_v23  ;;  %v793_v33 = vsel %vm516_vm2, %v4775_v29, 0.0  ;;  %v1607_v9 = vsel %vm1330_vm3, %v4788_v38, 0.0  ;;  %vm2955_vm5 = vcmp.eq.s32.totalorder %v5501_v22, %v4882_v7 }
  0xb8   : > { %8388 = vst [vmem:[#allocation11_spill] sm:$0xff] %v5510_v32  ;;  %v2423_v14 = vsel %vm2146_vm4, %v4804_v45, 0.0  ;;  %v3619_v12 = vadd.f32 %v3363_v18, %v2810_v27  ;;  %v1863_v15 = vadd.f32 %v1607_v9, %v793_v33  ;;  %v3232_v10 = vsel %vm2955_vm5, %v4825_v53, 0.0 }
  0xb9   : > { %vm644_vm6 = vcmp.eq.s32.totalorder %v5504_v25, %v4842_v59  ;;  %vm1458_vm7 = vcmp.eq.s32.totalorder %v5504_v25, %v4846_v60  ;;  %vm2274_vm8 = vcmp.eq.s32.totalorder %v5504_v25, %v4878_v5  ;;  %vm3083_vm9 = vcmp.eq.s32.totalorder %v5504_v25, %v4882_v7 }
  0xba   : > { %v921_v16 = vsel %vm644_vm6, %v4775_v29, 0.0  ;;  %3831 = vmatpush1.msra.mxu1 %v3619_v12  ;;  %v2679_v17 = vadd.f32 %v2423_v14, %v1863_v15  ;;  %v1735_v18 = vsel %vm1458_vm7, %v4788_v38, 0.0  ;;  %v2551_v23 = vsel %vm2274_vm8, %v4804_v45, 0.0 }
  0xbb   : > { %v3360_v27 = vsel %vm3083_vm9, %v4825_v53, 0.0  ;;  %v1991_v33 = vadd.f32 %v1735_v18, %v921_v16  ;;  %vm515_vm10 = vcmp.eq.s32.totalorder %v5501_v22, %v4850_v61  ;;  %vm1329_vm11 = vcmp.eq.s32.totalorder %v5501_v22, %v4854_v62 }
  0xbc   : > { %vm2145_vm12 = vcmp.eq.s32.totalorder %v5501_v22, %v4905_v20  ;;  %v3488_v9 = vadd.f32 %v3232_v10, %v2679_v17  ;;  %v792_v12 = vsel %vm515_vm10, %v4796_v41, 0.0  ;;  %v1606_v14 = vsel %vm1329_vm11, %v4800_v42, 0.0 }
  0xbd   : > { %v2422_v15 = vsel %vm2145_vm12, %v4809_v46, 0.0  ;;  %v2807_v8 = vadd.f32 %v2551_v23, %v1991_v33  ;;  %v1862_v4 = vadd.f32 %v1606_v14, %v792_v12  ;;  %vm2954_vm13 = vcmp.eq.s32.totalorder %v5501_v22, %v4909_v21 }
  0xbe   : > { %vm643_vm14 = vcmp.eq.s32.totalorder %v5504_v25, %v4850_v61  ;;  %3755 = vmatprep.subr.mxu0 %v3488_v9  ;;  %v3231_v16 = vsel %vm2954_vm13, %v4829_v54, 0.0  ;;  %vm1457_vm15 = vcmp.eq.s32.totalorder %v5504_v25, %v4854_v62  ;;  %vm2273_vm0 = vcmp.eq.s32.totalorder %v5504_v25, %v4905_v20 }
  0xbf   : > { %v920_v18 = vsel %vm643_vm14, %v4796_v41, 0.0  ;;  %v3616_v10 = vadd.f32 %v3360_v27, %v2807_v8  ;;  %v2678_v17 = vadd.f32 %v2422_v15, %v1862_v4  ;;  %v1734_v23 = vsel %vm1457_vm15, %v4800_v42, 0.0 }
  0xc0   : > { %v2550_v33 = vsel %vm2273_vm0, %v4809_v46, 0.0  ;;  %v1990_v12 = vadd.f32 %v1734_v23, %v920_v18  ;;  %vm3082_vm1 = vcmp.eq.s32.totalorder %v5504_v25, %v4909_v21  ;;  %vm512_vm2 = vcmp.eq.s32.totalorder %v5507_v28, %v4842_v59 }
  0xc1   : > { %vm1326_vm3 = vcmp.eq.s32.totalorder %v5507_v28, %v4846_v60  ;;  %3832 = vmatprep.subr.mxu1 %v3616_v10  ;;  %v3487_v9 = vadd.f32 %v3231_v16, %v2678_v17  ;;  %v3359_v14 = vsel %vm3082_vm1, %v4829_v54, 0.0  ;;  %v789_v4 = vsel %vm512_vm2, %v4775_v29, 0.0 }
  0xc2   : > { %v1603_v8 = vsel %vm1326_vm3, %v4788_v38, 0.0  ;;  %v2806_v27 = vadd.f32 %v2550_v33, %v1990_v12  ;;  %vm2142_vm4 = vcmp.eq.s32.totalorder %v5507_v28, %v4878_v5  ;;  %vm2951_vm5 = vcmp.eq.s32.totalorder %v5507_v28, %v4882_v7 }
  0xc3   : > { %v1859_v15 = vadd.f32 %v1603_v8, %v789_v4  ;;  %3756 = vmatpush1.msra.mxu0 %v3487_v9  ;;  %v2419_v18 = vsel %vm2142_vm4, %v4804_v45, 0.0  ;;  %v3228_v10 = vsel %vm2951_vm5, %v4825_v53, 0.0  ;;  %vm640_vm6 = vcmp.eq.s32.totalorder %v5510_v32, %v4842_v59 }
  0xc4   : > { %vm1454_vm7 = vcmp.eq.s32.totalorder %v5510_v32, %v4846_v60  ;;  %v3615_v16 = vadd.f32 %v3359_v14, %v2806_v27  ;;  %v917_v23 = vsel %vm640_vm6, %v4775_v29, 0.0  ;;  %vm2270_vm8 = vcmp.eq.s32.totalorder %v5510_v32, %v4878_v5 }
  0xc5   : > { %v2675_v17 = vadd.f32 %v2419_v18, %v1859_v15  ;;  %v1731_v33 = vsel %vm1454_vm7, %v4788_v38, 0.0  ;;  %vm3079_vm9 = vcmp.eq.s32.totalorder %v5510_v32, %v4882_v7  ;;  %vm511_vm10 = vcmp.eq.s32.totalorder %v5507_v28, %v4850_v61 }
  0xc6   : > { %v1987_v12 = vadd.f32 %v1731_v33, %v917_v23  ;;  %3833 = vmatpush1.msra.mxu1 %v3615_v16  ;;  %v2547_v4 = vsel %vm2270_vm8, %v4804_v45, 0.0  ;;  %v3356_v14 = vsel %vm3079_vm9, %v4825_v53, 0.0  ;;  %v788_v8 = vsel %vm511_vm10, %v4796_v41, 0.0 }
  0xc7   : > { %v3484_v9 = vadd.f32 %v3228_v10, %v2675_v17  ;;  %vm1325_vm11 = vcmp.eq.s32.totalorder %v5507_v28, %v4854_v62  ;;  %vm2141_vm12 = vcmp.eq.s32.totalorder %v5507_v28, %v4905_v20  ;;  %vm2950_vm13 = vcmp.eq.s32.totalorder %v5507_v28, %v4909_v21 }
  0xc8   : > { %v2803_v27 = vadd.f32 %v2547_v4, %v1987_v12  ;;  %v1602_v15 = vsel %vm1325_vm11, %v4800_v42, 0.0  ;;  %v2418_v18 = vsel %vm2141_vm12, %v4809_v46, 0.0  ;;  %v3227_v10 = vsel %vm2950_vm13, %v4829_v54, 0.0 }
  0xc9   : > { %3757 = vmatprep.subr.mxu0 %v3484_v9  ;;  %vm639_vm14 = vcmp.eq.s32.totalorder %v5510_v32, %v4850_v61  ;;  %v1858_v17 = vadd.f32 %v1602_v15, %v788_v8  ;;  %vm1453_vm15 = vcmp.eq.s32.totalorder %v5510_v32, %v4854_v62  ;;  %vm2269_vm0 = vcmp.eq.s32.totalorder %v5510_v32, %v4905_v20 }
  0xca   : > { %v3612_v16 = vadd.f32 %v3356_v14, %v2803_v27  ;;  %v916_v23 = vsel %vm639_vm14, %v4796_v41, 0.0  ;;  %v1730_v33 = vsel %vm1453_vm15, %v4800_v42, 0.0  ;;  %vm3078_vm1 = vcmp.eq.s32.totalorder %v5510_v32, %v4909_v21 }
  0xcb   : > { %v5607_v12 = vadd.s32 8, %v4756_v6  ;;  %v2674_v9 = vadd.f32 %v2418_v18, %v1858_v17  ;;  %v1986_v4 = vadd.f32 %v1730_v33, %v916_v23  ;;  %v2546_v14 = vsel %vm2269_vm0, %v4809_v46, 0.0 }
  0xcc   : > { %3834 = vmatprep.subr.mxu1 %v3612_v16  ;;  %v3355_v8 = vsel %vm3078_vm1, %v4829_v54, 0.0  ;;  %v5624_v32 = vadd.s32 264, %v4756_v6 }
  0xcd   : > { %8389 = vst [vmem:[#allocation12_spill] sm:$0xff] %v5607_v12  ;;  %vm508_vm2 = vcmp.eq.s32.totalorder %v5607_v12, %v4842_v59  ;;  %vm1322_vm3 = vcmp.eq.s32.totalorder %v5607_v12, %v4846_v60  ;;  %vm2138_vm4 = vcmp.eq.s32.totalorder %v5607_v12, %v4878_v5  ;;  %vm2947_vm5 = vcmp.eq.s32.totalorder %v5607_v12, %v4882_v7 }
  0xce   : > { %v3483_v27 = vadd.f32 %v3227_v10, %v2674_v9  ;;  %v2802_v15 = vadd.f32 %v2546_v14, %v1986_v4  ;;  %v785_v18 = vsel %vm508_vm2, %v4775_v29, 0.0  ;;  %v1599_v16 = vsel %vm1322_vm3, %v4788_v38, 0.0  ;;  %8390 = vst [vmem:[#allocation13_spill] sm:$0xff] %v5624_v32 }
  0xcf   : > { %v1855_v17 = vadd.f32 %v1599_v16, %v785_v18  ;;  %v2415_v23 = vsel %vm2138_vm4, %v4804_v45, 0.0  ;;  %v3224_v33 = vsel %vm2947_vm5, %v4825_v53, 0.0  ;;  %vm507_vm6 = vcmp.eq.s32.totalorder %v5607_v12, %v4850_v61 }
  0xd0   : > { %3758 = vmatpush1.msra.mxu0 %v3483_v27  ;;  %v3611_v28 = vadd.f32 %v3355_v8, %v2802_v15  ;;  %vm1321_vm7 = vcmp.eq.s32.totalorder %v5607_v12, %v4854_v62  ;;  %vm2137_vm8 = vcmp.eq.s32.totalorder %v5607_v12, %v4905_v20  ;;  %vm636_vm9 = vcmp.eq.s32.totalorder %v5624_v32, %v4842_v59 }
  0xd1   : > { %v2671_v10 = vadd.f32 %v2415_v23, %v1855_v17  ;;  %vm1450_vm10 = vcmp.eq.s32.totalorder %v5624_v32, %v4846_v60  ;;  %vm2266_vm11 = vcmp.eq.s32.totalorder %v5624_v32, %v4878_v5  ;;  %v913_v9 = vsel %vm636_vm9, %v4775_v29, 0.0 }
  0xd2   : > { %3835 = vmatpush1.msra.mxu1 %v3611_v28  ;;  %v1727_v4 = vsel %vm1450_vm10, %v4788_v38, 0.0  ;;  %v2543_v14 = vsel %vm2266_vm11, %v4804_v45, 0.0  ;;  %vm3075_vm12 = vcmp.eq.s32.totalorder %v5624_v32, %v4882_v7  ;;  %v784_v18 = vsel %vm507_vm6, %v4796_v41, 0.0 }
  0xd3   : > { %v3480_v8 = vadd.f32 %v3224_v33, %v2671_v10  ;;  %v1983_v27 = vadd.f32 %v1727_v4, %v913_v9  ;;  %v3352_v15 = vsel %vm3075_vm12, %v4825_v53, 0.0  ;;  %v1598_v16 = vsel %vm1321_vm7, %v4800_v42, 0.0 }
  0xd4   : > { %v2414_v17 = vsel %vm2137_vm8, %v4809_v46, 0.0  ;;  %vm2946_vm13 = vcmp.eq.s32.totalorder %v5607_v12, %v4909_v21  ;;  %vm635_vm14 = vcmp.eq.s32.totalorder %v5624_v32, %v4850_v61  ;;  %v1854_v23 = vadd.f32 %v1598_v16, %v784_v18 }
  0xd5   : > { %3759 = vmatprep.subr.mxu0 %v3480_v8  ;;  %v2799_v28 = vadd.f32 %v2543_v14, %v1983_v27  ;;  %v3223_v33 = vsel %vm2946_vm13, %v4829_v54, 0.0  ;;  %v912_v10 = vsel %vm635_vm14, %v4796_v41, 0.0  ;;  %vm1449_vm15 = vcmp.eq.s32.totalorder %v5624_v32, %v4854_v62 }
  0xd6   : > { %vm2265_vm0 = vcmp.eq.s32.totalorder %v5624_v32, %v4905_v20  ;;  %vm3074_vm1 = vcmp.eq.s32.totalorder %v5624_v32, %v4909_v21  ;;  %vm504_vm2 = vcmp.eq.s32.totalorder %v4756_v6, %v4842_v59  ;;  %v2670_v4 = vadd.f32 %v2414_v17, %v1854_v23 }
  0xd7   : > { %v3608_v9 = vadd.f32 %v3352_v15, %v2799_v28  ;;  %v1726_v14 = vsel %vm1449_vm15, %v4800_v42, 0.0  ;;  %v2542_v8 = vsel %vm2265_vm0, %v4809_v46, 0.0  ;;  %v3351_v18 = vsel %vm3074_vm1, %v4829_v54, 0.0 }
  0xd8   : > { %v1982_v27 = vadd.f32 %v1726_v14, %v912_v10  ;;  %v781_v16 = vsel %vm504_vm2, %v4775_v29, 0.0  ;;  %vm1318_vm3 = vcmp.eq.s32.totalorder %v4756_v6, %v4846_v60  ;;  %v3479_v12 = vadd.f32 %v3223_v33, %v2670_v4 }
  0xd9   : > { %3836 = vmatprep.subr.mxu1 %v3608_v9  ;;  %v1595_v32 = vsel %vm1318_vm3, %v4788_v38, 0.0  ;;  %vm2134_vm4 = vcmp.eq.s32.totalorder %v4756_v6, %v4878_v5  ;;  %vm2943_vm5 = vcmp.eq.s32.totalorder %v4756_v6, %v4882_v7  ;;  %v5675_v10 = vadd.s32 256, %v4756_v6 }
  0xda   : > { %v2798_v15 = vadd.f32 %v2542_v8, %v1982_v27  ;;  %v1851_v17 = vadd.f32 %v1595_v32, %v781_v16  ;;  %v2411_v28 = vsel %vm2134_vm4, %v4804_v45, 0.0  ;;  %v3220_v23 = vsel %vm2943_vm5, %v4825_v53, 0.0  ;;  %3760 = vmatpush1.msra.mxu0 %v3479_v12 }
  0xdb   : > { %8391 = vst [vmem:[#allocation14_spill] sm:$0xff] %v5675_v10  ;;  %vm503_vm6 = vcmp.eq.s32.totalorder %v4756_v6, %v4850_v61  ;;  %vm1317_vm7 = vcmp.eq.s32.totalorder %v4756_v6, %v4854_v62  ;;  %vm2133_vm8 = vcmp.eq.s32.totalorder %v4756_v6, %v4905_v20  ;;  %vm632_vm9 = vcmp.eq.s32.totalorder %v5675_v10, %v4842_v59 }
  0xdc   : > { %v3607_v33 = vadd.f32 %v3351_v18, %v2798_v15  ;;  %v2667_v9 = vadd.f32 %v2411_v28, %v1851_v17  ;;  %v780_v32 = vsel %vm503_vm6, %v4796_v41, 0.0  ;;  %v1594_v4 = vsel %vm1317_vm7, %v4800_v42, 0.0 }
  0xdd   : > { %vm1446_vm10 = vcmp.eq.s32.totalorder %v5675_v10, %v4846_v60  ;;  %vm2262_vm11 = vcmp.eq.s32.totalorder %v5675_v10, %v4878_v5  ;;  %vm3071_vm12 = vcmp.eq.s32.totalorder %v5675_v10, %v4882_v7  ;;  %v909_v14 = vsel %vm632_vm9, %v4775_v29, 0.0 }
  0xde   : > { %3837 = vmatpush1.msra.mxu1 %v3607_v33  ;;  %v3476_v12 = vadd.f32 %v3220_v23, %v2667_v9  ;;  %v1723_v8 = vsel %vm1446_vm10, %v4788_v38, 0.0  ;;  %v2539_v27 = vsel %vm2262_vm11, %v4804_v45, 0.0  ;;  %v3348_v16 = vsel %vm3071_vm12, %v4825_v53, 0.0 }
  0xdf   : > { %v1979_v18 = vadd.f32 %v1723_v8, %v909_v14  ;;  %v1850_v15 = vadd.f32 %v1594_v4, %v780_v32  ;;  %v2410_v17 = vsel %vm2133_vm8, %v4809_v46, 0.0  ;;  %vm2942_vm13 = vcmp.eq.s32.totalorder %v4756_v6, %v4909_v21 }
  0xe0   : > { %3761 = vmatprep.subr.mxu0 %v3476_v12  ;;  %vm631_vm14 = vcmp.eq.s32.totalorder %v5675_v10, %v4850_v61  ;;  %vm1445_vm15 = vcmp.eq.s32.totalorder %v5675_v10, %v4854_v62  ;;  %vm2261_vm0 = vcmp.eq.s32.totalorder %v5675_v10, %v4905_v20  ;;  %v3219_v33 = vsel %vm2942_vm13, %v4829_v54, 0.0 }
  0xe1   : > { %v2795_v28 = vadd.f32 %v2539_v27, %v1979_v18  ;;  %v2666_v23 = vadd.f32 %v2410_v17, %v1850_v15  ;;  %v908_v9 = vsel %vm631_vm14, %v4796_v41, 0.0  ;;  %v1722_v32 = vsel %vm1445_vm15, %v4800_v42, 0.0 }
  0xe2   : > { %v2538_v4 = vsel %vm2261_vm0, %v4809_v46, 0.0  ;;  %vm3070_vm1 = vcmp.eq.s32.totalorder %v5675_v10, %v4909_v21  ;;  %v5716_v12 = vadd.s32 248, %v4756_v6  ;;  %v1978_v25 = vadd.f32 %v1722_v32, %v908_v9 }
  0xe3   : > { %v3604_v14 = vadd.f32 %v3348_v16, %v2795_v28  ;;  %v3475_v8 = vadd.f32 %v3219_v33, %v2666_v23  ;;  %v3347_v27 = vsel %vm3070_vm1, %v4829_v54, 0.0  ;;  %v5732_v33 = vadd.s32 504, %v4756_v6 }
  0xe4   : > { %8392 = vst [vmem:[#allocation15_spill] sm:$0xff] %v5716_v12  ;;  %vm628_vm2 = vcmp.eq.s32.totalorder %v5716_v12, %v4842_v59  ;;  %vm1442_vm3 = vcmp.eq.s32.totalorder %v5716_v12, %v4846_v60  ;;  %vm2258_vm4 = vcmp.eq.s32.totalorder %v5716_v12, %v4878_v5  ;;  %vm3067_vm5 = vcmp.eq.s32.totalorder %v5716_v12, %v4882_v7 }
  0xe5   : > { %3838 = vmatprep.subr.mxu1 %v3604_v14  ;;  %3762 = vmatpush1.msra.mxu0 %v3475_v8  ;;  %v2794_v18 = vadd.f32 %v2538_v4, %v1978_v25  ;;  %v905_v16 = vsel %vm628_vm2, %v4775_v29, 0.0  ;;  %v1719_v15 = vsel %vm1442_vm3, %v4788_v38, 0.0  ;;  %v2535_v17 = vsel %vm2258_vm4, %v4804_v45, 0.0  ;;  %8393 = vst [vmem:[#allocation16_spill] sm:$0xff] %v5732_v33 }
  0xe6   : > { %v1975_v28 = vadd.f32 %v1719_v15, %v905_v16  ;;  %v3344_v23 = vsel %vm3067_vm5, %v4825_v53, 0.0  ;;  %vm627_vm6 = vcmp.eq.s32.totalorder %v5716_v12, %v4850_v61  ;;  %vm1441_vm7 = vcmp.eq.s32.totalorder %v5716_v12, %v4854_v62 }
  0xe7   : > { %v3603_v9 = vadd.f32 %v3347_v27, %v2794_v18  ;;  %v904_v32 = vsel %vm627_vm6, %v4796_v41, 0.0  ;;  %vm2257_vm8 = vcmp.eq.s32.totalorder %v5716_v12, %v4905_v20  ;;  %vm756_vm9 = vcmp.eq.s32.totalorder %v5732_v33, %v4842_v59 }
  0xe8   : > { %v2791_v25 = vadd.f32 %v2535_v17, %v1975_v28  ;;  %vm1570_vm10 = vcmp.eq.s32.totalorder %v5732_v33, %v4846_v60  ;;  %vm2386_vm11 = vcmp.eq.s32.totalorder %v5732_v33, %v4878_v5  ;;  %v1033_v4 = vsel %vm756_vm9, %v4775_v29, 0.0 }
  0xe9   : > { %3839 = vmatpush1.msra.mxu1 %v3603_v9  ;;  %v1847_v14 = vsel %vm1570_vm10, %v4788_v38, 0.0  ;;  %v2663_v8 = vsel %vm2386_vm11, %v4804_v45, 0.0  ;;  %vm3195_vm12 = vcmp.eq.s32.totalorder %v5732_v33, %v4882_v7  ;;  %v1718_v15 = vsel %vm1441_vm7, %v4800_v42, 0.0 }
  0xea   : > { %v3600_v27 = vadd.f32 %v3344_v23, %v2791_v25  ;;  %v2103_v18 = vadd.f32 %v1847_v14, %v1033_v4  ;;  %v3472_v16 = vsel %vm3195_vm12, %v4825_v53, 0.0  ;;  %v1974_v17 = vadd.f32 %v1718_v15, %v904_v32 }
  0xeb   : > { %v2534_v28 = vsel %vm2257_vm8, %v4809_v46, 0.0  ;;  %vm3066_vm13 = vcmp.eq.s32.totalorder %v5716_v12, %v4909_v21  ;;  %vm755_vm14 = vcmp.eq.s32.totalorder %v5732_v33, %v4850_v61  ;;  %vm1569_vm15 = vcmp.eq.s32.totalorder %v5732_v33, %v4854_v62 }
  0xec   : > { %3763 = vmatprep.subr.mxu0 %v3600_v27  ;;  %v2919_v9 = vadd.f32 %v2663_v8, %v2103_v18  ;;  %v3343_v10 = vsel %vm3066_vm13, %v4829_v54, 0.0  ;;  %v1032_v23 = vsel %vm755_vm14, %v4796_v41, 0.0  ;;  %v2790_v25 = vadd.f32 %v2534_v28, %v1974_v17 }
  0xed   : > { %v1846_v32 = vsel %vm1569_vm15, %v4800_v42, 0.0  ;;  %vm2385_vm0 = vcmp.eq.s32.totalorder %v5732_v33, %v4905_v20  ;;  %vm3194_vm1 = vcmp.eq.s32.totalorder %v5732_v33, %v4909_v21  ;;  %v5771_v15 = vadd.s32 240, %v4756_v6 }
  0xee   : > { %v3728_v4 = vadd.f32 %v3472_v16, %v2919_v9  ;;  %v2102_v14 = vadd.f32 %v1846_v32, %v1032_v23  ;;  %v2662_v8 = vsel %vm2385_vm0, %v4809_v46, 0.0  ;;  %v3471_v27 = vsel %vm3194_vm1, %v4829_v54, 0.0 }
  0xef   : > { %v3599_v18 = vadd.f32 %v3343_v10, %v2790_v25  ;;  %8394 = vst [vmem:[#allocation17_spill] sm:$0xff] %v5771_v15  ;;  %v5774_v17 = vadd.s32 496, %v4756_v6  ;;  %v5777_v28 = vadd.s32 232, %v4756_v6  ;;  %v5780_v33 = vadd.s32 488, %v4756_v6 }
  0xf0   : > { %3840 = vmatprep.subr.mxu1 %v3728_v4  ;;  %v2918_v12 = vadd.f32 %v2662_v8, %v2102_v14  ;;  %v5783_v16 = vadd.s32 224, %v4756_v6  ;;  %v5786_v9 = vadd.s32 480, %v4756_v6  ;;  %vm624_vm2 = vcmp.eq.s32.totalorder %v5771_v15, %v4842_v59 }
  0xf1   : > { %8395 = vst [vmem:[#allocation18_spill] sm:$0xff] %v5774_v17  ;;  %8396 = vst [vmem:[#allocation19_spill] sm:$0xff] %v5777_v28  ;;  %3764 = vmatpush2.msra.mxu0 %v3599_v18  ;;  %vm1438_vm3 = vcmp.eq.s32.totalorder %v5771_v15, %v4846_v60  ;;  %vm2254_vm4 = vcmp.eq.s32.totalorder %v5771_v15, %v4878_v5  ;;  %vm3063_vm5 = vcmp.eq.s32.totalorder %v5771_v15, %v4882_v7 }
  0xf2   : > { %8397 = vst [vmem:[#allocation20_spill] sm:$0xff] %v5780_v33  ;;  %8398 = vst [vmem:[#allocation21_spill] sm:$0xff] %v5783_v16  ;;  %v3727_v10 = vadd.f32 %v3471_v27, %v2918_v12  ;;  %v901_v23 = vsel %vm624_vm2, %v4775_v29, 0.0  ;;  %v1715_v25 = vsel %vm1438_vm3, %v4788_v38, 0.0  ;;  %v2531_v32 = vsel %vm2254_vm4, %v4804_v45, 0.0 }
  0xf3   : > { %8399 = vst [vmem:[#allocation22_spill] sm:$0xff] %v5786_v9  ;;  %v1971_v4 = vadd.f32 %v1715_v25, %v901_v23  ;;  %v3340_v14 = vsel %vm3063_vm5, %v4825_v53, 0.0  ;;  %vm752_vm6 = vcmp.eq.s32.totalorder %v5774_v17, %v4842_v59  ;;  %vm1566_vm7 = vcmp.eq.s32.totalorder %v5774_v17, %v4846_v60 }
  0xf4   : > { %3841 = vmatpush2.msra.mxu1 %v3727_v10  ;;  %v1029_v8 = vsel %vm752_vm6, %v4775_v29, 0.0  ;;  %v1843_v12 = vsel %vm1566_vm7, %v4788_v38, 0.0  ;;  %vm2382_vm8 = vcmp.eq.s32.totalorder %v5774_v17, %v4878_v5  ;;  %vm3191_vm9 = vcmp.eq.s32.totalorder %v5774_v17, %v4882_v7 }
  0xf5   : > { %v2787_v27 = vadd.f32 %v2531_v32, %v1971_v4  ;;  %v2099_v18 = vadd.f32 %v1843_v12, %v1029_v8  ;;  %v2659_v23 = vsel %vm2382_vm8, %v4804_v45, 0.0  ;;  %v3468_v25 = vsel %vm3191_vm9, %v4825_v53, 0.0 }
  0xf6   : > { %vm623_vm10 = vcmp.eq.s32.totalorder %v5771_v15, %v4850_v61  ;;  %vm1437_vm11 = vcmp.eq.s32.totalorder %v5771_v15, %v4854_v62  ;;  %vm2253_vm12 = vcmp.eq.s32.totalorder %v5771_v15, %v4905_v20  ;;  %vm3062_vm13 = vcmp.eq.s32.totalorder %v5771_v15, %v4909_v21 }
  0xf7   : > { %v3596_v10 = vadd.f32 %v3340_v14, %v2787_v27  ;;  %v2915_v22 = vadd.f32 %v2659_v23, %v2099_v18  ;;  %v900_v32 = vsel %vm623_vm10, %v4796_v41, 0.0  ;;  %v1714_v4 = vsel %vm1437_vm11, %v4800_v42, 0.0 }
  0xf8   : > { %v1970_v8 = vadd.f32 %v1714_v4, %v900_v32  ;;  %v2530_v12 = vsel %vm2253_vm12, %v4809_v46, 0.0  ;;  %v3339_v3 = vsel %vm3062_vm13, %v4829_v54, 0.0  ;;  %vm751_vm14 = vcmp.eq.s32.totalorder %v5774_v17, %v4850_v61 }
  0xf9   : > { %3765 = vmatprep.subr.mxu0 %v3596_v10  ;;  %v3724_v55 = vadd.f32 %v3468_v25, %v2915_v22  ;;  %v1028_v43 = vsel %vm751_vm14, %v4796_v41, 0.0  ;;  %vm1565_vm15 = vcmp.eq.s32.totalorder %v5774_v17, %v4854_v62  ;;  %vm2381_vm0 = vcmp.eq.s32.totalorder %v5774_v17, %v4905_v20 }
  0xfa   : > { %v2786_v14 = vadd.f32 %v2530_v12, %v1970_v8  ;;  %v1842_v27 = vsel %vm1565_vm15, %v4800_v42, 0.0  ;;  %v2658_v18 = vsel %vm2381_vm0, %v4809_v46, 0.0  ;;  %vm3190_vm1 = vcmp.eq.s32.totalorder %v5774_v17, %v4909_v21 }
  0xfb   : > { %3842 = vmatprep.subr.mxu1 %v3724_v55  ;;  %v2098_v23 = vadd.f32 %v1842_v27, %v1028_v43  ;;  %v3467_v22 = vsel %vm3190_vm1, %v4829_v54, 0.0  ;;  %vm620_vm2 = vcmp.eq.s32.totalorder %v5777_v28, %v4842_v59  ;;  %vm1434_vm3 = vcmp.eq.s32.totalorder %v5777_v28, %v4846_v60 }
  0xfc   : > { %v3595_v25 = vadd.f32 %v3339_v3, %v2786_v14  ;;  %v897_v10 = vsel %vm620_vm2, %v4775_v29, 0.0  ;;  %v1711_v32 = vsel %vm1434_vm3, %v4788_v38, 0.0  ;;  %vm2250_vm4 = vcmp.eq.s32.totalorder %v5777_v28, %v4878_v5 }
  0xfd   : > { %v2914_v4 = vadd.f32 %v2658_v18, %v2098_v23  ;;  %v1967_v8 = vadd.f32 %v1711_v32, %v897_v10  ;;  %v2527_v43 = vsel %vm2250_vm4, %v4804_v45, 0.0  ;;  %vm3059_vm5 = vcmp.eq.s32.totalorder %v5777_v28, %v4882_v7 }
  0xfe   : > { %3766 = vmatpush2.msra.mxu0 %v3595_v25  ;;  %v3336_v55 = vsel %vm3059_vm5, %v4825_v53, 0.0  ;;  %vm748_vm6 = vcmp.eq.s32.totalorder %v5780_v33, %v4842_v59  ;;  %vm1562_vm7 = vcmp.eq.s32.totalorder %v5780_v33, %v4846_v60  ;;  %vm2378_vm8 = vcmp.eq.s32.totalorder %v5780_v33, %v4878_v5 }
  0xff   : > { %v3723_v3 = vadd.f32 %v3467_v22, %v2914_v4  ;;  %v2783_v12 = vadd.f32 %v2527_v43, %v1967_v8  ;;  %v1025_v14 = vsel %vm748_vm6, %v4775_v29, 0.0  ;;  %v1839_v27 = vsel %vm1562_vm7, %v4788_v38, 0.0 }
 0x100   : > { %v2095_v18 = vadd.f32 %v1839_v27, %v1025_v14  ;;  %v2655_v23 = vsel %vm2378_vm8, %v4804_v45, 0.0  ;;  %vm3187_vm9 = vcmp.eq.s32.totalorder %v5780_v33, %v4882_v7  ;;  %vm619_vm10 = vcmp.eq.s32.totalorder %v5777_v28, %v4850_v61 }
 0x101   : > { %3843 = vmatpush2.msra.mxu1 %v3723_v3  ;;  %v3592_v25 = vadd.f32 %v3336_v55, %v2783_v12  ;;  %v3464_v10 = vsel %vm3187_vm9, %v4825_v53, 0.0  ;;  %v896_v22 = vsel %vm619_vm10, %v4796_v41, 0.0  ;;  %vm1433_vm11 = vcmp.eq.s32.totalorder %v5777_v28, %v4854_v62 }
 0x102   : > { %v2911_v32 = vadd.f32 %v2655_v23, %v2095_v18  ;;  %v1710_v4 = vsel %vm1433_vm11, %v4800_v42, 0.0  ;;  %vm2249_vm12 = vcmp.eq.s32.totalorder %v5777_v28, %v4905_v20  ;;  %vm3058_vm13 = vcmp.eq.s32.totalorder %v5777_v28, %v4909_v21 }
 0x103   : > { %3767 = vmatprep.subr.mxu0 %v3592_v25  ;;  %v1966_v8 = vadd.f32 %v1710_v4, %v896_v22  ;;  %v2526_v43 = vsel %vm2249_vm12, %v4809_v46, 0.0  ;;  %v3335_v55 = vsel %vm3058_vm13, %v4829_v54, 0.0  ;;  %vm747_vm14 = vcmp.eq.s32.totalorder %v5780_v33, %v4850_v61 }
 0x104   : > { %v3720_v3 = vadd.f32 %v3464_v10, %v2911_v32  ;;  %v1024_v12 = vsel %vm747_vm14, %v4796_v41, 0.0  ;;  %vm1561_vm15 = vcmp.eq.s32.totalorder %v5780_v33, %v4854_v62  ;;  %vm2377_vm0 = vcmp.eq.s32.totalorder %v5780_v33, %v4905_v20 }
 0x105   : > { %v2782_v14 = vadd.f32 %v2526_v43, %v1966_v8  ;;  %v1838_v27 = vsel %vm1561_vm15, %v4800_v42, 0.0  ;;  %v2654_v18 = vsel %vm2377_vm0, %v4809_v46, 0.0  ;;  %vm3186_vm1 = vcmp.eq.s32.totalorder %v5780_v33, %v4909_v21 }
 0x106   : > { %3844 = vmatprep.subr.mxu1 %v3720_v3  ;;  %v2094_v23 = vadd.f32 %v1838_v27, %v1024_v12  ;;  %v3463_v25 = vsel %vm3186_vm1, %v4829_v54, 0.0  ;;  %vm616_vm2 = vcmp.eq.s32.totalorder %v5783_v16, %v4842_v59  ;;  %vm1430_vm3 = vcmp.eq.s32.totalorder %v5783_v16, %v4846_v60 }
 0x107   : > { %v3591_v10 = vadd.f32 %v3335_v55, %v2782_v14  ;;  %v893_v22 = vsel %vm616_vm2, %v4775_v29, 0.0  ;;  %v1707_v32 = vsel %vm1430_vm3, %v4788_v38, 0.0  ;;  %vm2246_vm4 = vcmp.eq.s32.totalorder %v5783_v16, %v4878_v5 }
 0x108   : > { %v2910_v4 = vadd.f32 %v2654_v18, %v2094_v23  ;;  %v1963_v8 = vadd.f32 %v1707_v32, %v893_v22  ;;  %v2523_v43 = vsel %vm2246_vm4, %v4804_v45, 0.0  ;;  %vm3055_vm5 = vcmp.eq.s32.totalorder %v5783_v16, %v4882_v7 }
 0x109   : > { %3768 = vmatpush2.msra.mxu0 %v3591_v10  ;;  %v3332_v3 = vsel %vm3055_vm5, %v4825_v53, 0.0  ;;  %vm744_vm6 = vcmp.eq.s32.totalorder %v5786_v9, %v4842_v59  ;;  %vm1558_vm7 = vcmp.eq.s32.totalorder %v5786_v9, %v4846_v60  ;;  %vm2374_vm8 = vcmp.eq.s32.totalorder %v5786_v9, %v4878_v5 }
 0x10a   : > { %v3719_v55 = vadd.f32 %v3463_v25, %v2910_v4  ;;  %v2779_v12 = vadd.f32 %v2523_v43, %v1963_v8  ;;  %v1021_v14 = vsel %vm744_vm6, %v4775_v29, 0.0  ;;  %v1835_v27 = vsel %vm1558_vm7, %v4788_v38, 0.0 }
 0x10b   : > { %v2091_v18 = vadd.f32 %v1835_v27, %v1021_v14  ;;  %v2651_v23 = vsel %vm2374_vm8, %v4804_v45, 0.0  ;;  %vm3183_vm9 = vcmp.eq.s32.totalorder %v5786_v9, %v4882_v7  ;;  %vm615_vm10 = vcmp.eq.s32.totalorder %v5783_v16, %v4850_v61 }
 0x10c   : > { %3845 = vmatpush2.msra.mxu1 %v3719_v55  ;;  %v3588_v10 = vadd.f32 %v3332_v3, %v2779_v12  ;;  %v3460_v22 = vsel %vm3183_vm9, %v4825_v53, 0.0  ;;  %v892_v25 = vsel %vm615_vm10, %v4796_v41, 0.0  ;;  %vm1429_vm11 = vcmp.eq.s32.totalorder %v5783_v16, %v4854_v62 }
 0x10d   : > { %v2907_v32 = vadd.f32 %v2651_v23, %v2091_v18  ;;  %v1706_v4 = vsel %vm1429_vm11, %v4800_v42, 0.0  ;;  %vm2245_vm12 = vcmp.eq.s32.totalorder %v5783_v16, %v4905_v20  ;;  %vm3054_vm13 = vcmp.eq.s32.totalorder %v5783_v16, %v4909_v21 }
 0x10e   : > { %3769 = vmatprep.subr.mxu0 %v3588_v10  ;;  %v1962_v8 = vadd.f32 %v1706_v4, %v892_v25  ;;  %v2522_v43 = vsel %vm2245_vm12, %v4809_v46, 0.0  ;;  %v3331_v3 = vsel %vm3054_vm13, %v4829_v54, 0.0  ;;  %vm743_vm14 = vcmp.eq.s32.totalorder %v5786_v9, %v4850_v61 }
 0x10f   : > { %v3716_v55 = vadd.f32 %v3460_v22, %v2907_v32  ;;  %v1020_v12 = vsel %vm743_vm14, %v4796_v41, 0.0  ;;  %vm1557_vm15 = vcmp.eq.s32.totalorder %v5786_v9, %v4854_v62  ;;  %vm2373_vm0 = vcmp.eq.s32.totalorder %v5786_v9, %v4905_v20 }
 0x110   : > { %v2778_v14 = vadd.f32 %v2522_v43, %v1962_v8  ;;  %v1834_v27 = vsel %vm1557_vm15, %v4800_v42, 0.0  ;;  %v2650_v18 = vsel %vm2373_vm0, %v4809_v46, 0.0  ;;  %vm3182_vm1 = vcmp.eq.s32.totalorder %v5786_v9, %v4909_v21 }
 0x111   : > { %3846 = vmatprep.subr.mxu1 %v3716_v55  ;;  %v2090_v23 = vadd.f32 %v1834_v27, %v1020_v12  ;;  %v3459_v10 = vsel %vm3182_vm1, %v4829_v54, 0.0  ;;  %v5933_v22 = vadd.s32 216, %v4756_v6  ;;  %v5936_v25 = vadd.s32 472, %v4756_v6 }
 0x112   : > { %v3587_v32 = vadd.f32 %v3331_v3, %v2778_v14  ;;  %v5939_v4 = vadd.s32 208, %v4756_v6  ;;  %v5942_v8 = vadd.s32 464, %v4756_v6  ;;  %v5945_v43 = vadd.s32 200, %v4756_v6 }
 0x113   : > { %8400 = vst [vmem:[#allocation23_spill] sm:$0xff] %v5933_v22  ;;  %8401 = vst [vmem:[#allocation24_spill] sm:$0xff] %v5936_v25  ;;  %v2906_v55 = vadd.f32 %v2650_v18, %v2090_v23  ;;  %vm612_vm2 = vcmp.eq.s32.totalorder %v5933_v22, %v4842_v59  ;;  %vm1426_vm3 = vcmp.eq.s32.totalorder %v5933_v22, %v4846_v60 }
 0x114   : > { %8402 = vst [vmem:[#allocation25_spill] sm:$0xff] %v5939_v4  ;;  %8403 = vst [vmem:[#allocation26_spill] sm:$0xff] %v5942_v8  ;;  %vm2242_vm4 = vcmp.eq.s32.totalorder %v5933_v22, %v4878_v5  ;;  %3770 = vmatpush2.msra.mxu0 %v3587_v32  ;;  %v889_v3 = vsel %vm612_vm2, %v4775_v29, 0.0  ;;  %v1703_v12 = vsel %vm1426_vm3, %v4788_v38, 0.0  ;;  %vm3051_vm5 = vcmp.eq.s32.totalorder %v5933_v22, %v4882_v7 }
 0x115   : > { %8404 = vst [vmem:[#allocation27_spill] sm:$0xff] %v5945_v43  ;;  %v2519_v14 = vsel %vm2242_vm4, %v4804_v45, 0.0  ;;  %v3715_v27 = vadd.f32 %v3459_v10, %v2906_v55  ;;  %v1959_v18 = vadd.f32 %v1703_v12, %v889_v3  ;;  %v3328_v23 = vsel %vm3051_vm5, %v4825_v53, 0.0 }
 0x116   : > { %vm740_vm6 = vcmp.eq.s32.totalorder %v5936_v25, %v4842_v59  ;;  %vm1554_vm7 = vcmp.eq.s32.totalorder %v5936_v25, %v4846_v60  ;;  %vm2370_vm8 = vcmp.eq.s32.totalorder %v5936_v25, %v4878_v5  ;;  %vm3179_vm9 = vcmp.eq.s32.totalorder %v5936_v25, %v4882_v7 }
 0x117   : > { %v1017_v9 = vsel %vm740_vm6, %v4775_v29, 0.0  ;;  %3847 = vmatpush2.msra.mxu1 %v3715_v27  ;;  %v2775_v32 = vadd.f32 %v2519_v14, %v1959_v18  ;;  %v1831_v10 = vsel %vm1554_vm7, %v4788_v38, 0.0  ;;  %v2647_v55 = vsel %vm2370_vm8, %v4804_v45, 0.0 }
 0x118   : > { %v3456_v3 = vsel %vm3179_vm9, %v4825_v53, 0.0  ;;  %v2087_v12 = vadd.f32 %v1831_v10, %v1017_v9  ;;  %vm611_vm10 = vcmp.eq.s32.totalorder %v5933_v22, %v4850_v61  ;;  %vm1425_vm11 = vcmp.eq.s32.totalorder %v5933_v22, %v4854_v62 }
 0x119   : > { %vm2241_vm12 = vcmp.eq.s32.totalorder %v5933_v22, %v4905_v20  ;;  %v3584_v16 = vadd.f32 %v3328_v23, %v2775_v32  ;;  %v888_v27 = vsel %vm611_vm10, %v4796_v41, 0.0  ;;  %v1702_v14 = vsel %vm1425_vm11, %v4800_v42, 0.0 }
 0x11a   : > { %v2518_v18 = vsel %vm2241_vm12, %v4809_v46, 0.0  ;;  %v2903_v33 = vadd.f32 %v2647_v55, %v2087_v12  ;;  %v1958_v28 = vadd.f32 %v1702_v14, %v888_v27  ;;  %vm3050_vm13 = vcmp.eq.s32.totalorder %v5933_v22, %v4909_v21 }
 0x11b   : > { %vm739_vm14 = vcmp.eq.s32.totalorder %v5936_v25, %v4850_v61  ;;  %3771 = vmatprep.subr.mxu0 %v3584_v16  ;;  %v3327_v9 = vsel %vm3050_vm13, %v4829_v54, 0.0  ;;  %vm1553_vm15 = vcmp.eq.s32.totalorder %v5936_v25, %v4854_v62  ;;  %vm2369_vm0 = vcmp.eq.s32.totalorder %v5936_v25, %v4905_v20  ;;  %v385_v16 = vld [vmem:[%s8297_s2 + $0x8] sm:$0xff] }
 0x11c   : > { %v1016_v10 = vsel %vm739_vm14, %v4796_v41, 0.0  ;;  %v3712_v23 = vadd.f32 %v3456_v3, %v2903_v33  ;;  %v2774_v32 = vadd.f32 %v2518_v18, %v1958_v28  ;;  %v1830_v55 = vsel %vm1553_vm15, %v4800_v42, 0.0  ;;  %3795 = vmatprep.mubr.f32.mxu0 %v385_v16 }
 0x11d   : > { %v2646_v12 = vsel %vm2369_vm0, %v4809_v46, 0.0  ;;  %v2086_v27 = vadd.f32 %v1830_v55, %v1016_v10  ;;  %vm3178_vm1 = vcmp.eq.s32.totalorder %v5936_v25, %v4909_v21  ;;  %vm608_vm2 = vcmp.eq.s32.totalorder %v5939_v4, %v4842_v59 }
 0x11e   : > { %vm1422_vm3 = vcmp.eq.s32.totalorder %v5939_v4, %v4846_v60  ;;  %3848 = vmatprep.subr.mxu1 %v3712_v23  ;;  %v3583_v33 = vadd.f32 %v3327_v9, %v2774_v32  ;;  %v3455_v28 = vsel %vm3178_vm1, %v4829_v54, 0.0  ;;  %v885_v3 = vsel %vm608_vm2, %v4775_v29, 0.0  ;;  %v387_v23 = vld [vmem:[%s8297_s2 + $0x18] sm:$0xff] }
 0x11f   : > { %v1699_v14 = vsel %vm1422_vm3, %v4788_v38, 0.0  ;;  %v2902_v18 = vadd.f32 %v2646_v12, %v2086_v27  ;;  %vm2238_vm4 = vcmp.eq.s32.totalorder %v5939_v4, %v4878_v5  ;;  %vm3047_vm5 = vcmp.eq.s32.totalorder %v5939_v4, %v4882_v7  ;;  %3872 = vmatprep.mubr.f32.mxu1 %v387_v23 }
 0x120   : > { %v1955_v10 = vadd.f32 %v1699_v14, %v885_v3  ;;  %3772 = vmatpush2.msra.mxu0 %v3583_v33  ;;  %v2515_v55 = vsel %vm2238_vm4, %v4804_v45, 0.0  ;;  %v3324_v9 = vsel %vm3047_vm5, %v4825_v53, 0.0  ;;  %vm736_vm6 = vcmp.eq.s32.totalorder %v5942_v8, %v4842_v59 }
 0x121   : > { %vm1550_vm7 = vcmp.eq.s32.totalorder %v5942_v8, %v4846_v60  ;;  %v3711_v32 = vadd.f32 %v3455_v28, %v2902_v18  ;;  %v1013_v27 = vsel %vm736_vm6, %v4775_v29, 0.0  ;;  %vm2366_vm8 = vcmp.eq.s32.totalorder %v5942_v8, %v4878_v5 }
 0x122   : > { %v2771_v12 = vadd.f32 %v2515_v55, %v1955_v10  ;;  %v1827_v16 = vsel %vm1550_vm7, %v4788_v38, 0.0  ;;  %vm3175_vm9 = vcmp.eq.s32.totalorder %v5942_v8, %v4882_v7  ;;  %vm607_vm10 = vcmp.eq.s32.totalorder %v5939_v4, %v4850_v61 }
 0x123   : > { %v2083_v33 = vadd.f32 %v1827_v16, %v1013_v27  ;;  %3849 = vmatpush2.msra.mxu1 %v3711_v32  ;;  %v2643_v28 = vsel %vm2366_vm8, %v4804_v45, 0.0  ;;  %v3452_v14 = vsel %vm3175_vm9, %v4825_v53, 0.0  ;;  %v884_v18 = vsel %vm607_vm10, %v4796_v41, 0.0 }
 0x124   : > { %v3580_v3 = vadd.f32 %v3324_v9, %v2771_v12  ;;  %vm1421_vm11 = vcmp.eq.s32.totalorder %v5939_v4, %v4854_v62  ;;  %vm2237_vm12 = vcmp.eq.s32.totalorder %v5939_v4, %v4905_v20  ;;  %vm3046_vm13 = vcmp.eq.s32.totalorder %v5939_v4, %v4909_v21 }
 0x125   : > { %v2899_v10 = vadd.f32 %v2643_v28, %v2083_v33  ;;  %v1698_v55 = vsel %vm1421_vm11, %v4800_v42, 0.0  ;;  %v2514_v9 = vsel %vm2237_vm12, %v4809_v46, 0.0  ;;  %v3323_v23 = vsel %vm3046_vm13, %v4829_v54, 0.0 }
 0x126   : > { %3773 = vmatprep.subr.mxu0 %v3580_v3  ;;  %vm735_vm14 = vcmp.eq.s32.totalorder %v5942_v8, %v4850_v61  ;;  %v1954_v12 = vadd.f32 %v1698_v55, %v884_v18  ;;  %vm1549_vm15 = vcmp.eq.s32.totalorder %v5942_v8, %v4854_v62  ;;  %vm2365_vm0 = vcmp.eq.s32.totalorder %v5942_v8, %v4905_v20 }
 0x127   : > { %v3708_v32 = vadd.f32 %v3452_v14, %v2899_v10  ;;  %v1012_v27 = vsel %vm735_vm14, %v4796_v41, 0.0  ;;  %v1826_v16 = vsel %vm1549_vm15, %v4800_v42, 0.0  ;;  %vm3174_vm1 = vcmp.eq.s32.totalorder %v5942_v8, %v4909_v21 }
 0x128   : > { %vm604_vm2 = vcmp.eq.s32.totalorder %v5945_v43, %v4842_v59  ;;  %v2770_v33 = vadd.f32 %v2514_v9, %v1954_v12  ;;  %v2082_v3 = vadd.f32 %v1826_v16, %v1012_v27  ;;  %v2642_v28 = vsel %vm2365_vm0, %v4809_v46, 0.0 }
 0x129   : > { %3850 = vmatprep.subr.mxu1 %v3708_v32  ;;  %v3451_v14 = vsel %vm3174_vm1, %v4829_v54, 0.0  ;;  %v881_v18 = vsel %vm604_vm2, %v4775_v29, 0.0  ;;  %vm1418_vm3 = vcmp.eq.s32.totalorder %v5945_v43, %v4846_v60  ;;  %vm2234_vm4 = vcmp.eq.s32.totalorder %v5945_v43, %v4878_v5 }
 0x12a   : > { %vm3043_vm5 = vcmp.eq.s32.totalorder %v5945_v43, %v4882_v7  ;;  %v3579_v10 = vadd.f32 %v3323_v23, %v2770_v33  ;;  %v2898_v55 = vadd.f32 %v2642_v28, %v2082_v3  ;;  %v1695_v9 = vsel %vm1418_vm3, %v4788_v38, 0.0 }
 0x12b   : > { %v2511_v32 = vsel %vm2234_vm4, %v4804_v45, 0.0  ;;  %v1951_v12 = vadd.f32 %v1695_v9, %v881_v18  ;;  %v3320_v27 = vsel %vm3043_vm5, %v4825_v53, 0.0  ;;  %v6062_v16 = vadd.s32 456, %v4756_v6 }
 0x12c   : > { %vm603_vm6 = vcmp.eq.s32.totalorder %v5945_v43, %v4850_v61  ;;  %3774 = vmatpush2.msra.mxu0 %v3579_v10  ;;  %v3707_v8 = vadd.f32 %v3451_v14, %v2898_v55  ;;  %vm1417_vm7 = vcmp.eq.s32.totalorder %v5945_v43, %v4854_v62  ;;  %vm2233_vm8 = vcmp.eq.s32.totalorder %v5945_v43, %v4905_v20 }
 0x12d   : > { %8405 = vst [vmem:[#allocation28_spill] sm:$0xff] %v6062_v16  ;;  %v880_v4 = vsel %vm603_vm6, %v4796_v41, 0.0  ;;  %v2767_v23 = vadd.f32 %v2511_v32, %v1951_v12  ;;  %vm732_vm9 = vcmp.eq.s32.totalorder %v6062_v16, %v4842_v59  ;;  %vm1546_vm10 = vcmp.eq.s32.totalorder %v6062_v16, %v4846_v60 }
 0x12e   : > { %vm2362_vm11 = vcmp.eq.s32.totalorder %v6062_v16, %v4878_v5  ;;  %3851 = vmatpush2.msra.mxu1 %v3707_v8  ;;  %v1009_v33 = vsel %vm732_vm9, %v4775_v29, 0.0  ;;  %v1823_v3 = vsel %vm1546_vm10, %v4788_v38, 0.0  ;;  %vm3171_vm12 = vcmp.eq.s32.totalorder %v6062_v16, %v4882_v7 }
 0x12f   : > { %v2639_v28 = vsel %vm2362_vm11, %v4804_v45, 0.0  ;;  %v3576_v14 = vadd.f32 %v3320_v27, %v2767_v23  ;;  %v2079_v18 = vadd.f32 %v1823_v3, %v1009_v33  ;;  %v3448_v10 = vsel %vm3171_vm12, %v4825_v53, 0.0 }
 0x130   : > { %v1694_v55 = vsel %vm1417_vm7, %v4800_v42, 0.0  ;;  %v2510_v32 = vsel %vm2233_vm8, %v4809_v46, 0.0  ;;  %vm3042_vm13 = vcmp.eq.s32.totalorder %v5945_v43, %v4909_v21  ;;  %vm731_vm14 = vcmp.eq.s32.totalorder %v6062_v16, %v4850_v61 }
 0x131   : > { %v1950_v9 = vadd.f32 %v1694_v55, %v880_v4  ;;  %3775 = vmatprep.subr.mxu0 %v3576_v14  ;;  %v2895_v8 = vadd.f32 %v2639_v28, %v2079_v18  ;;  %v3319_v12 = vsel %vm3042_vm13, %v4829_v54, 0.0  ;;  %v1008_v27 = vsel %vm731_vm14, %v4796_v41, 0.0 }
 0x132   : > { %vm1545_vm15 = vcmp.eq.s32.totalorder %v6062_v16, %v4854_v62  ;;  %vm2361_vm0 = vcmp.eq.s32.totalorder %v6062_v16, %v4905_v20  ;;  %vm3170_vm1 = vcmp.eq.s32.totalorder %v6062_v16, %v4909_v21  ;;  %v6101_v55 = vadd.s32 192, %v4756_v6 }
 0x133   : > { %v2766_v23 = vadd.f32 %v2510_v32, %v1950_v9  ;;  %v1822_v4 = vsel %vm1545_vm15, %v4800_v42, 0.0  ;;  %v3704_v33 = vadd.f32 %v3448_v10, %v2895_v8  ;;  %v2638_v28 = vsel %vm2361_vm0, %v4809_v46, 0.0 }
 0x134   : > { %v2078_v3 = vadd.f32 %v1822_v4, %v1008_v27  ;;  %v3447_v14 = vsel %vm3170_vm1, %v4829_v54, 0.0  ;;  %8406 = vst [vmem:[#allocation29_spill] sm:$0xff] %v6101_v55  ;;  %v6104_v9 = vadd.s32 448, %v4756_v6  ;;  %v6107_v32 = vadd.s32 184, %v4756_v6 }
 0x135   : > { %v3575_v18 = vadd.f32 %v3319_v12, %v2766_v23  ;;  %3852 = vmatprep.subr.mxu1 %v3704_v33  ;;  %v6110_v16 = vadd.s32 440, %v4756_v6  ;;  %v6113_v10 = vadd.s32 176, %v4756_v6  ;;  %v6116_v8 = vadd.s32 432, %v4756_v6 }
 0x136   : > { %8407 = vst [vmem:[#allocation30_spill] sm:$0xff] %v6104_v9  ;;  %8408 = vst [vmem:[#allocation31_spill] sm:$0xff] %v6107_v32  ;;  %v2894_v43 = vadd.f32 %v2638_v28, %v2078_v3  ;;  %vm600_vm2 = vcmp.eq.s32.totalorder %v6101_v55, %v4842_v59  ;;  %vm1414_vm3 = vcmp.eq.s32.totalorder %v6101_v55, %v4846_v60 }
 0x137   : > { %8409 = vst [vmem:[#allocation32_spill] sm:$0xff] %v6110_v16  ;;  %8410 = vst [vmem:[#allocation33_spill] sm:$0xff] %v6113_v10  ;;  %3776 = vmatpush2.msra.mxu0 %v3575_v18  ;;  %vm2230_vm4 = vcmp.eq.s32.totalorder %v6101_v55, %v4878_v5  ;;  %vm3039_vm5 = vcmp.eq.s32.totalorder %v6101_v55, %v4882_v7  ;;  %v877_v27 = vsel %vm600_vm2, %v4775_v29, 0.0  ;;  %v1691_v23 = vsel %vm1414_vm3, %v4788_v38, 0.0 }
 0x138   : > { %8411 = vst [vmem:[#allocation34_spill] sm:$0xff] %v6116_v8  ;;  %v3703_v12 = vadd.f32 %v3447_v14, %v2894_v43  ;;  %v2507_v4 = vsel %vm2230_vm4, %v4804_v45, 0.0  ;;  %v1947_v33 = vadd.f32 %v1691_v23, %v877_v27  ;;  %v3316_v3 = vsel %vm3039_vm5, %v4825_v53, 0.0 }
 0x139   : > { %vm728_vm6 = vcmp.eq.s32.totalorder %v6104_v9, %v4842_v59  ;;  %vm1542_vm7 = vcmp.eq.s32.totalorder %v6104_v9, %v4846_v60  ;;  %vm2358_vm8 = vcmp.eq.s32.totalorder %v6104_v9, %v4878_v5  ;;  %vm3167_vm9 = vcmp.eq.s32.totalorder %v6104_v9, %v4882_v7 }
 0x13a   : > { %3853 = vmatpush2.msra.mxu1 %v3703_v12  ;;  %v1005_v28 = vsel %vm728_vm6, %v4775_v29, 0.0  ;;  %v1819_v43 = vsel %vm1542_vm7, %v4788_v38, 0.0  ;;  %v2763_v14 = vadd.f32 %v2507_v4, %v1947_v33  ;;  %v2635_v27 = vsel %vm2358_vm8, %v4804_v45, 0.0 }
 0x13b   : > { %v2075_v18 = vadd.f32 %v1819_v43, %v1005_v28  ;;  %v3444_v23 = vsel %vm3167_vm9, %v4825_v53, 0.0  ;;  %vm599_vm10 = vcmp.eq.s32.totalorder %v6101_v55, %v4850_v61  ;;  %vm1413_vm11 = vcmp.eq.s32.totalorder %v6101_v55, %v4854_v62 }
 0x13c   : > { %vm2229_vm12 = vcmp.eq.s32.totalorder %v6101_v55, %v4905_v20  ;;  %vm3038_vm13 = vcmp.eq.s32.totalorder %v6101_v55, %v4909_v21  ;;  %v3572_v12 = vadd.f32 %v3316_v3, %v2763_v14  ;;  %v876_v4 = vsel %vm599_vm10, %v4796_v41, 0.0 }
 0x13d   : > { %v2891_v25 = vadd.f32 %v2635_v27, %v2075_v18  ;;  %v1690_v33 = vsel %vm1413_vm11, %v4800_v42, 0.0  ;;  %v2506_v43 = vsel %vm2229_vm12, %v4809_v46, 0.0  ;;  %v3315_v22 = vsel %vm3038_vm13, %v4829_v54, 0.0 }
 0x13e   : > { %v1946_v28 = vadd.f32 %v1690_v33, %v876_v4  ;;  %vm727_vm14 = vcmp.eq.s32.totalorder %v6104_v9, %v4850_v61  ;;  %3777 = vmatprep.subr.mxu0 %v3572_v12  ;;  %vm1541_vm15 = vcmp.eq.s32.totalorder %v6104_v9, %v4854_v62  ;;  %vm2357_vm0 = vcmp.eq.s32.totalorder %v6104_v9, %v4905_v20 }
 0x13f   : > { %v3700_v17 = vadd.f32 %v3444_v23, %v2891_v25  ;;  %v1004_v15 = vsel %vm727_vm14, %v4796_v41, 0.0  ;;  %v1818_v14 = vsel %vm1541_vm15, %v4800_v42, 0.0  ;;  %v2634_v18 = vsel %vm2357_vm0, %v4809_v46, 0.0 }
 0x140   : > { %v2762_v3 = vadd.f32 %v2506_v43, %v1946_v28  ;;  %vm3166_vm1 = vcmp.eq.s32.totalorder %v6104_v9, %v4909_v21  ;;  %v2074_v27 = vadd.f32 %v1818_v14, %v1004_v15  ;;  %vm596_vm2 = vcmp.eq.s32.totalorder %v6107_v32, %v4842_v59 }
 0x141   : > { %3854 = vmatprep.subr.mxu1 %v3700_v17  ;;  %v3443_v25 = vsel %vm3166_vm1, %v4829_v54, 0.0  ;;  %vm1410_vm3 = vcmp.eq.s32.totalorder %v6107_v32, %v4846_v60  ;;  %v873_v12 = vsel %vm596_vm2, %v4775_v29, 0.0  ;;  %vm2226_vm4 = vcmp.eq.s32.totalorder %v6107_v32, %v4878_v5 }
 0x142   : > { %v3571_v23 = vadd.f32 %v3315_v22, %v2762_v3  ;;  %v1687_v4 = vsel %vm1410_vm3, %v4788_v38, 0.0  ;;  %v2890_v33 = vadd.f32 %v2634_v18, %v2074_v27  ;;  %v2503_v15 = vsel %vm2226_vm4, %v4804_v45, 0.0 }
 0x143   : > { %v1943_v28 = vadd.f32 %v1687_v4, %v873_v12  ;;  %vm3035_vm5 = vcmp.eq.s32.totalorder %v6107_v32, %v4882_v7  ;;  %vm724_vm6 = vcmp.eq.s32.totalorder %v6110_v16, %v4842_v59  ;;  %vm1538_vm7 = vcmp.eq.s32.totalorder %v6110_v16, %v4846_v60 }
 0x144   : > { %3778 = vmatpush2.msra.mxu0 %v3571_v23  ;;  %v3312_v17 = vsel %vm3035_vm5, %v4825_v53, 0.0  ;;  %vm2354_vm8 = vcmp.eq.s32.totalorder %v6110_v16, %v4878_v5  ;;  %v3699_v22 = vadd.f32 %v3443_v25, %v2890_v33  ;;  %v1001_v3 = vsel %vm724_vm6, %v4775_v29, 0.0 }
 0x145   : > { %v2759_v43 = vadd.f32 %v2503_v15, %v1943_v28  ;;  %v1815_v14 = vsel %vm1538_vm7, %v4788_v38, 0.0  ;;  %v2631_v27 = vsel %vm2354_vm8, %v4804_v45, 0.0  ;;  %vm3163_vm9 = vcmp.eq.s32.totalorder %v6110_v16, %v4882_v7 }
 0x146   : > { %v2071_v18 = vadd.f32 %v1815_v14, %v1001_v3  ;;  %vm595_vm10 = vcmp.eq.s32.totalorder %v6107_v32, %v4850_v61  ;;  %3855 = vmatpush2.msra.mxu1 %v3699_v22  ;;  %v3440_v12 = vsel %vm3163_vm9, %v4825_v53, 0.0  ;;  %vm1409_vm11 = vcmp.eq.s32.totalorder %v6107_v32, %v4854_v62 }
 0x147   : > { %v3568_v23 = vadd.f32 %v3312_v17, %v2759_v43  ;;  %v872_v25 = vsel %vm595_vm10, %v4796_v41, 0.0  ;;  %v1686_v33 = vsel %vm1409_vm11, %v4800_v42, 0.0  ;;  %vm2225_vm12 = vcmp.eq.s32.totalorder %v6107_v32, %v4905_v20 }
 0x148   : > { %v2887_v4 = vadd.f32 %v2631_v27, %v2071_v18  ;;  %vm3034_vm13 = vcmp.eq.s32.totalorder %v6107_v32, %v4909_v21  ;;  %v1942_v28 = vadd.f32 %v1686_v33, %v872_v25  ;;  %v2502_v15 = vsel %vm2225_vm12, %v4809_v46, 0.0 }
 0x149   : > { %3779 = vmatprep.subr.mxu0 %v3568_v23  ;;  %v3311_v17 = vsel %vm3034_vm13, %v4829_v54, 0.0  ;;  %vm723_vm14 = vcmp.eq.s32.totalorder %v6110_v16, %v4850_v61  ;;  %vm1537_vm15 = vcmp.eq.s32.totalorder %v6110_v16, %v4854_v62  ;;  %vm2353_vm0 = vcmp.eq.s32.totalorder %v6110_v16, %v4905_v20 }
 0x14a   : > { %v3696_v22 = vadd.f32 %v3440_v12, %v2887_v4  ;;  %v1000_v43 = vsel %vm723_vm14, %v4796_v41, 0.0  ;;  %v2758_v3 = vadd.f32 %v2502_v15, %v1942_v28  ;;  %v1814_v14 = vsel %vm1537_vm15, %v4800_v42, 0.0 }
 0x14b   : > { %v2630_v18 = vsel %vm2353_vm0, %v4809_v46, 0.0  ;;  %vm3162_vm1 = vcmp.eq.s32.totalorder %v6110_v16, %v4909_v21  ;;  %v2070_v27 = vadd.f32 %v1814_v14, %v1000_v43  ;;  %vm592_vm2 = vcmp.eq.s32.totalorder %v6113_v10, %v4842_v59 }
 0x14c   : > { %3856 = vmatprep.subr.mxu1 %v3696_v22  ;;  %v3439_v23 = vsel %vm3162_vm1, %v4829_v54, 0.0  ;;  %vm1406_vm3 = vcmp.eq.s32.totalorder %v6113_v10, %v4846_v60  ;;  %v3567_v12 = vadd.f32 %v3311_v17, %v2758_v3  ;;  %v869_v25 = vsel %vm592_vm2, %v4775_v29, 0.0 }
 0x14d   : > { %v1683_v4 = vsel %vm1406_vm3, %v4788_v38, 0.0  ;;  %vm2222_vm4 = vcmp.eq.s32.totalorder %v6113_v10, %v4878_v5  ;;  %v2886_v33 = vadd.f32 %v2630_v18, %v2070_v27  ;;  %vm3031_vm5 = vcmp.eq.s32.totalorder %v6113_v10, %v4882_v7 }
 0x14e   : > { %v1939_v28 = vadd.f32 %v1683_v4, %v869_v25  ;;  %v2499_v15 = vsel %vm2222_vm4, %v4804_v45, 0.0  ;;  %3780 = vmatpush2.msra.mxu0 %v3567_v12  ;;  %v3308_v22 = vsel %vm3031_vm5, %v4825_v53, 0.0  ;;  %vm720_vm6 = vcmp.eq.s32.totalorder %v6116_v8, %v4842_v59 }
 0x14f   : > { %vm1534_vm7 = vcmp.eq.s32.totalorder %v6116_v8, %v4846_v60  ;;  %vm2350_vm8 = vcmp.eq.s32.totalorder %v6116_v8, %v4878_v5  ;;  %v3695_v17 = vadd.f32 %v3439_v23, %v2886_v33  ;;  %v997_v3 = vsel %vm720_vm6, %v4775_v29, 0.0 }
 0x150   : > { %v2755_v43 = vadd.f32 %v2499_v15, %v1939_v28  ;;  %v1811_v14 = vsel %vm1534_vm7, %v4788_v38, 0.0  ;;  %v2627_v27 = vsel %vm2350_vm8, %v4804_v45, 0.0  ;;  %vm3159_vm9 = vcmp.eq.s32.totalorder %v6116_v8, %v4882_v7 }
 0x151   : > { %v2067_v18 = vadd.f32 %v1811_v14, %v997_v3  ;;  %vm591_vm10 = vcmp.eq.s32.totalorder %v6113_v10, %v4850_v61  ;;  %3857 = vmatpush2.msra.mxu1 %v3695_v17  ;;  %v3436_v25 = vsel %vm3159_vm9, %v4825_v53, 0.0  ;;  %vm1405_vm11 = vcmp.eq.s32.totalorder %v6113_v10, %v4854_v62 }
 0x152   : > { %v3564_v12 = vadd.f32 %v3308_v22, %v2755_v43  ;;  %v868_v23 = vsel %vm591_vm10, %v4796_v41, 0.0  ;;  %v1682_v33 = vsel %vm1405_vm11, %v4800_v42, 0.0  ;;  %vm2221_vm12 = vcmp.eq.s32.totalorder %v6113_v10, %v4905_v20 }
 0x153   : > { %v2883_v4 = vadd.f32 %v2627_v27, %v2067_v18  ;;  %vm3030_vm13 = vcmp.eq.s32.totalorder %v6113_v10, %v4909_v21  ;;  %v1938_v28 = vadd.f32 %v1682_v33, %v868_v23  ;;  %v2498_v15 = vsel %vm2221_vm12, %v4809_v46, 0.0 }
 0x154   : > { %3781 = vmatprep.subr.mxu0 %v3564_v12  ;;  %v3307_v22 = vsel %vm3030_vm13, %v4829_v54, 0.0  ;;  %vm719_vm14 = vcmp.eq.s32.totalorder %v6116_v8, %v4850_v61  ;;  %vm1533_vm15 = vcmp.eq.s32.totalorder %v6116_v8, %v4854_v62  ;;  %vm2349_vm0 = vcmp.eq.s32.totalorder %v6116_v8, %v4905_v20 }
 0x155   : > { %v3692_v17 = vadd.f32 %v3436_v25, %v2883_v4  ;;  %v996_v43 = vsel %vm719_vm14, %v4796_v41, 0.0  ;;  %v2754_v3 = vadd.f32 %v2498_v15, %v1938_v28  ;;  %v1810_v14 = vsel %vm1533_vm15, %v4800_v42, 0.0 }
 0x156   : > { %v2626_v18 = vsel %vm2349_vm0, %v4809_v46, 0.0  ;;  %vm3158_vm1 = vcmp.eq.s32.totalorder %v6116_v8, %v4909_v21  ;;  %v2066_v27 = vadd.f32 %v1810_v14, %v996_v43  ;;  %v6263_v25 = vadd.s32 168, %v4756_v6 }
 0x157   : > { %3858 = vmatprep.subr.mxu1 %v3692_v17  ;;  %v3435_v12 = vsel %vm3158_vm1, %v4829_v54, 0.0  ;;  %v6266_v23 = vadd.s32 424, %v4756_v6  ;;  %v3563_v4 = vadd.f32 %v3307_v22, %v2754_v3  ;;  %v6269_v33 = vadd.s32 160, %v4756_v6 }
 0x158   : > { %8412 = vst [vmem:[#allocation35_spill] sm:$0xff] %v6263_v25  ;;  %v6272_v28 = vadd.s32 416, %v4756_v6  ;;  %v6275_v15 = vadd.s32 152, %v4756_v6  ;;  %v2882_v17 = vadd.f32 %v2626_v18, %v2066_v27  ;;  %vm588_vm2 = vcmp.eq.s32.totalorder %v6263_v25, %v4842_v59 }
 0x159   : > { %8413 = vst [vmem:[#allocation36_spill] sm:$0xff] %v6266_v23  ;;  %8414 = vst [vmem:[#allocation37_spill] sm:$0xff] %v6269_v33  ;;  %vm1402_vm3 = vcmp.eq.s32.totalorder %v6263_v25, %v4846_v60  ;;  %vm2218_vm4 = vcmp.eq.s32.totalorder %v6263_v25, %v4878_v5  ;;  %3782 = vmatpush2.msra.mxu0 %v3563_v4  ;;  %v865_v22 = vsel %vm588_vm2, %v4775_v29, 0.0 }
 0x15a   : > { %8415 = vst [vmem:[#allocation38_spill] sm:$0xff] %v6272_v28  ;;  %8416 = vst [vmem:[#allocation39_spill] sm:$0xff] %v6275_v15  ;;  %v1679_v43 = vsel %vm1402_vm3, %v4788_v38, 0.0  ;;  %v2495_v3 = vsel %vm2218_vm4, %v4804_v45, 0.0  ;;  %vm3027_vm5 = vcmp.eq.s32.totalorder %v6263_v25, %v4882_v7  ;;  %v3691_v14 = vadd.f32 %v3435_v12, %v2882_v17 }
 0x15b   : > { %v1935_v18 = vadd.f32 %v1679_v43, %v865_v22  ;;  %v3304_v27 = vsel %vm3027_vm5, %v4825_v53, 0.0  ;;  %vm716_vm6 = vcmp.eq.s32.totalorder %v6266_v23, %v4842_v59  ;;  %vm1530_vm7 = vcmp.eq.s32.totalorder %v6266_v23, %v4846_v60 }
 0x15c   : > { %v993_v8 = vsel %vm716_vm6, %v4775_v29, 0.0  ;;  %vm2346_vm8 = vcmp.eq.s32.totalorder %v6266_v23, %v4878_v5  ;;  %vm3155_vm9 = vcmp.eq.s32.totalorder %v6266_v23, %v4882_v7  ;;  %3859 = vmatpush2.msra.mxu1 %v3691_v14  ;;  %v1807_v12 = vsel %vm1530_vm7, %v4788_v38, 0.0 }
 0x15d   : > { %v2751_v4 = vadd.f32 %v2495_v3, %v1935_v18  ;;  %v2623_v17 = vsel %vm2346_vm8, %v4804_v45, 0.0  ;;  %v3432_v22 = vsel %vm3155_vm9, %v4825_v53, 0.0  ;;  %v2063_v43 = vadd.f32 %v1807_v12, %v993_v8 }
 0x15e   : > { %vm587_vm10 = vcmp.eq.s32.totalorder %v6263_v25, %v4850_v61  ;;  %vm1401_vm11 = vcmp.eq.s32.totalorder %v6263_v25, %v4854_v62  ;;  %vm2217_vm12 = vcmp.eq.s32.totalorder %v6263_v25, %v4905_v20  ;;  %vm3026_vm13 = vcmp.eq.s32.totalorder %v6263_v25, %v4909_v21 }
 0x15f   : > { %v3560_v10 = vadd.f32 %v3304_v27, %v2751_v4  ;;  %v864_v14 = vsel %vm587_vm10, %v4796_v41, 0.0  ;;  %v1678_v3 = vsel %vm1401_vm11, %v4800_v42, 0.0  ;;  %v2494_v18 = vsel %vm2217_vm12, %v4809_v46, 0.0 }
 0x160   : > { %v2879_v16 = vadd.f32 %v2623_v17, %v2063_v43  ;;  %v1934_v32 = vadd.f32 %v1678_v3, %v864_v14  ;;  %vm715_vm14 = vcmp.eq.s32.totalorder %v6266_v23, %v4850_v61  ;;  %v3303_v8 = vsel %vm3026_vm13, %v4829_v54, 0.0 }
 0x161   : > { %3783 = vmatprep.subr.mxu0 %v3560_v10  ;;  %v992_v12 = vsel %vm715_vm14, %v4796_v41, 0.0  ;;  %vm1529_vm15 = vcmp.eq.s32.totalorder %v6266_v23, %v4854_v62  ;;  %vm2345_vm0 = vcmp.eq.s32.totalorder %v6266_v23, %v4905_v20  ;;  %vm3154_vm1 = vcmp.eq.s32.totalorder %v6266_v23, %v4909_v21 }
 0x162   : > { %v3688_v27 = vadd.f32 %v3432_v22, %v2879_v16  ;;  %v2750_v4 = vadd.f32 %v2494_v18, %v1934_v32  ;;  %v1806_v17 = vsel %vm1529_vm15, %v4800_v42, 0.0  ;;  %v2622_v43 = vsel %vm2345_vm0, %v4809_v46, 0.0 }
 0x163   : > { %v2062_v14 = vadd.f32 %v1806_v17, %v992_v12  ;;  %vm584_vm2 = vcmp.eq.s32.totalorder %v6269_v33, %v4842_v59  ;;  %vm1398_vm3 = vcmp.eq.s32.totalorder %v6269_v33, %v4846_v60  ;;  %v3431_v3 = vsel %vm3154_vm1, %v4829_v54, 0.0 }
 0x164   : > { %3860 = vmatprep.subr.mxu1 %v3688_v27  ;;  %v3559_v10 = vadd.f32 %v3303_v8, %v2750_v4  ;;  %v861_v16 = vsel %vm584_vm2, %v4775_v29, 0.0  ;;  %v1675_v32 = vsel %vm1398_vm3, %v4788_v38, 0.0  ;;  %vm2214_vm4 = vcmp.eq.s32.totalorder %v6269_v33, %v4878_v5 }
 0x165   : > { %v2878_v22 = vadd.f32 %v2622_v43, %v2062_v14  ;;  %v1931_v18 = vadd.f32 %v1675_v32, %v861_v16  ;;  %vm3023_vm5 = vcmp.eq.s32.totalorder %v6269_v33, %v4882_v7  ;;  %v2491_v12 = vsel %vm2214_vm4, %v4804_v45, 0.0 }
 0x166   : > { %3784 = vmatpush2.msra.mxu0 %v3559_v10  ;;  %v3300_v27 = vsel %vm3023_vm5, %v4825_v53, 0.0  ;;  %vm712_vm6 = vcmp.eq.s32.totalorder %v6272_v28, %v4842_v59  ;;  %vm1526_vm7 = vcmp.eq.s32.totalorder %v6272_v28, %v4846_v60  ;;  %vm2342_vm8 = vcmp.eq.s32.totalorder %v6272_v28, %v4878_v5 }
 0x167   : > { %v3687_v8 = vadd.f32 %v3431_v3, %v2878_v22  ;;  %v2747_v4 = vadd.f32 %v2491_v12, %v1931_v18  ;;  %v989_v17 = vsel %vm712_vm6, %v4775_v29, 0.0  ;;  %v1803_v43 = vsel %vm1526_vm7, %v4788_v38, 0.0 }
 0x168   : > { %v2059_v14 = vadd.f32 %v1803_v43, %v989_v17  ;;  %vm3151_vm9 = vcmp.eq.s32.totalorder %v6272_v28, %v4882_v7  ;;  %vm583_vm10 = vcmp.eq.s32.totalorder %v6269_v33, %v4850_v61  ;;  %v2619_v16 = vsel %vm2342_vm8, %v4804_v45, 0.0 }
 0x169   : > { %3861 = vmatpush2.msra.mxu1 %v3687_v8  ;;  %v3556_v10 = vadd.f32 %v3300_v27, %v2747_v4  ;;  %v3428_v3 = vsel %vm3151_vm9, %v4825_v53, 0.0  ;;  %v860_v32 = vsel %vm583_vm10, %v4796_v41, 0.0  ;;  %vm1397_vm11 = vcmp.eq.s32.totalorder %v6269_v33, %v4854_v62 }
 0x16a   : > { %v2875_v22 = vadd.f32 %v2619_v16, %v2059_v14  ;;  %vm2213_vm12 = vcmp.eq.s32.totalorder %v6269_v33, %v4905_v20  ;;  %vm3022_vm13 = vcmp.eq.s32.totalorder %v6269_v33, %v4909_v21  ;;  %v1674_v18 = vsel %vm1397_vm11, %v4800_v42, 0.0 }
 0x16b   : > { %3785 = vmatprep.subr.mxu0 %v3556_v10  ;;  %v2490_v12 = vsel %vm2213_vm12, %v4809_v46, 0.0  ;;  %v3299_v27 = vsel %vm3022_vm13, %v4829_v54, 0.0  ;;  %vm711_vm14 = vcmp.eq.s32.totalorder %v6272_v28, %v4850_v61  ;;  %v1930_v4 = vadd.f32 %v1674_v18, %v860_v32 }
 0x16c   : > { %v3684_v8 = vadd.f32 %v3428_v3, %v2875_v22  ;;  %v988_v17 = vsel %vm711_vm14, %v4796_v41, 0.0  ;;  %vm1525_vm15 = vcmp.eq.s32.totalorder %v6272_v28, %v4854_v62  ;;  %vm2341_vm0 = vcmp.eq.s32.totalorder %v6272_v28, %v4905_v20 }
 0x16d   : > { %v1802_v43 = vsel %vm1525_vm15, %v4800_v42, 0.0  ;;  %vm3150_vm1 = vcmp.eq.s32.totalorder %v6272_v28, %v4909_v21  ;;  %vm580_vm2 = vcmp.eq.s32.totalorder %v6275_v15, %v4842_v59  ;;  %v2746_v14 = vadd.f32 %v2490_v12, %v1930_v4 }
 0x16e   : > { %3862 = vmatprep.subr.mxu1 %v3684_v8  ;;  %v2058_v10 = vadd.f32 %v1802_v43, %v988_v17  ;;  %v2618_v16 = vsel %vm2341_vm0, %v4809_v46, 0.0  ;;  %v3427_v3 = vsel %vm3150_vm1, %v4829_v54, 0.0  ;;  %v857_v32 = vsel %vm580_vm2, %v4775_v29, 0.0 }
 0x16f   : > { %vm1394_vm3 = vcmp.eq.s32.totalorder %v6275_v15, %v4846_v60  ;;  %vm2210_vm4 = vcmp.eq.s32.totalorder %v6275_v15, %v4878_v5  ;;  %vm3019_vm5 = vcmp.eq.s32.totalorder %v6275_v15, %v4882_v7  ;;  %v3555_v22 = vadd.f32 %v3299_v27, %v2746_v14 }
 0x170   : > { %v2874_v18 = vadd.f32 %v2618_v16, %v2058_v10  ;;  %v1671_v12 = vsel %vm1394_vm3, %v4788_v38, 0.0  ;;  %v2487_v8 = vsel %vm2210_vm4, %v4804_v45, 0.0  ;;  %v3296_v17 = vsel %vm3019_vm5, %v4825_v53, 0.0 }
 0x171   : > { %v1927_v4 = vadd.f32 %v1671_v12, %v857_v32  ;;  %v6386_v43 = vadd.s32 408, %v4756_v6  ;;  %vm579_vm6 = vcmp.eq.s32.totalorder %v6275_v15, %v4850_v61  ;;  %3786 = vmatpush2.msra.mxu0 %v3555_v22  ;;  %vm1393_vm7 = vcmp.eq.s32.totalorder %v6275_v15, %v4854_v62 }
 0x172   : > { %v3683_v28 = vadd.f32 %v3427_v3, %v2874_v18  ;;  %v856_v33 = vsel %vm579_vm6, %v4796_v41, 0.0  ;;  %vm2209_vm8 = vcmp.eq.s32.totalorder %v6275_v15, %v4905_v20  ;;  %v1670_v18 = vsel %vm1393_vm7, %v4800_v42, 0.0 }
 0x173   : > { %8417 = vst [vmem:[#allocation40_spill] sm:$0xff] %v6386_v43  ;;  %v2743_v27 = vadd.f32 %v2487_v8, %v1927_v4  ;;  %vm708_vm9 = vcmp.eq.s32.totalorder %v6386_v43, %v4842_v59  ;;  %vm1522_vm10 = vcmp.eq.s32.totalorder %v6386_v43, %v4846_v60  ;;  %vm2338_vm11 = vcmp.eq.s32.totalorder %v6386_v43, %v4878_v5 }
 0x174   : > { %3863 = vmatpush2.msra.mxu1 %v3683_v28  ;;  %v985_v14 = vsel %vm708_vm9, %v4775_v29, 0.0  ;;  %v1799_v10 = vsel %vm1522_vm10, %v4788_v38, 0.0  ;;  %v2615_v16 = vsel %vm2338_vm11, %v4804_v45, 0.0  ;;  %vm3147_vm12 = vcmp.eq.s32.totalorder %v6386_v43, %v4882_v7 }
 0x175   : > { %v3552_v3 = vadd.f32 %v3296_v17, %v2743_v27  ;;  %v2055_v32 = vadd.f32 %v1799_v10, %v985_v14  ;;  %v3424_v22 = vsel %vm3147_vm12, %v4825_v53, 0.0  ;;  %v1926_v12 = vadd.f32 %v1670_v18, %v856_v33 }
 0x176   : > { %v2486_v8 = vsel %vm2209_vm8, %v4809_v46, 0.0  ;;  %vm3018_vm13 = vcmp.eq.s32.totalorder %v6275_v15, %v4909_v21  ;;  %vm707_vm14 = vcmp.eq.s32.totalorder %v6386_v43, %v4850_v61  ;;  %vm1521_vm15 = vcmp.eq.s32.totalorder %v6386_v43, %v4854_v62 }
 0x177   : > { %3787 = vmatprep.subr.mxu0 %v3552_v3  ;;  %v2871_v28 = vadd.f32 %v2615_v16, %v2055_v32  ;;  %v3295_v4 = vsel %vm3018_vm13, %v4829_v54, 0.0  ;;  %v984_v17 = vsel %vm707_vm14, %v4796_v41, 0.0  ;;  %v2742_v27 = vadd.f32 %v2486_v8, %v1926_v12 }
 0x178   : > { %v1798_v33 = vsel %vm1521_vm15, %v4800_v42, 0.0  ;;  %vm2337_vm0 = vcmp.eq.s32.totalorder %v6386_v43, %v4905_v20  ;;  %vm3146_vm1 = vcmp.eq.s32.totalorder %v6386_v43, %v4909_v21  ;;  %v6425_v18 = vadd.s32 144, %v4756_v6 }
 0x179   : > { %v3680_v14 = vadd.f32 %v3424_v22, %v2871_v28  ;;  %v2054_v10 = vadd.f32 %v1798_v33, %v984_v17  ;;  %v2614_v16 = vsel %vm2337_vm0, %v4809_v46, 0.0  ;;  %v3423_v3 = vsel %vm3146_vm1, %v4829_v54, 0.0 }
 0x17a   : > { %v3551_v32 = vadd.f32 %v3295_v4, %v2742_v27  ;;  %v6428_v12 = vadd.s32 400, %v4756_v6  ;;  %v6431_v8 = vadd.s32 136, %v4756_v6  ;;  %v6434_v43 = vadd.s32 392, %v4756_v6 }
 0x17b   : > { %3864 = vmatprep.subr.mxu1 %v3680_v14  ;;  %v2870_v15 = vadd.f32 %v2614_v16, %v2054_v10  ;;  %v6437_v22 = vadd.s32 128, %v4756_v6  ;;  %v6440_v28 = vadd.s32 384, %v4756_v6  ;;  %vm576_vm2 = vcmp.eq.s32.totalorder %v6425_v18, %v4842_v59 }
 0x17c   : > { %3788 = vmatpush2.msra.mxu0 %v3551_v32  ;;  %vm1390_vm3 = vcmp.eq.s32.totalorder %v6425_v18, %v4846_v60  ;;  %vm2206_vm4 = vcmp.eq.s32.totalorder %v6425_v18, %v4878_v5  ;;  %vm3015_vm5 = vcmp.eq.s32.totalorder %v6425_v18, %v4882_v7  ;;  %v853_v17 = vsel %vm576_vm2, %v4775_v29, 0.0 }
 0x17d   : > { %v3679_v4 = vadd.f32 %v3423_v3, %v2870_v15  ;;  %v1667_v27 = vsel %vm1390_vm3, %v4788_v38, 0.0  ;;  %v2483_v33 = vsel %vm2206_vm4, %v4804_v45, 0.0  ;;  %v3292_v10 = vsel %vm3015_vm5, %v4825_v53, 0.0 }
 0x17e   : > { %v1923_v14 = vadd.f32 %v1667_v27, %v853_v17  ;;  %vm704_vm6 = vcmp.eq.s32.totalorder %v6428_v12, %v4842_v59  ;;  %vm1518_vm7 = vcmp.eq.s32.totalorder %v6428_v12, %v4846_v60  ;;  %vm2334_vm8 = vcmp.eq.s32.totalorder %v6428_v12, %v4878_v5 }
 0x17f   : > { %3865 = vmatpush2.msra.mxu1 %v3679_v4  ;;  %v981_v16 = vsel %vm704_vm6, %v4775_v29, 0.0  ;;  %v1795_v15 = vsel %vm1518_vm7, %v4788_v38, 0.0  ;;  %vm3143_vm9 = vcmp.eq.s32.totalorder %v6428_v12, %v4882_v7  ;;  %v2611_v17 = vsel %vm2334_vm8, %v4804_v45, 0.0 }
 0x180   : > { %v2739_v3 = vadd.f32 %v2483_v33, %v1923_v14  ;;  %v2051_v32 = vadd.f32 %v1795_v15, %v981_v16  ;;  %v3420_v27 = vsel %vm3143_vm9, %v4825_v53, 0.0  ;;  %vm575_vm10 = vcmp.eq.s32.totalorder %v6425_v18, %v4850_v61 }
 0x181   : > { %vm1389_vm11 = vcmp.eq.s32.totalorder %v6425_v18, %v4854_v62  ;;  %vm2205_vm12 = vcmp.eq.s32.totalorder %v6425_v18, %v4905_v20  ;;  %vm3014_vm13 = vcmp.eq.s32.totalorder %v6425_v18, %v4909_v21  ;;  %v852_v33 = vsel %vm575_vm10, %v4796_v41, 0.0 }
 0x182   : > { %v3548_v4 = vadd.f32 %v3292_v10, %v2739_v3  ;;  %v2867_v23 = vadd.f32 %v2611_v17, %v2051_v32  ;;  %v1666_v14 = vsel %vm1389_vm11, %v4800_v42, 0.0  ;;  %v2482_v15 = vsel %vm2205_vm12, %v4809_v46, 0.0 }
 0x183   : > { %v1922_v16 = vadd.f32 %v1666_v14, %v852_v33  ;;  %v3291_v25 = vsel %vm3014_vm13, %v4829_v54, 0.0  ;;  %vm703_vm14 = vcmp.eq.s32.totalorder %v6428_v12, %v4850_v61  ;;  %vm1517_vm15 = vcmp.eq.s32.totalorder %v6428_v12, %v4854_v62 }
 0x184   : > { %3789 = vmatprep.subr.mxu0 %v3548_v4  ;;  %v3676_v9 = vadd.f32 %v3420_v27, %v2867_v23  ;;  %v980_v55 = vsel %vm703_vm14, %v4796_v41, 0.0  ;;  %vm2333_vm0 = vcmp.eq.s32.totalorder %v6428_v12, %v4905_v20  ;;  %v1794_v3 = vsel %vm1517_vm15, %v4800_v42, 0.0 }
 0x185   : > { %v2738_v10 = vadd.f32 %v2482_v15, %v1922_v16  ;;  %v2610_v32 = vsel %vm2333_vm0, %v4809_v46, 0.0  ;;  %vm3142_vm1 = vcmp.eq.s32.totalorder %v6428_v12, %v4909_v21  ;;  %v2050_v17 = vadd.f32 %v1794_v3, %v980_v55 }
 0x186   : > { %3866 = vmatprep.subr.mxu1 %v3676_v9  ;;  %v3419_v23 = vsel %vm3142_vm1, %v4829_v54, 0.0  ;;  %vm572_vm2 = vcmp.eq.s32.totalorder %v6431_v8, %v4842_v59  ;;  %vm1386_vm3 = vcmp.eq.s32.totalorder %v6431_v8, %v4846_v60  ;;  %vm2202_vm4 = vcmp.eq.s32.totalorder %v6431_v8, %v4878_v5 }
 0x187   : > { %v3547_v27 = vadd.f32 %v3291_v25, %v2738_v10  ;;  %v849_v4 = vsel %vm572_vm2, %v4775_v29, 0.0  ;;  %v1663_v33 = vsel %vm1386_vm3, %v4788_v38, 0.0  ;;  %v2866_v14 = vadd.f32 %v2610_v32, %v2050_v17 }
 0x188   : > { %v1919_v16 = vadd.f32 %v1663_v33, %v849_v4  ;;  %v2479_v55 = vsel %vm2202_vm4, %v4804_v45, 0.0  ;;  %vm3011_vm5 = vcmp.eq.s32.totalorder %v6431_v8, %v4882_v7  ;;  %vm700_vm6 = vcmp.eq.s32.totalorder %v6434_v43, %v4842_v59 }
 0x189   : > { %3790 = vmatpush2.msra.mxu0 %v3547_v27  ;;  %v3288_v9 = vsel %vm3011_vm5, %v4825_v53, 0.0  ;;  %vm1514_vm7 = vcmp.eq.s32.totalorder %v6434_v43, %v4846_v60  ;;  %vm2330_vm8 = vcmp.eq.s32.totalorder %v6434_v43, %v4878_v5  ;;  %v3675_v25 = vadd.f32 %v3419_v23, %v2866_v14 }
 0x18a   : > { %v2735_v15 = vadd.f32 %v2479_v55, %v1919_v16  ;;  %v977_v10 = vsel %vm700_vm6, %v4775_v29, 0.0  ;;  %v1791_v3 = vsel %vm1514_vm7, %v4788_v38, 0.0  ;;  %v2607_v17 = vsel %vm2330_vm8, %v4804_v45, 0.0 }
 0x18b   : > { %v2047_v32 = vadd.f32 %v1791_v3, %v977_v10  ;;  %vm3139_vm9 = vcmp.eq.s32.totalorder %v6434_v43, %v4882_v7  ;;  %vm571_vm10 = vcmp.eq.s32.totalorder %v6431_v8, %v4850_v61  ;;  %3867 = vmatpush2.msra.mxu1 %v3675_v25  ;;  %vm1385_vm11 = vcmp.eq.s32.totalorder %v6431_v8, %v4854_v62 }
 0x18c   : > { %v3544_v27 = vadd.f32 %v3288_v9, %v2735_v15  ;;  %v3416_v4 = vsel %vm3139_vm9, %v4825_v53, 0.0  ;;  %v848_v23 = vsel %vm571_vm10, %v4796_v41, 0.0  ;;  %v1662_v14 = vsel %vm1385_vm11, %v4800_v42, 0.0 }
 0x18d   : > { %v2863_v33 = vadd.f32 %v2607_v17, %v2047_v32  ;;  %vm2201_vm12 = vcmp.eq.s32.totalorder %v6431_v8, %v4905_v20  ;;  %vm3010_vm13 = vcmp.eq.s32.totalorder %v6431_v8, %v4909_v21  ;;  %v1918_v16 = vadd.f32 %v1662_v14, %v848_v23 }
 0x18e   : > { %3791 = vmatprep.subr.mxu0 %v3544_v27  ;;  %v2478_v55 = vsel %vm2201_vm12, %v4809_v46, 0.0  ;;  %v3287_v9 = vsel %vm3010_vm13, %v4829_v54, 0.0  ;;  %vm699_vm14 = vcmp.eq.s32.totalorder %v6434_v43, %v4850_v61  ;;  %vm1513_vm15 = vcmp.eq.s32.totalorder %v6434_v43, %v4854_v62 }
 0x18f   : > { %v3672_v25 = vadd.f32 %v3416_v4, %v2863_v33  ;;  %v976_v15 = vsel %vm699_vm14, %v4796_v41, 0.0  ;;  %vm2329_vm0 = vcmp.eq.s32.totalorder %v6434_v43, %v4905_v20  ;;  %v2734_v10 = vadd.f32 %v2478_v55, %v1918_v16 }
 0x190   : > { %v1790_v3 = vsel %vm1513_vm15, %v4800_v42, 0.0  ;;  %v2606_v32 = vsel %vm2329_vm0, %v4809_v46, 0.0  ;;  %vm3138_vm1 = vcmp.eq.s32.totalorder %v6434_v43, %v4909_v21  ;;  %vm568_vm2 = vcmp.eq.s32.totalorder %v6437_v22, %v4842_v59 }
 0x191   : > { %3868 = vmatprep.subr.mxu1 %v3672_v25  ;;  %v2046_v17 = vadd.f32 %v1790_v3, %v976_v15  ;;  %v3415_v27 = vsel %vm3138_vm1, %v4829_v54, 0.0  ;;  %vm1382_vm3 = vcmp.eq.s32.totalorder %v6437_v22, %v4846_v60  ;;  %v3543_v4 = vadd.f32 %v3287_v9, %v2734_v10 }
 0x192   : > { %v845_v23 = vsel %vm568_vm2, %v4775_v29, 0.0  ;;  %v1659_v33 = vsel %vm1382_vm3, %v4788_v38, 0.0  ;;  %vm2198_vm4 = vcmp.eq.s32.totalorder %v6437_v22, %v4878_v5  ;;  %vm3007_vm5 = vcmp.eq.s32.totalorder %v6437_v22, %v4882_v7 }
 0x193   : > { %v2862_v14 = vadd.f32 %v2606_v32, %v2046_v17  ;;  %v1915_v16 = vadd.f32 %v1659_v33, %v845_v23  ;;  %v2475_v55 = vsel %vm2198_vm4, %v4804_v45, 0.0  ;;  %3792 = vmatpush2.msra.mxu0 %v3543_v4  ;;  %v3284_v25 = vsel %vm3007_vm5, %v4825_v53, 0.0 }
 0x194   : > { %vm696_vm6 = vcmp.eq.s32.totalorder %v6440_v28, %v4842_v59  ;;  %vm1510_vm7 = vcmp.eq.s32.totalorder %v6440_v28, %v4846_v60  ;;  %vm2326_vm8 = vcmp.eq.s32.totalorder %v6440_v28, %v4878_v5  ;;  %vm3135_vm9 = vcmp.eq.s32.totalorder %v6440_v28, %v4882_v7 }
 0x195   : > { %v3671_v9 = vadd.f32 %v3415_v27, %v2862_v14  ;;  %v2731_v15 = vadd.f32 %v2475_v55, %v1915_v16  ;;  %v973_v10 = vsel %vm696_vm6, %v4775_v29, 0.0  ;;  %v1787_v3 = vsel %vm1510_vm7, %v4788_v38, 0.0 }
 0x196   : > { %v2043_v32 = vadd.f32 %v1787_v3, %v973_v10  ;;  %v2603_v17 = vsel %vm2326_vm8, %v4804_v45, 0.0  ;;  %vm567_vm10 = vcmp.eq.s32.totalorder %v6437_v22, %v4850_v61  ;;  %v3412_v60 = vsel %vm3135_vm9, %v4825_v53, 0.0 }
 0x197   : > { %3869 = vmatpush2.msra.mxu1 %v3671_v9  ;;  %v3540_v59 = vadd.f32 %v3284_v25, %v2731_v15  ;;  %v844_v5 = vsel %vm567_vm10, %v4796_v41, 0.0  ;;  %vm1381_vm11 = vcmp.eq.s32.totalorder %v6437_v22, %v4854_v62  ;;  %vm2197_vm12 = vcmp.eq.s32.totalorder %v6437_v22, %v4905_v20 }
 0x198   : > { %v2859_v29 = vadd.f32 %v2603_v17, %v2043_v32  ;;  %v1658_v38 = vsel %vm1381_vm11, %v4800_v42, 0.0  ;;  %vm3006_vm13 = vcmp.eq.s32.totalorder %v6437_v22, %v4909_v21  ;;  %v2474_v7 = vsel %vm2197_vm12, %v4809_v46, 0.0  ;;  %v386_v17 = vld [vmem:[%s8297_s2 + $0x10] sm:$0xff] }
 0x199   : > { %3793 = vmatprep.subr.mxu0 %v3540_v59  ;;  %v1914_v45 = vadd.f32 %v1658_v38, %v844_v5  ;;  %v3283_v53 = vsel %vm3006_vm13, %v4829_v54, 0.0  ;;  %vm695_vm14 = vcmp.eq.s32.totalorder %v6440_v28, %v4850_v61  ;;  %vm1509_vm15 = vcmp.eq.s32.totalorder %v6440_v28, %v4854_v62  ;;  %v384_v62 = vld [vmem:[%s8297_s2] sm:$0xff] }
 0x19a   : > { %v3668_v27 = vadd.f32 %v3412_v60, %v2859_v29  ;;  %v972_v4 = vsel %vm695_vm14, %v4796_v41, 0.0  ;;  %vm2325_vm0 = vcmp.eq.s32.totalorder %v6440_v28, %v4905_v20  ;;  %v1786_v33 = vsel %vm1509_vm15, %v4800_v42, 0.0  ;;  %v391_v29 = vld [vmem:[%s8297_s2 + $0x38] sm:$0xff]  ;;  %v388_v38 = vld [vmem:[%s8297_s2 + $0x20] sm:$0xff] }
 0x19b   : > { %v2730_v23 = vadd.f32 %v2474_v7, %v1914_v45  ;;  %v2602_v14 = vsel %vm2325_vm0, %v4809_v46, 0.0  ;;  %vm3134_vm1 = vcmp.eq.s32.totalorder %v6440_v28, %v4909_v21  ;;  %v2042_v16 = vadd.f32 %v1786_v33, %v972_v4 }
 0x19c   : > { %3870 = vmatprep.subr.mxu1 %v3668_v27  ;;  %v501_v61 = vsub.s32 3, %v4756_v6  ;;  %v3411_v41 = vsel %vm3134_vm1, %v4829_v54, 0.0  ;;  %v497_v20 = vsub.s32 2, %v4756_v6  ;;  %v389_v54 = vld [vmem:[%s8297_s2 + $0x28] sm:$0xff] }
 0x19d   : > { %v3539_v55 = vadd.f32 %v3283_v53, %v2730_v23  ;;  %v2858_v25 = vadd.f32 %v2602_v14, %v2042_v16  ;;  %v390_v16 = vld [vmem:[%s8297_s2 + $0x30] sm:$0xff] }
 0x19e   : > { %v6592_v42 = vrot.slane %v4819_v51, %v501_v61  ;;  %v6595_v46 = vrot.slane %v4767_v24, %v501_v61  ;;  %v6598_v21 = vrot.slane %v4821_v52, %v501_v61  ;;  %v6604_v9 = vrot.slane %v4777_v31, %v501_v61 }
 0x19f   : > { %3794 = vmatpush2.msra.mxu0 %v3539_v55  ;;  %v6607_v15 = vrot.slane %v4856_v63, %v501_v61  ;;  %v6610_v10 = vrot.slane %v4791_v40, %v501_v61  ;;  %v6613_v3 = vrot.slane %v4858_v0, %v501_v61  ;;  %v3667_v32 = vadd.f32 %v3411_v41, %v2858_v25  ;;  %v4630_v25 = vld [vmem:[%s8297_s2 + $0x8] sm:$0xff] }
 0x1a0   : > { %3796 = vmatmul.mubr.f32.vlgmr.msra.gmra.mxu0 %v384_v62  ;;  %vm566_vm2 = vcmp.eq.s32.totalorder %v4759_v11, %v6592_v42  ;;  %vm1380_vm3 = vcmp.eq.s32.totalorder %v4759_v11, %v6598_v21  ;;  %v6623_v59 = vrot.slane %v4811_v48, %v501_v61  ;;  %vm694_vm6 = vcmp.eq.s32.totalorder %v4771_v26, %v6592_v42 }
 0x1a1   : > { %v843_v60 = vsel %vm566_vm2, %v6595_v46, 0.0  ;;  %v1657_v5 = vsel %vm1380_vm3, %v6604_v9, 0.0  ;;  %vm2196_vm4 = vcmp.eq.s32.totalorder %v4759_v11, %v6607_v15  ;;  %vm3005_vm5 = vcmp.eq.s32.totalorder %v4759_v11, %v6613_v3  ;;  %3801 = vmatprep.mubr.f32.mxu0 %v389_v54  ;;  %3871 = vmatpush2.msra.mxu1 %v3667_v32 }
 0x1a2   : > { %v1913_v45 = vadd.f32 %v1657_v5, %v843_v60  ;;  %v2473_v7 = vsel %vm2196_vm4, %v6610_v10, 0.0  ;;  %v3282_v53 = vsel %vm3005_vm5, %v6623_v59, 0.0  ;;  %3873 = vmatmul.mubr.f32.vlgmr.msra.gmra.mxu1 %v386_v17  ;;  %v971_v27 = vsel %vm694_vm6, %v6595_v46, 0.0  ;;  %v4631_v60 = vld [vmem:[%s8297_s2 + $0x18] sm:$0xff] }
 0x1a3   : > { %vm1508_vm7 = vcmp.eq.s32.totalorder %v4771_v26, %v6598_v21  ;;  %vm2324_vm8 = vcmp.eq.s32.totalorder %v4771_v26, %v6607_v15  ;;  %vm3133_vm9 = vcmp.eq.s32.totalorder %v4771_v26, %v6613_v3  ;;  %3878 = vmatprep.mubr.f32.mxu1 %v391_v29  ;;  %v6655_v55 = vrot.slane %v4819_v51, %v497_v20 }
 0x1a4   : > { %v2729_v4 = vadd.f32 %v2473_v7, %v1913_v45  ;;  %v1785_v23 = vsel %vm1508_vm7, %v6604_v9, 0.0  ;;  %v2601_v33 = vsel %vm2324_vm8, %v6610_v10, 0.0  ;;  %v3410_v14 = vsel %vm3133_vm9, %v6623_v59, 0.0  ;;  %3802 = vmatmul.mubr.f32.gmra.mxu0 %v388_v38 }
 0x1a5   : > { %v2041_v61 = vadd.f32 %v1785_v23, %v971_v27  ;;  %v6658_v41 = vrot.slane %v4767_v24, %v497_v20  ;;  %v6661_v62 = vrot.slane %v4821_v52, %v497_v20  ;;  %3949 = vmatprep.mubr.f32.mxu0 %v4630_v25  ;;  %v6667_v32 = vrot.slane %v4777_v31, %v497_v20 }
 0x1a6   : > { %v3538_v54 = vadd.f32 %v3282_v53, %v2729_v4  ;;  %v6670_v17 = vrot.slane %v4856_v63, %v497_v20  ;;  %v6673_v51 = vrot.slane %v4791_v40, %v497_v20  ;;  %vm565_vm10 = vcmp.eq.s32.totalorder %v4759_v11, %v6655_v55  ;;  %3879 = vmatmul.mubr.f32.gmra.mxu1 %v390_v16 }
 0x1a7   : > { %v2857_v24 = vadd.f32 %v2601_v33, %v2041_v61  ;;  %vm1379_vm11 = vcmp.eq.s32.totalorder %v4759_v11, %v6661_v62  ;;  %v6680_v52 = vrot.slane %v4858_v0, %v497_v20  ;;  %v842_v31 = vsel %vm565_vm10, %v6658_v41, 0.0  ;;  %4026 = vmatprep.mubr.f32.mxu1 %v4631_v60 }
 0x1a8   : > { %3885 = vmatprep.subr.mxu0 %v3538_v54  ;;  %v1656_v63 = vsel %vm1379_vm11, %v6667_v32, 0.0  ;;  %vm2195_vm12 = vcmp.eq.s32.totalorder %v4759_v11, %v6670_v17  ;;  %v6687_v40 = vrot.slane %v4811_v48, %v497_v20  ;;  %vm693_vm14 = vcmp.eq.s32.totalorder %v4771_v26, %v6655_v55 }
 0x1a9   : > { %v3666_v5 = vadd.f32 %v3410_v14, %v2857_v24  ;;  %v1912_v0 = vadd.f32 %v1656_v63, %v842_v31  ;;  %v2472_v29 = vsel %vm2195_vm12, %v6673_v51, 0.0  ;;  %vm3004_vm13 = vcmp.eq.s32.totalorder %v4759_v11, %v6680_v52 }
 0x1aa   : > { %v3281_v38 = vsel %vm3004_vm13, %v6687_v40, 0.0  ;;  %vm1507_vm15 = vcmp.eq.s32.totalorder %v4771_v26, %v6661_v62  ;;  %vm2323_vm0 = vcmp.eq.s32.totalorder %v4771_v26, %v6670_v17  ;;  %v970_v20 = vsel %vm693_vm14, %v6658_v41, 0.0 }
 0x1ab   : > { %3962 = vmatprep.subr.mxu1 %v3666_v5  ;;  %v2728_v48 = vadd.f32 %v2472_v29, %v1912_v0  ;;  %v1784_v45 = vsel %vm1507_vm15, %v6667_v32, 0.0  ;;  %v2600_v7 = vsel %vm2323_vm0, %v6673_v51, 0.0  ;;  %vm3132_vm1 = vcmp.eq.s32.totalorder %v4771_v26, %v6680_v52 }
 0x1ac   : > { %v2040_v11 = vadd.f32 %v1784_v45, %v970_v20  ;;  %vm562_vm2 = vcmp.eq.s32.totalorder %v4784_v34, %v6592_v42  ;;  %vm1376_vm3 = vcmp.eq.s32.totalorder %v4784_v34, %v6598_v21  ;;  %v3409_v27 = vsel %vm3132_vm1, %v6687_v40, 0.0 }
 0x1ad   : > { %v3537_v53 = vadd.f32 %v3281_v38, %v2728_v48  ;;  %v839_v4 = vsel %vm562_vm2, %v6595_v46, 0.0  ;;  %v1653_v23 = vsel %vm1376_vm3, %v6604_v9, 0.0  ;;  %vm2192_vm4 = vcmp.eq.s32.totalorder %v4784_v34, %v6607_v15 }
 0x1ae   : > { %v2856_v33 = vadd.f32 %v2600_v7, %v2040_v11  ;;  %v1909_v14 = vadd.f32 %v1653_v23, %v839_v4  ;;  %vm3001_vm5 = vcmp.eq.s32.totalorder %v4784_v34, %v6613_v3  ;;  %v2469_v26 = vsel %vm2192_vm4, %v6610_v10, 0.0 }
 0x1af   : > { %3886 = vmatpush1.msra.mxu0 %v3537_v53  ;;  %v3278_v16 = vsel %vm3001_vm5, %v6623_v59, 0.0  ;;  %vm690_vm6 = vcmp.eq.s32.totalorder %v4814_v49, %v6592_v42  ;;  %vm1504_vm7 = vcmp.eq.s32.totalorder %v4814_v49, %v6598_v21  ;;  %vm2320_vm8 = vcmp.eq.s32.totalorder %v4814_v49, %v6607_v15 }
 0x1b0   : > { %v3665_v61 = vadd.f32 %v3409_v27, %v2856_v33  ;;  %v2725_v25 = vadd.f32 %v2469_v26, %v1909_v14  ;;  %v967_v54 = vsel %vm690_vm6, %v6595_v46, 0.0  ;;  %v1781_v24 = vsel %vm1504_vm7, %v6604_v9, 0.0 }
 0x1b1   : > { %v2037_v31 = vadd.f32 %v1781_v24, %v967_v54  ;;  %vm3129_vm9 = vcmp.eq.s32.totalorder %v4814_v49, %v6613_v3  ;;  %vm561_vm10 = vcmp.eq.s32.totalorder %v4784_v34, %v6655_v55  ;;  %v2597_v60 = vsel %vm2320_vm8, %v6610_v10, 0.0 }
 0x1b2   : > { %3963 = vmatpush1.msra.mxu1 %v3665_v61  ;;  %v3534_v63 = vadd.f32 %v3278_v16, %v2725_v25  ;;  %v3406_v5 = vsel %vm3129_vm9, %v6623_v59, 0.0  ;;  %v838_v0 = vsel %vm561_vm10, %v6658_v41, 0.0  ;;  %vm1375_vm11 = vcmp.eq.s32.totalorder %v4784_v34, %v6661_v62 }
 0x1b3   : > { %v2853_v29 = vadd.f32 %v2597_v60, %v2037_v31  ;;  %vm2191_vm12 = vcmp.eq.s32.totalorder %v4784_v34, %v6670_v17  ;;  %vm3000_vm13 = vcmp.eq.s32.totalorder %v4784_v34, %v6680_v52  ;;  %v1652_v38 = vsel %vm1375_vm11, %v6667_v32, 0.0 }
 0x1b4   : > { %3887 = vmatprep.subr.mxu0 %v3534_v63  ;;  %v2468_v48 = vsel %vm2191_vm12, %v6673_v51, 0.0  ;;  %v3277_v20 = vsel %vm3000_vm13, %v6687_v40, 0.0  ;;  %vm689_vm14 = vcmp.eq.s32.totalorder %v4814_v49, %v6655_v55  ;;  %v1908_v7 = vadd.f32 %v1652_v38, %v838_v0 }
 0x1b5   : > { %v3662_v45 = vadd.f32 %v3406_v5, %v2853_v29  ;;  %v966_v11 = vsel %vm689_vm14, %v6658_v41, 0.0  ;;  %vm1503_vm15 = vcmp.eq.s32.totalorder %v4814_v49, %v6661_v62  ;;  %vm2319_vm0 = vcmp.eq.s32.totalorder %v4814_v49, %v6670_v17 }
 0x1b6   : > { %v1780_v53 = vsel %vm1503_vm15, %v6667_v32, 0.0  ;;  %vm3128_vm1 = vcmp.eq.s32.totalorder %v4814_v49, %v6680_v52  ;;  %vm558_vm2 = vcmp.eq.s32.totalorder %v4817_v50, %v6592_v42  ;;  %v2724_v34 = vadd.f32 %v2468_v48, %v1908_v7 }
 0x1b7   : > { %3964 = vmatprep.subr.mxu1 %v3662_v45  ;;  %v2036_v27 = vadd.f32 %v1780_v53, %v966_v11  ;;  %v2596_v4 = vsel %vm2319_vm0, %v6673_v51, 0.0  ;;  %v3405_v23 = vsel %vm3128_vm1, %v6687_v40, 0.0  ;;  %v835_v33 = vsel %vm558_vm2, %v6595_v46, 0.0 }
 0x1b8   : > { %vm1372_vm3 = vcmp.eq.s32.totalorder %v4817_v50, %v6598_v21  ;;  %vm2188_vm4 = vcmp.eq.s32.totalorder %v4817_v50, %v6607_v15  ;;  %vm2997_vm5 = vcmp.eq.s32.totalorder %v4817_v50, %v6613_v3  ;;  %v3533_v49 = vadd.f32 %v3277_v20, %v2724_v34 }
 0x1b9   : > { %v2852_v14 = vadd.f32 %v2596_v4, %v2036_v27  ;;  %v1649_v26 = vsel %vm1372_vm3, %v6604_v9, 0.0  ;;  %v2465_v16 = vsel %vm2188_vm4, %v6610_v10, 0.0  ;;  %v3274_v25 = vsel %vm2997_vm5, %v6623_v59, 0.0 }
 0x1ba   : > { %v1905_v61 = vadd.f32 %v1649_v26, %v835_v33  ;;  %vm686_vm6 = vcmp.eq.s32.totalorder %v4832_v56, %v6592_v42  ;;  %vm1500_vm7 = vcmp.eq.s32.totalorder %v4832_v56, %v6598_v21  ;;  %3888 = vmatpush1.msra.mxu0 %v3533_v49  ;;  %vm2316_vm8 = vcmp.eq.s32.totalorder %v4832_v56, %v6607_v15 }
 0x1bb   : > { %v3661_v54 = vadd.f32 %v3405_v23, %v2852_v14  ;;  %v963_v24 = vsel %vm686_vm6, %v6595_v46, 0.0  ;;  %v1777_v31 = vsel %vm1500_vm7, %v6604_v9, 0.0  ;;  %v2593_v5 = vsel %vm2316_vm8, %v6610_v10, 0.0 }
 0x1bc   : > { %v2721_v63 = vadd.f32 %v2465_v16, %v1905_v61  ;;  %v2033_v60 = vadd.f32 %v1777_v31, %v963_v24  ;;  %vm3125_vm9 = vcmp.eq.s32.totalorder %v4832_v56, %v6613_v3  ;;  %vm557_vm10 = vcmp.eq.s32.totalorder %v4817_v50, %v6655_v55 }
 0x1bd   : > { %3965 = vmatpush1.msra.mxu1 %v3661_v54  ;;  %v3402_v0 = vsel %vm3125_vm9, %v6623_v59, 0.0  ;;  %vm1371_vm11 = vcmp.eq.s32.totalorder %v4817_v50, %v6661_v62  ;;  %vm2187_vm12 = vcmp.eq.s32.totalorder %v4817_v50, %v6670_v17  ;;  %v834_v48 = vsel %vm557_vm10, %v6658_v41, 0.0 }
 0x1be   : > { %v3530_v29 = vadd.f32 %v3274_v25, %v2721_v63  ;;  %v2849_v38 = vadd.f32 %v2593_v5, %v2033_v60  ;;  %v1648_v20 = vsel %vm1371_vm11, %v6667_v32, 0.0  ;;  %v2464_v7 = vsel %vm2187_vm12, %v6673_v51, 0.0 }
 0x1bf   : > { %v1904_v45 = vadd.f32 %v1648_v20, %v834_v48  ;;  %vm2996_vm13 = vcmp.eq.s32.totalorder %v4817_v50, %v6680_v52  ;;  %vm685_vm14 = vcmp.eq.s32.totalorder %v4832_v56, %v6655_v55  ;;  %vm1499_vm15 = vcmp.eq.s32.totalorder %v4832_v56, %v6661_v62 }
 0x1c0   : > { %3889 = vmatprep.subr.mxu0 %v3530_v29  ;;  %v3658_v11 = vadd.f32 %v3402_v0, %v2849_v38  ;;  %v3273_v53 = vsel %vm2996_vm13, %v6687_v40, 0.0  ;;  %v962_v34 = vsel %vm685_vm14, %v6658_v41, 0.0  ;;  %v1776_v4 = vsel %vm1499_vm15, %v6667_v32, 0.0 }
 0x1c1   : > { %v2720_v27 = vadd.f32 %v2464_v7, %v1904_v45  ;;  %vm2315_vm0 = vcmp.eq.s32.totalorder %v4832_v56, %v6670_v17  ;;  %vm3124_vm1 = vcmp.eq.s32.totalorder %v4832_v56, %v6680_v52  ;;  %v2032_v50 = vadd.f32 %v1776_v4, %v962_v34 }
 0x1c2   : > { %3966 = vmatprep.subr.mxu1 %v3658_v11  ;;  %v2592_v23 = vsel %vm2315_vm0, %v6673_v51, 0.0  ;;  %v3401_v33 = vsel %vm3124_vm1, %v6687_v40, 0.0  ;;  %vm554_vm2 = vcmp.eq.s32.totalorder %v4835_v57, %v6592_v42  ;;  %vm1368_vm3 = vcmp.eq.s32.totalorder %v4835_v57, %v6598_v21 }
 0x1c3   : > { %v3529_v49 = vadd.f32 %v3273_v53, %v2720_v27  ;;  %v831_v14 = vsel %vm554_vm2, %v6595_v46, 0.0  ;;  %vm2184_vm4 = vcmp.eq.s32.totalorder %v4835_v57, %v6607_v15  ;;  %v2848_v26 = vadd.f32 %v2592_v23, %v2032_v50 }
 0x1c4   : > { %v1645_v56 = vsel %vm1368_vm3, %v6604_v9, 0.0  ;;  %v2461_v16 = vsel %vm2184_vm4, %v6610_v10, 0.0  ;;  %vm2993_vm5 = vcmp.eq.s32.totalorder %v4835_v57, %v6613_v3  ;;  %vm682_vm6 = vcmp.eq.s32.totalorder %v4838_v58, %v6592_v42 }
 0x1c5   : > { %3890 = vmatpush1.msra.mxu0 %v3529_v49  ;;  %v1901_v61 = vadd.f32 %v1645_v56, %v831_v14  ;;  %v3270_v25 = vsel %vm2993_vm5, %v6623_v59, 0.0  ;;  %vm1496_vm7 = vcmp.eq.s32.totalorder %v4838_v58, %v6598_v21  ;;  %v3657_v54 = vadd.f32 %v3401_v33, %v2848_v26 }
 0x1c6   : > { %v959_v24 = vsel %vm682_vm6, %v6595_v46, 0.0  ;;  %v1773_v31 = vsel %vm1496_vm7, %v6604_v9, 0.0  ;;  %vm2312_vm8 = vcmp.eq.s32.totalorder %v4838_v58, %v6607_v15  ;;  %vm3121_vm9 = vcmp.eq.s32.totalorder %v4838_v58, %v6613_v3 }
 0x1c7   : > { %v2717_v63 = vadd.f32 %v2461_v16, %v1901_v61  ;;  %v2029_v60 = vadd.f32 %v1773_v31, %v959_v24  ;;  %v2589_v5 = vsel %vm2312_vm8, %v6610_v10, 0.0  ;;  %3967 = vmatpush1.msra.mxu1 %v3657_v54  ;;  %v3398_v0 = vsel %vm3121_vm9, %v6623_v59, 0.0 }
 0x1c8   : > { %vm553_vm10 = vcmp.eq.s32.totalorder %v4835_v57, %v6655_v55  ;;  %vm1367_vm11 = vcmp.eq.s32.totalorder %v4835_v57, %v6661_v62  ;;  %vm2183_vm12 = vcmp.eq.s32.totalorder %v4835_v57, %v6670_v17  ;;  %vm2992_vm13 = vcmp.eq.s32.totalorder %v4835_v57, %v6680_v52 }
 0x1c9   : > { %v3526_v29 = vadd.f32 %v3270_v25, %v2717_v63  ;;  %v2845_v38 = vadd.f32 %v2589_v5, %v2029_v60  ;;  %v830_v48 = vsel %vm553_vm10, %v6658_v41, 0.0  ;;  %v1644_v20 = vsel %vm1367_vm11, %v6667_v32, 0.0 }
 0x1ca   : > { %v1900_v45 = vadd.f32 %v1644_v20, %v830_v48  ;;  %v2460_v7 = vsel %vm2183_vm12, %v6673_v51, 0.0  ;;  %vm681_vm14 = vcmp.eq.s32.totalorder %v4838_v58, %v6655_v55  ;;  %v3269_v53 = vsel %vm2992_vm13, %v6687_v40, 0.0 }
 0x1cb   : > { %3891 = vmatprep.subr.mxu0 %v3526_v29  ;;  %v3654_v11 = vadd.f32 %v3398_v0, %v2845_v38  ;;  %v958_v34 = vsel %vm681_vm14, %v6658_v41, 0.0  ;;  %vm1495_vm15 = vcmp.eq.s32.totalorder %v4838_v58, %v6661_v62  ;;  %vm2311_vm0 = vcmp.eq.s32.totalorder %v4838_v58, %v6670_v17 }
 0x1cc   : > { %v2716_v27 = vadd.f32 %v2460_v7, %v1900_v45  ;;  %v1772_v4 = vsel %vm1495_vm15, %v6667_v32, 0.0  ;;  %vm3120_vm1 = vcmp.eq.s32.totalorder %v4838_v58, %v6680_v52  ;;  %v2588_v50 = vsel %vm2311_vm0, %v6673_v51, 0.0 }
 0x1cd   : > { %3968 = vmatprep.subr.mxu1 %v3654_v11  ;;  %v2028_v57 = vadd.f32 %v1772_v4, %v958_v34  ;;  %v3397_v23 = vsel %vm3120_vm1, %v6687_v40, 0.0  ;;  %vm550_vm2 = vcmp.eq.s32.totalorder %v4861_v1, %v6592_v42  ;;  %vm1364_vm3 = vcmp.eq.s32.totalorder %v4861_v1, %v6598_v21 }
 0x1ce   : > { %v3525_v33 = vadd.f32 %v3269_v53, %v2716_v27  ;;  %v827_v49 = vsel %vm550_vm2, %v6595_v46, 0.0  ;;  %vm2180_vm4 = vcmp.eq.s32.totalorder %v4861_v1, %v6607_v15  ;;  %v1641_v58 = vsel %vm1364_vm3, %v6604_v9, 0.0 }
 0x1cf   : > { %v2844_v14 = vadd.f32 %v2588_v50, %v2028_v57  ;;  %v2457_v26 = vsel %vm2180_vm4, %v6610_v10, 0.0  ;;  %vm2989_vm5 = vcmp.eq.s32.totalorder %v4861_v1, %v6613_v3  ;;  %v1897_v56 = vadd.f32 %v1641_v58, %v827_v49 }
 0x1d0   : > { %3892 = vmatpush1.msra.mxu0 %v3525_v33  ;;  %v3266_v16 = vsel %vm2989_vm5, %v6623_v59, 0.0  ;;  %vm678_vm6 = vcmp.eq.s32.totalorder %v4864_v2, %v6592_v42  ;;  %vm1492_vm7 = vcmp.eq.s32.totalorder %v4864_v2, %v6598_v21  ;;  %vm2308_vm8 = vcmp.eq.s32.totalorder %v4864_v2, %v6607_v15 }
 0x1d1   : > { %v3653_v61 = vadd.f32 %v3397_v23, %v2844_v14  ;;  %v955_v25 = vsel %vm678_vm6, %v6595_v46, 0.0  ;;  %v1769_v54 = vsel %vm1492_vm7, %v6604_v9, 0.0  ;;  %v2713_v24 = vadd.f32 %v2457_v26, %v1897_v56 }
 0x1d2   : > { %v2025_v31 = vadd.f32 %v1769_v54, %v955_v25  ;;  %v2585_v63 = vsel %vm2308_vm8, %v6610_v10, 0.0  ;;  %vm3117_vm9 = vcmp.eq.s32.totalorder %v4864_v2, %v6613_v3  ;;  %vm549_vm10 = vcmp.eq.s32.totalorder %v4861_v1, %v6655_v55 }
 0x1d3   : > { %3969 = vmatpush1.msra.mxu1 %v3653_v61  ;;  %v3394_v60 = vsel %vm3117_vm9, %v6623_v59, 0.0  ;;  %vm1363_vm11 = vcmp.eq.s32.totalorder %v4861_v1, %v6661_v62  ;;  %vm2179_vm12 = vcmp.eq.s32.totalorder %v4861_v1, %v6670_v17  ;;  %v3522_v5 = vadd.f32 %v3266_v16, %v2713_v24 }
 0x1d4   : > { %v2841_v0 = vadd.f32 %v2585_v63, %v2025_v31  ;;  %v826_v29 = vsel %vm549_vm10, %v6658_v41, 0.0  ;;  %v1640_v38 = vsel %vm1363_vm11, %v6667_v32, 0.0  ;;  %v2456_v20 = vsel %vm2179_vm12, %v6673_v51, 0.0 }
 0x1d5   : > { %v1896_v48 = vadd.f32 %v1640_v38, %v826_v29  ;;  %vm2988_vm13 = vcmp.eq.s32.totalorder %v4861_v1, %v6680_v52  ;;  %vm677_vm14 = vcmp.eq.s32.totalorder %v4864_v2, %v6655_v55  ;;  %3893 = vmatprep.subr.mxu0 %v3522_v5  ;;  %vm1491_vm15 = vcmp.eq.s32.totalorder %v4864_v2, %v6661_v62 }
 0x1d6   : > { %v3650_v45 = vadd.f32 %v3394_v60, %v2841_v0  ;;  %v3265_v7 = vsel %vm2988_vm13, %v6687_v40, 0.0  ;;  %v954_v11 = vsel %vm677_vm14, %v6658_v41, 0.0  ;;  %v1768_v34 = vsel %vm1491_vm15, %v6667_v32, 0.0 }
 0x1d7   : > { %v2712_v53 = vadd.f32 %v2456_v20, %v1896_v48  ;;  %vm2307_vm0 = vcmp.eq.s32.totalorder %v4864_v2, %v6670_v17  ;;  %vm3116_vm1 = vcmp.eq.s32.totalorder %v4864_v2, %v6680_v52  ;;  %v2024_v1 = vadd.f32 %v1768_v34, %v954_v11 }
 0x1d8   : > { %3970 = vmatprep.subr.mxu1 %v3650_v45  ;;  %v2584_v27 = vsel %vm2307_vm0, %v6673_v51, 0.0  ;;  %v3393_v4 = vsel %vm3116_vm1, %v6687_v40, 0.0  ;;  %vm546_vm2 = vcmp.eq.s32.totalorder %v5123_v35, %v6592_v42  ;;  %vm1360_vm3 = vcmp.eq.s32.totalorder %v5123_v35, %v6598_v21 }
 0x1d9   : > { %v3521_v57 = vadd.f32 %v3265_v7, %v2712_v53  ;;  %v823_v50 = vsel %vm546_vm2, %v6595_v46, 0.0  ;;  %vm2176_vm4 = vcmp.eq.s32.totalorder %v5123_v35, %v6607_v15  ;;  %v2840_v23 = vadd.f32 %v2584_v27, %v2024_v1 }
 0x1da   : > { %v1637_v2 = vsel %vm1360_vm3, %v6604_v9, 0.0  ;;  %v2453_v33 = vsel %vm2176_vm4, %v6610_v10, 0.0  ;;  %vm2985_vm5 = vcmp.eq.s32.totalorder %v5123_v35, %v6613_v3  ;;  %vm674_vm6 = vcmp.eq.s32.totalorder %v5126_v36, %v6592_v42 }
 0x1db   : > { %3894 = vmatpush1.msra.mxu0 %v3521_v57  ;;  %v1893_v49 = vadd.f32 %v1637_v2, %v823_v50  ;;  %v3262_v14 = vsel %vm2985_vm5, %v6623_v59, 0.0  ;;  %vm1488_vm7 = vcmp.eq.s32.totalorder %v5126_v36, %v6598_v21  ;;  %v3649_v58 = vadd.f32 %v3393_v4, %v2840_v23 }
 0x1dc   : > { %v951_v26 = vsel %vm674_vm6, %v6595_v46, 0.0  ;;  %v1765_v56 = vsel %vm1488_vm7, %v6604_v9, 0.0  ;;  %vm2304_vm8 = vcmp.eq.s32.totalorder %v5126_v36, %v6607_v15  ;;  %vm3113_vm9 = vcmp.eq.s32.totalorder %v5126_v36, %v6613_v3 }
 0x1dd   : > { %v2709_v16 = vadd.f32 %v2453_v33, %v1893_v49  ;;  %v2021_v61 = vadd.f32 %v1765_v56, %v951_v26  ;;  %v2581_v25 = vsel %vm2304_vm8, %v6610_v10, 0.0  ;;  %3971 = vmatpush1.msra.mxu1 %v3649_v58  ;;  %v3390_v54 = vsel %vm3113_vm9, %v6623_v59, 0.0 }
 0x1de   : > { %vm545_vm10 = vcmp.eq.s32.totalorder %v5123_v35, %v6655_v55  ;;  %vm1359_vm11 = vcmp.eq.s32.totalorder %v5123_v35, %v6661_v62  ;;  %vm2175_vm12 = vcmp.eq.s32.totalorder %v5123_v35, %v6670_v17  ;;  %vm2984_vm13 = vcmp.eq.s32.totalorder %v5123_v35, %v6680_v52 }
 0x1df   : > { %v3518_v24 = vadd.f32 %v3262_v14, %v2709_v16  ;;  %v2837_v31 = vadd.f32 %v2581_v25, %v2021_v61  ;;  %v822_v63 = vsel %vm545_vm10, %v6658_v41, 0.0  ;;  %v1636_v60 = vsel %vm1359_vm11, %v6667_v32, 0.0 }
 0x1e0   : > { %v1892_v5 = vadd.f32 %v1636_v60, %v822_v63  ;;  %v2452_v0 = vsel %vm2175_vm12, %v6673_v51, 0.0  ;;  %vm673_vm14 = vcmp.eq.s32.totalorder %v5126_v36, %v6655_v55  ;;  %v3261_v38 = vsel %vm2984_vm13, %v6687_v40, 0.0 }
 0x1e1   : > { %3895 = vmatprep.subr.mxu0 %v3518_v24  ;;  %v3646_v29 = vadd.f32 %v3390_v54, %v2837_v31  ;;  %v950_v48 = vsel %vm673_vm14, %v6658_v41, 0.0  ;;  %vm1487_vm15 = vcmp.eq.s32.totalorder %v5126_v36, %v6661_v62  ;;  %vm2303_vm0 = vcmp.eq.s32.totalorder %v5126_v36, %v6670_v17 }
 0x1e2   : > { %v2708_v20 = vadd.f32 %v2452_v0, %v1892_v5  ;;  %v1764_v45 = vsel %vm1487_vm15, %v6667_v32, 0.0  ;;  %vm3112_vm1 = vcmp.eq.s32.totalorder %v5126_v36, %v6680_v52  ;;  %v2580_v7 = vsel %vm2303_vm0, %v6673_v51, 0.0 }
 0x1e3   : > { %3972 = vmatprep.subr.mxu1 %v3646_v29  ;;  %v2020_v35 = vadd.f32 %v1764_v45, %v950_v48  ;;  %v3389_v11 = vsel %vm3112_vm1, %v6687_v40, 0.0  ;;  %vm542_vm2 = vcmp.eq.s32.totalorder %v5129_v37, %v6592_v42  ;;  %vm1356_vm3 = vcmp.eq.s32.totalorder %v5129_v37, %v6598_v21 }
 0x1e4   : > { %v3517_v53 = vadd.f32 %v3261_v38, %v2708_v20  ;;  %v819_v34 = vsel %vm542_vm2, %v6595_v46, 0.0  ;;  %vm2172_vm4 = vcmp.eq.s32.totalorder %v5129_v37, %v6607_v15  ;;  %v1633_v36 = vsel %vm1356_vm3, %v6604_v9, 0.0 }
 0x1e5   : > { %v2836_v1 = vadd.f32 %v2580_v7, %v2020_v35  ;;  %v2449_v27 = vsel %vm2172_vm4, %v6610_v10, 0.0  ;;  %vm2981_vm5 = vcmp.eq.s32.totalorder %v5129_v37, %v6613_v3  ;;  %v1889_v4 = vadd.f32 %v1633_v36, %v819_v34 }
 0x1e6   : > { %3896 = vmatpush1.msra.mxu0 %v3517_v53  ;;  %v3258_v57 = vsel %vm2981_vm5, %v6623_v59, 0.0  ;;  %vm670_vm6 = vcmp.eq.s32.totalorder %v5132_v44, %v6592_v42  ;;  %vm1484_vm7 = vcmp.eq.s32.totalorder %v5132_v44, %v6598_v21  ;;  %vm2300_vm8 = vcmp.eq.s32.totalorder %v5132_v44, %v6607_v15 }
 0x1e7   : > { %v3645_v50 = vadd.f32 %v3389_v11, %v2836_v1  ;;  %v947_v23 = vsel %vm670_vm6, %v6595_v46, 0.0  ;;  %v1761_v2 = vsel %vm1484_vm7, %v6604_v9, 0.0  ;;  %v2705_v33 = vadd.f32 %v2449_v27, %v1889_v4 }
 0x1e8   : > { %v2017_v49 = vadd.f32 %v1761_v2, %v947_v23  ;;  %v2577_v14 = vsel %vm2300_vm8, %v6610_v10, 0.0  ;;  %vm3109_vm9 = vcmp.eq.s32.totalorder %v5132_v44, %v6613_v3  ;;  %vm541_vm10 = vcmp.eq.s32.totalorder %v5129_v37, %v6655_v55 }
 0x1e9   : > { %3973 = vmatpush1.msra.mxu1 %v3645_v50  ;;  %v3386_v58 = vsel %vm3109_vm9, %v6623_v59, 0.0  ;;  %vm1355_vm11 = vcmp.eq.s32.totalorder %v5129_v37, %v6661_v62  ;;  %vm2171_vm12 = vcmp.eq.s32.totalorder %v5129_v37, %v6670_v17  ;;  %v3514_v26 = vadd.f32 %v3258_v57, %v2705_v33 }
 0x1ea   : > { %v2833_v56 = vadd.f32 %v2577_v14, %v2017_v49  ;;  %v818_v16 = vsel %vm541_vm10, %v6658_v41, 0.0  ;;  %v1632_v61 = vsel %vm1355_vm11, %v6667_v32, 0.0  ;;  %v2448_v54 = vsel %vm2171_vm12, %v6673_v51, 0.0 }
 0x1eb   : > { %v1888_v25 = vadd.f32 %v1632_v61, %v818_v16  ;;  %vm2980_vm13 = vcmp.eq.s32.totalorder %v5129_v37, %v6680_v52  ;;  %vm669_vm14 = vcmp.eq.s32.totalorder %v5132_v44, %v6655_v55  ;;  %3897 = vmatprep.subr.mxu0 %v3514_v26  ;;  %vm1483_vm15 = vcmp.eq.s32.totalorder %v5132_v44, %v6661_v62 }
 0x1ec   : > { %v3642_v24 = vadd.f32 %v3386_v58, %v2833_v56  ;;  %v3257_v31 = vsel %vm2980_vm13, %v6687_v40, 0.0  ;;  %v946_v63 = vsel %vm669_vm14, %v6658_v41, 0.0  ;;  %v1760_v5 = vsel %vm1483_vm15, %v6667_v32, 0.0 }
 0x1ed   : > { %v2704_v60 = vadd.f32 %v2448_v54, %v1888_v25  ;;  %vm2299_vm0 = vcmp.eq.s32.totalorder %v5132_v44, %v6670_v17  ;;  %vm3108_vm1 = vcmp.eq.s32.totalorder %v5132_v44, %v6680_v52  ;;  %v2016_v37 = vadd.f32 %v1760_v5, %v946_v63 }
 0x1ee   : > { %3974 = vmatprep.subr.mxu1 %v3642_v24  ;;  %v2576_v0 = vsel %vm2299_vm0, %v6673_v51, 0.0  ;;  %v3385_v29 = vsel %vm3108_vm1, %v6687_v40, 0.0  ;;  %vm538_vm2 = vcmp.eq.s32.totalorder %v5135_v47, %v6592_v42  ;;  %vm1352_vm3 = vcmp.eq.s32.totalorder %v5135_v47, %v6598_v21 }
 0x1ef   : > { %v3513_v38 = vadd.f32 %v3257_v31, %v2704_v60  ;;  %v815_v48 = vsel %vm538_vm2, %v6595_v46, 0.0  ;;  %vm2168_vm4 = vcmp.eq.s32.totalorder %v5135_v47, %v6607_v15  ;;  %v2832_v20 = vadd.f32 %v2576_v0, %v2016_v37 }
 0x1f0   : > { %v1629_v44 = vsel %vm1352_vm3, %v6604_v9, 0.0  ;;  %v2445_v45 = vsel %vm2168_vm4, %v6610_v10, 0.0  ;;  %vm2977_vm5 = vcmp.eq.s32.totalorder %v5135_v47, %v6613_v3  ;;  %vm666_vm6 = vcmp.eq.s32.totalorder %v5246_v19, %v6592_v42 }
 0x1f1   : > { %3898 = vmatpush1.msra.mxu0 %v3513_v38  ;;  %v1885_v35 = vadd.f32 %v1629_v44, %v815_v48  ;;  %v3254_v7 = vsel %vm2977_vm5, %v6623_v59, 0.0  ;;  %vm1480_vm7 = vcmp.eq.s32.totalorder %v5246_v19, %v6598_v21  ;;  %v3641_v11 = vadd.f32 %v3385_v29, %v2832_v20 }
 0x1f2   : > { %v943_v53 = vsel %vm666_vm6, %v6595_v46, 0.0  ;;  %v1757_v34 = vsel %vm1480_vm7, %v6604_v9, 0.0  ;;  %vm2296_vm8 = vcmp.eq.s32.totalorder %v5246_v19, %v6607_v15  ;;  %vm3105_vm9 = vcmp.eq.s32.totalorder %v5246_v19, %v6613_v3 }
 0x1f3   : > { %v2701_v1 = vadd.f32 %v2445_v45, %v1885_v35  ;;  %v2013_v36 = vadd.f32 %v1757_v34, %v943_v53  ;;  %v2573_v27 = vsel %vm2296_vm8, %v6610_v10, 0.0  ;;  %3975 = vmatpush1.msra.mxu1 %v3641_v11  ;;  %v3382_v4 = vsel %vm3105_vm9, %v6623_v59, 0.0 }
 0x1f4   : > { %vm537_vm10 = vcmp.eq.s32.totalorder %v5135_v47, %v6655_v55  ;;  %vm1351_vm11 = vcmp.eq.s32.totalorder %v5135_v47, %v6661_v62  ;;  %vm2167_vm12 = vcmp.eq.s32.totalorder %v5135_v47, %v6670_v17  ;;  %vm2976_vm13 = vcmp.eq.s32.totalorder %v5135_v47, %v6680_v52 }
 0x1f5   : > { %v3510_v57 = vadd.f32 %v3254_v7, %v2701_v1  ;;  %v2829_v50 = vadd.f32 %v2573_v27, %v2013_v36  ;;  %v814_v23 = vsel %vm537_vm10, %v6658_v41, 0.0  ;;  %v1628_v2 = vsel %vm1351_vm11, %v6667_v32, 0.0 }
 0x1f6   : > { %v1884_v33 = vadd.f32 %v1628_v2, %v814_v23  ;;  %v2444_v49 = vsel %vm2167_vm12, %v6673_v51, 0.0  ;;  %vm665_vm14 = vcmp.eq.s32.totalorder %v5246_v19, %v6655_v55  ;;  %v3253_v58 = vsel %vm2976_vm13, %v6687_v40, 0.0 }
 0x1f7   : > { %3899 = vmatprep.subr.mxu0 %v3510_v57  ;;  %v3638_v14 = vadd.f32 %v3382_v4, %v2829_v50  ;;  %v942_v26 = vsel %vm665_vm14, %v6658_v41, 0.0  ;;  %vm1479_vm15 = vcmp.eq.s32.totalorder %v5246_v19, %v6661_v62  ;;  %vm2295_vm0 = vcmp.eq.s32.totalorder %v5246_v19, %v6670_v17 }
 0x1f8   : > { %v2700_v56 = vadd.f32 %v2444_v49, %v1884_v33  ;;  %v1756_v16 = vsel %vm1479_vm15, %v6667_v32, 0.0  ;;  %vm3104_vm1 = vcmp.eq.s32.totalorder %v5246_v19, %v6680_v52  ;;  %v2572_v61 = vsel %vm2295_vm0, %v6673_v51, 0.0 }
 0x1f9   : > { %3976 = vmatprep.subr.mxu1 %v3638_v14  ;;  %v2012_v47 = vadd.f32 %v1756_v16, %v942_v26  ;;  %v3381_v25 = vsel %vm3104_vm1, %v6687_v40, 0.0  ;;  %vm534_vm2 = vcmp.eq.s32.totalorder %v5283_v13, %v6592_v42  ;;  %vm1348_vm3 = vcmp.eq.s32.totalorder %v5283_v13, %v6598_v21 }
 0x1fa   : > { %v3509_v54 = vadd.f32 %v3253_v58, %v2700_v56  ;;  %v811_v24 = vsel %vm534_vm2, %v6595_v46, 0.0  ;;  %vm2164_vm4 = vcmp.eq.s32.totalorder %v5283_v13, %v6607_v15  ;;  %v1625_v19 = vsel %vm1348_vm3, %v6604_v9, 0.0  ;;  %v8418_v56 = vld [vmem:[#allocation3_spill] sm:$0xff] }
 0x1fb   : > { %v2828_v31 = vadd.f32 %v2572_v61, %v2012_v47  ;;  %v2441_v63 = vsel %vm2164_vm4, %v6610_v10, 0.0  ;;  %vm2973_vm5 = vcmp.eq.s32.totalorder %v5283_v13, %v6613_v3  ;;  %v1881_v60 = vadd.f32 %v1625_v19, %v811_v24 }
 0x1fc   : > { %3900 = vmatpush1.msra.mxu0 %v3509_v54  ;;  %v3250_v5 = vsel %vm2973_vm5, %v6623_v59, 0.0  ;;  %vm662_vm6 = vcmp.eq.s32.totalorder %v5299_v30, %v6592_v42  ;;  %vm1476_vm7 = vcmp.eq.s32.totalorder %v5299_v30, %v6598_v21  ;;  %vm2292_vm8 = vcmp.eq.s32.totalorder %v5299_v30, %v6607_v15 }
 0x1fd   : > { %v3637_v37 = vadd.f32 %v3381_v25, %v2828_v31  ;;  %v939_v0 = vsel %vm662_vm6, %v6595_v46, 0.0  ;;  %v1753_v29 = vsel %vm1476_vm7, %v6604_v9, 0.0  ;;  %v2697_v38 = vadd.f32 %v2441_v63, %v1881_v60 }
 0x1fe   : > { %v2009_v48 = vadd.f32 %v1753_v29, %v939_v0  ;;  %v2569_v20 = vsel %vm2292_vm8, %v6610_v10, 0.0  ;;  %vm3101_vm9 = vcmp.eq.s32.totalorder %v5299_v30, %v6613_v3  ;;  %vm533_vm10 = vcmp.eq.s32.totalorder %v5283_v13, %v6655_v55 }
 0x1ff   : > { %3977 = vmatpush1.msra.mxu1 %v3637_v37  ;;  %v3378_v44 = vsel %vm3101_vm9, %v6623_v59, 0.0  ;;  %vm1347_vm11 = vcmp.eq.s32.totalorder %v5283_v13, %v6661_v62  ;;  %vm2163_vm12 = vcmp.eq.s32.totalorder %v5283_v13, %v6670_v17  ;;  %v3506_v45 = vadd.f32 %v3250_v5, %v2697_v38 }
 0x200   : > { %v2825_v35 = vadd.f32 %v2569_v20, %v2009_v48  ;;  %v810_v7 = vsel %vm533_vm10, %v6658_v41, 0.0  ;;  %v1624_v11 = vsel %vm1347_vm11, %v6667_v32, 0.0  ;;  %v2440_v34 = vsel %vm2163_vm12, %v6673_v51, 0.0 }
 0x201   : > { %v1880_v53 = vadd.f32 %v1624_v11, %v810_v7  ;;  %vm2972_vm13 = vcmp.eq.s32.totalorder %v5283_v13, %v6680_v52  ;;  %vm661_vm14 = vcmp.eq.s32.totalorder %v5299_v30, %v6655_v55  ;;  %3901 = vmatprep.subr.mxu0 %v3506_v45  ;;  %vm1475_vm15 = vcmp.eq.s32.totalorder %v5299_v30, %v6661_v62  ;;  %v8419_v7 = vld [vmem:[#allocation4_spill] sm:$0xff] }
 0x202   : > { %v3634_v1 = vadd.f32 %v3378_v44, %v2825_v35  ;;  %v3249_v36 = vsel %vm2972_vm13, %v6687_v40, 0.0  ;;  %v938_v27 = vsel %vm661_vm14, %v6658_v41, 0.0  ;;  %v1752_v57 = vsel %vm1475_vm15, %v6667_v32, 0.0 }
 0x203   : > { %v2696_v4 = vadd.f32 %v2440_v34, %v1880_v53  ;;  %vm2291_vm0 = vcmp.eq.s32.totalorder %v5299_v30, %v6670_v17  ;;  %vm3100_vm1 = vcmp.eq.s32.totalorder %v5299_v30, %v6680_v52  ;;  %v2008_v13 = vadd.f32 %v1752_v57, %v938_v27  ;;  %v8420_v57 = vld [vmem:[#allocation5_spill] sm:$0xff] }
 0x204   : > { %3978 = vmatprep.subr.mxu1 %v3634_v1  ;;  %v2568_v50 = vsel %vm2291_vm0, %v6673_v51, 0.0  ;;  %v3377_v23 = vsel %vm3100_vm1, %v6687_v40, 0.0  ;;  %vm530_vm2 = vcmp.eq.s32.totalorder %v5339_v39, %v6592_v42  ;;  %vm1344_vm3 = vcmp.eq.s32.totalorder %v5339_v39, %v6598_v21 }
 0x205   : > { %v3505_v2 = vadd.f32 %v3249_v36, %v2696_v4  ;;  %v807_v33 = vsel %vm530_vm2, %v6595_v46, 0.0  ;;  %vm2160_vm4 = vcmp.eq.s32.totalorder %v5339_v39, %v6607_v15  ;;  %v2824_v49 = vadd.f32 %v2568_v50, %v2008_v13 }
 0x206   : > { %v1621_v30 = vsel %vm1344_vm3, %v6604_v9, 0.0  ;;  %v2437_v14 = vsel %vm2160_vm4, %v6610_v10, 0.0  ;;  %vm2969_vm5 = vcmp.eq.s32.totalorder %v5339_v39, %v6613_v3  ;;  %vm658_vm6 = vcmp.eq.s32.totalorder %v8418_v56, %v6592_v42 }
 0x207   : > { %3902 = vmatpush1.msra.mxu0 %v3505_v2  ;;  %v1877_v58 = vadd.f32 %v1621_v30, %v807_v33  ;;  %v3246_v26 = vsel %vm2969_vm5, %v6623_v59, 0.0  ;;  %vm1472_vm7 = vcmp.eq.s32.totalorder %v8418_v56, %v6598_v21  ;;  %v3633_v16 = vadd.f32 %v3377_v23, %v2824_v49 }
 0x208   : > { %v935_v47 = vsel %vm658_vm6, %v6595_v46, 0.0  ;;  %v1749_v61 = vsel %vm1472_vm7, %v6604_v9, 0.0  ;;  %vm2288_vm8 = vcmp.eq.s32.totalorder %v8418_v56, %v6607_v15  ;;  %vm3097_vm9 = vcmp.eq.s32.totalorder %v8418_v56, %v6613_v3 }
 0x209   : > { %v2693_v25 = vadd.f32 %v2437_v14, %v1877_v58  ;;  %v2005_v54 = vadd.f32 %v1749_v61, %v935_v47  ;;  %v2565_v24 = vsel %vm2288_vm8, %v6610_v10, 0.0  ;;  %3979 = vmatpush1.msra.mxu1 %v3633_v16  ;;  %v3374_v31 = vsel %vm3097_vm9, %v6623_v59, 0.0 }
 0x20a   : > { %vm529_vm10 = vcmp.eq.s32.totalorder %v5339_v39, %v6655_v55  ;;  %vm1343_vm11 = vcmp.eq.s32.totalorder %v5339_v39, %v6661_v62  ;;  %vm2159_vm12 = vcmp.eq.s32.totalorder %v5339_v39, %v6670_v17  ;;  %vm2968_vm13 = vcmp.eq.s32.totalorder %v5339_v39, %v6680_v52 }
 0x20b   : > { %v3502_v19 = vadd.f32 %v3246_v26, %v2693_v25  ;;  %v2821_v63 = vadd.f32 %v2565_v24, %v2005_v54  ;;  %v806_v60 = vsel %vm529_vm10, %v6658_v41, 0.0  ;;  %v1620_v5 = vsel %vm1343_vm11, %v6667_v32, 0.0 }
 0x20c   : > { %v1876_v37 = vadd.f32 %v1620_v5, %v806_v60  ;;  %v2436_v0 = vsel %vm2159_vm12, %v6673_v51, 0.0  ;;  %vm657_vm14 = vcmp.eq.s32.totalorder %v8418_v56, %v6655_v55  ;;  %v3245_v38 = vsel %vm2968_vm13, %v6687_v40, 0.0  ;;  %v8421_v5 = vld [vmem:[#allocation6_spill] sm:$0xff] }
 0x20d   : > { %3903 = vmatprep.subr.mxu0 %v3502_v19  ;;  %v3630_v29 = vadd.f32 %v3374_v31, %v2821_v63  ;;  %v934_v48 = vsel %vm657_vm14, %v6658_v41, 0.0  ;;  %vm1471_vm15 = vcmp.eq.s32.totalorder %v8418_v56, %v6661_v62  ;;  %vm2287_vm0 = vcmp.eq.s32.totalorder %v8418_v56, %v6670_v17 }
 0x20e   : > { %v2692_v20 = vadd.f32 %v2436_v0, %v1876_v37  ;;  %v1748_v44 = vsel %vm1471_vm15, %v6667_v32, 0.0  ;;  %vm3096_vm1 = vcmp.eq.s32.totalorder %v8418_v56, %v6680_v52  ;;  %v2564_v45 = vsel %vm2287_vm0, %v6673_v51, 0.0 }
 0x20f   : > { %3980 = vmatprep.subr.mxu1 %v3630_v29  ;;  %v2004_v39 = vadd.f32 %v1748_v44, %v934_v48  ;;  %v3373_v35 = vsel %vm3096_vm1, %v6687_v40, 0.0  ;;  %vm526_vm2 = vcmp.eq.s32.totalorder %v8419_v7, %v6592_v42  ;;  %vm1340_vm3 = vcmp.eq.s32.totalorder %v8419_v7, %v6598_v21 }
 0x210   : > { %v3501_v11 = vadd.f32 %v3245_v38, %v2692_v20  ;;  %v803_v53 = vsel %vm526_vm2, %v6595_v46, 0.0  ;;  %vm2156_vm4 = vcmp.eq.s32.totalorder %v8419_v7, %v6607_v15  ;;  %v1617_v1 = vsel %vm1340_vm3, %v6604_v9, 0.0 }
 0x211   : > { %v2820_v34 = vadd.f32 %v2564_v45, %v2004_v39  ;;  %v2433_v36 = vsel %vm2156_vm4, %v6610_v10, 0.0  ;;  %vm2965_vm5 = vcmp.eq.s32.totalorder %v8419_v7, %v6613_v3  ;;  %v1873_v27 = vadd.f32 %v1617_v1, %v803_v53  ;;  %v8422_v39 = vld [vmem:[#allocation7_spill] sm:$0xff] }
 0x212   : > { %3904 = vmatpush1.msra.mxu0 %v3501_v11  ;;  %v3242_v4 = vsel %vm2965_vm5, %v6623_v59, 0.0  ;;  %vm654_vm6 = vcmp.eq.s32.totalorder %v8420_v57, %v6592_v42  ;;  %vm1468_vm7 = vcmp.eq.s32.totalorder %v8420_v57, %v6598_v21  ;;  %vm2284_vm8 = vcmp.eq.s32.totalorder %v8420_v57, %v6607_v15 }
 0x213   : > { %v3629_v13 = vadd.f32 %v3373_v35, %v2820_v34  ;;  %v931_v50 = vsel %vm654_vm6, %v6595_v46, 0.0  ;;  %v1745_v23 = vsel %vm1468_vm7, %v6604_v9, 0.0  ;;  %v2689_v2 = vadd.f32 %v2433_v36, %v1873_v27 }
 0x214   : > { %v2001_v33 = vadd.f32 %v1745_v23, %v931_v50  ;;  %v2561_v49 = vsel %vm2284_vm8, %v6610_v10, 0.0  ;;  %vm3093_vm9 = vcmp.eq.s32.totalorder %v8420_v57, %v6613_v3  ;;  %vm525_vm10 = vcmp.eq.s32.totalorder %v8419_v7, %v6655_v55 }
 0x215   : > { %3981 = vmatpush1.msra.mxu1 %v3629_v13  ;;  %v3370_v30 = vsel %vm3093_vm9, %v6623_v59, 0.0  ;;  %vm1339_vm11 = vcmp.eq.s32.totalorder %v8419_v7, %v6661_v62  ;;  %vm2155_vm12 = vcmp.eq.s32.totalorder %v8419_v7, %v6670_v17  ;;  %v3498_v14 = vadd.f32 %v3242_v4, %v2689_v2 }
 0x216   : > { %v2817_v58 = vadd.f32 %v2561_v49, %v2001_v33  ;;  %v802_v26 = vsel %vm525_vm10, %v6658_v41, 0.0  ;;  %v1616_v56 = vsel %vm1339_vm11, %v6667_v32, 0.0  ;;  %v2432_v47 = vsel %vm2155_vm12, %v6673_v51, 0.0 }
 0x217   : > { %v1872_v16 = vadd.f32 %v1616_v56, %v802_v26  ;;  %vm2964_vm13 = vcmp.eq.s32.totalorder %v8419_v7, %v6680_v52  ;;  %vm653_vm14 = vcmp.eq.s32.totalorder %v8420_v57, %v6655_v55  ;;  %3905 = vmatprep.subr.mxu0 %v3498_v14  ;;  %vm1467_vm15 = vcmp.eq.s32.totalorder %v8420_v57, %v6661_v62  ;;  %v8423_v56 = vld [vmem:[#allocation8_spill] sm:$0xff] }
 0x218   : > { %v3626_v61 = vadd.f32 %v3370_v30, %v2817_v58  ;;  %v3241_v25 = vsel %vm2964_vm13, %v6687_v40, 0.0  ;;  %v930_v54 = vsel %vm653_vm14, %v6658_v41, 0.0  ;;  %v1744_v31 = vsel %vm1467_vm15, %v6667_v32, 0.0 }
 0x219   : > { %v2688_v24 = vadd.f32 %v2432_v47, %v1872_v16  ;;  %vm2283_vm0 = vcmp.eq.s32.totalorder %v8420_v57, %v6670_v17  ;;  %vm3092_vm1 = vcmp.eq.s32.totalorder %v8420_v57, %v6680_v52  ;;  %v2000_v19 = vadd.f32 %v1744_v31, %v930_v54 }
 0x21a   : > { %3982 = vmatprep.subr.mxu1 %v3626_v61  ;;  %v2560_v63 = vsel %vm2283_vm0, %v6673_v51, 0.0  ;;  %v3369_v60 = vsel %vm3092_vm1, %v6687_v40, 0.0  ;;  %vm522_vm2 = vcmp.eq.s32.totalorder %v8421_v5, %v6592_v42  ;;  %vm1336_vm3 = vcmp.eq.s32.totalorder %v8421_v5, %v6598_v21 }
 0x21b   : > { %v3497_v37 = vadd.f32 %v3241_v25, %v2688_v24  ;;  %v799_v0 = vsel %vm522_vm2, %v6595_v46, 0.0  ;;  %vm2152_vm4 = vcmp.eq.s32.totalorder %v8421_v5, %v6607_v15  ;;  %v2816_v29 = vadd.f32 %v2560_v63, %v2000_v19  ;;  %v8424_v19 = vld [vmem:[#allocation9_spill] sm:$0xff] }
 0x21c   : > { %v1613_v38 = vsel %vm1336_vm3, %v6604_v9, 0.0  ;;  %v2429_v48 = vsel %vm2152_vm4, %v6610_v10, 0.0  ;;  %vm2961_vm5 = vcmp.eq.s32.totalorder %v8421_v5, %v6613_v3  ;;  %vm650_vm6 = vcmp.eq.s32.totalorder %v8422_v39, %v6592_v42 }
 0x21d   : > { %3906 = vmatpush1.msra.mxu0 %v3497_v37  ;;  %v1869_v20 = vadd.f32 %v1613_v38, %v799_v0  ;;  %v3238_v44 = vsel %vm2961_vm5, %v6623_v59, 0.0  ;;  %vm1464_vm7 = vcmp.eq.s32.totalorder %v8422_v39, %v6598_v21  ;;  %v3625_v45 = vadd.f32 %v3369_v60, %v2816_v29 }
 0x21e   : > { %v927_v35 = vsel %vm650_vm6, %v6595_v46, 0.0  ;;  %v1741_v7 = vsel %vm1464_vm7, %v6604_v9, 0.0  ;;  %vm2280_vm8 = vcmp.eq.s32.totalorder %v8422_v39, %v6607_v15  ;;  %vm3089_vm9 = vcmp.eq.s32.totalorder %v8422_v39, %v6613_v3 }
 0x21f   : > { %v2685_v11 = vadd.f32 %v2429_v48, %v1869_v20  ;;  %v1997_v53 = vadd.f32 %v1741_v7, %v927_v35  ;;  %v2557_v34 = vsel %vm2280_vm8, %v6610_v10, 0.0  ;;  %3983 = vmatpush1.msra.mxu1 %v3625_v45  ;;  %v3366_v1 = vsel %vm3089_vm9, %v6623_v59, 0.0 }
 0x220   : > { %vm521_vm10 = vcmp.eq.s32.totalorder %v8421_v5, %v6655_v55  ;;  %vm1335_vm11 = vcmp.eq.s32.totalorder %v8421_v5, %v6661_v62  ;;  %vm2151_vm12 = vcmp.eq.s32.totalorder %v8421_v5, %v6670_v17  ;;  %vm2960_vm13 = vcmp.eq.s32.totalorder %v8421_v5, %v6680_v52 }
 0x221   : > { %v3494_v36 = vadd.f32 %v3238_v44, %v2685_v11  ;;  %v2813_v27 = vadd.f32 %v2557_v34, %v1997_v53  ;;  %v798_v4 = vsel %vm521_vm10, %v6658_v41, 0.0  ;;  %v1612_v57 = vsel %vm1335_vm11, %v6667_v32, 0.0 }
 0x222   : > { %v1868_v13 = vadd.f32 %v1612_v57, %v798_v4  ;;  %v2428_v50 = vsel %vm2151_vm12, %v6673_v51, 0.0  ;;  %vm649_vm14 = vcmp.eq.s32.totalorder %v8422_v39, %v6655_v55  ;;  %v3237_v2 = vsel %vm2960_vm13, %v6687_v40, 0.0  ;;  %v8425_v57 = vld [vmem:[#allocation10_spill] sm:$0xff] }
 0x223   : > { %3907 = vmatprep.subr.mxu0 %v3494_v36  ;;  %v3622_v23 = vadd.f32 %v3366_v1, %v2813_v27  ;;  %v926_v33 = vsel %vm649_vm14, %v6658_v41, 0.0  ;;  %vm1463_vm15 = vcmp.eq.s32.totalorder %v8422_v39, %v6661_v62  ;;  %vm2279_vm0 = vcmp.eq.s32.totalorder %v8422_v39, %v6670_v17 }
 0x224   : > { %v2684_v49 = vadd.f32 %v2428_v50, %v1868_v13  ;;  %v1740_v30 = vsel %vm1463_vm15, %v6667_v32, 0.0  ;;  %vm3088_vm1 = vcmp.eq.s32.totalorder %v8422_v39, %v6680_v52  ;;  %v2556_v58 = vsel %vm2279_vm0, %v6673_v51, 0.0 }
 0x225   : > { %3984 = vmatprep.subr.mxu1 %v3622_v23  ;;  %v1996_v14 = vadd.f32 %v1740_v30, %v926_v33  ;;  %v3365_v26 = vsel %vm3088_vm1, %v6687_v40, 0.0  ;;  %vm518_vm2 = vcmp.eq.s32.totalorder %v8423_v56, %v6592_v42  ;;  %vm1332_vm3 = vcmp.eq.s32.totalorder %v8423_v56, %v6598_v21 }
 0x226   : > { %v3493_v16 = vadd.f32 %v3237_v2, %v2684_v49  ;;  %v795_v47 = vsel %vm518_vm2, %v6595_v46, 0.0  ;;  %vm2148_vm4 = vcmp.eq.s32.totalorder %v8423_v56, %v6607_v15  ;;  %v1609_v25 = vsel %vm1332_vm3, %v6604_v9, 0.0 }
 0x227   : > { %v2812_v61 = vadd.f32 %v2556_v58, %v1996_v14  ;;  %v2425_v54 = vsel %vm2148_vm4, %v6610_v10, 0.0  ;;  %vm2957_vm5 = vcmp.eq.s32.totalorder %v8423_v56, %v6613_v3  ;;  %v1865_v24 = vadd.f32 %v1609_v25, %v795_v47  ;;  %v8426_v14 = vld [vmem:[#allocation11_spill] sm:$0xff] }
 0x228   : > { %3908 = vmatpush1.msra.mxu0 %v3493_v16  ;;  %v3234_v31 = vsel %vm2957_vm5, %v6623_v59, 0.0  ;;  %vm646_vm6 = vcmp.eq.s32.totalorder %v8424_v19, %v6592_v42  ;;  %vm1460_vm7 = vcmp.eq.s32.totalorder %v8424_v19, %v6598_v21  ;;  %vm2276_vm8 = vcmp.eq.s32.totalorder %v8424_v19, %v6607_v15 }
 0x229   : > { %v3621_v63 = vadd.f32 %v3365_v26, %v2812_v61  ;;  %v923_v60 = vsel %vm646_vm6, %v6595_v46, 0.0  ;;  %v1737_v5 = vsel %vm1460_vm7, %v6604_v9, 0.0  ;;  %v2681_v37 = vadd.f32 %v2425_v54, %v1865_v24 }
 0x22a   : > { %v1993_v0 = vadd.f32 %v1737_v5, %v923_v60  ;;  %v2553_v29 = vsel %vm2276_vm8, %v6610_v10, 0.0  ;;  %vm3085_vm9 = vcmp.eq.s32.totalorder %v8424_v19, %v6613_v3  ;;  %vm517_vm10 = vcmp.eq.s32.totalorder %v8423_v56, %v6655_v55 }
 0x22b   : > { %3985 = vmatpush1.msra.mxu1 %v3621_v63  ;;  %v3362_v38 = vsel %vm3085_vm9, %v6623_v59, 0.0  ;;  %vm1331_vm11 = vcmp.eq.s32.totalorder %v8423_v56, %v6661_v62  ;;  %vm2147_vm12 = vcmp.eq.s32.totalorder %v8423_v56, %v6670_v17  ;;  %v3490_v48 = vadd.f32 %v3234_v31, %v2681_v37 }
 0x22c   : > { %v2809_v20 = vadd.f32 %v2553_v29, %v1993_v0  ;;  %v794_v44 = vsel %vm517_vm10, %v6658_v41, 0.0  ;;  %v1608_v39 = vsel %vm1331_vm11, %v6667_v32, 0.0  ;;  %v2424_v35 = vsel %vm2147_vm12, %v6673_v51, 0.0 }
 0x22d   : > { %v1864_v45 = vadd.f32 %v1608_v39, %v794_v44  ;;  %vm2956_vm13 = vcmp.eq.s32.totalorder %v8423_v56, %v6680_v52  ;;  %vm645_vm14 = vcmp.eq.s32.totalorder %v8424_v19, %v6655_v55  ;;  %3909 = vmatprep.subr.mxu0 %v3490_v48  ;;  %vm1459_vm15 = vcmp.eq.s32.totalorder %v8424_v19, %v6661_v62  ;;  %v8427_v39 = vld [vmem:[#allocation12_spill] sm:$0xff] }
 0x22e   : > { %v3618_v7 = vadd.f32 %v3362_v38, %v2809_v20  ;;  %v3233_v11 = vsel %vm2956_vm13, %v6687_v40, 0.0  ;;  %v922_v53 = vsel %vm645_vm14, %v6658_v41, 0.0  ;;  %v1736_v1 = vsel %vm1459_vm15, %v6667_v32, 0.0 }
 0x22f   : > { %v2680_v34 = vadd.f32 %v2424_v35, %v1864_v45  ;;  %vm2275_vm0 = vcmp.eq.s32.totalorder %v8424_v19, %v6670_v17  ;;  %vm3084_vm1 = vcmp.eq.s32.totalorder %v8424_v19, %v6680_v52  ;;  %v1992_v36 = vadd.f32 %v1736_v1, %v922_v53 }
 0x230   : > { %3986 = vmatprep.subr.mxu1 %v3618_v7  ;;  %v2552_v27 = vsel %vm2275_vm0, %v6673_v51, 0.0  ;;  %v3361_v4 = vsel %vm3084_vm1, %v6687_v40, 0.0  ;;  %vm514_vm2 = vcmp.eq.s32.totalorder %v8425_v57, %v6592_v42  ;;  %vm1328_vm3 = vcmp.eq.s32.totalorder %v8425_v57, %v6598_v21 }
 0x231   : > { %v3489_v13 = vadd.f32 %v3233_v11, %v2680_v34  ;;  %v791_v50 = vsel %vm514_vm2, %v6595_v46, 0.0  ;;  %vm2144_vm4 = vcmp.eq.s32.totalorder %v8425_v57, %v6607_v15  ;;  %v2808_v23 = vadd.f32 %v2552_v27, %v1992_v36  ;;  %v8428_v36 = vld [vmem:[#allocation13_spill] sm:$0xff] }
 0x232   : > { %v1605_v2 = vsel %vm1328_vm3, %v6604_v9, 0.0  ;;  %v2421_v33 = vsel %vm2144_vm4, %v6610_v10, 0.0  ;;  %vm2953_vm5 = vcmp.eq.s32.totalorder %v8425_v57, %v6613_v3  ;;  %vm642_vm6 = vcmp.eq.s32.totalorder %v8426_v14, %v6592_v42 }
 0x233   : > { %3910 = vmatpush1.msra.mxu0 %v3489_v13  ;;  %v1861_v49 = vadd.f32 %v1605_v2, %v791_v50  ;;  %v3230_v30 = vsel %vm2953_vm5, %v6623_v59, 0.0  ;;  %vm1456_vm7 = vcmp.eq.s32.totalorder %v8426_v14, %v6598_v21  ;;  %v3617_v58 = vadd.f32 %v3361_v4, %v2808_v23 }
 0x234   : > { %v919_v26 = vsel %vm642_vm6, %v6595_v46, 0.0  ;;  %v1733_v56 = vsel %vm1456_vm7, %v6604_v9, 0.0  ;;  %vm2272_vm8 = vcmp.eq.s32.totalorder %v8426_v14, %v6607_v15  ;;  %vm3081_vm9 = vcmp.eq.s32.totalorder %v8426_v14, %v6613_v3 }
 0x235   : > { %v2677_v16 = vadd.f32 %v2421_v33, %v1861_v49  ;;  %v1989_v47 = vadd.f32 %v1733_v56, %v919_v26  ;;  %v2549_v61 = vsel %vm2272_vm8, %v6610_v10, 0.0  ;;  %3987 = vmatpush1.msra.mxu1 %v3617_v58  ;;  %v3358_v25 = vsel %vm3081_vm9, %v6623_v59, 0.0 }
 0x236   : > { %vm513_vm10 = vcmp.eq.s32.totalorder %v8425_v57, %v6655_v55  ;;  %vm1327_vm11 = vcmp.eq.s32.totalorder %v8425_v57, %v6661_v62  ;;  %vm2143_vm12 = vcmp.eq.s32.totalorder %v8425_v57, %v6670_v17  ;;  %vm2952_vm13 = vcmp.eq.s32.totalorder %v8425_v57, %v6680_v52 }
 0x237   : > { %v3486_v54 = vadd.f32 %v3230_v30, %v2677_v16  ;;  %v2805_v24 = vadd.f32 %v2549_v61, %v1989_v47  ;;  %v790_v31 = vsel %vm513_vm10, %v6658_v41, 0.0  ;;  %v1604_v19 = vsel %vm1327_vm11, %v6667_v32, 0.0 }
 0x238   : > { %v1860_v63 = vadd.f32 %v1604_v19, %v790_v31  ;;  %v2420_v60 = vsel %vm2143_vm12, %v6673_v51, 0.0  ;;  %vm641_vm14 = vcmp.eq.s32.totalorder %v8426_v14, %v6655_v55  ;;  %v3229_v37 = vsel %vm2952_vm13, %v6687_v40, 0.0 }
 0x239   : > { %3911 = vmatprep.subr.mxu0 %v3486_v54  ;;  %v3614_v5 = vadd.f32 %v3358_v25, %v2805_v24  ;;  %v918_v0 = vsel %vm641_vm14, %v6658_v41, 0.0  ;;  %vm1455_vm15 = vcmp.eq.s32.totalorder %v8426_v14, %v6661_v62  ;;  %vm2271_vm0 = vcmp.eq.s32.totalorder %v8426_v14, %v6670_v17 }
 0x23a   : > { %v2676_v29 = vadd.f32 %v2420_v60, %v1860_v63  ;;  %v1732_v38 = vsel %vm1455_vm15, %v6667_v32, 0.0  ;;  %vm3080_vm1 = vcmp.eq.s32.totalorder %v8426_v14, %v6680_v52  ;;  %v2548_v20 = vsel %vm2271_vm0, %v6673_v51, 0.0 }
 0x23b   : > { %3988 = vmatprep.subr.mxu1 %v3614_v5  ;;  %v1988_v48 = vadd.f32 %v1732_v38, %v918_v0  ;;  %v3357_v44 = vsel %vm3080_vm1, %v6687_v40, 0.0  ;;  %vm510_vm2 = vcmp.eq.s32.totalorder %v8427_v39, %v6592_v42  ;;  %vm1324_vm3 = vcmp.eq.s32.totalorder %v8427_v39, %v6598_v21  ;;  %v8429_v38 = vld [vmem:[#allocation14_spill] sm:$0xff] }
 0x23c   : > { %v3485_v45 = vadd.f32 %v3229_v37, %v2676_v29  ;;  %v787_v35 = vsel %vm510_vm2, %v6595_v46, 0.0  ;;  %vm2140_vm4 = vcmp.eq.s32.totalorder %v8427_v39, %v6607_v15  ;;  %v1601_v11 = vsel %vm1324_vm3, %v6604_v9, 0.0 }
 0x23d   : > { %v2804_v7 = vadd.f32 %v2548_v20, %v1988_v48  ;;  %v2417_v53 = vsel %vm2140_vm4, %v6610_v10, 0.0  ;;  %vm2949_vm5 = vcmp.eq.s32.totalorder %v8427_v39, %v6613_v3  ;;  %v1857_v34 = vadd.f32 %v1601_v11, %v787_v35 }
 0x23e   : > { %3912 = vmatpush1.msra.mxu0 %v3485_v45  ;;  %v3226_v1 = vsel %vm2949_vm5, %v6623_v59, 0.0  ;;  %vm638_vm6 = vcmp.eq.s32.totalorder %v8428_v36, %v6592_v42  ;;  %vm1452_vm7 = vcmp.eq.s32.totalorder %v8428_v36, %v6598_v21  ;;  %vm2268_vm8 = vcmp.eq.s32.totalorder %v8428_v36, %v6607_v15 }
 0x23f   : > { %v3613_v27 = vadd.f32 %v3357_v44, %v2804_v7  ;;  %v915_v4 = vsel %vm638_vm6, %v6595_v46, 0.0  ;;  %v1729_v57 = vsel %vm1452_vm7, %v6604_v9, 0.0  ;;  %v2673_v13 = vadd.f32 %v2417_v53, %v1857_v34 }
 0x240   : > { %v1985_v50 = vadd.f32 %v1729_v57, %v915_v4  ;;  %v2545_v23 = vsel %vm2268_vm8, %v6610_v10, 0.0  ;;  %vm3077_vm9 = vcmp.eq.s32.totalorder %v8428_v36, %v6613_v3  ;;  %vm509_vm10 = vcmp.eq.s32.totalorder %v8427_v39, %v6655_v55 }
 0x241   : > { %3989 = vmatpush1.msra.mxu1 %v3613_v27  ;;  %v3354_v2 = vsel %vm3077_vm9, %v6623_v59, 0.0  ;;  %vm1323_vm11 = vcmp.eq.s32.totalorder %v8427_v39, %v6661_v62  ;;  %vm2139_vm12 = vcmp.eq.s32.totalorder %v8427_v39, %v6670_v17  ;;  %v3482_v33 = vadd.f32 %v3226_v1, %v2673_v13 }
 0x242   : > { %v2801_v49 = vadd.f32 %v2545_v23, %v1985_v50  ;;  %v786_v30 = vsel %vm509_vm10, %v6658_v41, 0.0  ;;  %v1600_v14 = vsel %vm1323_vm11, %v6667_v32, 0.0  ;;  %v2416_v26 = vsel %vm2139_vm12, %v6673_v51, 0.0 }
 0x243   : > { %v1856_v58 = vadd.f32 %v1600_v14, %v786_v30  ;;  %vm2948_vm13 = vcmp.eq.s32.totalorder %v8427_v39, %v6680_v52  ;;  %vm637_vm14 = vcmp.eq.s32.totalorder %v8428_v36, %v6655_v55  ;;  %3913 = vmatprep.subr.mxu0 %v3482_v33  ;;  %vm1451_vm15 = vcmp.eq.s32.totalorder %v8428_v36, %v6661_v62 }
 0x244   : > { %v3610_v56 = vadd.f32 %v3354_v2, %v2801_v49  ;;  %v3225_v16 = vsel %vm2948_vm13, %v6687_v40, 0.0  ;;  %v914_v47 = vsel %vm637_vm14, %v6658_v41, 0.0  ;;  %v1728_v25 = vsel %vm1451_vm15, %v6667_v32, 0.0  ;;  %v8430_v49 = vld [vmem:[#allocation15_spill] sm:$0xff] }
 0x245   : > { %v2672_v61 = vadd.f32 %v2416_v26, %v1856_v58  ;;  %vm2267_vm0 = vcmp.eq.s32.totalorder %v8428_v36, %v6670_v17  ;;  %vm3076_vm1 = vcmp.eq.s32.totalorder %v8428_v36, %v6680_v52  ;;  %v1984_v54 = vadd.f32 %v1728_v25, %v914_v47 }
 0x246   : > { %3990 = vmatprep.subr.mxu1 %v3610_v56  ;;  %v2544_v24 = vsel %vm2267_vm0, %v6673_v51, 0.0  ;;  %v3353_v31 = vsel %vm3076_vm1, %v6687_v40, 0.0  ;;  %vm506_vm2 = vcmp.eq.s32.totalorder %v4756_v6, %v6592_v42  ;;  %vm1320_vm3 = vcmp.eq.s32.totalorder %v4756_v6, %v6598_v21 }
 0x247   : > { %v3481_v19 = vadd.f32 %v3225_v16, %v2672_v61  ;;  %v783_v63 = vsel %vm506_vm2, %v6595_v46, 0.0  ;;  %vm2136_vm4 = vcmp.eq.s32.totalorder %v4756_v6, %v6607_v15  ;;  %v2800_v60 = vadd.f32 %v2544_v24, %v1984_v54  ;;  %v8431_v61 = vld [vmem:[#allocation16_spill] sm:$0xff] }
 0x248   : > { %v1597_v5 = vsel %vm1320_vm3, %v6604_v9, 0.0  ;;  %v2413_v37 = vsel %vm2136_vm4, %v6610_v10, 0.0  ;;  %vm2945_vm5 = vcmp.eq.s32.totalorder %v4756_v6, %v6613_v3  ;;  %vm634_vm6 = vcmp.eq.s32.totalorder %v8429_v38, %v6592_v42 }
 0x249   : > { %3914 = vmatpush1.msra.mxu0 %v3481_v19  ;;  %v1853_v0 = vadd.f32 %v1597_v5, %v783_v63  ;;  %v3222_v29 = vsel %vm2945_vm5, %v6623_v59, 0.0  ;;  %vm1448_vm7 = vcmp.eq.s32.totalorder %v8429_v38, %v6598_v21  ;;  %v3609_v48 = vadd.f32 %v3353_v31, %v2800_v60 }
 0x24a   : > { %v911_v20 = vsel %vm634_vm6, %v6595_v46, 0.0  ;;  %v1725_v44 = vsel %vm1448_vm7, %v6604_v9, 0.0  ;;  %vm2264_vm8 = vcmp.eq.s32.totalorder %v8429_v38, %v6607_v15  ;;  %vm3073_vm9 = vcmp.eq.s32.totalorder %v8429_v38, %v6613_v3 }
 0x24b   : > { %v2669_v39 = vadd.f32 %v2413_v37, %v1853_v0  ;;  %v1981_v45 = vadd.f32 %v1725_v44, %v911_v20  ;;  %v2541_v35 = vsel %vm2264_vm8, %v6610_v10, 0.0  ;;  %3991 = vmatpush1.msra.mxu1 %v3609_v48  ;;  %v3350_v7 = vsel %vm3073_vm9, %v6623_v59, 0.0 }
 0x24c   : > { %vm505_vm10 = vcmp.eq.s32.totalorder %v4756_v6, %v6655_v55  ;;  %vm1319_vm11 = vcmp.eq.s32.totalorder %v4756_v6, %v6661_v62  ;;  %vm2135_vm12 = vcmp.eq.s32.totalorder %v4756_v6, %v6670_v17  ;;  %vm2944_vm13 = vcmp.eq.s32.totalorder %v4756_v6, %v6680_v52 }
 0x24d   : > { %v3478_v11 = vadd.f32 %v3222_v29, %v2669_v39  ;;  %v2797_v53 = vadd.f32 %v2541_v35, %v1981_v45  ;;  %v782_v34 = vsel %vm505_vm10, %v6658_v41, 0.0  ;;  %v1596_v1 = vsel %vm1319_vm11, %v6667_v32, 0.0 }
 0x24e   : > { %v1852_v36 = vadd.f32 %v1596_v1, %v782_v34  ;;  %v2412_v27 = vsel %vm2135_vm12, %v6673_v51, 0.0  ;;  %vm633_vm14 = vcmp.eq.s32.totalorder %v8429_v38, %v6655_v55  ;;  %v3221_v57 = vsel %vm2944_vm13, %v6687_v40, 0.0  ;;  %v8432_v34 = vld [vmem:[#allocation17_spill] sm:$0xff] }
 0x24f   : > { %3915 = vmatprep.subr.mxu0 %v3478_v11  ;;  %v3606_v4 = vadd.f32 %v3350_v7, %v2797_v53  ;;  %v910_v13 = vsel %vm633_vm14, %v6658_v41, 0.0  ;;  %vm1447_vm15 = vcmp.eq.s32.totalorder %v8429_v38, %v6661_v62  ;;  %vm2263_vm0 = vcmp.eq.s32.totalorder %v8429_v38, %v6670_v17 }
 0x250   : > { %v2668_v50 = vadd.f32 %v2412_v27, %v1852_v36  ;;  %v1724_v23 = vsel %vm1447_vm15, %v6667_v32, 0.0  ;;  %vm3072_vm1 = vcmp.eq.s32.totalorder %v8429_v38, %v6680_v52  ;;  %v2540_v2 = vsel %vm2263_vm0, %v6673_v51, 0.0 }
 0x251   : > { %3992 = vmatprep.subr.mxu1 %v3606_v4  ;;  %v1980_v6 = vadd.f32 %v1724_v23, %v910_v13  ;;  %v3349_v33 = vsel %vm3072_vm1, %v6687_v40, 0.0  ;;  %vm630_vm2 = vcmp.eq.s32.totalorder %v8430_v49, %v6592_v42  ;;  %vm1444_vm3 = vcmp.eq.s32.totalorder %v8430_v49, %v6598_v21  ;;  %v8433_v23 = vld [vmem:[#allocation18_spill] sm:$0xff] }
 0x252   : > { %v3477_v30 = vadd.f32 %v3221_v57, %v2668_v50  ;;  %v907_v14 = vsel %vm630_vm2, %v6595_v46, 0.0  ;;  %vm2260_vm4 = vcmp.eq.s32.totalorder %v8430_v49, %v6607_v15  ;;  %v1721_v26 = vsel %vm1444_vm3, %v6604_v9, 0.0 }
 0x253   : > { %v2796_v58 = vadd.f32 %v2540_v2, %v1980_v6  ;;  %v2537_v56 = vsel %vm2260_vm4, %v6610_v10, 0.0  ;;  %vm3069_vm5 = vcmp.eq.s32.totalorder %v8430_v49, %v6613_v3  ;;  %v1977_v16 = vadd.f32 %v1721_v26, %v907_v14 }
 0x254   : > { %3916 = vmatpush1.msra.mxu0 %v3477_v30  ;;  %v3346_v47 = vsel %vm3069_vm5, %v6623_v59, 0.0  ;;  %vm758_vm6 = vcmp.eq.s32.totalorder %v8431_v61, %v6592_v42  ;;  %vm1572_vm7 = vcmp.eq.s32.totalorder %v8431_v61, %v6598_v21  ;;  %vm2388_vm8 = vcmp.eq.s32.totalorder %v8431_v61, %v6607_v15 }
 0x255   : > { %v3605_v25 = vadd.f32 %v3349_v33, %v2796_v58  ;;  %v1035_v54 = vsel %vm758_vm6, %v6595_v46, 0.0  ;;  %v1849_v24 = vsel %vm1572_vm7, %v6604_v9, 0.0  ;;  %v2793_v31 = vadd.f32 %v2537_v56, %v1977_v16 }
 0x256   : > { %v2105_v19 = vadd.f32 %v1849_v24, %v1035_v54  ;;  %v2665_v63 = vsel %vm2388_vm8, %v6610_v10, 0.0  ;;  %vm3197_vm9 = vcmp.eq.s32.totalorder %v8431_v61, %v6613_v3  ;;  %vm629_vm10 = vcmp.eq.s32.totalorder %v8430_v49, %v6655_v55 }
 0x257   : > { %3993 = vmatpush1.msra.mxu1 %v3605_v25  ;;  %v3474_v60 = vsel %vm3197_vm9, %v6623_v59, 0.0  ;;  %vm1443_vm11 = vcmp.eq.s32.totalorder %v8430_v49, %v6661_v62  ;;  %vm2259_vm12 = vcmp.eq.s32.totalorder %v8430_v49, %v6670_v17  ;;  %v3602_v5 = vadd.f32 %v3346_v47, %v2793_v31 }
 0x258   : > { %v2921_v37 = vadd.f32 %v2665_v63, %v2105_v19  ;;  %v906_v0 = vsel %vm629_vm10, %v6658_v41, 0.0  ;;  %v1720_v29 = vsel %vm1443_vm11, %v6667_v32, 0.0  ;;  %v2536_v48 = vsel %vm2259_vm12, %v6673_v51, 0.0 }
 0x259   : > { %v1976_v38 = vadd.f32 %v1720_v29, %v906_v0  ;;  %vm3068_vm13 = vcmp.eq.s32.totalorder %v8430_v49, %v6680_v52  ;;  %vm757_vm14 = vcmp.eq.s32.totalorder %v8431_v61, %v6655_v55  ;;  %3917 = vmatprep.subr.mxu0 %v3602_v5  ;;  %vm1571_vm15 = vcmp.eq.s32.totalorder %v8431_v61, %v6661_v62  ;;  %v8434_v0 = vld [vmem:[#allocation19_spill] sm:$0xff] }
 0x25a   : > { %v3730_v20 = vadd.f32 %v3474_v60, %v2921_v37  ;;  %v3345_v44 = vsel %vm3068_vm13, %v6687_v40, 0.0  ;;  %v1034_v39 = vsel %vm757_vm14, %v6658_v41, 0.0  ;;  %v1848_v35 = vsel %vm1571_vm15, %v6667_v32, 0.0 }
 0x25b   : > { %v2792_v45 = vadd.f32 %v2536_v48, %v1976_v38  ;;  %vm2387_vm0 = vcmp.eq.s32.totalorder %v8431_v61, %v6670_v17  ;;  %vm3196_vm1 = vcmp.eq.s32.totalorder %v8431_v61, %v6680_v52  ;;  %v2104_v7 = vadd.f32 %v1848_v35, %v1034_v39  ;;  %v8435_v35 = vld [vmem:[#allocation20_spill] sm:$0xff] }
 0x25c   : > { %3994 = vmatprep.subr.mxu1 %v3730_v20  ;;  %v2664_v11 = vsel %vm2387_vm0, %v6673_v51, 0.0  ;;  %v3473_v53 = vsel %vm3196_vm1, %v6687_v40, 0.0  ;;  %vm626_vm2 = vcmp.eq.s32.totalorder %v8432_v34, %v6592_v42  ;;  %vm1440_vm3 = vcmp.eq.s32.totalorder %v8432_v34, %v6598_v21 }
 0x25d   : > { %v3601_v1 = vadd.f32 %v3345_v44, %v2792_v45  ;;  %v903_v36 = vsel %vm626_vm2, %v6595_v46, 0.0  ;;  %vm2256_vm4 = vcmp.eq.s32.totalorder %v8432_v34, %v6607_v15  ;;  %v2920_v27 = vadd.f32 %v2664_v11, %v2104_v7 }
 0x25e   : > { %v1717_v4 = vsel %vm1440_vm3, %v6604_v9, 0.0  ;;  %v2533_v57 = vsel %vm2256_vm4, %v6610_v10, 0.0  ;;  %vm3065_vm5 = vcmp.eq.s32.totalorder %v8432_v34, %v6613_v3  ;;  %vm754_vm6 = vcmp.eq.s32.totalorder %v8433_v23, %v6592_v42 }
 0x25f   : > { %3918 = vmatpush2.msra.mxu0 %v3601_v1  ;;  %v1973_v13 = vadd.f32 %v1717_v4, %v903_v36  ;;  %v3342_v50 = vsel %vm3065_vm5, %v6623_v59, 0.0  ;;  %vm1568_vm7 = vcmp.eq.s32.totalorder %v8433_v23, %v6598_v21  ;;  %v3729_v6 = vadd.f32 %v3473_v53, %v2920_v27 }
 0x260   : > { %v1031_v2 = vsel %vm754_vm6, %v6595_v46, 0.0  ;;  %v1845_v33 = vsel %vm1568_vm7, %v6604_v9, 0.0  ;;  %vm2384_vm8 = vcmp.eq.s32.totalorder %v8433_v23, %v6607_v15  ;;  %vm3193_vm9 = vcmp.eq.s32.totalorder %v8433_v23, %v6613_v3 }
 0x261   : > { %v2789_v49 = vadd.f32 %v2533_v57, %v1973_v13  ;;  %v2101_v30 = vadd.f32 %v1845_v33, %v1031_v2  ;;  %v2661_v14 = vsel %vm2384_vm8, %v6610_v10, 0.0  ;;  %3995 = vmatpush2.msra.mxu1 %v3729_v6  ;;  %v3470_v58 = vsel %vm3193_vm9, %v6623_v59, 0.0 }
 0x262   : > { %vm625_vm10 = vcmp.eq.s32.totalorder %v8432_v34, %v6655_v55  ;;  %vm1439_vm11 = vcmp.eq.s32.totalorder %v8432_v34, %v6661_v62  ;;  %vm2255_vm12 = vcmp.eq.s32.totalorder %v8432_v34, %v6670_v17  ;;  %vm3064_vm13 = vcmp.eq.s32.totalorder %v8432_v34, %v6680_v52 }
 0x263   : > { %v3598_v26 = vadd.f32 %v3342_v50, %v2789_v49  ;;  %v2917_v56 = vadd.f32 %v2661_v14, %v2101_v30  ;;  %v902_v16 = vsel %vm625_vm10, %v6658_v41, 0.0  ;;  %v1716_v47 = vsel %vm1439_vm11, %v6667_v32, 0.0 }
 0x264   : > { %v1972_v61 = vadd.f32 %v1716_v47, %v902_v16  ;;  %v2532_v25 = vsel %vm2255_vm12, %v6673_v51, 0.0  ;;  %vm753_vm14 = vcmp.eq.s32.totalorder %v8433_v23, %v6655_v55  ;;  %v3341_v24 = vsel %vm3064_vm13, %v6687_v40, 0.0  ;;  %v8436_v16 = vld [vmem:[#allocation21_spill] sm:$0xff] }
 0x265   : > { %3919 = vmatprep.subr.mxu0 %v3598_v26  ;;  %v3726_v54 = vadd.f32 %v3470_v58, %v2917_v56  ;;  %v1030_v31 = vsel %vm753_vm14, %v6658_v41, 0.0  ;;  %vm1567_vm15 = vcmp.eq.s32.totalorder %v8433_v23, %v6661_v62  ;;  %vm2383_vm0 = vcmp.eq.s32.totalorder %v8433_v23, %v6670_v17 }
 0x266   : > { %v2788_v19 = vadd.f32 %v2532_v25, %v1972_v61  ;;  %v1844_v63 = vsel %vm1567_vm15, %v6667_v32, 0.0  ;;  %vm3192_vm1 = vcmp.eq.s32.totalorder %v8433_v23, %v6680_v52  ;;  %v2660_v5 = vsel %vm2383_vm0, %v6673_v51, 0.0 }
 0x267   : > { %3996 = vmatprep.subr.mxu1 %v3726_v54  ;;  %v2100_v60 = vadd.f32 %v1844_v63, %v1030_v31  ;;  %v3469_v37 = vsel %vm3192_vm1, %v6687_v40, 0.0  ;;  %vm622_vm2 = vcmp.eq.s32.totalorder %v8434_v0, %v6592_v42  ;;  %vm1436_vm3 = vcmp.eq.s32.totalorder %v8434_v0, %v6598_v21  ;;  %v8437_v63 = vld [vmem:[#allocation22_spill] sm:$0xff] }
 0x268   : > { %v3597_v29 = vadd.f32 %v3341_v24, %v2788_v19  ;;  %v899_v38 = vsel %vm622_vm2, %v6595_v46, 0.0  ;;  %vm2252_vm4 = vcmp.eq.s32.totalorder %v8434_v0, %v6607_v15  ;;  %v1713_v20 = vsel %vm1436_vm3, %v6604_v9, 0.0 }
 0x269   : > { %v2916_v48 = vadd.f32 %v2660_v5, %v2100_v60  ;;  %v2529_v44 = vsel %vm2252_vm4, %v6610_v10, 0.0  ;;  %vm3061_vm5 = vcmp.eq.s32.totalorder %v8434_v0, %v6613_v3  ;;  %v1969_v39 = vadd.f32 %v1713_v20, %v899_v38 }
 0x26a   : > { %3920 = vmatpush2.msra.mxu0 %v3597_v29  ;;  %v3338_v45 = vsel %vm3061_vm5, %v6623_v59, 0.0  ;;  %vm750_vm6 = vcmp.eq.s32.totalorder %v8435_v35, %v6592_v42  ;;  %vm1564_vm7 = vcmp.eq.s32.totalorder %v8435_v35, %v6598_v21  ;;  %vm2380_vm8 = vcmp.eq.s32.totalorder %v8435_v35, %v6607_v15 }
 0x26b   : > { %v3725_v7 = vadd.f32 %v3469_v37, %v2916_v48  ;;  %v1027_v11 = vsel %vm750_vm6, %v6595_v46, 0.0  ;;  %v1841_v53 = vsel %vm1564_vm7, %v6604_v9, 0.0  ;;  %v2785_v34 = vadd.f32 %v2529_v44, %v1969_v39 }
 0x26c   : > { %v2097_v1 = vadd.f32 %v1841_v53, %v1027_v11  ;;  %v2657_v36 = vsel %vm2380_vm8, %v6610_v10, 0.0  ;;  %vm3189_vm9 = vcmp.eq.s32.totalorder %v8435_v35, %v6613_v3  ;;  %vm621_vm10 = vcmp.eq.s32.totalorder %v8434_v0, %v6655_v55 }
 0x26d   : > { %3997 = vmatpush2.msra.mxu1 %v3725_v7  ;;  %v3466_v27 = vsel %vm3189_vm9, %v6623_v59, 0.0  ;;  %vm1435_vm11 = vcmp.eq.s32.totalorder %v8434_v0, %v6661_v62  ;;  %vm2251_vm12 = vcmp.eq.s32.totalorder %v8434_v0, %v6670_v17  ;;  %v3594_v4 = vadd.f32 %v3338_v45, %v2785_v34 }
 0x26e   : > { %v2913_v57 = vadd.f32 %v2657_v36, %v2097_v1  ;;  %v898_v13 = vsel %vm621_vm10, %v6658_v41, 0.0  ;;  %v1712_v50 = vsel %vm1435_vm11, %v6667_v32, 0.0  ;;  %v2528_v6 = vsel %vm2251_vm12, %v6673_v51, 0.0 }
 0x26f   : > { %v1968_v23 = vadd.f32 %v1712_v50, %v898_v13  ;;  %vm3060_vm13 = vcmp.eq.s32.totalorder %v8434_v0, %v6680_v52  ;;  %vm749_vm14 = vcmp.eq.s32.totalorder %v8435_v35, %v6655_v55  ;;  %3921 = vmatprep.subr.mxu0 %v3594_v4  ;;  %vm1563_vm15 = vcmp.eq.s32.totalorder %v8435_v35, %v6661_v62  ;;  %v8438_v13 = vld [vmem:[#allocation23_spill] sm:$0xff] }
 0x270   : > { %v3722_v2 = vadd.f32 %v3466_v27, %v2913_v57  ;;  %v3337_v33 = vsel %vm3060_vm13, %v6687_v40, 0.0  ;;  %v1026_v49 = vsel %vm749_vm14, %v6658_v41, 0.0  ;;  %v1840_v14 = vsel %vm1563_vm15, %v6667_v32, 0.0 }
 0x271   : > { %v2784_v30 = vadd.f32 %v2528_v6, %v1968_v23  ;;  %vm2379_vm0 = vcmp.eq.s32.totalorder %v8435_v35, %v6670_v17  ;;  %vm3188_vm1 = vcmp.eq.s32.totalorder %v8435_v35, %v6680_v52  ;;  %v2096_v58 = vadd.f32 %v1840_v14, %v1026_v49  ;;  %v8439_v14 = vld [vmem:[#allocation24_spill] sm:$0xff] }
 0x272   : > { %3998 = vmatprep.subr.mxu1 %v3722_v2  ;;  %v2656_v26 = vsel %vm2379_vm0, %v6673_v51, 0.0  ;;  %v3465_v56 = vsel %vm3188_vm1, %v6687_v40, 0.0  ;;  %vm618_vm2 = vcmp.eq.s32.totalorder %v8436_v16, %v6592_v42  ;;  %vm1432_vm3 = vcmp.eq.s32.totalorder %v8436_v16, %v6598_v21 }
 0x273   : > { %v3593_v47 = vadd.f32 %v3337_v33, %v2784_v30  ;;  %v895_v61 = vsel %vm618_vm2, %v6595_v46, 0.0  ;;  %vm2248_vm4 = vcmp.eq.s32.totalorder %v8436_v16, %v6607_v15  ;;  %v2912_v25 = vadd.f32 %v2656_v26, %v2096_v58 }
 0x274   : > { %v1709_v54 = vsel %vm1432_vm3, %v6604_v9, 0.0  ;;  %v2525_v24 = vsel %vm2248_vm4, %v6610_v10, 0.0  ;;  %vm3057_vm5 = vcmp.eq.s32.totalorder %v8436_v16, %v6613_v3  ;;  %vm746_vm6 = vcmp.eq.s32.totalorder %v8437_v63, %v6592_v42 }
 0x275   : > { %3922 = vmatpush2.msra.mxu0 %v3593_v47  ;;  %v1965_v31 = vadd.f32 %v1709_v54, %v895_v61  ;;  %v3334_v19 = vsel %vm3057_vm5, %v6623_v59, 0.0  ;;  %vm1560_vm7 = vcmp.eq.s32.totalorder %v8437_v63, %v6598_v21  ;;  %v3721_v60 = vadd.f32 %v3465_v56, %v2912_v25 }
 0x276   : > { %v1023_v5 = vsel %vm746_vm6, %v6595_v46, 0.0  ;;  %v1837_v37 = vsel %vm1560_vm7, %v6604_v9, 0.0  ;;  %vm2376_vm8 = vcmp.eq.s32.totalorder %v8437_v63, %v6607_v15  ;;  %vm3185_vm9 = vcmp.eq.s32.totalorder %v8437_v63, %v6613_v3 }
 0x277   : > { %v2781_v0 = vadd.f32 %v2525_v24, %v1965_v31  ;;  %v2093_v29 = vadd.f32 %v1837_v37, %v1023_v5  ;;  %v2653_v38 = vsel %vm2376_vm8, %v6610_v10, 0.0  ;;  %3999 = vmatpush2.msra.mxu1 %v3721_v60  ;;  %v3462_v48 = vsel %vm3185_vm9, %v6623_v59, 0.0 }
 0x278   : > { %vm617_vm10 = vcmp.eq.s32.totalorder %v8436_v16, %v6655_v55  ;;  %vm1431_vm11 = vcmp.eq.s32.totalorder %v8436_v16, %v6661_v62  ;;  %vm2247_vm12 = vcmp.eq.s32.totalorder %v8436_v16, %v6670_v17  ;;  %vm3056_vm13 = vcmp.eq.s32.totalorder %v8436_v16, %v6680_v52 }
 0x279   : > { %v3590_v20 = vadd.f32 %v3334_v19, %v2781_v0  ;;  %v2909_v44 = vadd.f32 %v2653_v38, %v2093_v29  ;;  %v894_v39 = vsel %vm617_vm10, %v6658_v41, 0.0  ;;  %v1708_v45 = vsel %vm1431_vm11, %v6667_v32, 0.0 }
 0x27a   : > { %v1964_v35 = vadd.f32 %v1708_v45, %v894_v39  ;;  %v2524_v7 = vsel %vm2247_vm12, %v6673_v51, 0.0  ;;  %vm745_vm14 = vcmp.eq.s32.totalorder %v8437_v63, %v6655_v55  ;;  %v3333_v53 = vsel %vm3056_vm13, %v6687_v40, 0.0  ;;  %v8440_v39 = vld [vmem:[#allocation25_spill] sm:$0xff] }
 0x27b   : > { %3923 = vmatprep.subr.mxu0 %v3590_v20  ;;  %v3718_v11 = vadd.f32 %v3462_v48, %v2909_v44  ;;  %v1022_v34 = vsel %vm745_vm14, %v6658_v41, 0.0  ;;  %vm1559_vm15 = vcmp.eq.s32.totalorder %v8437_v63, %v6661_v62  ;;  %vm2375_vm0 = vcmp.eq.s32.totalorder %v8437_v63, %v6670_v17 }
 0x27c   : > { %v2780_v1 = vadd.f32 %v2524_v7, %v1964_v35  ;;  %v1836_v36 = vsel %vm1559_vm15, %v6667_v32, 0.0  ;;  %vm3184_vm1 = vcmp.eq.s32.totalorder %v8437_v63, %v6680_v52  ;;  %v2652_v4 = vsel %vm2375_vm0, %v6673_v51, 0.0 }
 0x27d   : > { %4000 = vmatprep.subr.mxu1 %v3718_v11  ;;  %v2092_v27 = vadd.f32 %v1836_v36, %v1022_v34  ;;  %v3461_v57 = vsel %vm3184_vm1, %v6687_v40, 0.0  ;;  %vm614_vm2 = vcmp.eq.s32.totalorder %v8438_v13, %v6592_v42  ;;  %vm1428_vm3 = vcmp.eq.s32.totalorder %v8438_v13, %v6598_v21  ;;  %v8441_v36 = vld [vmem:[#allocation26_spill] sm:$0xff] }
 0x27e   : > { %v3589_v50 = vadd.f32 %v3333_v53, %v2780_v1  ;;  %v891_v23 = vsel %vm614_vm2, %v6595_v46, 0.0  ;;  %vm2244_vm4 = vcmp.eq.s32.totalorder %v8438_v13, %v6607_v15  ;;  %v1705_v2 = vsel %vm1428_vm3, %v6604_v9, 0.0 }
 0x27f   : > { %v2908_v6 = vadd.f32 %v2652_v4, %v2092_v27  ;;  %v2521_v33 = vsel %vm2244_vm4, %v6610_v10, 0.0  ;;  %vm3053_vm5 = vcmp.eq.s32.totalorder %v8438_v13, %v6613_v3  ;;  %v1961_v49 = vadd.f32 %v1705_v2, %v891_v23 }
 0x280   : > { %3924 = vmatpush2.msra.mxu0 %v3589_v50  ;;  %v3330_v30 = vsel %vm3053_vm5, %v6623_v59, 0.0  ;;  %vm742_vm6 = vcmp.eq.s32.totalorder %v8439_v14, %v6592_v42  ;;  %vm1556_vm7 = vcmp.eq.s32.totalorder %v8439_v14, %v6598_v21  ;;  %vm2372_vm8 = vcmp.eq.s32.totalorder %v8439_v14, %v6607_v15 }
 0x281   : > { %v3717_v58 = vadd.f32 %v3461_v57, %v2908_v6  ;;  %v1019_v26 = vsel %vm742_vm6, %v6595_v46, 0.0  ;;  %v1833_v56 = vsel %vm1556_vm7, %v6604_v9, 0.0  ;;  %v2777_v16 = vadd.f32 %v2521_v33, %v1961_v49 }
 0x282   : > { %v2089_v47 = vadd.f32 %v1833_v56, %v1019_v26  ;;  %v2649_v61 = vsel %vm2372_vm8, %v6610_v10, 0.0  ;;  %vm3181_vm9 = vcmp.eq.s32.totalorder %v8439_v14, %v6613_v3  ;;  %vm613_vm10 = vcmp.eq.s32.totalorder %v8438_v13, %v6655_v55 }
 0x283   : > { %4001 = vmatpush2.msra.mxu1 %v3717_v58  ;;  %v3458_v25 = vsel %vm3181_vm9, %v6623_v59, 0.0  ;;  %vm1427_vm11 = vcmp.eq.s32.totalorder %v8438_v13, %v6661_v62  ;;  %vm2243_vm12 = vcmp.eq.s32.totalorder %v8438_v13, %v6670_v17  ;;  %v3586_v54 = vadd.f32 %v3330_v30, %v2777_v16 }
 0x284   : > { %v2905_v24 = vadd.f32 %v2649_v61, %v2089_v47  ;;  %v890_v31 = vsel %vm613_vm10, %v6658_v41, 0.0  ;;  %v1704_v19 = vsel %vm1427_vm11, %v6667_v32, 0.0  ;;  %v2520_v60 = vsel %vm2243_vm12, %v6673_v51, 0.0 }
 0x285   : > { %v1960_v63 = vadd.f32 %v1704_v19, %v890_v31  ;;  %vm3052_vm13 = vcmp.eq.s32.totalorder %v8438_v13, %v6680_v52  ;;  %vm741_vm14 = vcmp.eq.s32.totalorder %v8439_v14, %v6655_v55  ;;  %3925 = vmatprep.subr.mxu0 %v3586_v54  ;;  %vm1555_vm15 = vcmp.eq.s32.totalorder %v8439_v14, %v6661_v62  ;;  %v8442_v31 = vld [vmem:[#allocation27_spill] sm:$0xff] }
 0x286   : > { %v3714_v5 = vadd.f32 %v3458_v25, %v2905_v24  ;;  %v3329_v37 = vsel %vm3052_vm13, %v6687_v40, 0.0  ;;  %v1018_v0 = vsel %vm741_vm14, %v6658_v41, 0.0  ;;  %v1832_v38 = vsel %vm1555_vm15, %v6667_v32, 0.0 }
 0x287   : > { %v2776_v29 = vadd.f32 %v2520_v60, %v1960_v63  ;;  %vm2371_vm0 = vcmp.eq.s32.totalorder %v8439_v14, %v6670_v17  ;;  %vm3180_vm1 = vcmp.eq.s32.totalorder %v8439_v14, %v6680_v52  ;;  %v2088_v48 = vadd.f32 %v1832_v38, %v1018_v0  ;;  %v8443_v38 = vld [vmem:[#allocation28_spill] sm:$0xff] }
 0x288   : > { %4002 = vmatprep.subr.mxu1 %v3714_v5  ;;  %v2648_v20 = vsel %vm2371_vm0, %v6673_v51, 0.0  ;;  %v3457_v44 = vsel %vm3180_vm1, %v6687_v40, 0.0  ;;  %vm610_vm2 = vcmp.eq.s32.totalorder %v8440_v39, %v6592_v42  ;;  %vm1424_vm3 = vcmp.eq.s32.totalorder %v8440_v39, %v6598_v21 }
 0x289   : > { %v3585_v45 = vadd.f32 %v3329_v37, %v2776_v29  ;;  %v887_v35 = vsel %vm610_vm2, %v6595_v46, 0.0  ;;  %vm2240_vm4 = vcmp.eq.s32.totalorder %v8440_v39, %v6607_v15  ;;  %v2904_v7 = vadd.f32 %v2648_v20, %v2088_v48 }
 0x28a   : > { %v1701_v11 = vsel %vm1424_vm3, %v6604_v9, 0.0  ;;  %v2517_v53 = vsel %vm2240_vm4, %v6610_v10, 0.0  ;;  %vm3049_vm5 = vcmp.eq.s32.totalorder %v8440_v39, %v6613_v3  ;;  %vm738_vm6 = vcmp.eq.s32.totalorder %v8441_v36, %v6592_v42 }
 0x28b   : > { %3926 = vmatpush2.msra.mxu0 %v3585_v45  ;;  %v1957_v34 = vadd.f32 %v1701_v11, %v887_v35  ;;  %v3326_v1 = vsel %vm3049_vm5, %v6623_v59, 0.0  ;;  %vm1552_vm7 = vcmp.eq.s32.totalorder %v8441_v36, %v6598_v21  ;;  %v3713_v27 = vadd.f32 %v3457_v44, %v2904_v7 }
 0x28c   : > { %v1015_v4 = vsel %vm738_vm6, %v6595_v46, 0.0  ;;  %v1829_v57 = vsel %vm1552_vm7, %v6604_v9, 0.0  ;;  %vm2368_vm8 = vcmp.eq.s32.totalorder %v8441_v36, %v6607_v15  ;;  %vm3177_vm9 = vcmp.eq.s32.totalorder %v8441_v36, %v6613_v3 }
 0x28d   : > { %v2773_v13 = vadd.f32 %v2517_v53, %v1957_v34  ;;  %v2085_v50 = vadd.f32 %v1829_v57, %v1015_v4  ;;  %v2645_v23 = vsel %vm2368_vm8, %v6610_v10, 0.0  ;;  %4003 = vmatpush2.msra.mxu1 %v3713_v27  ;;  %v3454_v6 = vsel %vm3177_vm9, %v6623_v59, 0.0 }
 0x28e   : > { %vm609_vm10 = vcmp.eq.s32.totalorder %v8440_v39, %v6655_v55  ;;  %vm1423_vm11 = vcmp.eq.s32.totalorder %v8440_v39, %v6661_v62  ;;  %vm2239_vm12 = vcmp.eq.s32.totalorder %v8440_v39, %v6670_v17  ;;  %vm3048_vm13 = vcmp.eq.s32.totalorder %v8440_v39, %v6680_v52 }
 0x28f   : > { %v3582_v2 = vadd.f32 %v3326_v1, %v2773_v13  ;;  %v2901_v33 = vadd.f32 %v2645_v23, %v2085_v50  ;;  %v886_v49 = vsel %vm609_vm10, %v6658_v41, 0.0  ;;  %v1700_v30 = vsel %vm1423_vm11, %v6667_v32, 0.0 }
 0x290   : > { %v1956_v14 = vadd.f32 %v1700_v30, %v886_v49  ;;  %v2516_v58 = vsel %vm2239_vm12, %v6673_v51, 0.0  ;;  %vm737_vm14 = vcmp.eq.s32.totalorder %v8441_v36, %v6655_v55  ;;  %v3325_v56 = vsel %vm3048_vm13, %v6687_v40, 0.0  ;;  %v8444_v49 = vld [vmem:[#allocation29_spill] sm:$0xff] }
 0x291   : > { %3927 = vmatprep.subr.mxu0 %v3582_v2  ;;  %v3710_v26 = vadd.f32 %v3454_v6, %v2901_v33  ;;  %v1014_v16 = vsel %vm737_vm14, %v6658_v41, 0.0  ;;  %vm1551_vm15 = vcmp.eq.s32.totalorder %v8441_v36, %v6661_v62  ;;  %vm2367_vm0 = vcmp.eq.s32.totalorder %v8441_v36, %v6670_v17 }
 0x292   : > { %v2772_v47 = vadd.f32 %v2516_v58, %v1956_v14  ;;  %v1828_v61 = vsel %vm1551_vm15, %v6667_v32, 0.0  ;;  %vm3176_vm1 = vcmp.eq.s32.totalorder %v8441_v36, %v6680_v52  ;;  %v2644_v54 = vsel %vm2367_vm0, %v6673_v51, 0.0 }
 0x293   : > { %4004 = vmatprep.subr.mxu1 %v3710_v26  ;;  %v2084_v25 = vadd.f32 %v1828_v61, %v1014_v16  ;;  %v3453_v24 = vsel %vm3176_vm1, %v6687_v40, 0.0  ;;  %vm606_vm2 = vcmp.eq.s32.totalorder %v8442_v31, %v6592_v42  ;;  %vm1420_vm3 = vcmp.eq.s32.totalorder %v8442_v31, %v6598_v21  ;;  %v8445_v61 = vld [vmem:[#allocation30_spill] sm:$0xff] }
 0x294   : > { %v3581_v19 = vadd.f32 %v3325_v56, %v2772_v47  ;;  %v883_v63 = vsel %vm606_vm2, %v6595_v46, 0.0  ;;  %vm2236_vm4 = vcmp.eq.s32.totalorder %v8442_v31, %v6607_v15  ;;  %v1697_v5 = vsel %vm1420_vm3, %v6604_v9, 0.0 }
 0x295   : > { %v2900_v60 = vadd.f32 %v2644_v54, %v2084_v25  ;;  %v2513_v37 = vsel %vm2236_vm4, %v6610_v10, 0.0  ;;  %vm3045_vm5 = vcmp.eq.s32.totalorder %v8442_v31, %v6613_v3  ;;  %v1953_v0 = vadd.f32 %v1697_v5, %v883_v63 }
 0x296   : > { %3928 = vmatpush2.msra.mxu0 %v3581_v19  ;;  %v3322_v29 = vsel %vm3045_vm5, %v6623_v59, 0.0  ;;  %vm734_vm6 = vcmp.eq.s32.totalorder %v8443_v38, %v6592_v42  ;;  %vm1548_vm7 = vcmp.eq.s32.totalorder %v8443_v38, %v6598_v21  ;;  %vm2364_vm8 = vcmp.eq.s32.totalorder %v8443_v38, %v6607_v15 }
 0x297   : > { %v3709_v48 = vadd.f32 %v3453_v24, %v2900_v60  ;;  %v1011_v20 = vsel %vm734_vm6, %v6595_v46, 0.0  ;;  %v1825_v44 = vsel %vm1548_vm7, %v6604_v9, 0.0  ;;  %v2769_v39 = vadd.f32 %v2513_v37, %v1953_v0 }
 0x298   : > { %v2081_v45 = vadd.f32 %v1825_v44, %v1011_v20  ;;  %v2641_v35 = vsel %vm2364_vm8, %v6610_v10, 0.0  ;;  %vm3173_vm9 = vcmp.eq.s32.totalorder %v8443_v38, %v6613_v3  ;;  %vm605_vm10 = vcmp.eq.s32.totalorder %v8442_v31, %v6655_v55 }
 0x299   : > { %4005 = vmatpush2.msra.mxu1 %v3709_v48  ;;  %v3450_v7 = vsel %vm3173_vm9, %v6623_v59, 0.0  ;;  %vm1419_vm11 = vcmp.eq.s32.totalorder %v8442_v31, %v6661_v62  ;;  %vm2235_vm12 = vcmp.eq.s32.totalorder %v8442_v31, %v6670_v17  ;;  %v3578_v11 = vadd.f32 %v3322_v29, %v2769_v39 }
 0x29a   : > { %v2897_v53 = vadd.f32 %v2641_v35, %v2081_v45  ;;  %v882_v34 = vsel %vm605_vm10, %v6658_v41, 0.0  ;;  %v1696_v1 = vsel %vm1419_vm11, %v6667_v32, 0.0  ;;  %v2512_v27 = vsel %vm2235_vm12, %v6673_v51, 0.0 }
 0x29b   : > { %v1952_v36 = vadd.f32 %v1696_v1, %v882_v34  ;;  %vm3044_vm13 = vcmp.eq.s32.totalorder %v8442_v31, %v6680_v52  ;;  %vm733_vm14 = vcmp.eq.s32.totalorder %v8443_v38, %v6655_v55  ;;  %3929 = vmatprep.subr.mxu0 %v3578_v11  ;;  %vm1547_vm15 = vcmp.eq.s32.totalorder %v8443_v38, %v6661_v62  ;;  %v8446_v34 = vld [vmem:[#allocation31_spill] sm:$0xff] }
 0x29c   : > { %v3706_v4 = vadd.f32 %v3450_v7, %v2897_v53  ;;  %v3321_v57 = vsel %vm3044_vm13, %v6687_v40, 0.0  ;;  %v1010_v13 = vsel %vm733_vm14, %v6658_v41, 0.0  ;;  %v1824_v23 = vsel %vm1547_vm15, %v6667_v32, 0.0 }
 0x29d   : > { %v2768_v50 = vadd.f32 %v2512_v27, %v1952_v36  ;;  %vm2363_vm0 = vcmp.eq.s32.totalorder %v8443_v38, %v6670_v17  ;;  %vm3172_vm1 = vcmp.eq.s32.totalorder %v8443_v38, %v6680_v52  ;;  %v2080_v6 = vadd.f32 %v1824_v23, %v1010_v13  ;;  %v8447_v23 = vld [vmem:[#allocation32_spill] sm:$0xff] }
 0x29e   : > { %4006 = vmatprep.subr.mxu1 %v3706_v4  ;;  %v2640_v2 = vsel %vm2363_vm0, %v6673_v51, 0.0  ;;  %v3449_v33 = vsel %vm3172_vm1, %v6687_v40, 0.0  ;;  %vm602_vm2 = vcmp.eq.s32.totalorder %v8444_v49, %v6592_v42  ;;  %vm1416_vm3 = vcmp.eq.s32.totalorder %v8444_v49, %v6598_v21 }
 0x29f   : > { %v3577_v30 = vadd.f32 %v3321_v57, %v2768_v50  ;;  %v879_v14 = vsel %vm602_vm2, %v6595_v46, 0.0  ;;  %vm2232_vm4 = vcmp.eq.s32.totalorder %v8444_v49, %v6607_v15  ;;  %v2896_v58 = vadd.f32 %v2640_v2, %v2080_v6 }
 0x2a0   : > { %v1693_v26 = vsel %vm1416_vm3, %v6604_v9, 0.0  ;;  %v2509_v56 = vsel %vm2232_vm4, %v6610_v10, 0.0  ;;  %vm3041_vm5 = vcmp.eq.s32.totalorder %v8444_v49, %v6613_v3  ;;  %vm730_vm6 = vcmp.eq.s32.totalorder %v8445_v61, %v6592_v42 }
 0x2a1   : > { %3930 = vmatpush2.msra.mxu0 %v3577_v30  ;;  %v1949_v16 = vadd.f32 %v1693_v26, %v879_v14  ;;  %v3318_v47 = vsel %vm3041_vm5, %v6623_v59, 0.0  ;;  %vm1544_vm7 = vcmp.eq.s32.totalorder %v8445_v61, %v6598_v21  ;;  %v3705_v25 = vadd.f32 %v3449_v33, %v2896_v58 }
 0x2a2   : > { %v1007_v54 = vsel %vm730_vm6, %v6595_v46, 0.0  ;;  %v1821_v24 = vsel %vm1544_vm7, %v6604_v9, 0.0  ;;  %vm2360_vm8 = vcmp.eq.s32.totalorder %v8445_v61, %v6607_v15  ;;  %vm3169_vm9 = vcmp.eq.s32.totalorder %v8445_v61, %v6613_v3 }
 0x2a3   : > { %v2765_v31 = vadd.f32 %v2509_v56, %v1949_v16  ;;  %v2077_v19 = vadd.f32 %v1821_v24, %v1007_v54  ;;  %v2637_v63 = vsel %vm2360_vm8, %v6610_v10, 0.0  ;;  %4007 = vmatpush2.msra.mxu1 %v3705_v25  ;;  %v3446_v60 = vsel %vm3169_vm9, %v6623_v59, 0.0 }
 0x2a4   : > { %vm601_vm10 = vcmp.eq.s32.totalorder %v8444_v49, %v6655_v55  ;;  %vm1415_vm11 = vcmp.eq.s32.totalorder %v8444_v49, %v6661_v62  ;;  %vm2231_vm12 = vcmp.eq.s32.totalorder %v8444_v49, %v6670_v17  ;;  %vm3040_vm13 = vcmp.eq.s32.totalorder %v8444_v49, %v6680_v52 }
 0x2a5   : > { %v3574_v5 = vadd.f32 %v3318_v47, %v2765_v31  ;;  %v2893_v37 = vadd.f32 %v2637_v63, %v2077_v19  ;;  %v878_v0 = vsel %vm601_vm10, %v6658_v41, 0.0  ;;  %v1692_v29 = vsel %vm1415_vm11, %v6667_v32, 0.0 }
 0x2a6   : > { %v1948_v38 = vadd.f32 %v1692_v29, %v878_v0  ;;  %v2508_v48 = vsel %vm2231_vm12, %v6673_v51, 0.0  ;;  %vm729_vm14 = vcmp.eq.s32.totalorder %v8445_v61, %v6655_v55  ;;  %v3317_v44 = vsel %vm3040_vm13, %v6687_v40, 0.0  ;;  %v8448_v0 = vld [vmem:[#allocation33_spill] sm:$0xff] }
 0x2a7   : > { %3931 = vmatprep.subr.mxu0 %v3574_v5  ;;  %v3702_v20 = vadd.f32 %v3446_v60, %v2893_v37  ;;  %v1006_v39 = vsel %vm729_vm14, %v6658_v41, 0.0  ;;  %vm1543_vm15 = vcmp.eq.s32.totalorder %v8445_v61, %v6661_v62  ;;  %vm2359_vm0 = vcmp.eq.s32.totalorder %v8445_v61, %v6670_v17 }
 0x2a8   : > { %v2764_v45 = vadd.f32 %v2508_v48, %v1948_v38  ;;  %v1820_v35 = vsel %vm1543_vm15, %v6667_v32, 0.0  ;;  %vm3168_vm1 = vcmp.eq.s32.totalorder %v8445_v61, %v6680_v52  ;;  %v2636_v11 = vsel %vm2359_vm0, %v6673_v51, 0.0 }
 0x2a9   : > { %4008 = vmatprep.subr.mxu1 %v3702_v20  ;;  %v2076_v7 = vadd.f32 %v1820_v35, %v1006_v39  ;;  %v3445_v53 = vsel %vm3168_vm1, %v6687_v40, 0.0  ;;  %vm598_vm2 = vcmp.eq.s32.totalorder %v8446_v34, %v6592_v42  ;;  %vm1412_vm3 = vcmp.eq.s32.totalorder %v8446_v34, %v6598_v21  ;;  %v8449_v35 = vld [vmem:[#allocation34_spill] sm:$0xff] }
 0x2aa   : > { %v3573_v1 = vadd.f32 %v3317_v44, %v2764_v45  ;;  %v875_v36 = vsel %vm598_vm2, %v6595_v46, 0.0  ;;  %vm2228_vm4 = vcmp.eq.s32.totalorder %v8446_v34, %v6607_v15  ;;  %v1689_v4 = vsel %vm1412_vm3, %v6604_v9, 0.0 }
 0x2ab   : > { %v2892_v27 = vadd.f32 %v2636_v11, %v2076_v7  ;;  %v2505_v57 = vsel %vm2228_vm4, %v6610_v10, 0.0  ;;  %vm3037_vm5 = vcmp.eq.s32.totalorder %v8446_v34, %v6613_v3  ;;  %v1945_v13 = vadd.f32 %v1689_v4, %v875_v36 }
 0x2ac   : > { %3932 = vmatpush2.msra.mxu0 %v3573_v1  ;;  %v3314_v50 = vsel %vm3037_vm5, %v6623_v59, 0.0  ;;  %vm726_vm6 = vcmp.eq.s32.totalorder %v8447_v23, %v6592_v42  ;;  %vm1540_vm7 = vcmp.eq.s32.totalorder %v8447_v23, %v6598_v21  ;;  %vm2356_vm8 = vcmp.eq.s32.totalorder %v8447_v23, %v6607_v15 }
 0x2ad   : > { %v3701_v6 = vadd.f32 %v3445_v53, %v2892_v27  ;;  %v1003_v2 = vsel %vm726_vm6, %v6595_v46, 0.0  ;;  %v1817_v33 = vsel %vm1540_vm7, %v6604_v9, 0.0  ;;  %v2761_v49 = vadd.f32 %v2505_v57, %v1945_v13 }
 0x2ae   : > { %v2073_v30 = vadd.f32 %v1817_v33, %v1003_v2  ;;  %v2633_v14 = vsel %vm2356_vm8, %v6610_v10, 0.0  ;;  %vm3165_vm9 = vcmp.eq.s32.totalorder %v8447_v23, %v6613_v3  ;;  %vm597_vm10 = vcmp.eq.s32.totalorder %v8446_v34, %v6655_v55 }
 0x2af   : > { %4009 = vmatpush2.msra.mxu1 %v3701_v6  ;;  %v3442_v58 = vsel %vm3165_vm9, %v6623_v59, 0.0  ;;  %vm1411_vm11 = vcmp.eq.s32.totalorder %v8446_v34, %v6661_v62  ;;  %vm2227_vm12 = vcmp.eq.s32.totalorder %v8446_v34, %v6670_v17  ;;  %v3570_v26 = vadd.f32 %v3314_v50, %v2761_v49 }
 0x2b0   : > { %v2889_v56 = vadd.f32 %v2633_v14, %v2073_v30  ;;  %v874_v16 = vsel %vm597_vm10, %v6658_v41, 0.0  ;;  %v1688_v47 = vsel %vm1411_vm11, %v6667_v32, 0.0  ;;  %v2504_v25 = vsel %vm2227_vm12, %v6673_v51, 0.0 }
 0x2b1   : > { %v1944_v61 = vadd.f32 %v1688_v47, %v874_v16  ;;  %vm3036_vm13 = vcmp.eq.s32.totalorder %v8446_v34, %v6680_v52  ;;  %vm725_vm14 = vcmp.eq.s32.totalorder %v8447_v23, %v6655_v55  ;;  %3933 = vmatprep.subr.mxu0 %v3570_v26  ;;  %vm1539_vm15 = vcmp.eq.s32.totalorder %v8447_v23, %v6661_v62  ;;  %v8450_v16 = vld [vmem:[#allocation35_spill] sm:$0xff] }
 0x2b2   : > { %v3698_v54 = vadd.f32 %v3442_v58, %v2889_v56  ;;  %v3313_v24 = vsel %vm3036_vm13, %v6687_v40, 0.0  ;;  %v1002_v31 = vsel %vm725_vm14, %v6658_v41, 0.0  ;;  %v1816_v63 = vsel %vm1539_vm15, %v6667_v32, 0.0 }
 0x2b3   : > { %v2760_v19 = vadd.f32 %v2504_v25, %v1944_v61  ;;  %vm2355_vm0 = vcmp.eq.s32.totalorder %v8447_v23, %v6670_v17  ;;  %vm3164_vm1 = vcmp.eq.s32.totalorder %v8447_v23, %v6680_v52  ;;  %v2072_v60 = vadd.f32 %v1816_v63, %v1002_v31  ;;  %v8451_v63 = vld [vmem:[#allocation36_spill] sm:$0xff] }
 0x2b4   : > { %4010 = vmatprep.subr.mxu1 %v3698_v54  ;;  %v2632_v5 = vsel %vm2355_vm0, %v6673_v51, 0.0  ;;  %v3441_v37 = vsel %vm3164_vm1, %v6687_v40, 0.0  ;;  %vm594_vm2 = vcmp.eq.s32.totalorder %v8448_v0, %v6592_v42  ;;  %vm1408_vm3 = vcmp.eq.s32.totalorder %v8448_v0, %v6598_v21 }
 0x2b5   : > { %v3569_v29 = vadd.f32 %v3313_v24, %v2760_v19  ;;  %v871_v38 = vsel %vm594_vm2, %v6595_v46, 0.0  ;;  %vm2224_vm4 = vcmp.eq.s32.totalorder %v8448_v0, %v6607_v15  ;;  %v2888_v48 = vadd.f32 %v2632_v5, %v2072_v60 }
 0x2b6   : > { %v1685_v20 = vsel %vm1408_vm3, %v6604_v9, 0.0  ;;  %v2501_v44 = vsel %vm2224_vm4, %v6610_v10, 0.0  ;;  %vm3033_vm5 = vcmp.eq.s32.totalorder %v8448_v0, %v6613_v3  ;;  %vm722_vm6 = vcmp.eq.s32.totalorder %v8449_v35, %v6592_v42 }
 0x2b7   : > { %3934 = vmatpush2.msra.mxu0 %v3569_v29  ;;  %v1941_v39 = vadd.f32 %v1685_v20, %v871_v38  ;;  %v3310_v45 = vsel %vm3033_vm5, %v6623_v59, 0.0  ;;  %vm1536_vm7 = vcmp.eq.s32.totalorder %v8449_v35, %v6598_v21  ;;  %v3697_v7 = vadd.f32 %v3441_v37, %v2888_v48 }
 0x2b8   : > { %v999_v11 = vsel %vm722_vm6, %v6595_v46, 0.0  ;;  %v1813_v53 = vsel %vm1536_vm7, %v6604_v9, 0.0  ;;  %vm2352_vm8 = vcmp.eq.s32.totalorder %v8449_v35, %v6607_v15  ;;  %vm3161_vm9 = vcmp.eq.s32.totalorder %v8449_v35, %v6613_v3 }
 0x2b9   : > { %v2757_v34 = vadd.f32 %v2501_v44, %v1941_v39  ;;  %v2069_v1 = vadd.f32 %v1813_v53, %v999_v11  ;;  %v2629_v36 = vsel %vm2352_vm8, %v6610_v10, 0.0  ;;  %4011 = vmatpush2.msra.mxu1 %v3697_v7  ;;  %v3438_v27 = vsel %vm3161_vm9, %v6623_v59, 0.0 }
 0x2ba   : > { %vm593_vm10 = vcmp.eq.s32.totalorder %v8448_v0, %v6655_v55  ;;  %vm1407_vm11 = vcmp.eq.s32.totalorder %v8448_v0, %v6661_v62  ;;  %vm2223_vm12 = vcmp.eq.s32.totalorder %v8448_v0, %v6670_v17  ;;  %vm3032_vm13 = vcmp.eq.s32.totalorder %v8448_v0, %v6680_v52 }
 0x2bb   : > { %v3566_v4 = vadd.f32 %v3310_v45, %v2757_v34  ;;  %v2885_v57 = vadd.f32 %v2629_v36, %v2069_v1  ;;  %v870_v13 = vsel %vm593_vm10, %v6658_v41, 0.0  ;;  %v1684_v50 = vsel %vm1407_vm11, %v6667_v32, 0.0 }
 0x2bc   : > { %v1940_v23 = vadd.f32 %v1684_v50, %v870_v13  ;;  %v2500_v6 = vsel %vm2223_vm12, %v6673_v51, 0.0  ;;  %vm721_vm14 = vcmp.eq.s32.totalorder %v8449_v35, %v6655_v55  ;;  %v3309_v33 = vsel %vm3032_vm13, %v6687_v40, 0.0  ;;  %v8452_v13 = vld [vmem:[#allocation37_spill] sm:$0xff] }
 0x2bd   : > { %3935 = vmatprep.subr.mxu0 %v3566_v4  ;;  %v3694_v2 = vadd.f32 %v3438_v27, %v2885_v57  ;;  %v998_v49 = vsel %vm721_vm14, %v6658_v41, 0.0  ;;  %vm1535_vm15 = vcmp.eq.s32.totalorder %v8449_v35, %v6661_v62  ;;  %vm2351_vm0 = vcmp.eq.s32.totalorder %v8449_v35, %v6670_v17 }
 0x2be   : > { %v2756_v30 = vadd.f32 %v2500_v6, %v1940_v23  ;;  %v1812_v14 = vsel %vm1535_vm15, %v6667_v32, 0.0  ;;  %vm3160_vm1 = vcmp.eq.s32.totalorder %v8449_v35, %v6680_v52  ;;  %v2628_v26 = vsel %vm2351_vm0, %v6673_v51, 0.0 }
 0x2bf   : > { %4012 = vmatprep.subr.mxu1 %v3694_v2  ;;  %v2068_v58 = vadd.f32 %v1812_v14, %v998_v49  ;;  %v3437_v56 = vsel %vm3160_vm1, %v6687_v40, 0.0  ;;  %vm590_vm2 = vcmp.eq.s32.totalorder %v8450_v16, %v6592_v42  ;;  %vm1404_vm3 = vcmp.eq.s32.totalorder %v8450_v16, %v6598_v21  ;;  %v8453_v14 = vld [vmem:[#allocation38_spill] sm:$0xff] }
 0x2c0   : > { %v3565_v47 = vadd.f32 %v3309_v33, %v2756_v30  ;;  %v867_v61 = vsel %vm590_vm2, %v6595_v46, 0.0  ;;  %vm2220_vm4 = vcmp.eq.s32.totalorder %v8450_v16, %v6607_v15  ;;  %v1681_v54 = vsel %vm1404_vm3, %v6604_v9, 0.0 }
 0x2c1   : > { %v2884_v25 = vadd.f32 %v2628_v26, %v2068_v58  ;;  %v2497_v24 = vsel %vm2220_vm4, %v6610_v10, 0.0  ;;  %vm3029_vm5 = vcmp.eq.s32.totalorder %v8450_v16, %v6613_v3  ;;  %v1937_v31 = vadd.f32 %v1681_v54, %v867_v61 }
 0x2c2   : > { %3936 = vmatpush2.msra.mxu0 %v3565_v47  ;;  %v3306_v19 = vsel %vm3029_vm5, %v6623_v59, 0.0  ;;  %vm718_vm6 = vcmp.eq.s32.totalorder %v8451_v63, %v6592_v42  ;;  %vm1532_vm7 = vcmp.eq.s32.totalorder %v8451_v63, %v6598_v21  ;;  %vm2348_vm8 = vcmp.eq.s32.totalorder %v8451_v63, %v6607_v15 }
 0x2c3   : > { %v3693_v60 = vadd.f32 %v3437_v56, %v2884_v25  ;;  %v995_v5 = vsel %vm718_vm6, %v6595_v46, 0.0  ;;  %v1809_v37 = vsel %vm1532_vm7, %v6604_v9, 0.0  ;;  %v2753_v0 = vadd.f32 %v2497_v24, %v1937_v31 }
 0x2c4   : > { %v2065_v29 = vadd.f32 %v1809_v37, %v995_v5  ;;  %v2625_v38 = vsel %vm2348_vm8, %v6610_v10, 0.0  ;;  %vm3157_vm9 = vcmp.eq.s32.totalorder %v8451_v63, %v6613_v3  ;;  %vm589_vm10 = vcmp.eq.s32.totalorder %v8450_v16, %v6655_v55 }
 0x2c5   : > { %4013 = vmatpush2.msra.mxu1 %v3693_v60  ;;  %v3434_v48 = vsel %vm3157_vm9, %v6623_v59, 0.0  ;;  %vm1403_vm11 = vcmp.eq.s32.totalorder %v8450_v16, %v6661_v62  ;;  %vm2219_vm12 = vcmp.eq.s32.totalorder %v8450_v16, %v6670_v17  ;;  %v3562_v20 = vadd.f32 %v3306_v19, %v2753_v0 }
 0x2c6   : > { %v2881_v44 = vadd.f32 %v2625_v38, %v2065_v29  ;;  %v866_v39 = vsel %vm589_vm10, %v6658_v41, 0.0  ;;  %v1680_v45 = vsel %vm1403_vm11, %v6667_v32, 0.0  ;;  %v2496_v7 = vsel %vm2219_vm12, %v6673_v51, 0.0 }
 0x2c7   : > { %v1936_v35 = vadd.f32 %v1680_v45, %v866_v39  ;;  %vm3028_vm13 = vcmp.eq.s32.totalorder %v8450_v16, %v6680_v52  ;;  %vm717_vm14 = vcmp.eq.s32.totalorder %v8451_v63, %v6655_v55  ;;  %3937 = vmatprep.subr.mxu0 %v3562_v20  ;;  %vm1531_vm15 = vcmp.eq.s32.totalorder %v8451_v63, %v6661_v62  ;;  %v8454_v39 = vld [vmem:[#allocation39_spill] sm:$0xff] }
 0x2c8   : > { %v3690_v11 = vadd.f32 %v3434_v48, %v2881_v44  ;;  %v3305_v53 = vsel %vm3028_vm13, %v6687_v40, 0.0  ;;  %v994_v34 = vsel %vm717_vm14, %v6658_v41, 0.0  ;;  %v1808_v36 = vsel %vm1531_vm15, %v6667_v32, 0.0 }
 0x2c9   : > { %v2752_v1 = vadd.f32 %v2496_v7, %v1936_v35  ;;  %vm2347_vm0 = vcmp.eq.s32.totalorder %v8451_v63, %v6670_v17  ;;  %vm3156_vm1 = vcmp.eq.s32.totalorder %v8451_v63, %v6680_v52  ;;  %v2064_v27 = vadd.f32 %v1808_v36, %v994_v34  ;;  %v8455_v36 = vld [vmem:[#allocation40_spill] sm:$0xff] }
 0x2ca   : > { %4014 = vmatprep.subr.mxu1 %v3690_v11  ;;  %v2624_v4 = vsel %vm2347_vm0, %v6673_v51, 0.0  ;;  %v3433_v57 = vsel %vm3156_vm1, %v6687_v40, 0.0  ;;  %vm586_vm2 = vcmp.eq.s32.totalorder %v8452_v13, %v6592_v42  ;;  %vm1400_vm3 = vcmp.eq.s32.totalorder %v8452_v13, %v6598_v21 }
 0x2cb   : > { %v3561_v50 = vadd.f32 %v3305_v53, %v2752_v1  ;;  %v863_v23 = vsel %vm586_vm2, %v6595_v46, 0.0  ;;  %vm2216_vm4 = vcmp.eq.s32.totalorder %v8452_v13, %v6607_v15  ;;  %v2880_v6 = vadd.f32 %v2624_v4, %v2064_v27 }
 0x2cc   : > { %v1677_v2 = vsel %vm1400_vm3, %v6604_v9, 0.0  ;;  %v2493_v33 = vsel %vm2216_vm4, %v6610_v10, 0.0  ;;  %vm3025_vm5 = vcmp.eq.s32.totalorder %v8452_v13, %v6613_v3  ;;  %vm714_vm6 = vcmp.eq.s32.totalorder %v8453_v14, %v6592_v42 }
 0x2cd   : > { %3938 = vmatpush2.msra.mxu0 %v3561_v50  ;;  %v1933_v49 = vadd.f32 %v1677_v2, %v863_v23  ;;  %v3302_v30 = vsel %vm3025_vm5, %v6623_v59, 0.0  ;;  %vm1528_vm7 = vcmp.eq.s32.totalorder %v8453_v14, %v6598_v21  ;;  %v3689_v58 = vadd.f32 %v3433_v57, %v2880_v6 }
 0x2ce   : > { %v991_v26 = vsel %vm714_vm6, %v6595_v46, 0.0  ;;  %v1805_v56 = vsel %vm1528_vm7, %v6604_v9, 0.0  ;;  %vm2344_vm8 = vcmp.eq.s32.totalorder %v8453_v14, %v6607_v15  ;;  %vm3153_vm9 = vcmp.eq.s32.totalorder %v8453_v14, %v6613_v3 }
 0x2cf   : > { %v2749_v16 = vadd.f32 %v2493_v33, %v1933_v49  ;;  %v2061_v47 = vadd.f32 %v1805_v56, %v991_v26  ;;  %v2621_v61 = vsel %vm2344_vm8, %v6610_v10, 0.0  ;;  %4015 = vmatpush2.msra.mxu1 %v3689_v58  ;;  %v3430_v25 = vsel %vm3153_vm9, %v6623_v59, 0.0 }
 0x2d0   : > { %vm585_vm10 = vcmp.eq.s32.totalorder %v8452_v13, %v6655_v55  ;;  %vm1399_vm11 = vcmp.eq.s32.totalorder %v8452_v13, %v6661_v62  ;;  %vm2215_vm12 = vcmp.eq.s32.totalorder %v8452_v13, %v6670_v17  ;;  %vm3024_vm13 = vcmp.eq.s32.totalorder %v8452_v13, %v6680_v52 }
 0x2d1   : > { %v3558_v54 = vadd.f32 %v3302_v30, %v2749_v16  ;;  %v2877_v24 = vadd.f32 %v2621_v61, %v2061_v47  ;;  %v862_v31 = vsel %vm585_vm10, %v6658_v41, 0.0  ;;  %v1676_v19 = vsel %vm1399_vm11, %v6667_v32, 0.0 }
 0x2d2   : > { %v1932_v63 = vadd.f32 %v1676_v19, %v862_v31  ;;  %v2492_v60 = vsel %vm2215_vm12, %v6673_v51, 0.0  ;;  %vm713_vm14 = vcmp.eq.s32.totalorder %v8453_v14, %v6655_v55  ;;  %v3301_v37 = vsel %vm3024_vm13, %v6687_v40, 0.0 }
 0x2d3   : > { %3939 = vmatprep.subr.mxu0 %v3558_v54  ;;  %v3686_v5 = vadd.f32 %v3430_v25, %v2877_v24  ;;  %v990_v0 = vsel %vm713_vm14, %v6658_v41, 0.0  ;;  %vm1527_vm15 = vcmp.eq.s32.totalorder %v8453_v14, %v6661_v62  ;;  %vm2343_vm0 = vcmp.eq.s32.totalorder %v8453_v14, %v6670_v17 }
 0x2d4   : > { %v2748_v29 = vadd.f32 %v2492_v60, %v1932_v63  ;;  %v1804_v38 = vsel %vm1527_vm15, %v6667_v32, 0.0  ;;  %vm3152_vm1 = vcmp.eq.s32.totalorder %v8453_v14, %v6680_v52  ;;  %v2620_v20 = vsel %vm2343_vm0, %v6673_v51, 0.0 }
 0x2d5   : > { %4016 = vmatprep.subr.mxu1 %v3686_v5  ;;  %v2060_v48 = vadd.f32 %v1804_v38, %v990_v0  ;;  %v3429_v44 = vsel %vm3152_vm1, %v6687_v40, 0.0  ;;  %vm582_vm2 = vcmp.eq.s32.totalorder %v8454_v39, %v6592_v42  ;;  %vm1396_vm3 = vcmp.eq.s32.totalorder %v8454_v39, %v6598_v21 }
 0x2d6   : > { %v3557_v45 = vadd.f32 %v3301_v37, %v2748_v29  ;;  %v859_v35 = vsel %vm582_vm2, %v6595_v46, 0.0  ;;  %vm2212_vm4 = vcmp.eq.s32.totalorder %v8454_v39, %v6607_v15  ;;  %v1673_v11 = vsel %vm1396_vm3, %v6604_v9, 0.0 }
 0x2d7   : > { %v2876_v7 = vadd.f32 %v2620_v20, %v2060_v48  ;;  %v2489_v53 = vsel %vm2212_vm4, %v6610_v10, 0.0  ;;  %vm3021_vm5 = vcmp.eq.s32.totalorder %v8454_v39, %v6613_v3  ;;  %v1929_v34 = vadd.f32 %v1673_v11, %v859_v35 }
 0x2d8   : > { %3940 = vmatpush2.msra.mxu0 %v3557_v45  ;;  %v3298_v1 = vsel %vm3021_vm5, %v6623_v59, 0.0  ;;  %vm710_vm6 = vcmp.eq.s32.totalorder %v8455_v36, %v6592_v42  ;;  %vm1524_vm7 = vcmp.eq.s32.totalorder %v8455_v36, %v6598_v21  ;;  %vm2340_vm8 = vcmp.eq.s32.totalorder %v8455_v36, %v6607_v15 }
 0x2d9   : > { %v3685_v27 = vadd.f32 %v3429_v44, %v2876_v7  ;;  %v987_v4 = vsel %vm710_vm6, %v6595_v46, 0.0  ;;  %v1801_v57 = vsel %vm1524_vm7, %v6604_v9, 0.0  ;;  %v2745_v13 = vadd.f32 %v2489_v53, %v1929_v34 }
 0x2da   : > { %v2057_v50 = vadd.f32 %v1801_v57, %v987_v4  ;;  %v2617_v23 = vsel %vm2340_vm8, %v6610_v10, 0.0  ;;  %vm3149_vm9 = vcmp.eq.s32.totalorder %v8455_v36, %v6613_v3  ;;  %vm581_vm10 = vcmp.eq.s32.totalorder %v8454_v39, %v6655_v55 }
 0x2db   : > { %4017 = vmatpush2.msra.mxu1 %v3685_v27  ;;  %v3426_v6 = vsel %vm3149_vm9, %v6623_v59, 0.0  ;;  %vm1395_vm11 = vcmp.eq.s32.totalorder %v8454_v39, %v6661_v62  ;;  %vm2211_vm12 = vcmp.eq.s32.totalorder %v8454_v39, %v6670_v17  ;;  %v3554_v2 = vadd.f32 %v3298_v1, %v2745_v13 }
 0x2dc   : > { %v2873_v33 = vadd.f32 %v2617_v23, %v2057_v50  ;;  %v858_v49 = vsel %vm581_vm10, %v6658_v41, 0.0  ;;  %v1672_v30 = vsel %vm1395_vm11, %v6667_v32, 0.0  ;;  %v2488_v58 = vsel %vm2211_vm12, %v6673_v51, 0.0 }
 0x2dd   : > { %v1928_v14 = vadd.f32 %v1672_v30, %v858_v49  ;;  %vm3020_vm13 = vcmp.eq.s32.totalorder %v8454_v39, %v6680_v52  ;;  %vm709_vm14 = vcmp.eq.s32.totalorder %v8455_v36, %v6655_v55  ;;  %3941 = vmatprep.subr.mxu0 %v3554_v2  ;;  %vm1523_vm15 = vcmp.eq.s32.totalorder %v8455_v36, %v6661_v62 }
 0x2de   : > { %v3682_v26 = vadd.f32 %v3426_v6, %v2873_v33  ;;  %v3297_v56 = vsel %vm3020_vm13, %v6687_v40, 0.0  ;;  %v986_v16 = vsel %vm709_vm14, %v6658_v41, 0.0  ;;  %v1800_v61 = vsel %vm1523_vm15, %v6667_v32, 0.0 }
 0x2df   : > { %v2744_v47 = vadd.f32 %v2488_v58, %v1928_v14  ;;  %vm2339_vm0 = vcmp.eq.s32.totalorder %v8455_v36, %v6670_v17  ;;  %vm3148_vm1 = vcmp.eq.s32.totalorder %v8455_v36, %v6680_v52  ;;  %v2056_v25 = vadd.f32 %v1800_v61, %v986_v16 }
 0x2e0   : > { %4018 = vmatprep.subr.mxu1 %v3682_v26  ;;  %v2616_v54 = vsel %vm2339_vm0, %v6673_v51, 0.0  ;;  %v3425_v24 = vsel %vm3148_vm1, %v6687_v40, 0.0  ;;  %vm578_vm2 = vcmp.eq.s32.totalorder %v6425_v18, %v6592_v42  ;;  %vm1392_vm3 = vcmp.eq.s32.totalorder %v6425_v18, %v6598_v21 }
 0x2e1   : > { %v3553_v31 = vadd.f32 %v3297_v56, %v2744_v47  ;;  %v855_v19 = vsel %vm578_vm2, %v6595_v46, 0.0  ;;  %vm2208_vm4 = vcmp.eq.s32.totalorder %v6425_v18, %v6607_v15  ;;  %v2872_v63 = vadd.f32 %v2616_v54, %v2056_v25 }
 0x2e2   : > { %v1669_v60 = vsel %vm1392_vm3, %v6604_v9, 0.0  ;;  %v2485_v5 = vsel %vm2208_vm4, %v6610_v10, 0.0  ;;  %vm3017_vm5 = vcmp.eq.s32.totalorder %v6425_v18, %v6613_v3  ;;  %vm706_vm6 = vcmp.eq.s32.totalorder %v6428_v12, %v6592_v42 }
 0x2e3   : > { %3942 = vmatpush2.msra.mxu0 %v3553_v31  ;;  %v1925_v37 = vadd.f32 %v1669_v60, %v855_v19  ;;  %v3294_v0 = vsel %vm3017_vm5, %v6623_v59, 0.0  ;;  %vm1520_vm7 = vcmp.eq.s32.totalorder %v6428_v12, %v6598_v21  ;;  %v3681_v29 = vadd.f32 %v3425_v24, %v2872_v63 }
 0x2e4   : > { %v983_v38 = vsel %vm706_vm6, %v6595_v46, 0.0  ;;  %v1797_v48 = vsel %vm1520_vm7, %v6604_v9, 0.0  ;;  %vm2336_vm8 = vcmp.eq.s32.totalorder %v6428_v12, %v6607_v15  ;;  %vm3145_vm9 = vcmp.eq.s32.totalorder %v6428_v12, %v6613_v3 }
 0x2e5   : > { %v2741_v20 = vadd.f32 %v2485_v5, %v1925_v37  ;;  %v2053_v44 = vadd.f32 %v1797_v48, %v983_v38  ;;  %v2613_v39 = vsel %vm2336_vm8, %v6610_v10, 0.0  ;;  %4019 = vmatpush2.msra.mxu1 %v3681_v29  ;;  %v3422_v45 = vsel %vm3145_vm9, %v6623_v59, 0.0  ;;  %v8137_v5 = vpop.f32.mrf.mxu0  ;;  %v8139_v37 = vpop.f32.mrf.mxu1 }
 0x2e6   : > { %vm577_vm10 = vcmp.eq.s32.totalorder %v6425_v18, %v6655_v55  ;;  %vm1391_vm11 = vcmp.eq.s32.totalorder %v6425_v18, %v6661_v62  ;;  %vm2207_vm12 = vcmp.eq.s32.totalorder %v6425_v18, %v6670_v17  ;;  %vm3016_vm13 = vcmp.eq.s32.totalorder %v6425_v18, %v6680_v52 }
 0x2e7   : > { %v3550_v35 = vadd.f32 %v3294_v0, %v2741_v20  ;;  %v2869_v7 = vadd.f32 %v2613_v39, %v2053_v44  ;;  %v854_v11 = vsel %vm577_vm10, %v6658_v41, 0.0  ;;  %v1668_v53 = vsel %vm1391_vm11, %v6667_v32, 0.0 }
 0x2e8   : > { %v1924_v34 = vadd.f32 %v1668_v53, %v854_v11  ;;  %v2484_v1 = vsel %vm2207_vm12, %v6673_v51, 0.0  ;;  %vm705_vm14 = vcmp.eq.s32.totalorder %v6428_v12, %v6655_v55  ;;  %v3293_v27 = vsel %vm3016_vm13, %v6687_v40, 0.0 }
 0x2e9   : > { %3943 = vmatprep.subr.mxu0 %v3550_v35  ;;  %v3678_v36 = vadd.f32 %v3422_v45, %v2869_v7  ;;  %v982_v4 = vsel %vm705_vm14, %v6658_v41, 0.0  ;;  %vm1519_vm15 = vcmp.eq.s32.totalorder %v6428_v12, %v6661_v62  ;;  %vm2335_vm0 = vcmp.eq.s32.totalorder %v6428_v12, %v6670_v17  ;;  %v3799_v7 = vpop.f32.mrf.mxu0 }
 0x2ea   : > { %v2740_v57 = vadd.f32 %v2484_v1, %v1924_v34  ;;  %v1796_v13 = vsel %vm1519_vm15, %v6667_v32, 0.0  ;;  %vm3144_vm1 = vcmp.eq.s32.totalorder %v6428_v12, %v6680_v52  ;;  %v2612_v50 = vsel %vm2335_vm0, %v6673_v51, 0.0 }
 0x2eb   : > { %4020 = vmatprep.subr.mxu1 %v3678_v36  ;;  %v2052_v18 = vadd.f32 %v1796_v13, %v982_v4  ;;  %v3421_v23 = vsel %vm3144_vm1, %v6687_v40, 0.0  ;;  %vm574_vm2 = vcmp.eq.s32.totalorder %v6431_v8, %v6592_v42  ;;  %vm1388_vm3 = vcmp.eq.s32.totalorder %v6431_v8, %v6598_v21 }
 0x2ec   : > { %v3549_v6 = vadd.f32 %v3293_v27, %v2740_v57  ;;  %v851_v2 = vsel %vm574_vm2, %v6595_v46, 0.0  ;;  %vm2204_vm4 = vcmp.eq.s32.totalorder %v6431_v8, %v6607_v15  ;;  %v1665_v12 = vsel %vm1388_vm3, %v6604_v9, 0.0 }
 0x2ed   : > { %v2868_v33 = vadd.f32 %v2612_v50, %v2052_v18  ;;  %v2481_v49 = vsel %vm2204_vm4, %v6610_v10, 0.0  ;;  %vm3013_vm5 = vcmp.eq.s32.totalorder %v6431_v8, %v6613_v3  ;;  %v1921_v30 = vadd.f32 %v1665_v12, %v851_v2 }
 0x2ee   : > { %3944 = vmatpush2.msra.mxu0 %v3549_v6  ;;  %v3290_v14 = vsel %vm3013_vm5, %v6623_v59, 0.0  ;;  %vm702_vm6 = vcmp.eq.s32.totalorder %v6434_v43, %v6592_v42  ;;  %vm1516_vm7 = vcmp.eq.s32.totalorder %v6434_v43, %v6598_v21  ;;  %vm2332_vm8 = vcmp.eq.s32.totalorder %v6434_v43, %v6607_v15 }
 0x2ef   : > { %v3677_v58 = vadd.f32 %v3421_v23, %v2868_v33  ;;  %v979_v26 = vsel %vm702_vm6, %v6595_v46, 0.0  ;;  %v1793_v56 = vsel %vm1516_vm7, %v6604_v9, 0.0  ;;  %v2737_v16 = vadd.f32 %v2481_v49, %v1921_v30  ;;  %v3803_v23 = vpop.f32.mrf.mxu0 }
 0x2f0   : > { %v2049_v47 = vadd.f32 %v1793_v56, %v979_v26  ;;  %v2609_v61 = vsel %vm2332_vm8, %v6610_v10, 0.0  ;;  %vm3141_vm9 = vcmp.eq.s32.totalorder %v6434_v43, %v6613_v3  ;;  %vm573_vm10 = vcmp.eq.s32.totalorder %v6431_v8, %v6655_v55 }
 0x2f1   : > { %4021 = vmatpush2.msra.mxu1 %v3677_v58  ;;  %v3418_v25 = vsel %vm3141_vm9, %v6623_v59, 0.0  ;;  %vm1387_vm11 = vcmp.eq.s32.totalorder %v6431_v8, %v6661_v62  ;;  %vm2203_vm12 = vcmp.eq.s32.totalorder %v6431_v8, %v6670_v17  ;;  %v3546_v54 = vadd.f32 %v3290_v14, %v2737_v16  ;;  %v3805_v12 = vpop.f32.mrf.mxu0 }
 0x2f2   : > { %v2865_v24 = vadd.f32 %v2609_v61, %v2049_v47  ;;  %v850_v31 = vsel %vm573_vm10, %v6658_v41, 0.0  ;;  %v1664_v19 = vsel %vm1387_vm11, %v6667_v32, 0.0  ;;  %v2480_v60 = vsel %vm2203_vm12, %v6673_v51, 0.0  ;;  %v4636_v47 = vld [vmem:[%s8297_s2 + $0x20] sm:$0xff]  ;;  %v4637_v61 = vld [vmem:[%s8297_s2 + $0x30] sm:$0xff] }
 0x2f3   : > { %v1920_v63 = vadd.f32 %v1664_v19, %v850_v31  ;;  %vm3012_vm13 = vcmp.eq.s32.totalorder %v6431_v8, %v6680_v52  ;;  %vm701_vm14 = vcmp.eq.s32.totalorder %v6434_v43, %v6655_v55  ;;  %3945 = vmatprep.subr.mxu0 %v3546_v54  ;;  %vm1515_vm15 = vcmp.eq.s32.totalorder %v6434_v43, %v6661_v62  ;;  %v4047_v54 = vld [vmem:[%s4753_s20] sm:$0xff] }
 0x2f4   : > { %v3674_v0 = vadd.f32 %v3418_v25, %v2865_v24  ;;  %v3289_v29 = vsel %vm3012_vm13, %v6687_v40, 0.0  ;;  %v978_v38 = vsel %vm701_vm14, %v6658_v41, 0.0  ;;  %v1792_v20 = vsel %vm1515_vm15, %v6667_v32, 0.0  ;;  %v4048_v24 = vld [vmem:[%s4753_s20 + $0x8] sm:$0xff] }
 0x2f5   : > { %v2736_v48 = vadd.f32 %v2480_v60, %v1920_v63  ;;  %vm2331_vm0 = vcmp.eq.s32.totalorder %v6434_v43, %v6670_v17  ;;  %vm3140_vm1 = vcmp.eq.s32.totalorder %v6434_v43, %v6680_v52  ;;  %v2048_v8 = vadd.f32 %v1792_v20, %v978_v38  ;;  %v3876_v43 = vpop.f32.mrf.mxu1 }
 0x2f6   : > { %4022 = vmatprep.subr.mxu1 %v3674_v0  ;;  %v2608_v44 = vsel %vm2331_vm0, %v6673_v51, 0.0  ;;  %v3417_v39 = vsel %vm3140_vm1, %v6687_v40, 0.0  ;;  %vm570_vm2 = vcmp.eq.s32.totalorder %v6437_v22, %v6592_v42  ;;  %vm1384_vm3 = vcmp.eq.s32.totalorder %v6437_v22, %v6598_v21 }
 0x2f7   : > { %v3545_v45 = vadd.f32 %v3289_v29, %v2736_v48  ;;  %v847_v35 = vsel %vm570_vm2, %v6595_v46, 0.0  ;;  %vm2200_vm4 = vcmp.eq.s32.totalorder %v6437_v22, %v6607_v15  ;;  %v2864_v11 = vadd.f32 %v2608_v44, %v2048_v8  ;;  %v4039_v44 = vld [vmem:[#allocation2 + $0x30] sm:$0xff] }
 0x2f8   : > { %v1661_v53 = vsel %vm1384_vm3, %v6604_v9, 0.0  ;;  %v2477_v34 = vsel %vm2200_vm4, %v6610_v10, 0.0  ;;  %vm3009_vm5 = vcmp.eq.s32.totalorder %v6437_v22, %v6613_v3  ;;  %vm698_vm6 = vcmp.eq.s32.totalorder %v6440_v28, %v6592_v42  ;;  %v3880_v42 = vpop.f32.mrf.mxu1 }
 0x2f9   : > { %3946 = vmatpush2.msra.mxu0 %v3545_v45  ;;  %v1917_v1 = vadd.f32 %v1661_v53, %v847_v35  ;;  %v3286_v36 = vsel %vm3009_vm5, %v6623_v59, 0.0  ;;  %vm1512_vm7 = vcmp.eq.s32.totalorder %v6440_v28, %v6598_v21  ;;  %v3673_v27 = vadd.f32 %v3417_v39, %v2864_v11  ;;  %v4040_v35 = vld [vmem:[#allocation2] sm:$0xff]  ;;  %v4043_v53 = vld [vmem:[#allocation2 + $0x8] sm:$0xff] }
 0x2fa   : > { %v975_v4 = vsel %vm698_vm6, %v6595_v46, 0.0  ;;  %v1789_v57 = vsel %vm1512_vm7, %v6604_v9, 0.0  ;;  %vm2328_vm8 = vcmp.eq.s32.totalorder %v6440_v28, %v6607_v15  ;;  %vm3137_vm9 = vcmp.eq.s32.totalorder %v6440_v28, %v6613_v3  ;;  %v3882_v49 = vpop.f32.mrf.mxu1 }
 0x2fb   : > { %v2733_v13 = vadd.f32 %v2477_v34, %v1917_v1  ;;  %v2045_v18 = vadd.f32 %v1789_v57, %v975_v4  ;;  %v2605_v50 = vsel %vm2328_vm8, %v6610_v10, 0.0  ;;  %4023 = vmatpush2.msra.mxu1 %v3673_v27  ;;  %v3414_v21 = vsel %vm3137_vm9, %v6623_v59, 0.0  ;;  %v4044_v34 = vld [vmem:[#allocation2 + $0x20] sm:$0xff]  ;;  %v4041_v4 = vld [vmem:[#allocation2 + $0x18] sm:$0xff] }
 0x2fc   : > { %vm569_vm10 = vcmp.eq.s32.totalorder %v6437_v22, %v6655_v55  ;;  %vm1383_vm11 = vcmp.eq.s32.totalorder %v6437_v22, %v6661_v62  ;;  %vm2199_vm12 = vcmp.eq.s32.totalorder %v6437_v22, %v6670_v17  ;;  %vm3008_vm13 = vcmp.eq.s32.totalorder %v6437_v22, %v6680_v52 }
 0x2fd   : > { %v3542_v46 = vadd.f32 %v3286_v36, %v2733_v13  ;;  %v2861_v9 = vadd.f32 %v2605_v50, %v2045_v18  ;;  %v846_v15 = vsel %vm569_vm10, %v6658_v41, 0.0  ;;  %v1660_v10 = vsel %vm1383_vm11, %v6667_v32, 0.0  ;;  %v4042_v13 = vld [vmem:[#allocation2 + $0x10] sm:$0xff] }
 0x2fe   : > { %v1916_v3 = vadd.f32 %v1660_v10, %v846_v15  ;;  %v2476_v6 = vsel %vm2199_vm12, %v6673_v51, 0.0  ;;  %vm697_vm14 = vcmp.eq.s32.totalorder %v6440_v28, %v6655_v55  ;;  %v3285_v2 = vsel %vm3008_vm13, %v6687_v40, 0.0 }
 0x2ff   : > { %3947 = vmatprep.subr.mxu0 %v3542_v46  ;;  %v3670_v59 = vadd.f32 %v3414_v21, %v2861_v9  ;;  %v974_v33 = vsel %vm697_vm14, %v6658_v41, 0.0  ;;  %vm1511_vm15 = vcmp.eq.s32.totalorder %v6440_v28, %v6661_v62  ;;  %vm2327_vm0 = vcmp.eq.s32.totalorder %v6440_v28, %v6670_v17  ;;  %v4046_v46 = vld [vmem:[#allocation2 + $0x38] sm:$0xff] }
 0x300   : > { %v2732_v30 = vadd.f32 %v2476_v6, %v1916_v3  ;;  %v1788_v14 = vsel %vm1511_vm15, %v6667_v32, 0.0  ;;  %vm3136_vm1 = vcmp.eq.s32.totalorder %v6440_v28, %v6680_v52  ;;  %v2604_v55 = vsel %vm2327_vm0, %v6673_v51, 0.0  ;;  %v4632_v32 = vld [vmem:[%s8297_s2] sm:$0xff]  ;;  %v4633_v28 = vld [vmem:[%s8297_s2 + $0x28] sm:$0xff]  ;;  %v4634_v52 = vld [vmem:[%s8297_s2 + $0x10] sm:$0xff] }
 0x301   : > { %4024 = vmatprep.subr.mxu1 %v3670_v59  ;;  %v2044_v22 = vadd.f32 %v1788_v14, %v974_v33  ;;  %v3413_v41 = vsel %vm3136_vm1, %v6687_v40, 0.0  ;;  %v3881_v26 = vadd.f32 %v3880_v42, %v3803_v23  ;;  %v3883_v62 = vadd.f32 %v3882_v49, %v3805_v12  ;;  %v4635_v40 = vld [vmem:[%s8297_s2 + $0x38] sm:$0xff]  ;;  %v4045_v23 = vld [vmem:[#allocation2 + $0x28] sm:$0xff] }
 0x302   : > { %v3541_v58 = vadd.f32 %v3285_v2, %v2732_v30  ;;  %v3877_v17 = vadd.f32 %v3876_v43, %v3799_v7  ;;  %v3875_v51 = vadd.f32 %v8139_v37, %v8137_v5  ;;  %v4673_v25 = vmov 0.0  }
 0x303   : > { %v2860_v56 = vadd.f32 %v2604_v55, %v2044_v22  ;;  %vm4049_vm2 = vcmask 130048  }
 0x304   : > { %3948 = vmatpush2.msra.mxu0 %v3541_v58 }
 0x305   : > { %v3669_v16 = vadd.f32 %v3413_v41, %v2860_v56  ;;  %3950 = vmatmul.mubr.f32.vlgmr.msra.gmra.mxu0 %v4632_v32  ;;  %4084 = vmatprep.subr.mxu0 %v3883_v62 }
 0x306   : > { %3955 = vmatprep.mubr.f32.mxu0 %v4633_v28  ;;  %4085 = vmatpush1.msra.mxu0 %v3881_v26 }
 0x307   : > { %4025 = vmatpush2.msra.mxu1 %v3669_v16  ;;  %4086 = vmatprep.subr.mxu0 %v3877_v17 }
 0x308   : > { %4027 = vmatmul.mubr.f32.vlgmr.msra.gmra.mxu1 %v4634_v52  ;;  %4087 = vmatpush1.msra.mxu0 %v3875_v51 }
 0x309   : > { %4032 = vmatprep.mubr.f32.mxu1 %v4635_v40  ;;  %3956 = vmatmul.mubr.f32.gmra.mxu0 %v4636_v47 }
 0x30a   : > { %4120 = vmatprep.mubr.f32.mxu0 %v4673_v25 }
 0x30c   : > { %4033 = vmatmul.mubr.f32.gmra.mxu1 %v4637_v61 }
 0x30d   : > { %4197 = vmatprep.mubr.f32.mxu1 %v4673_v25  ;;  %4561 = vmatmul.mubr.msk.f32.vlgmr.msra.gmra.mxu0 %vm4049_vm2, %v4047_v54 }
 0x30e   : > { %4126 = vmatprep.mubr.f32.mxu0 %v4673_v25 }
 0x311   : > { %4562 = vmatmul.mubr.msk.f32.gmra.mxu0 %vm4049_vm2, %v4048_v24 }
 0x3c5   : > { %v3951_v31 = vpop.f32.mrf.mxu0 }
 0x3c7   : > { %v3953_v19 = vpop.f32.mrf.mxu0 }
 0x3c8   : > { %v4028_v63 = vpop.f32.mrf.mxu1 }
 0x3c9   : > { %v3957_v60 = vpop.f32.mrf.mxu0  ;;  %v4029_v8 = vadd.f32 %v4028_v63, %v3951_v31 }
 0x3ca   : > { %v4030_v5 = vpop.f32.mrf.mxu1 }
 0x3cb   : > { %v3959_v0 = vpop.f32.mrf.mxu0  ;;  %v4031_v20 = vadd.f32 %v4030_v5, %v3953_v19 }
 0x3cc   : > { %v4034_v37 = vpop.f32.mrf.mxu1 }
 0x3cd   : > { %v4035_v48 = vadd.f32 %v4034_v37, %v3957_v60  ;;  %v4122_v39 = vpop.f32.mrf.mxu0 }
 0x3ce   : > { %v4036_v29 = vpop.f32.mrf.mxu1  ;;  %v4210_v45 = vadd.f32 %v4122_v39, %v4039_v44 }
 0x3cf   : > { %v4037_v38 = vadd.f32 %v4036_v29, %v3959_v0  ;;  %v4124_v7 = vpop.f32.mrf.mxu0 }
 0x3d0   : > { %4218 = vst [vmem:[#allocation2 + $0x30] sm:$0xff] %v4210_v45  ;;  %v4211_v43 = vadd.f32 %v4124_v7, %v4040_v35 }
 0x3d1   : > { %4161 = vmatprep.subr.mxu1 %v4037_v38  ;;  %v4128_v11 = vpop.f32.mrf.mxu0 }
 0x3d2   : > { %4162 = vmatpush1.msra.mxu1 %v4035_v48  ;;  %4219 = vst [vmem:[#allocation2] sm:$0xff] %v4211_v43  ;;  %v4214_v36 = vadd.f32 %v4128_v11, %v4043_v53 }
 0x3d3   : > { %4163 = vmatprep.subr.mxu1 %v4031_v20  ;;  %v4130_v1 = vpop.f32.mrf.mxu0 }
 0x3d4   : > { %4164 = vmatpush1.msra.mxu1 %v4029_v8  ;;  %v4215_v27 = vadd.f32 %v4130_v1, %v4044_v34  ;;  %4222 = vst [vmem:[#allocation2 + $0x8] sm:$0xff] %v4214_v36 }
 0x3d5   : > { %4563 = vmatmul.mubr.msk.f32.vlgmr.msra.gmra.mxu1 %vm4049_vm2, %v4047_v54 }
 0x3d6   : > { %4203 = vmatprep.mubr.f32.mxu1 %v4673_v25  ;;  %4223 = vst [vmem:[#allocation2 + $0x20] sm:$0xff] %v4215_v27 }
 0x3d9   : > { %4564 = vmatmul.mubr.msk.f32.gmra.mxu1 %vm4049_vm2, %v4048_v24 }
 0x495   : > { %v4199_v57 = vpop.f32.mrf.mxu1 }
 0x496   : > { %v4212_v18 = vadd.f32 %v4199_v57, %v4041_v4 }
 0x497   : > { %v4201_v50 = vpop.f32.mrf.mxu1 }
 0x498   : > { %4220 = vst [vmem:[#allocation2 + $0x18] sm:$0xff] %v4212_v18  ;;  %v4213_v42 = vadd.f32 %v4201_v50, %v4042_v13 }
 0x499   : > { %v4205_v21 = vpop.f32.mrf.mxu1 }
 0x49a   : > { %4221 = vst [vmem:[#allocation2 + $0x10] sm:$0xff] %v4213_v42  ;;  %v4216_v9 = vadd.f32 %v4205_v21, %v4045_v23  ;;  %4229 = sbr.rel (%p4565_p6) target bundleno = 1897 (0x769), region = 60 }
 0x49b   : > { %v4207_v15 = vpop.f32.mrf.mxu1 }
 0x49c   : > { %4224 = vst [vmem:[#allocation2 + $0x28] sm:$0xff] %v4216_v9  ;;  %v4217_v10 = vadd.f32 %v4207_v15, %v4046_v46 }
 0x49e   : > { %4225 = vst [vmem:[#allocation2 + $0x38] sm:$0xff] %v4217_v10 }
 0x49f   : > { %v8227_v3 = vld [vmem:[#allocation2 + $0x8] sm:$0xff]  ;;  %v8229_v6 = vld [vmem:[#allocation2 + $0x20] sm:$0xff]  ;;  %v4230_v33 = vld [vmem:[#allocation2 + $0x30] sm:$0xff]  ;;  %v4674_v62 = vmov 0.0   ;;  %vm4675_vm3 = vmmov 0   ;;  %vm4331_vm4 = vcmask 64512  }
 0x4a0   : > { %v4243_v2 = vadd.f32 %v8229_v6, %v8227_v3  ;;  %v4231_v12 = vld [vmem:[#allocation2] sm:$0xff]  ;;  %v4232_v30 = vld [vmem:[#allocation2 + $0x18] sm:$0xff]  ;;  %4581 = vmatprep.subr.mxu0 %v4674_v62  ;;  %4585 = vmatprep.mubr.msk.f32.mxu0 %vm4675_vm3, %v4674_v62  ;;  %v4328_v54 = vld [vmem:[%s8301_s6 + $0x8] sm:$0xff]  ;;  %v4676_v24 = vmov 0  }
 0x4a1   : > { %v4238_v14 = vadd.f32 %v4231_v12, %v4230_v33  ;;  %v4233_v55 = vld [vmem:[#allocation2 + $0x10] sm:$0xff]  ;;  %v4251_v28 = vld [vmem:[%s8299_s4] sm:$0xff]  ;;  %4638 = vset.pattern.permute.xlu1 %v4676_v24  ;;  %4639 = vset.pattern.permute.xlu0 %v4676_v24  ;;  %v4330_v31 = vld [vmem:[%s8302_s7 + $0x8] sm:$0xff] }
 0x4a2   : > { %v4327_v51 = vld [vmem:[%s8301_s6] sm:$0xff] }
 0x4a3   : > { %v8231_v59 = vld [vmem:[#allocation2 + $0x28] sm:$0xff]  ;;  %v4239_v58 = vadd.f32 %v4238_v14, %v4232_v30  ;;  %4590 = vmatprep.mubr.msk.f32.mxu1 %vm4331_vm4, %v4327_v51  ;;  %v4252_v52 = vld [vmem:[%s8300_s5] sm:$0xff] }
 0x4a4   : > { %v4244_v22 = vadd.f32 %v4243_v2, %v8231_v59  ;;  %v4329_v63 = vld [vmem:[%s8302_s7] sm:$0xff] }
 0x4a5   : > { %v8235_v49 = vld [vmem:[#allocation2 + $0x38] sm:$0xff]  ;;  %v4240_v26 = vadd.f32 %v4239_v58, %v4233_v55 }
 0x4a6   : > { %v4245_v41 = vadd.f32 %v4244_v22, %v8235_v49 }
 0x4a8   : > { %4246 = vadd.xlane.f32.xlu0 %v4245_v41 }
 0x4ac   : > { %4241 = vadd.xlane.f32.xlu0 %v4240_v26 }
 0x531   : > { %v4247_v56 = vpop.xlane.xlu0 %4246 }
 0x532   : > { %v4250_v16 = vmul.f32 0.001953125, %v4247_v56 }
 0x534   : > { %4582 = vmatpush3.msra.mxu0 %v4250_v16 }
 0x535   : > { %v4242_v32 = vpop.xlane.xlu0 %4241  ;;  %4583 = vmatprep.subr.mxu0 %v4674_v62 }
 0x536   : > { %v4249_v17 = vmul.f32 0.001953125, %v4242_v32 }
 0x538   : > { %4584 = vmatpush3.msra.mxu0 %v4249_v17 }
 0x539   : > { %4586 = vmatmul.mubr.msk.f32.vlgmr.msra.gmra.mxu0 %vm4049_vm2, %v4251_v28 }
 0x5f9   : > { %v4322_v40 = vpop.f32.mrf.mxu0 }
 0x5fa   : > { %v4323_v47 = vadd.f32 %v4322_v40, %v4252_v52 }
 0x5fb   : > { %v4587_v61 = vpop.f32.mrf.mxu0 }
 0x5fc   : > { %v4326_v25 = vmax.f32 %v4323_v47, 0.0 }
 0x5fe   : > { %4588 = vmatprep.subr.mxu1 %v4326_v25 }
 0x5ff   : > { %4589 = vmatpush3.msra.mxu1 %v4326_v25 }
 0x600   : > { %4591 = vmatmul.mubr.msk.f32.vlgmr.msra.gmra.mxu1 %vm4331_vm4, %v4328_v54 }
 0x6c0   : > { %v4592_v19 = vpop.f32.mrf.mxu1 }
 0x6c1   : > { %v4410_v60 = vadd.f32 %v4592_v19, %v4330_v31 }
 0x6c2   : > { %v4404_v5 = vpop.f32.mrf.mxu1 }
 0x6c3   : > { %v4570_v37 = vmul.f32 -1.442695, %v4410_v60  ;;  %v4405_v0 = vadd.f32 %v4404_v5, %v4329_v63 }
 0x6c5   : > { %v4569_v29 = vmul.f32 -1.442695, %v4405_v0  ;;  %4640 = vpow2.f32 %v4570_v37 }
 0x6c7   : > { %4642 = vpow2.f32 %v4569_v29 }
 0x6d2   : > { %v4641_v38 = vpop.eup %4640 }
 0x6d3   : > { %v4420_v8 = vadd.f32 1.0, %v4641_v38 }
 0x6d4   : > { %v4643_v48 = vpop.eup %4642 }
 0x6d5   : > { %v4419_v20 = vadd.f32 1.0, %v4643_v48 }
 0x6d7   : > { %4644 = vrcp.f32 %v4419_v20 }
 0x6d8   : > { %4646 = vrcp.f32 %v4420_v8 }
 0x6e4   : > { %v4645_v44 = vpop.eup %4644 }
 0x6e5   : > { %4427 = vperm.xlu1 %4638, %v4645_v44   ;;  %v4647_v39 = vpop.eup %4646 }
 0x6e9   : > { %4432 = vperm.xlu1 %4638, %v4647_v39  }
 0x760   : > { %v4428_v45 = vpop.permute.xlu1 %4427 }
 0x761   : > { %v4435_v35 = vmul.f32 %v4428_v45, %v4230_v33  ;;  %v4436_v7 = vmul.f32 %v4428_v45, %v4231_v12  ;;  %v4437_v43 = vmul.f32 %v4428_v45, %v4232_v30  ;;  %v4438_v11 = vmul.f32 %v4428_v45, %v4233_v55 }
 0x763   : > { %4443 = vst [vmem:[%s8303_s8] sm:$0xff] %v4435_v35  ;;  %4444 = vst [vmem:[%s8303_s8 + $0x8] sm:$0xff] %v4436_v7 }
 0x764   : > { %4445 = vst [vmem:[%s8303_s8 + $0x10] sm:$0xff] %v4437_v43  ;;  %4446 = vst [vmem:[%s8303_s8 + $0x18] sm:$0xff] %v4438_v11  ;;  %v4433_v53 = vpop.permute.xlu1 %4432 }
 0x765   : > { %v4439_v34 = vmul.f32 %v4433_v53, %v8227_v3  ;;  %v4440_v1 = vmul.f32 %v4433_v53, %v8229_v6  ;;  %v4441_v36 = vmul.f32 %v4433_v53, %v8231_v59  ;;  %v4442_v27 = vmul.f32 %v4433_v53, %v8235_v49 }
 0x767   : > { %4447 = vst [vmem:[%s8303_s8 + $0x20] sm:$0xff] %v4439_v34  ;;  %4448 = vst [vmem:[%s8303_s8 + $0x28] sm:$0xff] %v4440_v1 }
 0x768   : > { %4449 = vst [vmem:[%s8303_s8 + $0x30] sm:$0xff] %v4441_v36  ;;  %4450 = vst [vmem:[%s8303_s8 + $0x38] sm:$0xff] %v4442_v27 }
 0x769 PF: > { %s18_s29 = sadd.s32 1, %s4670_s29   ;;  %s8456_s27 = smov %s4666_s28 }
 0x76a   : > { %p15_p7 = scmp.ge.s32.totalorder %s18_s29, 11   ;;  %s8457_s28 = smov %s8459_s30 }
 0x76c   :  { %17 = sbr.rel (!%p15_p7) target bundleno = 2 (0x2), region = 99 }

</bundles_post_ra>
